<compile_context>
chip_gen: v5e
topology: v5e:2x2
jax: 0.10.0
libtpu: 0.0.40
codegen_flags: <defaults>
</compile_context>

<pallas_src>
import jax
import jax.numpy as jnp
import numpy as np
from jax.experimental import pallas as pl
from jax.experimental.pallas import tpu as pltpu

# ---- small, module-consistent sizes (n_dim=768/n_head=12 -> 128/8 here) ----
E = 128            # n_dim
H = 8              # n_head
DH = E // H        # head dim
B = 8              # users per item
ND = 8             # description CLS rows
NC = 8             # comment CLS rows
S = ND + NC        # total key/value length
N_ITEM = 256
N_USER = 64

# Items per grid step.  Peak in-kernel VMEM ~4 MB at NB=64 (intermediates are
# (NB, S, E) f32 slabs), comfortably under the v5e 16 MiB / v7x 32 MiB scoped
# defaults while still giving M = NB*ND = 512 MXU rows per kv matmul.
NB = 64


def _semantic_latent_kernel(desc_ref, com_ref, item_ref, wd_ref, wc_ref,
                            qow_ref, hmask_ref, rows_ref, ideep_ref):
    f32 = jnp.float32
    bf16 = jnp.bfloat16
    nb = item_ref.shape[0]                     # items in this block

    rows = rows_ref[...]                       # (8, 2E) packed bias/LN rows
    bkv_d = rows[0:1, :]                       # folded [bk_d, bv_d]
    bkv_c = rows[1:2, :]                       # folded [bk_c, bv_c]
    qb = rows[2:3, 0:E]                        # q bias (pre-scaled)
    ob = rows[2:3, E:2 * E]                    # out_proj bias
    ln_g = rows[3:4, 0:E]
    ln_b = rows[3:4, E:2 * E]

    # ---- folded key/value projections: one MXU matmul per source ----
    # desc_ref: (nb*ND, E) bf16, wd: (E, 2E) = [Wk_d | Wv_d]  (likewise comment)
    kv_d = jnp.dot(desc_ref[...], wd_ref[...],
                   preferred_element_type=f32) + bkv_d          # (nb*ND, 2E)
    kv_c = jnp.dot(com_ref[...], wc_ref[...],
                   preferred_element_type=f32) + bkv_c          # (nb*NC, 2E)
    kv = jnp.concatenate([kv_d.reshape(nb, ND, 2 * E),
                          kv_c.reshape(nb, NC, 2 * E)], axis=1)  # (nb, S, 2E)
    k = kv[:, :, 0:E]                                            # (nb, S, E)
    v = kv[:, :, E:2 * E]                                        # (nb, S, E)

    # ---- q projection (1/sqrt(DH) folded into qow/qb on the host) ----
    I = item_ref[...]                                            # (nb, E) f32
    qow = qow_ref[...]                                           # (2E, E) bf16
    q = jnp.dot(I.astype(bf16), qow[0:E, :],
                preferred_element_type=f32) + qb                 # (nb, E)

    # ---- per-head attention (query length 1), lane-dense via (E,E) head mask
    # hmask[e,f] = 1 iff head(e)==head(f): the matmul computes the per-head
    # q.k score and broadcasts it across the head's lanes in one shot.
    p = q[:, None, :] * k                                        # (nb, S, E)
    scores = jnp.dot(p.reshape(nb * S, E), hmask_ref[...],
                     preferred_element_type=f32).reshape(nb, S, E)
    m = jnp.max(scores, axis=1, keepdims=True)                   # (nb, 1, E)
    ex = jnp.exp(scores - m)
    denom = jnp.sum(ex, axis=1, keepdims=True)
    w = ex / denom                                               # softmax over keys
    ctx = jnp.sum(w * v, axis=1)                                 # (nb, E)

    # ---- attention output projection + LayerNorm(eps=1e-6) + residual ----
    O = jnp.dot(ctx.astype(bf16), qow[E:2 * E, :],
                preferred_element_type=f32) + ob                 # (nb, E)
    mean = jnp.mean(O, axis=-1, keepdims=True)
    xc = O - mean
    var = jnp.mean(xc * xc, axis=-1, keepdims=True)
    O_ln = xc * jax.lax.rsqrt(var + 1e-6) * ln_g + ln_b

    ideep_ref[...] = I + O_ln                                    # (nb, E) f32


def init_params(key):
    ks = jax.random.split(key, 12)
    n = lambda k, shape, s=0.05: (s * jax.random.normal(k, shape)).astype(jnp.float32)
    return {
        "item_emb": n(ks[0], (N_ITEM, E), 0.1),
        "user_emb": n(ks[1], (N_USER, E), 0.1),
        "item_bias": n(ks[2], (N_ITEM, 1), 0.1),
        "user_bias": n(ks[3], (N_USER, 1), 0.1),
        "global_bias": jnp.float32(0.0),
        # CustomAttentionModel: xavier-normal-ish weights, zero biases
        "wk1": n(ks[4], (E, E)), "bk1": jnp.zeros((E,), jnp.float32),
        "wk2": n(ks[5], (E, E)), "bk2": jnp.zeros((E,), jnp.float32),
        "wv1": n(ks[6], (E, E)), "bv1": jnp.zeros((E,), jnp.float32),
        "wv2": n(ks[7], (E, E)), "bv2": jnp.zeros((E,), jnp.float32),
        # nn.MultiheadAttention
        "in_proj_w": n(ks[8], (3 * E, E)),
        "in_proj_b": jnp.zeros((3 * E,), jnp.float32),
        "out_proj_w": n(ks[9], (E, E)),
        "out_proj_b": jnp.zeros((E,), jnp.float32),
        # LayerNorm
        "ln_g": jnp.ones((E,), jnp.float32),
        "ln_b": jnp.zeros((E,), jnp.float32),
        # fc: E -> 1
        "fc_w": n(ks[10], (1, E)),
        "fc_b": n(ks[11], (1,), 0.1),
        # registered buffer
        "item_deep_emb": jnp.zeros((N_ITEM, E), jnp.float32),
    }


def prepare_params(params):
    """One-time host-side weight folding / re-layout (hoisted out of the jit path)."""
    f32, bf16 = jnp.float32, jnp.bfloat16
    wq, wk_in, wv_in = jnp.split(params["in_proj_w"], 3, axis=0)
    bq, bk_in, bv_in = jnp.split(params["in_proj_b"], 3, axis=0)

    wk1_t, wk2_t = params["wk1"].T, params["wk2"].T
    wv1_t, wv2_t = params["wv1"].T, params["wv2"].T
    bk1, bk2 = params["bk1"], params["bk2"]
    bv1, bv2 = params["bv1"], params["bv2"]

    # fold MHA k in-proj into the wk1/wk2 key projections:
    #   k_d = D @ (wk1.T @ wk_in.T) + (bk1 @ wk_in.T + bk_in)
    Wk_d = wk1_t @ wk_in.T
    Wk_c = wk2_t @ wk_in.T
    bk_d = bk1 @ wk_in.T + bk_in
    bk_c = bk2 @ wk_in.T + bk_in
    # fold value chain (wk* -> wv* -> MHA v in-proj):
    Wv_d = wk1_t @ wv1_t @ wv_in.T
    Wv_c = wk2_t @ wv2_t @ wv_in.T
    bv_d = (bk1 @ wv1_t + bv1) @ wv_in.T + bv_in
    bv_c = (bk2 @ wv2_t + bv2) @ wv_in.T + bv_in

    wd = jnp.concatenate([Wk_d, Wv_d], axis=1).astype(bf16)      # (E, 2E)
    wc = jnp.concatenate([Wk_c, Wv_c], axis=1).astype(bf16)      # (E, 2E)

    scale = 1.0 / float(np.sqrt(DH))                             # exact power of two here
    qow = jnp.concatenate([wq.T * scale, params["out_proj_w"].T],
                          axis=0).astype(bf16)                   # (2E, E)

    head = np.arange(E) // DH
    hmask = jnp.asarray((head[:, None] == head[None, :]).astype(np.float32))  # (E, E)

    rows = jnp.zeros((8, 2 * E), f32)
    rows = rows.at[0].set(jnp.concatenate([bk_d, bv_d]))
    rows = rows.at[1].set(jnp.concatenate([bk_c, bv_c]))
    rows = rows.at[2, 0:E].set(bq * scale)
    rows = rows.at[2, E:].set(params["out_proj_b"])
    rows = rows.at[3, 0:E].set(params["ln_g"])
    rows = rows.at[3, E:].set(params["ln_b"])

    return {
        "wd": wd, "wc": wc, "qow": qow, "hmask": hmask, "rows": rows,
        "item_emb": params["item_emb"], "user_emb": params["user_emb"],
        "item_bias": params["item_bias"], "user_bias": params["user_bias"],
        "global_bias": params["global_bias"],
        "fc_w_row": params["fc_w"][0],          # (E,)
        "fc_b": params["fc_b"],
        "item_deep_emb": params["item_deep_emb"],
    }


@jax.jit
def semantic_latent_forward(item_ids, user_ids, desc_feats, comment_feats, prep):
    """Batched forward: item_ids (N,), user_ids (N,B), desc/comment feats (N,{ND,NC},E)."""
    N = item_ids.shape[0]
    n_pad = (-N) % NB
    Np = N + n_pad
    bf16 = jnp.bfloat16

    I = prep["item_emb"][item_ids]                     # (N, E) f32
    U = prep["user_emb"][user_ids]                     # (N, B, E) f32 (stays in XLA)

    # activations streamed in bf16, flattened to lane-dense 2-D row slabs
    desc2 = desc_feats.astype(bf16).reshape(N * ND, E)
    com2 = comment_feats.astype(bf16).reshape(N * NC, E)
    I_p = I
    if n_pad:
        desc2 = jnp.pad(desc2, ((0, n_pad * ND), (0, 0)))
        com2 = jnp.pad(com2, ((0, n_pad * NC), (0, 0)))
        I_p = jnp.pad(I, ((0, n_pad), (0, 0)))

    i_deep_p = pl.pallas_call(
        _semantic_latent_kernel,
        grid=(Np // NB,),
        out_shape=jax.ShapeDtypeStruct((Np, E), jnp.float32),
        in_specs=[
            pl.BlockSpec((NB * ND, E), lambda i: (i, 0)),    # desc CLS rows (bf16)
            pl.BlockSpec((NB * NC, E), lambda i: (i, 0)),    # comment CLS rows (bf16)
            pl.BlockSpec((NB, E), lambda i: (i, 0)),         # item embeddings (f32)
            pl.BlockSpec((E, 2 * E), lambda i: (0, 0)),      # Wd       (resident)
            pl.BlockSpec((E, 2 * E), lambda i: (0, 0)),      # Wc       (resident)
            pl.BlockSpec((2 * E, E), lambda i: (0, 0)),      # [wq.T*s ; out_w.T]
            pl.BlockSpec((E, E), lambda i: (0, 0)),          # head mask (resident)
            pl.BlockSpec((8, 2 * E), lambda i: (0, 0)),      # packed bias/LN rows
        ],
        out_specs=pl.BlockSpec((NB, E), lambda i: (i, 0)),
        compiler_params=pltpu.CompilerParams(
            dimension_semantics=("parallel",)),
    )(desc2, com2, I_p, prep["wd"], prep["wc"], prep["qow"],
      prep["hmask"], prep["rows"])

    i_deep = i_deep_p[:N]                              # (N, E)

    # prediction head + scalar/bias epilogue in XLA — fuses with the gathers
    pred = jnp.einsum("nbe,ne->nb", U * prep["fc_w_row"], i_deep)
    b_i = prep["item_bias"][item_ids]                  # (N, 1)
    b_u = prep["user_bias"][user_ids][..., 0]          # (N, B)
    pred = pred + prep["fc_b"] + b_i + b_u + prep["global_bias"]

    # mirror of `item_deep_emb.data[item_id] = I_deep`
    # (last-writer-wins if item_ids ever contained duplicates)
    item_deep_emb = prep["item_deep_emb"].at[item_ids].set(i_deep)
    return pred, item_deep_emb                         # pred[n] == PyTorch `(...).T` row


def _reference_forward(item_ids, user_ids, desc_feats, comment_feats, params):
    # straightforward f32 jnp re-implementation of the PyTorch semantics (unfused)
    lin = lambda x, w, b: x @ w.T + b
    wq, wk_in, wv_in = jnp.split(params["in_proj_w"], 3, axis=0)
    bq, bk_in, bv_in = jnp.split(params["in_proj_b"], 3, axis=0)

    def one(item_id, u_ids, D, C):
        I = params["item_emb"][item_id][None, :]
        U = params["user_emb"][u_ids]
        key1 = lin(D, params["wk1"], params["bk1"])
        key2 = lin(C, params["wk2"], params["bk2"])
        val1 = lin(key1, params["wv1"], params["bv1"])
        val2 = lin(key2, params["wv2"], params["bv2"])
        keys = jnp.concatenate([key1, key2], axis=0)
        values = jnp.concatenate([val1, val2], axis=0)
        q = lin(I, wq, bq).reshape(1, H, DH).transpose(1, 0, 2)
        k = lin(keys, wk_in, bk_in).reshape(S, H, DH).transpose(1, 0, 2)
        v = lin(values, wv_in, bv_in).reshape(S, H, DH).transpose(1, 0, 2)
        sc = jnp.einsum("hqd,hkd->hqk", q, k) / jnp.sqrt(jnp.float32(DH))
        a = jax.nn.softmax(sc, axis=-1)
        ctx = jnp.einsum("hqk,hkd->hqd", a, v).transpose(1, 0, 2).reshape(1, E)
        O = lin(ctx, params["out_proj_w"], params["out_proj_b"])
        mean = jnp.mean(O, axis=-1, keepdims=True)
        var = jnp.mean((O - mean) ** 2, axis=-1, keepdims=True)
        O_ln = (O - mean) / jnp.sqrt(var + 1e-6) * params["ln_g"] + params["ln_b"]
        I_deep = I + O_ln
        pred = lin(I_deep * U, params["fc_w"], params["fc_b"])
        pred = (pred + params["item_bias"][item_id] + params["user_bias"][u_ids]
                + params["global_bias"])
        return pred[:, 0], I_deep[0]

    return jax.vmap(one)(item_ids, user_ids, desc_feats, comment_feats)


if __name__ == "__main__":
    N = 200          # deliberately not a multiple of NB to exercise padding
    root = jax.random.PRNGKey(0)
    kp, kd, kc, ku = jax.random.split(root, 4)

    params = init_params(kp)
    prep = prepare_params(params)            # one-time folding / re-layout

    item_ids = jnp.arange(N, dtype=jnp.int32)                           # distinct ids
    user_ids = jax.random.randint(ku, (N, B), 0, N_USER, jnp.int32)     # (N, B)
    desc_feats = jax.random.normal(kd, (N, ND, E), jnp.float32)         # BERT CLS stand-in
    comment_feats = jax.random.normal(kc, (N, NC, E), jnp.float32)      # BERT CLS stand-in

    pred, item_deep_emb = semantic_latent_forward(
        item_ids, user_ids, desc_feats, comment_feats, prep)
    pred = jax.block_until_ready(pred)
    item_deep_emb = jax.block_until_ready(item_deep_emb)

    ref_pred, ref_ideep = _reference_forward(
        item_ids, user_ids, desc_feats, comment_feats, params)

    assert pred.shape == (N, B)
    assert bool(jnp.all(jnp.isfinite(pred)))
    np.testing.assert_allclose(np.asarray(pred), np.asarray(ref_pred),
                               rtol=3e-2, atol=3e-2)
    np.testing.assert_allclose(np.asarray(item_deep_emb[item_ids]),
                               np.asarray(ref_ideep), rtol=5e-2, atol=5e-2)

    print("KERNEL_OK")
</pallas_src>

<mosaic_0001>
module attributes {stable_mosaic.version = 11 : i64} {
  func.func @_semantic_latent_kernel(%arg0: i32, %arg1: memref<512x128xbf16, #tpu.memory_space<vmem>>, %arg2: memref<512x128xbf16, #tpu.memory_space<vmem>>, %arg3: memref<64x128xf32, #tpu.memory_space<vmem>>, %arg4: memref<128x256xbf16, #tpu.memory_space<vmem>>, %arg5: memref<128x256xbf16, #tpu.memory_space<vmem>>, %arg6: memref<256x128xbf16, #tpu.memory_space<vmem>>, %arg7: memref<128x128xf32, #tpu.memory_space<vmem>>, %arg8: memref<8x256xf32, #tpu.memory_space<vmem>>, %arg9: memref<64x128xf32, #tpu.memory_space<vmem>>) attributes {dimension_semantics = [#tpu.dimension_semantics<parallel>], iteration_bounds = array<i64: 4>, scalar_prefetch = 0 : i64, scratch_operands = 0 : i64, tpu.core_type = #tpu.core_type<tc>, window_params = [{transform_indices = @transform_0, window_bounds = array<i64: 512, 128>}, {transform_indices = @transform_1, window_bounds = array<i64: 512, 128>}, {transform_indices = @transform_2, window_bounds = array<i64: 64, 128>}, {pipeline_mode = #tpu.pipeline_mode<synchronous>, transform_indices = @transform_3, window_bounds = array<i64: 128, 256>}, {pipeline_mode = #tpu.pipeline_mode<synchronous>, transform_indices = @transform_4, window_bounds = array<i64: 128, 256>}, {pipeline_mode = #tpu.pipeline_mode<synchronous>, transform_indices = @transform_5, window_bounds = array<i64: 256, 128>}, {pipeline_mode = #tpu.pipeline_mode<synchronous>, transform_indices = @transform_6, window_bounds = array<i64: 128, 128>}, {pipeline_mode = #tpu.pipeline_mode<synchronous>, transform_indices = @transform_7, window_bounds = array<i64: 8, 256>}, {transform_indices = @transform_8, window_bounds = array<i64: 64, 128>}]} {
    %c0 = arith.constant 0 : index
    %c0_0 = arith.constant 0 : index
    %0 = vector.load %arg8[%c0, %c0_0] : memref<8x256xf32, #tpu.memory_space<vmem>>, vector<8x256xf32>
    %1 = vector.extract_strided_slice %0 {offsets = [0, 0], sizes = [1, 256], strides = [1, 1]} : vector<8x256xf32> to vector<1x256xf32>
    %2 = vector.extract_strided_slice %0 {offsets = [1, 0], sizes = [1, 256], strides = [1, 1]} : vector<8x256xf32> to vector<1x256xf32>
    %3 = vector.extract_strided_slice %0 {offsets = [2, 0], sizes = [1, 128], strides = [1, 1]} : vector<8x256xf32> to vector<1x128xf32>
    %4 = vector.extract_strided_slice %0 {offsets = [2, 128], sizes = [1, 128], strides = [1, 1]} : vector<8x256xf32> to vector<1x128xf32>
    %5 = vector.extract_strided_slice %0 {offsets = [3, 0], sizes = [1, 128], strides = [1, 1]} : vector<8x256xf32> to vector<1x128xf32>
    %6 = vector.extract_strided_slice %0 {offsets = [3, 128], sizes = [1, 128], strides = [1, 1]} : vector<8x256xf32> to vector<1x128xf32>
    %c0_1 = arith.constant 0 : index
    %c0_2 = arith.constant 0 : index
    %7 = vector.load %arg1[%c0_1, %c0_2] : memref<512x128xbf16, #tpu.memory_space<vmem>>, vector<512x128xbf16>
    %c0_3 = arith.constant 0 : index
    %c0_4 = arith.constant 0 : index
    %8 = vector.load %arg4[%c0_3, %c0_4] : memref<128x256xbf16, #tpu.memory_space<vmem>>, vector<128x256xbf16>
    %cst = arith.constant dense<0.000000e+00> : vector<512x256xf32>
    %9 = tpu.matmul %7, %8, %cst {dimension_numbers = #tpu.dot_dimension_numbers<[1], [0], [0], [1], [0, 0, 1, 1], [], []>} : vector<512x128xbf16>, vector<128x256xbf16>, vector<512x256xf32> -> vector<512x256xf32>
    %10 = vector.broadcast %1 : vector<1x256xf32> to vector<512x256xf32>
    %11 = arith.addf %9, %10 : vector<512x256xf32>
    %c0_5 = arith.constant 0 : index
    %c0_6 = arith.constant 0 : index
    %12 = vector.load %arg2[%c0_5, %c0_6] : memref<512x128xbf16, #tpu.memory_space<vmem>>, vector<512x128xbf16>
    %c0_7 = arith.constant 0 : index
    %c0_8 = arith.constant 0 : index
    %13 = vector.load %arg5[%c0_7, %c0_8] : memref<128x256xbf16, #tpu.memory_space<vmem>>, vector<128x256xbf16>
    %cst_9 = arith.constant dense<0.000000e+00> : vector<512x256xf32>
    %14 = tpu.matmul %12, %13, %cst_9 {dimension_numbers = #tpu.dot_dimension_numbers<[1], [0], [0], [1], [0, 0, 1, 1], [], []>} : vector<512x128xbf16>, vector<128x256xbf16>, vector<512x256xf32> -> vector<512x256xf32>
    %15 = vector.broadcast %2 : vector<1x256xf32> to vector<512x256xf32>
    %16 = arith.addf %14, %15 : vector<512x256xf32>
    %17 = vector.shape_cast %11 : vector<512x256xf32> to vector<64x8x256xf32>
    %18 = vector.shape_cast %16 : vector<512x256xf32> to vector<64x8x256xf32>
    %19 = tpu.concatenate %17, %18 in 1 : vector<64x8x256xf32>, vector<64x8x256xf32> -> vector<64x16x256xf32>
    %20 = vector.extract_strided_slice %19 {offsets = [0, 0, 0], sizes = [64, 16, 128], strides = [1, 1, 1]} : vector<64x16x256xf32> to vector<64x16x128xf32>
    %21 = vector.extract_strided_slice %19 {offsets = [0, 0, 128], sizes = [64, 16, 128], strides = [1, 1, 1]} : vector<64x16x256xf32> to vector<64x16x128xf32>
    %c0_10 = arith.constant 0 : index
    %c0_11 = arith.constant 0 : index
    %22 = vector.load %arg3[%c0_10, %c0_11] : memref<64x128xf32, #tpu.memory_space<vmem>>, vector<64x128xf32>
    %c0_12 = arith.constant 0 : index
    %c0_13 = arith.constant 0 : index
    %23 = vector.load %arg6[%c0_12, %c0_13] : memref<256x128xbf16, #tpu.memory_space<vmem>>, vector<256x128xbf16>
    %24 = arith.truncf %22 : vector<64x128xf32> to vector<64x128xbf16>
    %25 = vector.extract_strided_slice %23 {offsets = [0, 0], sizes = [128, 128], strides = [1, 1]} : vector<256x128xbf16> to vector<128x128xbf16>
    %cst_14 = arith.constant dense<0.000000e+00> : vector<64x128xf32>
    %26 = tpu.matmul %24, %25, %cst_14 {dimension_numbers = #tpu.dot_dimension_numbers<[1], [0], [0], [1], [0, 0, 1, 1], [], []>} : vector<64x128xbf16>, vector<128x128xbf16>, vector<64x128xf32> -> vector<64x128xf32>
    %27 = vector.broadcast %3 : vector<1x128xf32> to vector<64x128xf32>
    %28 = arith.addf %26, %27 : vector<64x128xf32>
    %29 = vector.shape_cast %28 : vector<64x128xf32> to vector<64x1x128xf32>
    %30 = vector.broadcast %29 : vector<64x1x128xf32> to vector<64x16x128xf32>
    %31 = arith.mulf %30, %20 : vector<64x16x128xf32>
    %32 = vector.shape_cast %31 : vector<64x16x128xf32> to vector<1024x128xf32>
    %c0_15 = arith.constant 0 : index
    %c0_16 = arith.constant 0 : index
    %33 = vector.load %arg7[%c0_15, %c0_16] : memref<128x128xf32, #tpu.memory_space<vmem>>, vector<128x128xf32>
    %cst_17 = arith.constant dense<0.000000e+00> : vector<1024x128xf32>
    %34 = tpu.matmul %32, %33, %cst_17 {dimension_numbers = #tpu.dot_dimension_numbers<[1], [0], [0], [1], [0, 0, 1, 1], [], []>} : vector<1024x128xf32>, vector<128x128xf32>, vector<1024x128xf32> -> vector<1024x128xf32>
    %35 = vector.shape_cast %34 : vector<1024x128xf32> to vector<64x16x128xf32>
    %cst_18 = arith.constant dense<0xFF800000> : vector<64x128xf32>
    %36 = vector.multi_reduction <maximumf>, %35, %cst_18 [1] : vector<64x16x128xf32> to vector<64x128xf32>
    %37 = vector.shape_cast %36 : vector<64x128xf32> to vector<64x1x128xf32>
    %38 = vector.broadcast %37 : vector<64x1x128xf32> to vector<64x16x128xf32>
    %39 = arith.subf %35, %38 : vector<64x16x128xf32>
    %40 = math.exp %39 : vector<64x16x128xf32>
    %cst_19 = arith.constant dense<0.000000e+00> : vector<64x128xf32>
    %41 = vector.multi_reduction <add>, %40, %cst_19 [1] : vector<64x16x128xf32> to vector<64x128xf32>
    %42 = vector.shape_cast %41 : vector<64x128xf32> to vector<64x1x128xf32>
    %43 = vector.broadcast %42 : vector<64x1x128xf32> to vector<64x16x128xf32>
    %44 = arith.divf %40, %43 : vector<64x16x128xf32>
    %45 = arith.mulf %44, %21 : vector<64x16x128xf32>
    %cst_20 = arith.constant dense<0.000000e+00> : vector<64x128xf32>
    %46 = vector.multi_reduction <add>, %45, %cst_20 [1] : vector<64x16x128xf32> to vector<64x128xf32>
    %47 = arith.truncf %46 : vector<64x128xf32> to vector<64x128xbf16>
    %48 = vector.extract_strided_slice %23 {offsets = [128, 0], sizes = [128, 128], strides = [1, 1]} : vector<256x128xbf16> to vector<128x128xbf16>
    %cst_21 = arith.constant dense<0.000000e+00> : vector<64x128xf32>
    %49 = tpu.matmul %47, %48, %cst_21 {dimension_numbers = #tpu.dot_dimension_numbers<[1], [0], [0], [1], [0, 0, 1, 1], [], []>} : vector<64x128xbf16>, vector<128x128xbf16>, vector<64x128xf32> -> vector<64x128xf32>
    %50 = vector.broadcast %4 : vector<1x128xf32> to vector<64x128xf32>
    %51 = arith.addf %49, %50 : vector<64x128xf32>
    %cst_22 = arith.constant dense<0.000000e+00> : vector<64xf32>
    %52 = vector.multi_reduction <add>, %51, %cst_22 [1] : vector<64x128xf32> to vector<64xf32>
    %53 = vector.shape_cast %52 : vector<64xf32> to vector<64x1xf32>
    %cst_23 = arith.constant 1.280000e+02 : f32
    %54 = vector.broadcast %cst_23 : f32 to vector<64x1xf32>
    %55 = arith.divf %53, %54 : vector<64x1xf32>
    %56 = vector.broadcast %55 : vector<64x1xf32> to vector<64x128xf32>
    %57 = arith.subf %51, %56 : vector<64x128xf32>
    %58 = arith.mulf %57, %57 : vector<64x128xf32>
    %cst_24 = arith.constant dense<0.000000e+00> : vector<64xf32>
    %59 = vector.multi_reduction <add>, %58, %cst_24 [1] : vector<64x128xf32> to vector<64xf32>
    %60 = vector.shape_cast %59 : vector<64xf32> to vector<64x1xf32>
    %cst_25 = arith.constant 1.280000e+02 : f32
    %61 = vector.broadcast %cst_25 : f32 to vector<64x1xf32>
    %62 = arith.divf %60, %61 : vector<64x1xf32>
    %cst_26 = arith.constant 9.99999997E-7 : f32
    %63 = vector.broadcast %cst_26 : f32 to vector<64x1xf32>
    %64 = arith.addf %62, %63 : vector<64x1xf32>
    %65 = math.rsqrt %64 : vector<64x1xf32>
    %66 = vector.broadcast %65 : vector<64x1xf32> to vector<64x128xf32>
    %67 = arith.mulf %57, %66 : vector<64x128xf32>
    %68 = vector.broadcast %5 : vector<1x128xf32> to vector<64x128xf32>
    %69 = arith.mulf %67, %68 : vector<64x128xf32>
    %70 = vector.broadcast %6 : vector<1x128xf32> to vector<64x128xf32>
    %71 = arith.addf %69, %70 : vector<64x128xf32>
    %72 = arith.addf %22, %71 : vector<64x128xf32>
    %c0_27 = arith.constant 0 : index
    %c0_28 = arith.constant 0 : index
    %73 = vector.load %arg9[%c0_27, %c0_28] : memref<64x128xf32, #tpu.memory_space<vmem>>, vector<64x128xf32>
    tpu.vector_store %arg9[%c0_27, %c0_28], %72 {strides = array<i32>} : memref<64x128xf32, #tpu.memory_space<vmem>>, vector<64x128xf32>,
    return
  }
  func.func @transform_0(%arg0: i32) -> (i32, i32) {
    %c0_i32 = arith.constant 0 : i32
    %c0_i32_0 = arith.constant 0 : i32
    return %arg0, %c0_i32 : i32, i32
  }
  func.func @transform_1(%arg0: i32) -> (i32, i32) {
    %c0_i32 = arith.constant 0 : i32
    %c0_i32_0 = arith.constant 0 : i32
    return %arg0, %c0_i32 : i32, i32
  }
  func.func @transform_2(%arg0: i32) -> (i32, i32) {
    %c0_i32 = arith.constant 0 : i32
    %c0_i32_0 = arith.constant 0 : i32
    return %arg0, %c0_i32 : i32, i32
  }
  func.func @transform_3(%arg0: i32) -> (i32, i32) {
    %c0_i32 = arith.constant 0 : i32
    %c0_i32_0 = arith.constant 0 : i32
    %c0_i32_1 = arith.constant 0 : i32
    return %c0_i32, %c0_i32_0 : i32, i32
  }
  func.func @transform_4(%arg0: i32) -> (i32, i32) {
    %c0_i32 = arith.constant 0 : i32
    %c0_i32_0 = arith.constant 0 : i32
    %c0_i32_1 = arith.constant 0 : i32
    return %c0_i32, %c0_i32_0 : i32, i32
  }
  func.func @transform_5(%arg0: i32) -> (i32, i32) {
    %c0_i32 = arith.constant 0 : i32
    %c0_i32_0 = arith.constant 0 : i32
    %c0_i32_1 = arith.constant 0 : i32
    return %c0_i32, %c0_i32_0 : i32, i32
  }
  func.func @transform_6(%arg0: i32) -> (i32, i32) {
    %c0_i32 = arith.constant 0 : i32
    %c0_i32_0 = arith.constant 0 : i32
    %c0_i32_1 = arith.constant 0 : i32
    return %c0_i32, %c0_i32_0 : i32, i32
  }
  func.func @transform_7(%arg0: i32) -> (i32, i32) {
    %c0_i32 = arith.constant 0 : i32
    %c0_i32_0 = arith.constant 0 : i32
    %c0_i32_1 = arith.constant 0 : i32
    return %c0_i32, %c0_i32_0 : i32, i32
  }
  func.func @transform_8(%arg0: i32) -> (i32, i32) {
    %c0_i32 = arith.constant 0 : i32
    %c0_i32_0 = arith.constant 0 : i32
    return %arg0, %c0_i32 : i32, i32
  }
}

</mosaic_0001>

<bundles_post_ra>
// kernel: squeeze.1
= control target key start
LH: loop header
LB: loop body
LE: loop exit
PB: predicated region body
PF: predicated region fallthrough
CT: control target
= control target key end

     0   :  { %s477_s8 = smov 112   ;;  %s478_s9 = smov 120   ;;  %vm3_vm0 = vcmask 64512   ;;  %s969_s0 = inlined_call_operand.vmem [shape: f32[1600], index: 0, kind: input, shape index: {}]   ;;  %s970_s1 = inlined_call_operand.vmem [shape: f32[200,8], index: 1, kind: output, shape index: {}]  }
   0x1   :  { %v40_v0 = vld [vmem:[%s969_s0] sm:$0xff]   ;;  %s479_s10 = smov 104   ;;  %v362_v1 = vld [vmem:[%s969_s0 + $0x8] sm:$0x1f]   ;;  %s480_s19 = smov 96  }
   0x2   :  { %41 = vrot.lane.b32.xlu1 %v40_v0, %s477_s8  ;;  %18 = vrot.lane.b32.xlu0 %v40_v0, %s478_s9  ;;  %v354_v2 = vld [vmem:[%s969_s0 + $0x8] sm:$0x1f]   ;;  %s481_s20 = smov 88   ;;  %s482_s25 = smov 80  }
   0x3   :  { %64 = vrot.lane.b32.xlu2 %v40_v0, %s479_s10  ;;  %v370_v3 = vld [vmem:[%s969_s0 + $0x8] sm:$0x1f]   ;;  %s483_s28 = smov 72   ;;  %s484_s29 = smov 64  }
   0x4   :  { %v378_v4 = vld [vmem:[%s969_s0 + $0x8] sm:$0x1f]   ;;  %s485_s5 = smov 56   ;;  %4 = vst.msk [vmem:[%s970_s1] ss:$16 sm:$0x3] %vm3_vm0, %v40_v0  }
   0x5   :  { %v386_v5 = vld [vmem:[%s969_s0 + $0x8] sm:$0x1f]   ;;  %5 = vst.msk [vmem:[%s970_s1] ss:$16 sm:$0xc] %vm3_vm0, %v40_v0   ;;  %s486_s16 = smov 48  }
   0x6   :  { %v394_v6 = vld [vmem:[%s969_s0 + $0x8] sm:$0x1f]   ;;  %6 = vst.msk [vmem:[%s970_s1] ss:$16 sm:$0x30] %vm3_vm0, %v40_v0   ;;  %s487_s17 = smov 40  }
   0x7   :  { %v402_v7 = vld [vmem:[%s969_s0 + $0x8] sm:$0x1f]   ;;  %7 = vst.msk [vmem:[%s970_s1] ss:$16 sm:$0xc0] %vm3_vm0, %v40_v0   ;;  %s488_s22 = smov 32  }
   0x8   :  { %v410_v8 = vld [vmem:[%s969_s0 + $0x8] sm:$0xf]   ;;  %s490_s26 = smov 16   ;;  %s491_s2 = smov 8  }
   0x9   :  { %v417_v9 = vld [vmem:[%s969_s0 + $0x8] sm:$0xf]  }
   0xa   :  { %54 = vrot.lane.b32.xlu1 %v362_v1, %s477_s8  ;;  %31 = vrot.lane.b32.xlu0 %v354_v2, %s478_s9  ;;  %v424_v10 = vld [vmem:[%s969_s0 + $0x8] sm:$0xf]  }
   0xb   :  { %77 = vrot.lane.b32.xlu2 %v370_v3, %s479_s10  ;;  %v431_v11 = vld [vmem:[%s969_s0 + $0x8] sm:$0xf]  }
   0xc   :  { %v438_v12 = vld [vmem:[%s969_s0 + $0x8] sm:$0xf]  }
   0xd   :  { %v445_v13 = vld [vmem:[%s969_s0 + $0x8] sm:$0xf]  }
   0xe   :  { %v452_v14 = vld [vmem:[%s969_s0 + $0x8] sm:$0xf]  }
   0xf   :  { %v459_v15 = vld [vmem:[%s969_s0 + $0x8] sm:$0xf]  }
  0x10   :  { %v346_v46 = vld [vmem:[%s969_s0 + $0x8] sm:$0x1f]  }
  0x11   :  { %347 = vst.msk [vmem:[%s970_s1 + $0x80] ss:$16 sm:$0x3] %vm3_vm0, %v346_v46  }
  0x12   :  { %100 = vrot.lane.b32.xlu1 %v378_v4, %s480_s19  ;;  %87 = vrot.lane.b32.xlu0 %v40_v0, %s480_s19  ;;  %348 = vst.msk [vmem:[%s970_s1 + $0x80] ss:$16 sm:$0xc] %vm3_vm0, %v346_v46  }
  0x13   :  { %110 = vrot.lane.b32.xlu2 %v40_v0, %s481_s20  ;;  %349 = vst.msk [vmem:[%s970_s1 + $0xbc] sm:$0x10] %vm3_vm0, %v346_v46  }
  0x1a   :  { %133 = vrot.lane.b32.xlu1 %v40_v0, %s482_s25  ;;  %123 = vrot.lane.b32.xlu0 %v386_v5, %s481_s20 }
  0x1b   :  { %146 = vrot.lane.b32.xlu2 %v394_v6, %s482_s25  ;;  %s489_s25 = smov 24  }
  0x22   :  { %169 = vrot.lane.b32.xlu1 %v402_v7, %s483_s28  ;;  %156 = vrot.lane.b32.xlu0 %v40_v0, %s483_s28 }
  0x23   :  { %179 = vrot.lane.b32.xlu2 %v40_v0, %s484_s29 }
  0x2a   :  { %200 = vrot.lane.b32.xlu1 %v40_v0, %s485_s5  ;;  %192 = vrot.lane.b32.xlu0 %v410_v8, %s484_s29 }
  0x2b   :  { %213 = vrot.lane.b32.xlu2 %v417_v9, %s485_s5 }
  0x32   :  { %234 = vrot.lane.b32.xlu1 %v424_v10, %s486_s16  ;;  %221 = vrot.lane.b32.xlu0 %v40_v0, %s486_s16 }
  0x33   :  { %242 = vrot.lane.b32.xlu2 %v40_v0, %s487_s17 }
  0x3a   :  { %263 = vrot.lane.b32.xlu1 %v40_v0, %s488_s22  ;;  %255 = vrot.lane.b32.xlu0 %v431_v11, %s487_s17 }
  0x3b   :  { %276 = vrot.lane.b32.xlu2 %v438_v12, %s488_s22 }
  0x42   :  { %297 = vrot.lane.b32.xlu1 %v445_v13, %s489_s25  ;;  %284 = vrot.lane.b32.xlu0 %v40_v0, %s489_s25 }
  0x43   :  { %305 = vrot.lane.b32.xlu2 %v40_v0, %s490_s26 }
  0x4a   :  { %326 = vrot.lane.b32.xlu1 %v40_v0, %s491_s2  ;;  %318 = vrot.lane.b32.xlu0 %v452_v14, %s490_s26 }
  0x4b   :  { %339 = vrot.lane.b32.xlu2 %v459_v15, %s491_s2 }
  0x5d   :  { %v65_v16 = vpop.permute.xlu2 %64  }
  0x5e   :  { %366 = vst.msk [vmem:[%s970_s1 + $0x3] ss:$16 sm:$0x3] %vm3_vm0, %v65_v16  }
  0x5f   :  { %367 = vst.msk [vmem:[%s970_s1 + $0x3] ss:$16 sm:$0xc] %vm3_vm0, %v65_v16  }
  0x60   :  { %368 = vst.msk [vmem:[%s970_s1 + $0x3] ss:$16 sm:$0x30] %vm3_vm0, %v65_v16  }
  0x61   :  { %369 = vst.msk [vmem:[%s970_s1 + $0x3] ss:$16 sm:$0xc0] %vm3_vm0, %v65_v16  }
  0x65   :  { %v78_v17 = vpop.permute.xlu2 %77  }
  0x66   :  { %371 = vst.msk [vmem:[%s970_s1 + $0x83] ss:$16 sm:$0x3] %vm3_vm0, %v78_v17  }
  0x67   :  { %372 = vst.msk [vmem:[%s970_s1 + $0x83] ss:$16 sm:$0xc] %vm3_vm0, %v78_v17  }
  0x68   :  { %373 = vst.msk [vmem:[%s970_s1 + $0xbf] sm:$0x10] %vm3_vm0, %v78_v17  }
  0x6d   :  { %v111_v18 = vpop.permute.xlu2 %110  }
  0x6e   :  { %382 = vst.msk [vmem:[%s970_s1 + $0x5] ss:$16 sm:$0x3] %vm3_vm0, %v111_v18  }
  0x6f   :  { %383 = vst.msk [vmem:[%s970_s1 + $0x5] ss:$16 sm:$0xc] %vm3_vm0, %v111_v18  }
  0x70   :  { %384 = vst.msk [vmem:[%s970_s1 + $0x5] ss:$16 sm:$0x30] %vm3_vm0, %v111_v18  }
  0x71   :  { %385 = vst.msk [vmem:[%s970_s1 + $0x5] ss:$16 sm:$0xc0] %vm3_vm0, %v111_v18  }
  0x74   :  { %v42_v19 = vpop.permute.xlu1 %41   ;;  %v19_v20 = vpop.permute.xlu0 %18  }
  0x75   :  { %358 = vst.msk [vmem:[%s970_s1 + $0x2] ss:$16 sm:$0x3] %vm3_vm0, %v42_v19   ;;  %v147_v21 = vpop.permute.xlu2 %146  }
  0x76   :  { %359 = vst.msk [vmem:[%s970_s1 + $0x2] ss:$16 sm:$0xc] %vm3_vm0, %v42_v19  }
  0x77   :  { %360 = vst.msk [vmem:[%s970_s1 + $0x2] ss:$16 sm:$0x30] %vm3_vm0, %v42_v19  }
  0x78   :  { %361 = vst.msk [vmem:[%s970_s1 + $0x2] ss:$16 sm:$0xc0] %vm3_vm0, %v42_v19  }
  0x79   :  { %350 = vst.msk [vmem:[%s970_s1 + $0x1] ss:$16 sm:$0x3] %vm3_vm0, %v19_v20  }
  0x7a   :  { %351 = vst.msk [vmem:[%s970_s1 + $0x1] ss:$16 sm:$0xc] %vm3_vm0, %v19_v20  }
  0x7b   :  { %352 = vst.msk [vmem:[%s970_s1 + $0x1] ss:$16 sm:$0x30] %vm3_vm0, %v19_v20  }
  0x7c   :  { %353 = vst.msk [vmem:[%s970_s1 + $0x1] ss:$16 sm:$0xc0] %vm3_vm0, %v19_v20   ;;  %v55_v22 = vpop.permute.xlu1 %54   ;;  %v32_v23 = vpop.permute.xlu0 %31  }
  0x7d   :  { %363 = vst.msk [vmem:[%s970_s1 + $0x82] ss:$16 sm:$0x3] %vm3_vm0, %v55_v22   ;;  %v180_v24 = vpop.permute.xlu2 %179  }
  0x7e   :  { %364 = vst.msk [vmem:[%s970_s1 + $0x82] ss:$16 sm:$0xc] %vm3_vm0, %v55_v22  }
  0x7f   :  { %365 = vst.msk [vmem:[%s970_s1 + $0xbe] sm:$0x10] %vm3_vm0, %v55_v22  }
  0x80   :  { %355 = vst.msk [vmem:[%s970_s1 + $0x81] ss:$16 sm:$0x3] %vm3_vm0, %v32_v23  }
  0x81   :  { %356 = vst.msk [vmem:[%s970_s1 + $0x81] ss:$16 sm:$0xc] %vm3_vm0, %v32_v23  }
  0x82   :  { %357 = vst.msk [vmem:[%s970_s1 + $0xbd] sm:$0x10] %vm3_vm0, %v32_v23  }
  0x83   :  { %395 = vst.msk [vmem:[%s970_s1 + $0x86] ss:$16 sm:$0x3] %vm3_vm0, %v147_v21  }
  0x84   :  { %v101_v25 = vpop.permute.xlu1 %100   ;;  %v88_v26 = vpop.permute.xlu0 %87   ;;  %396 = vst.msk [vmem:[%s970_s1 + $0x86] ss:$16 sm:$0xc] %vm3_vm0, %v147_v21  }
  0x85   :  { %379 = vst.msk [vmem:[%s970_s1 + $0x84] ss:$16 sm:$0x3] %vm3_vm0, %v101_v25   ;;  %v214_v27 = vpop.permute.xlu2 %213  }
  0x86   :  { %380 = vst.msk [vmem:[%s970_s1 + $0x84] ss:$16 sm:$0xc] %vm3_vm0, %v101_v25  }
  0x87   :  { %381 = vst.msk [vmem:[%s970_s1 + $0xc0] sm:$0x10] %vm3_vm0, %v101_v25  }
  0x88   :  { %374 = vst.msk [vmem:[%s970_s1 + $0x4] ss:$16 sm:$0x3] %vm3_vm0, %v88_v26  }
  0x89   :  { %375 = vst.msk [vmem:[%s970_s1 + $0x4] ss:$16 sm:$0xc] %vm3_vm0, %v88_v26  }
  0x8a   :  { %376 = vst.msk [vmem:[%s970_s1 + $0x4] ss:$16 sm:$0x30] %vm3_vm0, %v88_v26  }
  0x8b   :  { %377 = vst.msk [vmem:[%s970_s1 + $0x4] ss:$16 sm:$0xc0] %vm3_vm0, %v88_v26  }
  0x8c   :  { %397 = vst.msk [vmem:[%s970_s1 + $0xc2] sm:$0x10] %vm3_vm0, %v147_v21   ;;  %v134_v28 = vpop.permute.xlu1 %133   ;;  %v124_v29 = vpop.permute.xlu0 %123  }
  0x8d   :  { %390 = vst.msk [vmem:[%s970_s1 + $0x6] ss:$16 sm:$0x3] %vm3_vm0, %v134_v28   ;;  %v243_v30 = vpop.permute.xlu2 %242  }
  0x8e   :  { %391 = vst.msk [vmem:[%s970_s1 + $0x6] ss:$16 sm:$0xc] %vm3_vm0, %v134_v28  }
  0x8f   :  { %392 = vst.msk [vmem:[%s970_s1 + $0x6] ss:$16 sm:$0x30] %vm3_vm0, %v134_v28  }
  0x90   :  { %393 = vst.msk [vmem:[%s970_s1 + $0x6] ss:$16 sm:$0xc0] %vm3_vm0, %v134_v28  }
  0x91   :  { %387 = vst.msk [vmem:[%s970_s1 + $0x85] ss:$16 sm:$0x3] %vm3_vm0, %v124_v29  }
  0x92   :  { %388 = vst.msk [vmem:[%s970_s1 + $0x85] ss:$16 sm:$0xc] %vm3_vm0, %v124_v29  }
  0x93   :  { %389 = vst.msk [vmem:[%s970_s1 + $0xc1] sm:$0x10] %vm3_vm0, %v124_v29  }
  0x94   :  { %406 = vst.msk [vmem:[%s970_s1 + $0x8] ss:$16 sm:$0x3] %vm3_vm0, %v180_v24   ;;  %v170_v31 = vpop.permute.xlu1 %169   ;;  %v157_v32 = vpop.permute.xlu0 %156  }
  0x95   :  { %407 = vst.msk [vmem:[%s970_s1 + $0x8] ss:$16 sm:$0xc] %vm3_vm0, %v180_v24   ;;  %v277_v33 = vpop.permute.xlu2 %276  }
  0x96   :  { %408 = vst.msk [vmem:[%s970_s1 + $0x8] ss:$16 sm:$0x30] %vm3_vm0, %v180_v24  }
  0x97   :  { %409 = vst.msk [vmem:[%s970_s1 + $0x8] ss:$16 sm:$0xc0] %vm3_vm0, %v180_v24  }
  0x98   :  { %403 = vst.msk [vmem:[%s970_s1 + $0x87] ss:$16 sm:$0x3] %vm3_vm0, %v170_v31  }
  0x99   :  { %404 = vst.msk [vmem:[%s970_s1 + $0x87] ss:$16 sm:$0xc] %vm3_vm0, %v170_v31  }
  0x9a   :  { %405 = vst.msk [vmem:[%s970_s1 + $0xc3] sm:$0x10] %vm3_vm0, %v170_v31  }
  0x9b   :  { %398 = vst.msk [vmem:[%s970_s1 + $0x7] ss:$16 sm:$0x3] %vm3_vm0, %v157_v32  }
  0x9c   :  { %399 = vst.msk [vmem:[%s970_s1 + $0x7] ss:$16 sm:$0xc] %vm3_vm0, %v157_v32   ;;  %v201_v34 = vpop.permute.xlu1 %200   ;;  %v193_v35 = vpop.permute.xlu0 %192  }
  0x9d   :  { %400 = vst.msk [vmem:[%s970_s1 + $0x7] ss:$16 sm:$0x30] %vm3_vm0, %v157_v32   ;;  %v306_v36 = vpop.permute.xlu2 %305  }
  0x9e   :  { %401 = vst.msk [vmem:[%s970_s1 + $0x7] ss:$16 sm:$0xc0] %vm3_vm0, %v157_v32  }
  0x9f   :  { %418 = vst.msk [vmem:[%s970_s1 + $0x89] ss:$16 sm:$0x3] %vm3_vm0, %v214_v27  }
  0xa0   :  { %419 = vst.msk [vmem:[%s970_s1 + $0x89] ss:$16 sm:$0xc] %vm3_vm0, %v214_v27  }
  0xa1   :  { %413 = vst.msk [vmem:[%s970_s1 + $0x9] ss:$16 sm:$0x3] %vm3_vm0, %v201_v34  }
  0xa2   :  { %414 = vst.msk [vmem:[%s970_s1 + $0x9] ss:$16 sm:$0xc] %vm3_vm0, %v201_v34  }
  0xa3   :  { %415 = vst.msk [vmem:[%s970_s1 + $0x9] ss:$16 sm:$0x30] %vm3_vm0, %v201_v34  }
  0xa4   :  { %416 = vst.msk [vmem:[%s970_s1 + $0x9] ss:$16 sm:$0xc0] %vm3_vm0, %v201_v34   ;;  %v235_v37 = vpop.permute.xlu1 %234   ;;  %v222_v38 = vpop.permute.xlu0 %221  }
  0xa5   :  { %411 = vst.msk [vmem:[%s970_s1 + $0x88] ss:$16 sm:$0x3] %vm3_vm0, %v193_v35   ;;  %v340_v39 = vpop.permute.xlu2 %339  }
  0xa6   :  { %412 = vst.msk [vmem:[%s970_s1 + $0x88] ss:$16 sm:$0xc] %vm3_vm0, %v193_v35  }
  0xa7   :  { %427 = vst.msk [vmem:[%s970_s1 + $0xb] ss:$16 sm:$0x3] %vm3_vm0, %v243_v30  }
  0xa8   :  { %428 = vst.msk [vmem:[%s970_s1 + $0xb] ss:$16 sm:$0xc] %vm3_vm0, %v243_v30  }
  0xa9   :  { %429 = vst.msk [vmem:[%s970_s1 + $0xb] ss:$16 sm:$0x30] %vm3_vm0, %v243_v30  }
  0xaa   :  { %430 = vst.msk [vmem:[%s970_s1 + $0xb] ss:$16 sm:$0xc0] %vm3_vm0, %v243_v30  }
  0xab   :  { %425 = vst.msk [vmem:[%s970_s1 + $0x8a] ss:$16 sm:$0x3] %vm3_vm0, %v235_v37  }
  0xac   :  { %426 = vst.msk [vmem:[%s970_s1 + $0x8a] ss:$16 sm:$0xc] %vm3_vm0, %v235_v37   ;;  %v264_v40 = vpop.permute.xlu1 %263   ;;  %v256_v41 = vpop.permute.xlu0 %255  }
  0xad   :  { %420 = vst.msk [vmem:[%s970_s1 + $0xa] ss:$16 sm:$0x3] %vm3_vm0, %v222_v38  }
  0xae   :  { %421 = vst.msk [vmem:[%s970_s1 + $0xa] ss:$16 sm:$0xc] %vm3_vm0, %v222_v38  }
  0xaf   :  { %422 = vst.msk [vmem:[%s970_s1 + $0xa] ss:$16 sm:$0x30] %vm3_vm0, %v222_v38  }
  0xb0   :  { %423 = vst.msk [vmem:[%s970_s1 + $0xa] ss:$16 sm:$0xc0] %vm3_vm0, %v222_v38  }
  0xb1   :  { %439 = vst.msk [vmem:[%s970_s1 + $0x8c] ss:$16 sm:$0x3] %vm3_vm0, %v277_v33  }
  0xb2   :  { %440 = vst.msk [vmem:[%s970_s1 + $0x8c] ss:$16 sm:$0xc] %vm3_vm0, %v277_v33  }
  0xb3   :  { %434 = vst.msk [vmem:[%s970_s1 + $0xc] ss:$16 sm:$0x3] %vm3_vm0, %v264_v40  }
  0xb4   :  { %435 = vst.msk [vmem:[%s970_s1 + $0xc] ss:$16 sm:$0xc] %vm3_vm0, %v264_v40   ;;  %v298_v42 = vpop.permute.xlu1 %297   ;;  %v285_v43 = vpop.permute.xlu0 %284  }
  0xb5   :  { %436 = vst.msk [vmem:[%s970_s1 + $0xc] ss:$16 sm:$0x30] %vm3_vm0, %v264_v40  }
  0xb6   :  { %437 = vst.msk [vmem:[%s970_s1 + $0xc] ss:$16 sm:$0xc0] %vm3_vm0, %v264_v40  }
  0xb7   :  { %432 = vst.msk [vmem:[%s970_s1 + $0x8b] ss:$16 sm:$0x3] %vm3_vm0, %v256_v41  }
  0xb8   :  { %433 = vst.msk [vmem:[%s970_s1 + $0x8b] ss:$16 sm:$0xc] %vm3_vm0, %v256_v41  }
  0xb9   :  { %448 = vst.msk [vmem:[%s970_s1 + $0xe] ss:$16 sm:$0x3] %vm3_vm0, %v306_v36  }
  0xba   :  { %449 = vst.msk [vmem:[%s970_s1 + $0xe] ss:$16 sm:$0xc] %vm3_vm0, %v306_v36  }
  0xbb   :  { %450 = vst.msk [vmem:[%s970_s1 + $0xe] ss:$16 sm:$0x30] %vm3_vm0, %v306_v36  }
  0xbc   :  { %451 = vst.msk [vmem:[%s970_s1 + $0xe] ss:$16 sm:$0xc0] %vm3_vm0, %v306_v36   ;;  %v327_v44 = vpop.permute.xlu1 %326   ;;  %v319_v45 = vpop.permute.xlu0 %318  }
  0xbd   :  { %446 = vst.msk [vmem:[%s970_s1 + $0x8d] ss:$16 sm:$0x3] %vm3_vm0, %v298_v42  }
  0xbe   :  { %447 = vst.msk [vmem:[%s970_s1 + $0x8d] ss:$16 sm:$0xc] %vm3_vm0, %v298_v42  }
  0xbf   :  { %441 = vst.msk [vmem:[%s970_s1 + $0xd] ss:$16 sm:$0x3] %vm3_vm0, %v285_v43  }
  0xc0   :  { %442 = vst.msk [vmem:[%s970_s1 + $0xd] ss:$16 sm:$0xc] %vm3_vm0, %v285_v43  }
  0xc1   :  { %443 = vst.msk [vmem:[%s970_s1 + $0xd] ss:$16 sm:$0x30] %vm3_vm0, %v285_v43  }
  0xc2   :  { %444 = vst.msk [vmem:[%s970_s1 + $0xd] ss:$16 sm:$0xc0] %vm3_vm0, %v285_v43  }
  0xc3   :  { %460 = vst.msk [vmem:[%s970_s1 + $0x8f] ss:$16 sm:$0x3] %vm3_vm0, %v340_v39  }
  0xc4   :  { %461 = vst.msk [vmem:[%s970_s1 + $0x8f] ss:$16 sm:$0xc] %vm3_vm0, %v340_v39  }
  0xc5   :  { %455 = vst.msk [vmem:[%s970_s1 + $0xf] ss:$16 sm:$0x3] %vm3_vm0, %v327_v44  }
  0xc6   :  { %456 = vst.msk [vmem:[%s970_s1 + $0xf] ss:$16 sm:$0xc] %vm3_vm0, %v327_v44  }
  0xc7   :  { %457 = vst.msk [vmem:[%s970_s1 + $0xf] ss:$16 sm:$0x30] %vm3_vm0, %v327_v44  }
  0xc8   :  { %458 = vst.msk [vmem:[%s970_s1 + $0xf] ss:$16 sm:$0xc0] %vm3_vm0, %v327_v44  }
  0xc9   :  { %453 = vst.msk [vmem:[%s970_s1 + $0x8e] ss:$16 sm:$0x3] %vm3_vm0, %v319_v45  }
  0xca   :  { %454 = vst.msk [vmem:[%s970_s1 + $0x8e] ss:$16 sm:$0xc] %vm3_vm0, %v319_v45  }

// kernel: semantic_latent_forward.1
= control target key start
LH: loop header
LB: loop body
LE: loop exit
PB: predicated region body
PF: predicated region fallthrough
CT: control target
= control target key end

     0   :  { %s7186_s27 = smov 0   ;;  %s11480_s0 = inlined_call_operand.vmem [shape: bf16[2048,128], index: 0, kind: input, shape index: {}]   ;;  %s11481_s1 = inlined_call_operand.vmem [shape: bf16[2048,128], index: 1, kind: input, shape index: {}]   ;;  %s11482_s2 = inlined_call_operand.vmem [shape: f32[256,128], index: 2, kind: input, shape index: {}]   ;;  %s11483_s3 = inlined_call_operand.vmem [shape: bf16[128,256], index: 3, kind: input, shape index: {}]   ;;  %s11484_s4 = inlined_call_operand.vmem [shape: bf16[128,256], index: 4, kind: input, shape index: {}]   ;;  %s11485_s5 = inlined_call_operand.vmem [shape: bf16[256,128], index: 5, kind: input, shape index: {}]   ;;  %s11486_s6 = inlined_call_operand.vmem [shape: f32[128,128], index: 6, kind: input, shape index: {}]   ;;  %s11487_s7 = inlined_call_operand.vmem [shape: f32[8,256], index: 7, kind: input, shape index: {}]   ;;  %s11488_s8 = inlined_call_operand.vmem [shape: f32[256,128], index: 8, kind: output, shape index: {}]  }
   0x1 LB: > { %s6100_s28 = sadd.s32 4294967295, %s7138_s27   ;;  %p6104_p0 = scmp.ge.s32.totalorder %s7138_s27, 1  ;;  %s7138_s27 = sphi %s7186_s27, %s18_s27  }
   0x2   : > { %p285_p1 = scmp.lt.s32.totalorder %s7138_s27, 5 }
   0x4   : > { %p286_p2 = pnand %p6104_p0, %p285_p1 }
   0x6   : > { %289 = sbr.rel (%p286_p2) target bundleno = 2243 (0x8c3), region = 52 }
   0xb   : > { %v6299_v0 = vld [vmem:[%s11483_s3 + $0x70] sm:$0xf]  ;;  %v6610_v1 = vld [vmem:[%s11483_s3 + $0x74] sm:$0xf0]  ;;  %v6291_v2 = vld [vmem:[%s11483_s3 + $0x60] sm:$0xf] }
   0xc   : > { %v6300_v3 = vor.u32 %v6610_v1, %v6299_v0  ;;  %v6608_v4 = vld [vmem:[%s11483_s3 + $0x64] sm:$0xf0]  ;;  %v6283_v6 = vld [vmem:[%s11483_s3 + $0x50] sm:$0xf]  ;;  %v6606_v7 = vld [vmem:[%s11483_s3 + $0x54] sm:$0xf0] }
   0xd   : > { %v6292_v5 = vor.u32 %v6608_v4, %v6291_v2  ;;  %v6284_v8 = vor.u32 %v6606_v7, %v6283_v6  ;;  %v6275_v9 = vld [vmem:[%s11483_s3 + $0x40] sm:$0xf]  ;;  %v6604_v10 = vld [vmem:[%s11483_s3 + $0x44] sm:$0xf0]  ;;  %v6267_v12 = vld [vmem:[%s11483_s3 + $0x30] sm:$0xf] }
   0xe   : > { %709 = vmatpush.bf16.msra.mxu0 %v6300_v3  ;;  %v6276_v11 = vor.u32 %v6604_v10, %v6275_v9  ;;  %v6602_v13 = vld [vmem:[%s11483_s3 + $0x34] sm:$0xf0]  ;;  %s6105_s29 = sshll.u32 %s6100_s28, 6  ;;  %v6259_v15 = vld [vmem:[%s11483_s3 + $0x20] sm:$0xf]  ;;  %v6665_v43 = vld [vmem:[%s11485_s5 + $0x30] sm:$0xff] }
   0xf   : > { %v6268_v14 = vor.u32 %v6602_v13, %v6267_v12  ;;  %v6600_v16 = vld [vmem:[%s11483_s3 + $0x24] sm:$0xf0]  ;;  %p330_p3 = scmp.lt.s32.totalorder %s6105_s29, 255  ;;  %v6251_v18 = vld [vmem:[%s11483_s3 + $0x10] sm:$0xf]  ;;  %v6666_v24 = vld [vmem:[%s11485_s5 + $0x38] sm:$0xff] }
  0x10   : > { %v6260_v17 = vor.u32 %v6600_v16, %v6259_v15  ;;  %v6598_v19 = vld [vmem:[%s11483_s3 + $0x14] sm:$0xf0]  ;;  %v6243_v21 = vld [vmem:[%s11483_s3] sm:$0xf]  ;;  %v6596_v22 = vld [vmem:[%s11483_s3 + $0x4] sm:$0xf0] }
  0x11   : > { %s12044_s29 = smov (!%p330_p3, %s6105_s29), 255  ;;  %v6252_v20 = vor.u32 %v6598_v19, %v6251_v18  ;;  %v6244_v23 = vor.u32 %v6596_v22, %v6243_v21  ;;  %v6609_v27 = vld [vmem:[%s11483_s3 + $0x74] sm:$0xf]  ;;  %v6301_v28 = vld [vmem:[%s11483_s3 + $0x78] sm:$0xf0]  ;;  %v6664_v57 = vld [vmem:[%s11485_s5 + $0x28] sm:$0xff] }
  0x12   : > { %710 = vmatpush.bf16.msra.mxu0 %v6292_v5  ;;  %s6106_s20 = sshll.u32 %s12044_s29, 2  ;;  %v6304_v29 = vor.u32 %v6609_v27, %v6301_v28  ;;  %v6607_v30 = vld [vmem:[%s11483_s3 + $0x64] sm:$0xf]  ;;  %v6293_v31 = vld [vmem:[%s11483_s3 + $0x68] sm:$0xf0]  ;;  %s6109_s18 = sshll.u32 %s6100_s28, 3 }
  0x13   : > { %s7252_s23 = scalar_lea.vmem %s11480_s0, %s6106_s20  ;;  %v6296_v32 = vor.u32 %v6607_v30, %v6293_v31  ;;  %v6605_v33 = vld [vmem:[%s11483_s3 + $0x54] sm:$0xf]  ;;  %v6285_v34 = vld [vmem:[%s11483_s3 + $0x58] sm:$0xf0]  ;;  %v6603_v36 = vld [vmem:[%s11483_s3 + $0x44] sm:$0xf]  ;;  %s7447_s13 = scalar_lea.vmem %s11481_s1, %s6106_s20 }
  0x14   : > { %v6563_v25 = vld [vmem:[%s7252_s23] sm:$0xff]  ;;  %v6564_v26 = vld [vmem:[%s7252_s23 + $0x8] sm:$0xff]  ;;  %878 = vmatpush.bf16.msra.mxu2 %v6304_v29  ;;  %6675 = vmatpush.bf16.msra.mxu3 %v6304_v29  ;;  %v6288_v35 = vor.u32 %v6605_v33, %v6285_v34  ;;  %v6565_v39 = vld [vmem:[%s7252_s23 + $0x10] sm:$0xff]  ;;  %p342_p4 = scmp.lt.s32.totalorder %s6109_s18, 31 }
  0x15   : > { %v6277_v37 = vld [vmem:[%s11483_s3 + $0x48] sm:$0xf0]  ;;  %v6601_v40 = vld [vmem:[%s11483_s3 + $0x34] sm:$0xf]  ;;  %v6269_v41 = vld [vmem:[%s11483_s3 + $0x38] sm:$0xf0] }
  0x16   : > { %711 = vmatpush.bf16.msra.mxu0 %v6284_v8  ;;  %v6280_v38 = vor.u32 %v6603_v36, %v6277_v37  ;;  %v6272_v42 = vor.u32 %v6601_v40, %v6269_v41  ;;  %v6599_v44 = vld [vmem:[%s11483_s3 + $0x24] sm:$0xf]  ;;  %v6261_v45 = vld [vmem:[%s11483_s3 + $0x28] sm:$0xf0]  ;;  %v6597_v47 = vld [vmem:[%s11483_s3 + $0x14] sm:$0xf] }
  0x17   : > { %v6264_v46 = vor.u32 %v6599_v44, %v6261_v45  ;;  %v6253_v48 = vld [vmem:[%s11483_s3 + $0x18] sm:$0xf0]  ;;  %v6595_v50 = vld [vmem:[%s11483_s3 + $0x4] sm:$0xf]  ;;  %v6245_v51 = vld [vmem:[%s11483_s3 + $0x8] sm:$0xf0] }
  0x18   : > { %879 = vmatpush.bf16.msra.mxu2 %v6296_v32  ;;  %6676 = vmatpush.bf16.msra.mxu3 %v6296_v32  ;;  %v6256_v49 = vor.u32 %v6597_v47, %v6253_v48  ;;  %v6248_v52 = vor.u32 %v6595_v50, %v6245_v51  ;;  %v6566_v53 = vld [vmem:[%s7252_s23 + $0x18] sm:$0xff]  ;;  %v6567_v54 = vld [vmem:[%s7252_s23 + $0x20] sm:$0xff]  ;;  %v6568_v55 = vld [vmem:[%s7252_s23 + $0x28] sm:$0xff]  ;;  %s12046_s18 = smov (!%p342_p4, %s6109_s18), 31 }
  0x19   : > { %v6569_v56 = vld [vmem:[%s7252_s23 + $0x30] sm:$0xff]  ;;  %v6570_v58 = vld [vmem:[%s7252_s23 + $0x38] sm:$0xff]  ;;  %v6571_v59 = vld [vmem:[%s7252_s23 + $0x40] sm:$0xff]  ;;  %s6110_s28 = sshll.u32 %s12046_s18, 3 }
  0x1a   : > { %712 = vmatpush.bf16.msra.mxu0 %v6276_v11  ;;  %v6572_v62 = vld [vmem:[%s7252_s23 + $0x48] sm:$0xff]  ;;  %v6573_v1 = vld [vmem:[%s7252_s23 + $0x50] sm:$0xff]  ;;  %v6658_v4 = vld [vmem:[%s11484_s4 + $0x74] sm:$0xf0]  ;;  %s7673_s21 = scalar_lea.vmem %s11482_s2, %s6110_s28  ;;  %s11400_s10 = scalar_lea.vmem %s11488_s8, %s6110_s28 }
  0x1b   : > { %v6491_v3 = vld [vmem:[%s11484_s4 + $0x70] sm:$0xf]  ;;  %v6663_v6 = vld [vmem:[%s11485_s5 + $0x20] sm:$0xff]  ;;  %v6574_v8 = vld [vmem:[%s7252_s23 + $0x58] sm:$0xff] }
  0x1c   : > { %880 = vmatpush.bf16.msra.mxu2 %v6288_v35  ;;  %6677 = vmatpush.bf16.msra.mxu3 %v6288_v35  ;;  %v6492_v5 = vor.u32 %v6658_v4, %v6491_v3  ;;  %v6483_v12 = vld [vmem:[%s11484_s4 + $0x60] sm:$0xf]  ;;  %v6656_v13 = vld [vmem:[%s11484_s4 + $0x64] sm:$0xf0]  ;;  %v6577_v18 = vld [vmem:[%s7252_s23 + $0x70] sm:$0xff] }
  0x1d   : > { %v6575_v16 = vld [vmem:[%s7252_s23 + $0x60] sm:$0xff]  ;;  %v6576_v22 = vld [vmem:[%s7252_s23 + $0x68] sm:$0xff]  ;;  %v6475_v27 = vld [vmem:[%s11484_s4 + $0x50] sm:$0xf] }
  0x1e   : > { %713 = vmatpush.bf16.msra.mxu0 %v6268_v14  ;;  %v6484_v14 = vor.u32 %v6656_v13, %v6483_v12  ;;  %v6654_v28 = vld [vmem:[%s11484_s4 + $0x54] sm:$0xf0]  ;;  %v6579_v32 = vld [vmem:[%s7252_s23 + $0x80] sm:$0xff]  ;;  %v6652_v40 = vld [vmem:[%s11484_s4 + $0x44] sm:$0xf0] }
  0x1f   : > { %v6476_v29 = vor.u32 %v6654_v28, %v6475_v27  ;;  %v6662_v33 = vld [vmem:[%s11485_s5 + $0x18] sm:$0xff]  ;;  %v6581_v48 = vld [vmem:[%s7252_s23 + $0x90] sm:$0xff]  ;;  %v6451_v50 = vld [vmem:[%s11484_s4 + $0x20] sm:$0xf] }
  0x20   : > { %881 = vmatpush.bf16.msra.mxu2 %v6280_v38  ;;  %6678 = vmatpush.bf16.msra.mxu3 %v6280_v38  ;;  %v6580_v38 = vld [vmem:[%s7252_s23 + $0x88] sm:$0xff]  ;;  %v6650_v47 = vld [vmem:[%s11484_s4 + $0x34] sm:$0xf0]  ;;  %v7452_v3 = vld [vmem:[%s7447_s13] sm:$0xff] }
  0x21   : > { %v6648_v51 = vld [vmem:[%s11484_s4 + $0x24] sm:$0xf0]  ;;  %v6582_v4 = vld [vmem:[%s7252_s23 + $0x98] sm:$0xff]  ;;  %v7481_v28 = vld [vmem:[%s7447_s13 + $0x10] sm:$0xff] }
  0x22   : > { %714 = vmatpush.bf16.msra.mxu0 %v6260_v17  ;;  %v7465_v13 = vld [vmem:[%s7447_s13 + $0x8] sm:$0xff] }
  0x24   : > { %882 = vmatpush.bf16.msra.mxu2 %v6272_v42  ;;  %6679 = vmatpush.bf16.msra.mxu3 %v6272_v42 }
  0x26   : > { %715 = vmatpush.bf16.msra.mxu0 %v6252_v20 }
  0x28   : > { %883 = vmatpush.bf16.msra.mxu2 %v6264_v46  ;;  %6680 = vmatpush.bf16.msra.mxu3 %v6264_v46  ;;  %v6459_v46 = vld [vmem:[%s11484_s4 + $0x30] sm:$0xf] }
  0x2a   : > { %716 = vmatpush.bf16.msra.mxu0 %v6244_v23 }
  0x2c   : > { %884 = vmatpush.bf16.msra.mxu2 %v6256_v49  ;;  %6681 = vmatpush.bf16.msra.mxu3 %v6256_v49  ;;  %v6460_v49 = vor.u32 %v6650_v47, %v6459_v46 }
  0x2d   : > { %717 = vmatmul.bf16.vlgmr.msra.gmra.mxu0 %v6563_v25 }
  0x2e   : > { %1832 = vmatpush.bf16.msrb.mxu0 %v6666_v24  ;;  %v6578_v24 = vld [vmem:[%s7252_s23 + $0x78] sm:$0xff] }
  0x30   : > { %885 = vmatpush.bf16.msra.mxu2 %v6248_v52  ;;  %6682 = vmatpush.bf16.msra.mxu3 %v6248_v52  ;;  %v6452_v52 = vor.u32 %v6648_v51, %v6451_v50  ;;  %v6586_v50 = vld [vmem:[%s7252_s23 + $0xb8] sm:$0xff] }
  0x32   : > { %1833 = vmatpush.bf16.msrb.mxu0 %v6665_v43 }
  0x33   : > { %886 = vmatmul.bf16.vlgmr.msra.gmra.mxu2 %v6563_v25  ;;  %956 = vmatmul.bf16.vlgmr.msra.gmra.mxu3 %v6577_v18 }
  0x34   : > { %1401 = vmatpush.bf16.msrb.mxu2 %v6492_v5 }
  0x36   : > { %1834 = vmatpush.bf16.msrb.mxu0 %v6664_v57 }
  0x38   : > { %1402 = vmatpush.bf16.msrb.mxu2 %v6484_v14  ;;  %v6583_v14 = vld [vmem:[%s7252_s23 + $0xa0] sm:$0xff] }
  0x3a   : > { %1835 = vmatpush.bf16.msrb.mxu0 %v6663_v6 }
  0x3c   : > { %1403 = vmatpush.bf16.msrb.mxu2 %v6476_v29  ;;  %v6584_v29 = vld [vmem:[%s7252_s23 + $0xa8] sm:$0xff] }
  0x3d   : > { %722 = vmatmul.bf16.gmra.mxu0 %v6564_v26 }
  0x3e   : > { %1836 = vmatpush.bf16.msrb.mxu0 %v6662_v33 }
  0x43   : > { %891 = vmatmul.bf16.gmra.mxu2 %v6564_v26  ;;  %961 = vmatmul.bf16.gmra.mxu3 %v6578_v24 }
  0x4d   : > { %727 = vmatmul.bf16.gmra.mxu0 %v6565_v39 }
  0x53   : > { %896 = vmatmul.bf16.gmra.mxu2 %v6565_v39  ;;  %966 = vmatmul.bf16.gmra.mxu3 %v6579_v32  ;;  %v6467_v39 = vld [vmem:[%s11484_s4 + $0x40] sm:$0xf] }
  0x54   : > { %v6468_v41 = vor.u32 %v6652_v40, %v6467_v39  ;;  %v7492_v39 = vld [vmem:[%s7447_s13 + $0x18] sm:$0xff]  ;;  %v6585_v40 = vld [vmem:[%s7252_s23 + $0xb0] sm:$0xff] }
  0x56   : > { %1404 = vmatpush.bf16.msrb.mxu2 %v6468_v41 }
  0x5a   : > { %1405 = vmatpush.bf16.msrb.mxu2 %v6460_v49  ;;  %v7505_v49 = vld [vmem:[%s7447_s13 + $0x20] sm:$0xff] }
  0x5d   : > { %732 = vmatmul.bf16.gmra.mxu0 %v6566_v53 }
  0x5e   : > { %1406 = vmatpush.bf16.msrb.mxu2 %v6452_v52 }
  0x63   : > { %901 = vmatmul.bf16.gmra.mxu2 %v6566_v53  ;;  %971 = vmatmul.bf16.gmra.mxu3 %v6580_v38 }
  0x6d   : > { %737 = vmatmul.bf16.gmra.mxu0 %v6567_v54 }
  0x73   : > { %906 = vmatmul.bf16.gmra.mxu2 %v6567_v54  ;;  %976 = vmatmul.bf16.gmra.mxu3 %v6581_v48 }
  0x7d   : > { %742 = vmatmul.bf16.gmra.mxu0 %v6568_v55 }
  0x83   : > { %911 = vmatmul.bf16.gmra.mxu2 %v6568_v55  ;;  %v6443_v55 = vld [vmem:[%s11484_s4 + $0x10] sm:$0xf]  ;;  %981 = vmatmul.bf16.gmra.mxu3 %v6582_v4 }
  0x8d   : > { %747 = vmatmul.bf16.gmra.mxu0 %v6569_v56 }
  0x93   : > { %916 = vmatmul.bf16.gmra.mxu2 %v6569_v56  ;;  %v6646_v56 = vld [vmem:[%s11484_s4 + $0x14] sm:$0xf0]  ;;  %986 = vmatmul.bf16.gmra.mxu3 %v6583_v14 }
  0x94   : > { %v6444_v57 = vor.u32 %v6646_v56, %v6443_v55  ;;  %v7516_v56 = vld [vmem:[%s7447_s13 + $0x28] sm:$0xff] }
  0x96   : > { %1407 = vmatpush.bf16.msrb.mxu2 %v6444_v57  ;;  %v6587_v57 = vld [vmem:[%s7252_s23 + $0xc0] sm:$0xff] }
  0x9d   : > { %752 = vmatmul.bf16.gmra.mxu0 %v6570_v58 }
  0xa3   : > { %921 = vmatmul.bf16.gmra.mxu2 %v6570_v58  ;;  %v6435_v58 = vld [vmem:[%s11484_s4] sm:$0xf]  ;;  %991 = vmatmul.bf16.gmra.mxu3 %v6584_v29 }
  0xaa   : > { %v7320_v60 = vpop.f32.mrf.mxu0 }
  0xad   : > { %757 = vmatmul.bf16.gmra.mxu0 %v6571_v59 }
  0xb2   : > { %v7322_v61 = vpop.f32.mrf.mxu0 }
  0xb3   : > { %926 = vmatmul.bf16.gmra.mxu2 %v6571_v59  ;;  %v6644_v59 = vld [vmem:[%s11484_s4 + $0x4] sm:$0xf0]  ;;  %996 = vmatmul.bf16.gmra.mxu3 %v6585_v40 }
  0xb6   : > { %v7346_v10 = vpop.f32.mrf.mxu2 }
  0xb7   : > { %11543 = vst [vmem:[#allocation2_spill] sm:$0xff] %v7346_v10  ;;  %v7637_v10 = vld [vmem:[%s7447_s13 + $0x68] sm:$0xff] }
  0xb8   : > { %11598 = vst [vmem:[#allocation57_spill] sm:$0xff] %v7637_v10 }
  0xba   : > { %v7325_v63 = vpop.f32.mrf.mxu0 }
  0xbd   : > { %762 = vmatmul.bf16.gmra.mxu0 %v6572_v62 }
  0xbe   : > { %v7356_v15 = vpop.f32.mrf.mxu2 }
  0xbf   : > { %11544 = vst [vmem:[#allocation3_spill] sm:$0xff] %v7356_v15 }
  0xc2   : > { %v7327_v0 = vpop.f32.mrf.mxu0 }
  0xc3   : > { %931 = vmatmul.bf16.gmra.mxu2 %v6572_v62  ;;  %v6436_v62 = vor.u32 %v6644_v59, %v6435_v58  ;;  %1001 = vmatmul.bf16.gmra.mxu3 %v6586_v50  ;;  %v6660_v59 = vld [vmem:[%s11485_s5 + $0x8] sm:$0xff] }
  0xc5   : > { %1408 = vmatpush.bf16.msrb.mxu2 %v6436_v62 }
  0xc6   : > { %v7362_v19 = vpop.f32.mrf.mxu2 }
  0xc7   : > { %11545 = vst [vmem:[#allocation4_spill] sm:$0xff] %v7362_v19  ;;  %v7622_v19 = vld [vmem:[%s7447_s13 + $0x60] sm:$0xff] }
  0xc8   : > { %11593 = vst [vmem:[#allocation52_spill] sm:$0xff] %v7622_v19 }
  0xca   : > { %v7330_v2 = vpop.f32.mrf.mxu0 }
  0xcd   : > { %767 = vmatmul.bf16.gmra.mxu0 %v6573_v1 }
  0xce   : > { %v7366_v21 = vpop.f32.mrf.mxu2 }
  0xcf   : > { %11546 = vst [vmem:[#allocation5_spill] sm:$0xff] %v7366_v21 }
  0xd2   : > { %v7341_v7 = vpop.f32.mrf.mxu0 }
  0xd3   : > { %936 = vmatmul.bf16.gmra.mxu2 %v6573_v1  ;;  %1006 = vmatmul.bf16.gmra.mxu3 %v6587_v57 }
  0xd6   : > { %v7372_v25 = vpop.f32.mrf.mxu2 }
  0xd7   : > { %11547 = vst [vmem:[#allocation6_spill] sm:$0xff] %v7372_v25  ;;  %v6592_v25 = vld [vmem:[%s7252_s23 + $0xe8] sm:$0xff] }
  0xda   : > { %v7344_v9 = vpop.f32.mrf.mxu0 }
  0xdd   : > { %772 = vmatmul.bf16.gmra.mxu0 %v6574_v8 }
  0xde   : > { %v7382_v30 = vpop.f32.mrf.mxu2 }
  0xdf   : > { %11548 = vst [vmem:[#allocation7_spill] sm:$0xff] %v7382_v30  ;;  %v7605_v30 = vld [vmem:[%s7447_s13 + $0x58] sm:$0xff] }
  0xe0   : > { %11588 = vst [vmem:[#allocation47_spill] sm:$0xff] %v7605_v30 }
  0xe2   : > { %v7348_v11 = vpop.f32.mrf.mxu0 }
  0xe3   : > { %941 = vmatmul.bf16.gmra.mxu2 %v6574_v8 }
  0xe6   : > { %v7390_v34 = vpop.f32.mrf.mxu2 }
  0xe7   : > { %11549 = vst [vmem:[#allocation8_spill] sm:$0xff] %v7390_v34 }
  0xea   : > { %v7359_v17 = vpop.f32.mrf.mxu0 }
  0xed   : > { %777 = vmatmul.bf16.gmra.mxu0 %v6575_v16 }
  0xee   : > { %v7394_v36 = vpop.f32.mrf.mxu2 }
  0xef   : > { %11550 = vst [vmem:[#allocation9_spill] sm:$0xff] %v7394_v36 }
  0xf2   : > { %v7364_v20 = vpop.f32.mrf.mxu0 }
  0xf3   : > { %946 = vmatmul.bf16.gmra.mxu2 %v6575_v16  ;;  %v6661_v16 = vld [vmem:[%s11485_s5 + $0x10] sm:$0xff] }
  0xf4   : > { %1837 = vmatpush.bf16.msrb.mxu0 %v6661_v16  ;;  %v7532_v16 = vld [vmem:[%s7447_s13 + $0x30] sm:$0xff] }
  0xf6   : > { %v7405_v42 = vpop.f32.mrf.mxu2 }
  0xf7   : > { %11551 = vst [vmem:[#allocation10_spill] sm:$0xff] %v7405_v42  ;;  %v7588_v42 = vld [vmem:[%s7447_s13 + $0x50] sm:$0xff] }
  0xf8   : > { %1838 = vmatpush.bf16.msrb.mxu0 %v6660_v59  ;;  %11582 = vst [vmem:[#allocation41_spill] sm:$0xff] %v7588_v42 }
  0xfa   : > { %v7369_v23 = vpop.f32.mrf.mxu0 }
  0xfd   : > { %782 = vmatmul.bf16.gmra.mxu0 %v6576_v22 }
  0xfe   : > { %v7409_v44 = vpop.f32.mrf.mxu2 }
  0xff   : > { %11552 = vst [vmem:[#allocation11_spill] sm:$0xff] %v7409_v44 }
 0x102   : > { %v7374_v26 = vpop.f32.mrf.mxu0 }
 0x103   : > { %951 = vmatmul.bf16.gmra.mxu2 %v6576_v22 }
 0x106   : > { %v7428_v54 = vpop.f32.mrf.mxu2 }
 0x107   : > { %11553 = vst [vmem:[#allocation12_spill] sm:$0xff] %v7428_v54  ;;  %v6590_v54 = vld [vmem:[%s7252_s23 + $0xd8] sm:$0xff] }
 0x10a   : > { %v7384_v31 = vpop.f32.mrf.mxu0 }
 0x10d   : > { %787 = vmatmul.bf16.gmra.mxu0 %v6577_v18 }
 0x10e   : > { %v7455_v5 = vpop.f32.mrf.mxu2 }
 0x10f   : > { %11554 = vst [vmem:[#allocation13_spill] sm:$0xff] %v7455_v5 }
 0x112   : > { %v7392_v35 = vpop.f32.mrf.mxu0 }
 0x113   : > { %1409 = vmatmul.bf16.vlgmr.msrb.gmra.mxu2 %v7452_v3 }
 0x116   : > { %v7460_v8 = vpop.f32.mrf.mxu2 }
 0x117   : > { %11556 = vst [vmem:[#allocation15_spill] sm:$0xff] %v7460_v8 }
 0x11a   : > { %v7396_v37 = vpop.f32.mrf.mxu0 }
 0x11d   : > { %792 = vmatmul.bf16.gmra.mxu0 %v6578_v24 }
 0x11e   : > { %v7472_v18 = vpop.f32.mrf.mxu2 }
 0x11f   : > { %11558 = vst [vmem:[#allocation17_spill] sm:$0xff] %v7472_v18  ;;  %v6589_v18 = vld [vmem:[%s7252_s23 + $0xd0] sm:$0xff] }
 0x122   : > { %v7407_v43 = vpop.f32.mrf.mxu0 }
 0x123   : > { %1414 = vmatmul.bf16.gmra.mxu2 %v7465_v13 }
 0x126   : > { %v7478_v27 = vpop.f32.mrf.mxu2 }
 0x127   : > { %11559 = vst [vmem:[#allocation18_spill] sm:$0xff] %v7478_v27  ;;  %v7562_v27 = vpop.f32.mrf.mxu3 }
 0x128   : > { %11574 = vst [vmem:[#allocation33_spill] sm:$0xff] %v7562_v27 }
 0x12a   : > { %v7411_v45 = vpop.f32.mrf.mxu0 }
 0x12d   : > { %797 = vmatmul.bf16.gmra.mxu0 %v6579_v32 }
 0x12e   : > { %v7487_v33 = vpop.f32.mrf.mxu2 }
 0x12f   : > { %11560 = vst [vmem:[#allocation19_spill] sm:$0xff] %v7487_v33 }
 0x132   : > { %v7426_v53 = vpop.f32.mrf.mxu0 }
 0x133   : > { %1419 = vmatmul.bf16.gmra.mxu2 %v7481_v28 }
 0x136   : > { %v7496_v41 = vpop.f32.mrf.mxu2 }
 0x137   : > { %11561 = vst [vmem:[#allocation20_spill] sm:$0xff] %v7496_v41 }
 0x13a   : > { %v7449_v1 = vpop.f32.mrf.mxu0 }
 0x13d   : > { %802 = vmatmul.bf16.gmra.mxu0 %v6580_v38 }
 0x13e   : > { %v7500_v47 = vpop.f32.mrf.mxu2 }
 0x13f   : > { %11562 = vst [vmem:[#allocation21_spill] sm:$0xff] %v7500_v47 }
 0x142   : > { %v7458_v6 = vpop.f32.mrf.mxu0 }
 0x143   : > { %11555 = vst [vmem:[#allocation14_spill] sm:$0xff] %v7458_v6  ;;  %1424 = vmatmul.bf16.gmra.mxu2 %v7492_v39 }
 0x146   : > { %v7511_v52 = vpop.f32.mrf.mxu2 }
 0x147   : > { %11563 = vst [vmem:[#allocation22_spill] sm:$0xff] %v7511_v52 }
 0x14a   : > { %v7462_v12 = vpop.f32.mrf.mxu0 }
 0x14b   : > { %11557 = vst [vmem:[#allocation16_spill] sm:$0xff] %v7462_v12 }
 0x14d   : > { %807 = vmatmul.bf16.gmra.mxu0 %v6581_v48 }
 0x14e   : > { %v7519_v58 = vpop.f32.mrf.mxu2 }
 0x14f   : > { %11564 = vst [vmem:[#allocation23_spill] sm:$0xff] %v7519_v58 }
 0x152   : > { %v7474_v22 = vpop.f32.mrf.mxu0 }
 0x153   : > { %1429 = vmatmul.bf16.gmra.mxu2 %v7505_v49 }
 0x15a   : > { %v7476_v24 = vpop.f32.mrf.mxu0 }
 0x15d   : > { %812 = vmatmul.bf16.gmra.mxu0 %v6582_v4  ;;  %v7527_v4 = vpop.f32.mrf.mxu2 }
 0x15e   : > { %11565 = vst [vmem:[#allocation24_spill] sm:$0xff] %v7527_v4  ;;  %v7545_v4 = vld [vmem:[%s7447_s13 + $0x38] sm:$0xff] }
 0x162   : > { %v7485_v32 = vpop.f32.mrf.mxu0 }
 0x163   : > { %1434 = vmatmul.bf16.gmra.mxu2 %v7516_v56 }
 0x16a   : > { %v7489_v38 = vpop.f32.mrf.mxu0 }
 0x16d   : > { %817 = vmatmul.bf16.gmra.mxu0 %v6583_v14 }
 0x172   : > { %v7498_v46 = vpop.f32.mrf.mxu0 }
 0x173   : > { %1439 = vmatmul.bf16.gmra.mxu2 %v7532_v16 }
 0x17a   : > { %v7502_v48 = vpop.f32.mrf.mxu0 }
 0x17d   : > { %822 = vmatmul.bf16.gmra.mxu0 %v6584_v29  ;;  %v6588_v29 = vld [vmem:[%s7252_s23 + $0xc8] sm:$0xff] }
 0x17e   : > { %1011 = vmatmul.bf16.gmra.mxu3 %v6588_v29 }
 0x182   : > { %v7509_v51 = vpop.f32.mrf.mxu0 }
 0x183   : > { %1444 = vmatmul.bf16.gmra.mxu2 %v7545_v4 }
 0x18a   : > { %v7513_v55 = vpop.f32.mrf.mxu0 }
 0x18d   : > { %827 = vmatmul.bf16.gmra.mxu0 %v6585_v40  ;;  %v7536_v40 = vpop.f32.mrf.mxu2 }
 0x18e   : > { %11566 = vst [vmem:[#allocation25_spill] sm:$0xff] %v7536_v40  ;;  %v7555_v40 = vld [vmem:[%s7447_s13 + $0x40] sm:$0xff] }
 0x192   : > { %v7525_v62 = vpop.f32.mrf.mxu0 }
 0x193   : > { %1449 = vmatmul.bf16.gmra.mxu2 %v7555_v40 }
 0x195   : > { %v7542_v52 = vpop.f32.mrf.mxu2 }
 0x196   : > { %11568 = vst [vmem:[#allocation27_spill] sm:$0xff] %v7542_v52 }
 0x19a   : > { %v7529_v14 = vpop.f32.mrf.mxu0 }
 0x19d   : > { %832 = vmatmul.bf16.gmra.mxu0 %v6586_v50  ;;  %v7550_v50 = vpop.f32.mrf.mxu2 }
 0x19e   : > { %11570 = vst [vmem:[#allocation29_spill] sm:$0xff] %v7550_v50  ;;  %v7570_v50 = vld [vmem:[%s7447_s13 + $0x48] sm:$0xff] }
 0x1a2   : > { %v7538_v58 = vpop.f32.mrf.mxu0 }
 0x1a3   : > { %1454 = vmatmul.bf16.gmra.mxu2 %v7570_v50 }
 0x1a5   : > { %v7558_v33 = vpop.f32.mrf.mxu2 }
 0x1a6   : > { %11572 = vst [vmem:[#allocation31_spill] sm:$0xff] %v7558_v33  ;;  %v7576_v33 = vpop.f32.mrf.mxu3  ;;  %1016 = vmatmul.bf16.gmra.mxu3 %v6589_v18 }
 0x1a7   : > { %11577 = vst [vmem:[#allocation36_spill] sm:$0xff] %v7576_v33 }
 0x1aa   : > { %v7540_v59 = vpop.f32.mrf.mxu0 }
 0x1ab   : > { %11567 = vst [vmem:[#allocation26_spill] sm:$0xff] %v7540_v59 }
 0x1ad   : > { %837 = vmatmul.bf16.gmra.mxu0 %v6587_v57  ;;  %v7564_v57 = vpop.f32.mrf.mxu2 }
 0x1ae   : > { %11575 = vst [vmem:[#allocation34_spill] sm:$0xff] %v7564_v57  ;;  %v7582_v5 = vpop.f32.mrf.mxu3 }
 0x1af   : > { %11580 = vst [vmem:[#allocation39_spill] sm:$0xff] %v7582_v5 }
 0x1b2   : > { %v7548_v47 = vpop.f32.mrf.mxu0 }
 0x1b3   : > { %11569 = vst [vmem:[#allocation28_spill] sm:$0xff] %v7548_v47  ;;  %1459 = vmatmul.bf16.gmra.mxu2 %v7588_v42 }
 0x1b5   : > { %v7580_v57 = vpop.f32.mrf.mxu2 }
 0x1b6   : > { %11579 = vst [vmem:[#allocation38_spill] sm:$0xff] %v7580_v57  ;;  %v6591_v57 = vld [vmem:[%s7252_s23 + $0xe0] sm:$0xff] }
 0x1ba   : > { %v7552_v41 = vpop.f32.mrf.mxu0 }
 0x1bb   : > { %11571 = vst [vmem:[#allocation30_spill] sm:$0xff] %v7552_v41  ;;  %v1742_v41 = vld [vmem:[%s7673_s21 + $0x18] sm:$0xff] }
 0x1bd   : > { %842 = vmatmul.bf16.gmra.mxu0 %v6588_v29  ;;  %v6659_v29 = vld [vmem:[%s11485_s5] sm:$0xff]  ;;  %v7590_v36 = vpop.f32.mrf.mxu2 }
 0x1be   : > { %1839 = vmatpush.bf16.msrb.mxu0 %v6659_v29  ;;  %11583 = vst [vmem:[#allocation42_spill] sm:$0xff] %v7590_v36 }
 0x1c2   : > { %v7560_v52 = vpop.f32.mrf.mxu0 }
 0x1c3   : > { %11573 = vst [vmem:[#allocation32_spill] sm:$0xff] %v7560_v52  ;;  %1464 = vmatmul.bf16.gmra.mxu2 %v7605_v30 }
 0x1c5   : > { %v7599_v5 = vpop.f32.mrf.mxu2 }
 0x1ca   : > { %v7567_v8 = vpop.f32.mrf.mxu0 }
 0x1cb   : > { %11576 = vst [vmem:[#allocation35_spill] sm:$0xff] %v7567_v8 }
 0x1cd   : > { %847 = vmatmul.bf16.gmra.mxu0 %v6589_v18  ;;  %v7593_v18 = vpop.f32.mrf.mxu3  ;;  %1021 = vmatmul.bf16.gmra.mxu3 %v6590_v54 }
 0x1ce   : > { %11584 = vst [vmem:[#allocation43_spill] sm:$0xff] %v7593_v18 }
 0x1d2   : > { %v7578_v27 = vpop.f32.mrf.mxu0 }
 0x1d3   : > { %11578 = vst [vmem:[#allocation37_spill] sm:$0xff] %v7578_v27 }
 0x1d5   : > { %v7597_v33 = vpop.f32.mrf.mxu3 }
 0x1d6   : > { %11586 = vst [vmem:[#allocation45_spill] sm:$0xff] %v7597_v33 }
 0x1da   : > { %v7585_v44 = vpop.f32.mrf.mxu0 }
 0x1db   : > { %11581 = vst [vmem:[#allocation40_spill] sm:$0xff] %v7585_v44  ;;  %v7656_v44 = vld [vmem:[%s7447_s13 + $0x70] sm:$0xff] }
 0x1dc   : > { %11603 = vst [vmem:[#allocation62_spill] sm:$0xff] %v7656_v44 }
 0x1dd   : > { %852 = vmatmul.bf16.gmra.mxu0 %v6590_v54  ;;  %v7608_v36 = vpop.f32.mrf.mxu3  ;;  %1026 = vmatmul.bf16.gmra.mxu3 %v6591_v57  ;;  %v7610_v54 = vpop.f32.mrf.mxu2 }
 0x1de   : > { %11589 = vst [vmem:[#allocation48_spill] sm:$0xff] %v7608_v36  ;;  %1469 = vmatmul.bf16.gmra.mxu2 %v7622_v19 }
 0x1e2   : > { %v7595_v29 = vpop.f32.mrf.mxu0 }
 0x1e3   : > { %11585 = vst [vmem:[#allocation44_spill] sm:$0xff] %v7595_v29 }
 0x1e5   : > { %v7614_v33 = vpop.f32.mrf.mxu3 }
 0x1e6   : > { %11591 = vst [vmem:[#allocation50_spill] sm:$0xff] %v7614_v33 }
 0x1ea   : > { %v7602_v34 = vpop.f32.mrf.mxu0 }
 0x1eb   : > { %11587 = vst [vmem:[#allocation46_spill] sm:$0xff] %v7602_v34  ;;  %v7619_v34 = vpop.f32.mrf.mxu2 }
 0x1ed   : > { %857 = vmatmul.bf16.gmra.mxu0 %v6591_v57  ;;  %v7625_v36 = vpop.f32.mrf.mxu3  ;;  %1031 = vmatmul.bf16.gmra.mxu3 %v6592_v25 }
 0x1ee   : > { %11594 = vst [vmem:[#allocation53_spill] sm:$0xff] %v7625_v36 }
 0x1f2   : > { %v7612_v18 = vpop.f32.mrf.mxu0 }
 0x1f3   : > { %11590 = vst [vmem:[#allocation49_spill] sm:$0xff] %v7612_v18  ;;  %v7629_v18 = vpop.f32.mrf.mxu2  ;;  %1474 = vmatmul.bf16.gmra.mxu2 %v7637_v10 }
 0x1f5   : > { %v7631_v33 = vpop.f32.mrf.mxu3 }
 0x1f6   : > { %11596 = vst [vmem:[#allocation55_spill] sm:$0xff] %v7631_v33 }
 0x1fa   : > { %v7617_v21 = vpop.f32.mrf.mxu0 }
 0x1fb   : > { %11592 = vst [vmem:[#allocation51_spill] sm:$0xff] %v7617_v21  ;;  %v6593_v21 = vld [vmem:[%s7252_s23 + $0xf0] sm:$0xff] }
 0x1fd   : > { %862 = vmatmul.bf16.gmra.mxu0 %v6592_v25  ;;  %v7640_v19 = vpop.f32.mrf.mxu3  ;;  %1036 = vmatmul.bf16.gmra.mxu3 %v6593_v21  ;;  %v7642_v25 = vpop.f32.mrf.mxu2 }
 0x1fe   : > { %11599 = vst [vmem:[#allocation58_spill] sm:$0xff] %v7640_v19 }
 0x202   : > { %v7627_v57 = vpop.f32.mrf.mxu0 }
 0x203   : > { %11595 = vst [vmem:[#allocation54_spill] sm:$0xff] %v7627_v57 }
 0x205   : > { %v7648_v57 = vpop.f32.mrf.mxu3  ;;  %v7650_v33 = vpop.f32.mrf.mxu2  ;;  %1479 = vmatmul.bf16.gmra.mxu2 %v7656_v44 }
 0x206   : > { %11601 = vst [vmem:[#allocation60_spill] sm:$0xff] %v7648_v57 }
 0x20a   : > { %v7634_v15 = vpop.f32.mrf.mxu0 }
 0x20b   : > { %11597 = vst [vmem:[#allocation56_spill] sm:$0xff] %v7634_v15  ;;  %v6594_v15 = vld [vmem:[%s7252_s23 + $0xf8] sm:$0xff] }
 0x20d   : > { %867 = vmatmul.bf16.gmra.mxu0 %v6593_v21  ;;  %v7661_v21 = vpop.f32.mrf.mxu3  ;;  %1041 = vmatmul.bf16.gmra.mxu3 %v6594_v15  ;;  %v7666_v19 = vpop.f32.mrf.mxu2 }
 0x20e   : > { %11604 = vst [vmem:[#allocation63_spill] sm:$0xff] %v7661_v21  ;;  %v1740_v21 = vld [vmem:[%s7673_s21 + $0x8] sm:$0xff] }
 0x212   : > { %v7644_v36 = vpop.f32.mrf.mxu0 }
 0x213   : > { %11600 = vst [vmem:[#allocation59_spill] sm:$0xff] %v7644_v36  ;;  %v1739_v36 = vld [vmem:[%s7673_s21] sm:$0xff] }
 0x215   : > { %v7684_v10 = vpop.f32.mrf.mxu2 }
 0x21a   : > { %v7653_v29 = vpop.f32.mrf.mxu0 }
 0x21b   : > { %11602 = vst [vmem:[#allocation61_spill] sm:$0xff] %v7653_v29  ;;  %v7675_v29 = vpop.f32.mrf.mxu3 }
 0x21c   : > { %11606 = vst [vmem:[#allocation65_spill] sm:$0xff] %v7675_v29  ;;  %v1741_v29 = vld [vmem:[%s7673_s21 + $0x10] sm:$0xff] }
 0x21d   : > { %872 = vmatmul.bf16.gmra.mxu0 %v6594_v15  ;;  %v1779_v15 = vpack.c.bf16 %v1740_v21, %v1739_v36  ;;  %v1780_v36 = vpack.c.bf16 %v1742_v41, %v1741_v29  ;;  %v1744_v41 = vld [vmem:[%s7673_s21 + $0x28] sm:$0xff]  ;;  %v6655_v29 = vld [vmem:[%s11484_s4 + $0x64] sm:$0xf] }
 0x222   : > { %v7664_v57 = vpop.f32.mrf.mxu0 }
 0x223   : > { %11605 = vst [vmem:[#allocation64_spill] sm:$0xff] %v7664_v57  ;;  %v7682_v57 = vld [vmem:[%s7447_s13 + $0x78] sm:$0xff]  ;;  %v7687_v27 = vpop.f32.mrf.mxu3 }
 0x224   : > { %11608 = vst [vmem:[#allocation67_spill] sm:$0xff] %v7682_v57  ;;  %1484 = vmatmul.bf16.gmra.mxu2 %v7682_v57  ;;  %v1743_v57 = vld [vmem:[%s7673_s21 + $0x20] sm:$0xff] }
 0x225   : > { %11609 = vst [vmem:[#allocation68_spill] sm:$0xff] %v7687_v27  ;;  %v6493_v27 = vld [vmem:[%s11484_s4 + $0x78] sm:$0xf0] }
 0x22a   : > { %v7679_v44 = vpop.f32.mrf.mxu0 }
 0x22b   : > { %11607 = vst [vmem:[#allocation66_spill] sm:$0xff] %v7679_v44  ;;  %v7691_v52 = vpop.f32.mrf.mxu3 }
 0x22c   : > { %11611 = vst [vmem:[#allocation70_spill] sm:$0xff] %v7691_v52 }
 0x22d   : > { %1840 = vmatmul.bf16.vlgmr.msrb.gmra.mxu0 %v1779_v15  ;;  %v6657_v15 = vld [vmem:[%s11484_s4 + $0x74] sm:$0xf] }
 0x232   : > { %v7689_v8 = vpop.f32.mrf.mxu0 }
 0x233   : > { %11610 = vst [vmem:[#allocation69_spill] sm:$0xff] %v7689_v8  ;;  %v7697_v44 = vpop.f32.mrf.mxu3  ;;  %v6496_v8 = vor.u32 %v6657_v15, %v6493_v27  ;;  %v6653_v27 = vld [vmem:[%s11484_s4 + $0x54] sm:$0xf] }
 0x234   : > { %11613 = vst [vmem:[#allocation72_spill] sm:$0xff] %v7697_v44 }
 0x235   : > { %1570 = vmatpush.bf16.msrb.mxu3 %v6496_v8  ;;  %v6477_v8 = vld [vmem:[%s11484_s4 + $0x58] sm:$0xf0] }
 0x236   : > { %v6480_v15 = vor.u32 %v6653_v27, %v6477_v8 }
 0x23a   : > { %v7695_v21 = vpop.f32.mrf.mxu0 }
 0x23b   : > { %11612 = vst [vmem:[#allocation71_spill] sm:$0xff] %v7695_v21  ;;  %v7707_v52 = vpop.f32.mrf.mxu3 }
 0x23c   : > { %11615 = vst [vmem:[#allocation74_spill] sm:$0xff] %v7707_v52 }
 0x23d   : > { %1845 = vmatmul.bf16.gmra.mxu0 %v1780_v36  ;;  %v6485_v36 = vld [vmem:[%s11484_s4 + $0x68] sm:$0xf0] }
 0x23e   : > { %v6488_v44 = vor.u32 %v6655_v29, %v6485_v36  ;;  %v6649_v36 = vld [vmem:[%s11484_s4 + $0x34] sm:$0xf] }
 0x240   : > { %1571 = vmatpush.bf16.msrb.mxu3 %v6488_v44  ;;  %v6469_v44 = vld [vmem:[%s11484_s4 + $0x48] sm:$0xf0] }
 0x242   : > { %v7699_v12 = vpop.f32.mrf.mxu0 }
 0x243   : > { %11614 = vst [vmem:[#allocation73_spill] sm:$0xff] %v7699_v12  ;;  %v1781_v12 = vpack.c.bf16 %v1744_v41, %v1743_v57  ;;  %v7725_v52 = vpop.f32.mrf.mxu3  ;;  %v6651_v57 = vld [vmem:[%s11484_s4 + $0x44] sm:$0xf] }
 0x244   : > { %11617 = vst [vmem:[#allocation76_spill] sm:$0xff] %v7725_v52  ;;  %1572 = vmatpush.bf16.msrb.mxu3 %v6480_v15  ;;  %v6472_v41 = vor.u32 %v6651_v57, %v6469_v44  ;;  %v1745_v15 = vld [vmem:[%s7673_s21 + $0x30] sm:$0xff]  ;;  %v1746_v52 = vld [vmem:[%s7673_s21 + $0x38] sm:$0xff]  ;;  %v6647_v57 = vld [vmem:[%s11484_s4 + $0x24] sm:$0xf] }
 0x245   : > { %v6453_v44 = vld [vmem:[%s11484_s4 + $0x28] sm:$0xf0] }
 0x248   : > { %1573 = vmatpush.bf16.msrb.mxu3 %v6472_v41  ;;  %v6456_v41 = vor.u32 %v6647_v57, %v6453_v44 }
 0x24a   : > { %v7717_v21 = vpop.f32.mrf.mxu0 }
 0x24b   : > { %11616 = vst [vmem:[#allocation75_spill] sm:$0xff] %v7717_v21  ;;  %v7741_v8 = vpop.f32.mrf.mxu3 }
 0x24c   : > { %11619 = vst [vmem:[#allocation78_spill] sm:$0xff] %v7741_v8 }
 0x24d   : > { %1850 = vmatmul.bf16.gmra.mxu0 %v1781_v12  ;;  %v6461_v12 = vld [vmem:[%s11484_s4 + $0x38] sm:$0xf0] }
 0x24e   : > { %v6464_v27 = vor.u32 %v6649_v36, %v6461_v12  ;;  %v6645_v36 = vld [vmem:[%s11484_s4 + $0x14] sm:$0xf]  ;;  %v6445_v12 = vld [vmem:[%s11484_s4 + $0x18] sm:$0xf0] }
 0x250   : > { %1574 = vmatpush.bf16.msrb.mxu3 %v6464_v27  ;;  %v6448_v27 = vor.u32 %v6645_v36, %v6445_v12  ;;  %v2196_v12 = vld [vmem:[%s11486_s6 + $0x78] sm:$0xff] }
 0x251   : > { %2197 = vmatpush.msra.mxu0 %v2196_v12  ;;  %6683 = vmatpush.msra.mxu1 %v2196_v12  ;;  %v2192_v12 = vld [vmem:[%s11486_s6 + $0x58] sm:$0xff] }
 0x252   : > { %v7733_v29 = vpop.f32.mrf.mxu0 }
 0x253   : > { %11618 = vst [vmem:[#allocation77_spill] sm:$0xff] %v7733_v29  ;;  %v1782_v29 = vpack.c.bf16 %v1746_v52, %v1745_v15  ;;  %v7759_v8 = vpop.f32.mrf.mxu3  ;;  %v6643_v52 = vld [vmem:[%s11484_s4 + $0x4] sm:$0xf]  ;;  %v6437_v15 = vld [vmem:[%s11484_s4 + $0x8] sm:$0xf0] }
 0x254   : > { %1575 = vmatpush.bf16.msrb.mxu3 %v6456_v41  ;;  %11621 = vst [vmem:[#allocation80_spill] sm:$0xff] %v7759_v8  ;;  %v6440_v57 = vor.u32 %v6643_v52, %v6437_v15  ;;  %v2195_v52 = vld [vmem:[%s11486_s6 + $0x70] sm:$0xff] }
 0x255   : > { %2198 = vmatpush.msra.mxu0 %v2195_v52  ;;  %6684 = vmatpush.msra.mxu1 %v2195_v52  ;;  %v2190_v52 = vld [vmem:[%s11486_s6 + $0x48] sm:$0xff] }
 0x258   : > { %1576 = vmatpush.bf16.msrb.mxu3 %v6448_v27 }
 0x25a   : > { %v7751_v21 = vpop.f32.mrf.mxu0 }
 0x25b   : > { %11620 = vst [vmem:[#allocation79_spill] sm:$0xff] %v7751_v21  ;;  %v7770_v41 = vpop.f32.mrf.mxu3 }
 0x25c   : > { %1577 = vmatpush.bf16.msrb.mxu3 %v6440_v57  ;;  %11623 = vst [vmem:[#allocation82_spill] sm:$0xff] %v7770_v41  ;;  %v2193_v57 = vld [vmem:[%s11486_s6 + $0x60] sm:$0xff] }
 0x25d   : > { %1855 = vmatmul.bf16.gmra.mxu0 %v1782_v29 }
 0x25f   : > { %1578 = vmatmul.bf16.vlgmr.msrb.gmra.mxu3 %v7452_v3  ;;  %v2194_v3 = vld [vmem:[%s11486_s6 + $0x68] sm:$0xff] }
 0x260   : > { %2199 = vmatpush.msra.mxu0 %v2194_v3  ;;  %6685 = vmatpush.msra.mxu1 %v2194_v3 }
 0x262   : > { %v7767_v44 = vpop.f32.mrf.mxu0  ;;  %2200 = vmatpush.msra.mxu0 %v2193_v57  ;;  %6686 = vmatpush.msra.mxu1 %v2193_v57  ;;  %v2189_v57 = vld [vmem:[%s11486_s6 + $0x40] sm:$0xff] }
 0x263   : > { %11622 = vst [vmem:[#allocation81_spill] sm:$0xff] %v7767_v44  ;;  %v7774_v36 = vpop.f32.mrf.mxu3 }
 0x264   : > { %11625 = vst [vmem:[#allocation84_spill] sm:$0xff] %v7774_v36  ;;  %2201 = vmatpush.msra.mxu0 %v2192_v12  ;;  %6687 = vmatpush.msra.mxu1 %v2192_v12  ;;  %v2188_v12 = vld [vmem:[%s11486_s6 + $0x38] sm:$0xff] }
 0x26a   : > { %v7772_v29 = vpop.f32.mrf.mxu0 }
 0x26b   : > { %11624 = vst [vmem:[#allocation83_spill] sm:$0xff] %v7772_v29  ;;  %v7788_v15 = vpop.f32.mrf.mxu3 }
 0x26c   : > { %11627 = vst [vmem:[#allocation86_spill] sm:$0xff] %v7788_v15  ;;  %v7809_v15 = vpop.f32.mrf.mxu2 }
 0x26f   : > { %1583 = vmatmul.bf16.gmra.mxu3 %v7465_v13  ;;  %v2191_v13 = vld [vmem:[%s11486_s6 + $0x50] sm:$0xff] }
 0x270   : > { %2202 = vmatpush.msra.mxu0 %v2191_v13  ;;  %6688 = vmatpush.msra.mxu1 %v2191_v13  ;;  %v2187_v13 = vld [vmem:[%s11486_s6 + $0x30] sm:$0xff] }
 0x272   : > { %v7779_v27 = vpop.f32.mrf.mxu0  ;;  %2203 = vmatpush.msra.mxu0 %v2190_v52  ;;  %6689 = vmatpush.msra.mxu1 %v2190_v52  ;;  %v2186_v52 = vld [vmem:[%s11486_s6 + $0x28] sm:$0xff] }
 0x273   : > { %11626 = vst [vmem:[#allocation85_spill] sm:$0xff] %v7779_v27  ;;  %v7804_v3 = vpop.f32.mrf.mxu3 }
 0x274   : > { %11629 = vst [vmem:[#allocation88_spill] sm:$0xff] %v7804_v3  ;;  %2204 = vmatpush.msra.mxu0 %v2189_v57  ;;  %6690 = vmatpush.msra.mxu1 %v2189_v57  ;;  %v2185_v3 = vld [vmem:[%s11486_s6 + $0x20] sm:$0xff]  ;;  %v7831_v8 = vpop.f32.mrf.mxu2 }
 0x275   : > { %11632 = vst [vmem:[#allocation91_spill] sm:$0xff] %v7831_v8 }
 0x276   : > { %2205 = vmatpush.msra.mxu0 %v2188_v12  ;;  %6691 = vmatpush.msra.mxu1 %v2188_v12  ;;  %v2184_v12 = vld [vmem:[%s11486_s6 + $0x18] sm:$0xff] }
 0x278   : > { %2206 = vmatpush.msra.mxu0 %v2187_v13  ;;  %6692 = vmatpush.msra.mxu1 %v2187_v13  ;;  %v2182_v13 = vld [vmem:[%s11486_s6 + $0x8] sm:$0xff] }
 0x27a   : > { %v7796_v36 = vpop.f32.mrf.mxu0  ;;  %2207 = vmatpush.msra.mxu0 %v2186_v52  ;;  %6693 = vmatpush.msra.mxu1 %v2186_v52  ;;  %v2181_v52 = vld [vmem:[%s11486_s6] sm:$0xff] }
 0x27b   : > { %11628 = vst [vmem:[#allocation87_spill] sm:$0xff] %v7796_v36  ;;  %v7823_v57 = vpop.f32.mrf.mxu3 }
 0x27c   : > { %11631 = vst [vmem:[#allocation90_spill] sm:$0xff] %v7823_v57  ;;  %2208 = vmatpush.msra.mxu0 %v2185_v3  ;;  %6694 = vmatpush.msra.mxu1 %v2185_v3  ;;  %v1435_v57 = vpop.f32.mrf.mxu2 }
 0x27e   : > { %2209 = vmatpush.msra.mxu0 %v2184_v12  ;;  %6695 = vmatpush.msra.mxu1 %v2184_v12 }
 0x27f   : > { %1588 = vmatmul.bf16.gmra.mxu3 %v7481_v28  ;;  %v2183_v28 = vld [vmem:[%s11486_s6 + $0x10] sm:$0xff] }
 0x280   : > { %2210 = vmatpush.msra.mxu0 %v2183_v28  ;;  %6696 = vmatpush.msra.mxu1 %v2183_v28 }
 0x282   : > { %v7814_v41 = vpop.f32.mrf.mxu0  ;;  %2211 = vmatpush.msra.mxu0 %v2182_v13  ;;  %6697 = vmatpush.msra.mxu1 %v2182_v13  ;;  %v353_v13 = vld [vmem:[%s11487_s7] sm:$0xff] }
 0x283   : > { %11630 = vst [vmem:[#allocation89_spill] sm:$0xff] %v7814_v41  ;;  %v7841_v3 = vpop.f32.mrf.mxu3  ;;  %v7879_v21 = vperm.slane %v353_v13, 1 }
 0x284   : > { %11634 = vst [vmem:[#allocation93_spill] sm:$0xff] %v7841_v3  ;;  %2212 = vmatpush.msra.mxu0 %v2181_v52  ;;  %6698 = vmatpush.msra.mxu1 %v2181_v52  ;;  %v7853_v28 = vpop.f32.mrf.mxu2  ;;  %v7863_v52 = vperm.slane %v353_v13, 2 }
 0x285   : > { %11638 = vst [vmem:[#allocation97_spill] sm:$0xff] %v7853_v28  ;;  %v1423_v47 = vadd.f32 %v7650_v33, %v7879_v21 }
 0x286   : > { %11641 = vst [vmem:[#allocation100_spill] sm:$0xff] %v7863_v52 }
 0x28a   : > { %v7833_v41 = vpop.f32.mrf.mxu0 }
 0x28b   : > { %11633 = vst [vmem:[#allocation92_spill] sm:$0xff] %v7833_v41  ;;  %v7849_v41 = vpop.f32.mrf.mxu3 }
 0x28c   : > { %11636 = vst [vmem:[#allocation95_spill] sm:$0xff] %v7849_v41 }
 0x28f   : > { %1593 = vmatmul.bf16.gmra.mxu3 %v7492_v39  ;;  %v7867_v39 = vperm.slane %v353_v13, 0 }
 0x291   : > { %11642 = vst [vmem:[#allocation101_spill] sm:$0xff] %v7867_v39  ;;  %v739_v13 = vadd.f32 %v7359_v17, %v7867_v39 }
 0x292   : > { %v7846_v12 = vpop.f32.mrf.mxu0 }
 0x293   : > { %11635 = vst [vmem:[#allocation94_spill] sm:$0xff] %v7846_v12  ;;  %v7855_v3 = vpop.f32.mrf.mxu3  ;;  %v7865_v12 = vpop.f32.mrf.mxu2 }
 0x294   : > { %11639 = vst [vmem:[#allocation98_spill] sm:$0xff] %v7855_v3  ;;  %v719_v3 = vadd.f32 %v7320_v60, %v7867_v39  ;;  %v736_v60 = vadd.f32 %v7348_v11, %v7867_v39  ;;  %v754_v11 = vadd.f32 %v7396_v37, %v7867_v39  ;;  %v1431_v37 = vadd.f32 %v7809_v15, %v7879_v21 }
 0x29a   : > { %v7851_v36 = vpop.f32.mrf.mxu0 }
 0x29b   : > { %11637 = vst [vmem:[#allocation96_spill] sm:$0xff] %v7851_v36  ;;  %v7869_v41 = vpop.f32.mrf.mxu3 }
 0x29c   : > { %11643 = vst [vmem:[#allocation102_spill] sm:$0xff] %v7869_v41  ;;  %v731_v41 = vadd.f32 %v7341_v7, %v7867_v39  ;;  %v1426_v7 = vadd.f32 %v7666_v19, %v7879_v21 }
 0x29f   : > { %1598 = vmatmul.bf16.gmra.mxu3 %v7505_v49 }
 0x2a2   : > { %v7857_v27 = vpop.f32.mrf.mxu0 }
 0x2a3   : > { %11640 = vst [vmem:[#allocation99_spill] sm:$0xff] %v7857_v27 }
 0x2aa   : > { %v1841_v36 = vpop.f32.mrf.mxu0 }
 0x2ab   : > { %v7872_v29 = vadd.f32 %v1841_v36, %v7863_v52  ;;  %v734_v36 = vadd.f32 %v7344_v9, %v7867_v39  ;;  %v7897_v9 = vpop.f32.mrf.mxu2 }
 0x2ac   : > { %11644 = vst [vmem:[#allocation103_spill] sm:$0xff] %v7897_v9 }
 0x2ad   : > { %v1925_v49 = vperm.slane %v7872_v29, 0  ;;  %v1873_v27 = vrot.slane %v7872_v29, 5  ;;  %v1874_v44 = vrot.slane %v7872_v29, 6  ;;  %v1875_v9 = vrot.slane %v7872_v29, 7 }
 0x2af   : > { %v2053_v28 = vmul.f32 %v1925_v49, %v719_v3  ;;  %v1930_v8 = vperm.slane %v1873_v27, 0  ;;  %v1931_v30 = vperm.slane %v1874_v44, 0  ;;  %v741_v27 = vadd.f32 %v7364_v20, %v7867_v39  ;;  %1603 = vmatmul.bf16.gmra.mxu3 %v7516_v56 }
 0x2b0   : > { %v744_v44 = vadd.f32 %v7369_v23, %v7867_v39  ;;  %v1411_v23 = vadd.f32 %v7599_v5, %v7879_v21  ;;  %v1428_v5 = vadd.f32 %v7684_v10, %v7879_v21  ;;  %v1436_v10 = vadd.f32 %v1435_v57, %v7879_v21 }
 0x2b1   : > { %2213 = vmatmul.f32.vlgmr.msra.gmra.mxu0 %v2053_v28  ;;  %v7904_v28 = vpop.f32.mrf.mxu3  ;;  %v7906_v17 = vmul.f32 %v1930_v8, %v731_v41  ;;  %v7908_v20 = vmul.f32 %v1930_v8, %v1423_v47  ;;  %v7912_v59 = vmul.f32 %v1931_v30, %v734_v36  ;;  %v7914_v19 = vmul.f32 %v1931_v30, %v1426_v7 }
 0x2b2   : > { %v1843_v3 = vpop.f32.mrf.mxu0  ;;  %11645 = vst [vmem:[#allocation104_spill] sm:$0xff] %v7904_v28  ;;  %v1869_v8 = vrot.slane %v7872_v29, 1  ;;  %v1932_v30 = vperm.slane %v1875_v9, 0  ;;  %v2054_v7 = vmul.f32 %v1925_v49, %v1411_v23 }
 0x2b3   : > { %v7902_v33 = vadd.f32 %v1843_v3, %v7863_v52  ;;  %11646 = vst [vmem:[#allocation105_spill] sm:$0xff] %v7908_v20 }
 0x2b4   : > { %11647 = vst [vmem:[#allocation106_spill] sm:$0xff] %v7912_v59  ;;  %v7931_v56 = vmul.f32 %v1932_v30, %v736_v60  ;;  %v7933_v59 = vmul.f32 %v1932_v30, %v1428_v5  ;;  %v1926_v60 = vperm.slane %v1869_v8, 0 }
 0x2b5   : > { %11648 = vst [vmem:[#allocation107_spill] sm:$0xff] %v7914_v19  ;;  %v1881_v3 = vrot.slane %v7902_v33, 6  ;;  %v1933_v41 = vperm.slane %v7902_v33, 0  ;;  %v1876_v47 = vrot.slane %v7902_v33, 1  ;;  %v1877_v36 = vrot.slane %v7902_v33, 2 }
 0x2b6   : > { %v1878_v57 = vrot.slane %v7902_v33, 3 }
 0x2b7   : > { %v1939_v28 = vperm.slane %v1881_v3, 0  ;;  %v7927_v15 = vmul.f32 %v1933_v41, %v739_v13  ;;  %v7929_v19 = vmul.f32 %v1933_v41, %v1431_v37  ;;  %v7935_v20 = vperm.slane %v1876_v47, 0  ;;  %v7947_v37 = vld [vmem:[%s7447_s13 + $0x80] sm:$0xff]  ;;  %v1445_v41 = vpop.f32.mrf.mxu2 }
 0x2b8   : > { %v1935_v6 = vperm.slane %v1877_v36, 0  ;;  %11649 = vst [vmem:[#allocation108_spill] sm:$0xff] %v7947_v37  ;;  %1489 = vmatmul.bf16.gmra.mxu2 %v7947_v37  ;;  %v7964_v30 = vperm.slane %v1878_v57, 0  ;;  %v774_v36 = vadd.f32 %v7476_v24, %v7867_v39  ;;  %v749_v24 = vadd.f32 %v7384_v31, %v7867_v39 }
 0x2b9   : > { %2216 = vmatmul.f32.gmra.mxu0 %v2054_v7  ;;  %v2081_v9 = vmul.f32 %v1939_v28, %v754_v11  ;;  %v7939_v49 = vmul.f32 %v7935_v20, %v741_v27  ;;  %v721_v11 = vadd.f32 %v7322_v61, %v7867_v39  ;;  %v1446_v27 = vadd.f32 %v1445_v41, %v7879_v21  ;;  %v7955_v47 = vpop.f32.mrf.mxu3 }
 0x2ba   : > { %v1846_v42 = vpop.f32.mrf.mxu0  ;;  %v7941_v23 = vmul.f32 %v1935_v6, %v744_v44  ;;  %v7949_v3 = vmul.f32 %v1935_v6, %v1436_v10  ;;  %11650 = vst [vmem:[#allocation109_spill] sm:$0xff] %v7955_v47  ;;  %v771_v61 = vadd.f32 %v7474_v22, %v7867_v39  ;;  %v1882_v10 = vrot.slane %v7902_v33, 7 }
 0x2bb   : > { %v7944_v13 = vadd.f32 %v1846_v42, %v7863_v52  ;;  %2297 = vmatmul.f32.vlgmr.msra.gmra.mxu1 %v2081_v9  ;;  %v2055_v5 = vmul.f32 %v1926_v60, %v721_v11  ;;  %v2082_v7 = vmul.f32 %v1939_v28, %v1446_v27  ;;  %v746_v9 = vadd.f32 %v7374_v26, %v7867_v39 }
 0x2bc   : > { %v1879_v11 = vrot.slane %v7902_v33, 4  ;;  %v776_v28 = vadd.f32 %v7485_v32, %v7867_v39 }
 0x2bd   : > { %v1887_v42 = vrot.slane %v7944_v13, 5  ;;  %v1888_v44 = vrot.slane %v7944_v13, 6  ;;  %v1889_v26 = vrot.slane %v7944_v13, 7  ;;  %v7989_v27 = vmul.f32 %v7964_v30, %v746_v9 }
 0x2be   : > { %v756_v9 = vadd.f32 %v7407_v43, %v7867_v39 }
 0x2bf   : > { %v7960_v8 = vperm.slane %v1887_v42, 0  ;;  %v7962_v6 = vperm.slane %v1888_v44, 0  ;;  %v779_v44 = vadd.f32 %v7489_v38, %v7867_v39  ;;  %1608 = vmatmul.bf16.gmra.mxu3 %v7532_v16  ;;  %v7997_v31 = vperm.slane %v1889_v26, 0 }
 0x2c0   : > { %v1870_v38 = vrot.slane %v7872_v29, 2 }
 0x2c1   : > { %2219 = vmatmul.f32.gmra.mxu0 %v2055_v5  ;;  %v7978_v57 = vmul.f32 %v7960_v8, %v771_v61  ;;  %v7981_v22 = vmul.f32 %v7962_v6, %v774_v36  ;;  %v1413_v5 = vadd.f32 %v7610_v54, %v7879_v21  ;;  %v1940_v61 = vperm.slane %v1882_v10, 0  ;;  %v8004_v37 = vpop.f32.mrf.mxu3 }
 0x2c2   : > { %v1848_v41 = vpop.f32.mrf.mxu0  ;;  %11651 = vst [vmem:[#allocation110_spill] sm:$0xff] %v8004_v37  ;;  %v781_v54 = vadd.f32 %v7498_v46, %v7867_v39  ;;  %v1441_v10 = vadd.f32 %v7865_v12, %v7879_v21 }
 0x2c3   : > { %v7975_v42 = vadd.f32 %v1848_v41, %v7863_v52  ;;  %2300 = vmatmul.f32.gmra.mxu1 %v2082_v7  ;;  %v1937_v7 = vperm.slane %v1879_v11, 0  ;;  %v1880_v41 = vrot.slane %v7902_v33, 5  ;;  %v2056_v47 = vmul.f32 %v1926_v60, %v1413_v5 }
 0x2c4   : > { %v8015_v33 = vmul.f32 %v7997_v31, %v776_v28  ;;  %v751_v60 = vadd.f32 %v7392_v35, %v7867_v39  ;;  %v2083_v11 = vmul.f32 %v1940_v61, %v756_v9  ;;  %v1927_v28 = vperm.slane %v1870_v38, 0 }
 0x2c5   : > { %v11496_v36 = vperm.slane %v7975_v42, 0  ;;  %v1890_v32 = vrot.slane %v7975_v42, 1  ;;  %v8021_v26 = vmul.f32 %v1937_v7, %v749_v24  ;;  %v8026_v5 = vmul.f32 %v1937_v7, %v1441_v10 }
 0x2c6   : > { %v1891_v46 = vrot.slane %v7975_v42, 2  ;;  %v8029_v12 = vperm.slane %v1880_v41, 0  ;;  %v784_v35 = vadd.f32 %v7502_v48, %v7867_v39  ;;  %v724_v7 = vadd.f32 %v7325_v63, %v7867_v39 }
 0x2c7   : > { %v8008_v16 = vmul.f32 %v11496_v36, %v779_v44  ;;  %v8017_v43 = vperm.slane %v1890_v32, 0  ;;  %v8032_v32 = vld [vmem:[%s7447_s13 + $0x88] sm:$0xff]  ;;  %v759_v63 = vadd.f32 %v7411_v45, %v7867_v39 }
 0x2c8   : > { %v8036_v9 = vperm.slane %v1891_v46, 0  ;;  %v8039_v24 = vmul.f32 %v8029_v12, %v751_v60  ;;  %1494 = vmatmul.bf16.gmra.mxu2 %v8032_v32  ;;  %v2057_v38 = vmul.f32 %v1927_v28, %v724_v7  ;;  %v1416_v60 = vadd.f32 %v7619_v34, %v7879_v21 }
 0x2c9   : > { %2222 = vmatmul.f32.gmra.mxu0 %v2056_v47  ;;  %v8024_v44 = vmul.f32 %v8017_v43, %v781_v54  ;;  %v1447_v47 = vpop.f32.mrf.mxu2  ;;  %v8048_v48 = vpop.f32.mrf.mxu3 }
 0x2ca   : > { %v1448_v54 = vadd.f32 %v1447_v47, %v7879_v21  ;;  %v8046_v41 = vmul.f32 %v8036_v9, %v784_v35  ;;  %11652 = vst [vmem:[#allocation111_spill] sm:$0xff] %v8048_v48  ;;  %v2058_v46 = vmul.f32 %v1927_v28, %v1416_v60  ;;  %v1871_v35 = vrot.slane %v7872_v29, 3  ;;  %v11675_v48 = vld [vmem:[#allocation47_spill] sm:$0xff] }
 0x2cb   : > { %2303 = vmatmul.f32.gmra.mxu1 %v2083_v11  ;;  %v1941_v11 = vperm.slane %v7944_v13, 0  ;;  %v1892_v47 = vrot.slane %v7975_v42, 3 }
 0x2cc   : > { %v2084_v10 = vmul.f32 %v1940_v61, %v1448_v54  ;;  %v786_v61 = vadd.f32 %v7509_v51, %v7867_v39  ;;  %v1928_v34 = vperm.slane %v1871_v35, 0  ;;  %v1883_v35 = vrot.slane %v7944_v13, 1 }
 0x2cd   : > { %v2085_v7 = vmul.f32 %v1941_v11, %v759_v63  ;;  %v8060_v54 = vperm.slane %v1892_v47, 0  ;;  %v1893_v63 = vrot.slane %v7975_v42, 4  ;;  %v789_v47 = vadd.f32 %v7513_v55, %v7867_v39 }
 0x2ce   : > { %v1872_v55 = vrot.slane %v7872_v29, 4 }
 0x2cf   : > { %1613 = vmatmul.bf16.gmra.mxu3 %v7545_v4  ;;  %v8065_v4 = vld [vmem:[%s7447_s13 + $0x90] sm:$0xff]  ;;  %v8068_v45 = vmul.f32 %v8060_v54, %v786_v61  ;;  %v8078_v61 = vperm.slane %v1893_v63, 0  ;;  %v1894_v63 = vrot.slane %v7975_v42, 5 }
 0x2d1   : > { %2225 = vmatmul.f32.gmra.mxu0 %v2057_v38  ;;  %v8062_v38 = vpop.f32.mrf.mxu3  ;;  %v1450_v28 = vpop.f32.mrf.mxu2  ;;  %11654 = vst [vmem:[#allocation113_spill] sm:$0xff] %v8078_v61 }
 0x2d2   : > { %11653 = vst [vmem:[#allocation112_spill] sm:$0xff] %v8062_v38  ;;  %v1451_v60 = vadd.f32 %v1450_v28, %v7879_v21  ;;  %v1942_v28 = vperm.slane %v1883_v35, 0  ;;  %v729_v35 = vadd.f32 %v7330_v2, %v7867_v39  ;;  %v1896_v2 = vrot.slane %v7975_v42, 7 }
 0x2d3   : > { %2306 = vmatmul.f32.gmra.mxu1 %v2084_v10  ;;  %v726_v10 = vadd.f32 %v7327_v0, %v7867_v39  ;;  %v8081_v0 = vmul.f32 %v8078_v61, %v789_v47  ;;  %v8093_v47 = vld [vmem:[%s7447_s13 + $0x98] sm:$0xff] }
 0x2d5   : > { %v2059_v51 = vmul.f32 %v1928_v34, %v726_v10  ;;  %11655 = vst [vmem:[#allocation114_spill] sm:$0xff] %v8081_v0 }
 0x2d8   : > { %1499 = vmatmul.bf16.gmra.mxu2 %v8065_v4 }
 0x2d9   : > { %2228 = vmatmul.f32.gmra.mxu0 %v2058_v46  ;;  %v2086_v46 = vmul.f32 %v1941_v11, %v1451_v60  ;;  %v8085_v10 = vpop.f32.mrf.mxu3  ;;  %v761_v11 = vadd.f32 %v7426_v53, %v7867_v39  ;;  %v8099_v53 = vperm.slane %v1894_v63, 0  ;;  %v1421_v63 = vadd.f32 %v7642_v25, %v7879_v21 }
 0x2da   : > { %11656 = vst [vmem:[#allocation115_spill] sm:$0xff] %v8085_v10 }
 0x2db   : > { %2309 = vmatmul.f32.gmra.mxu1 %v2085_v7  ;;  %v1418_v7 = vadd.f32 %v7629_v18, %v7879_v21  ;;  %v1452_v18 = vpop.f32.mrf.mxu2  ;;  %11657 = vst [vmem:[#allocation116_spill] sm:$0xff] %v8099_v53 }
 0x2dd   : > { %v2060_v60 = vmul.f32 %v1928_v34, %v1418_v7  ;;  %v791_v7 = vadd.f32 %v7525_v62, %v7867_v39  ;;  %v764_v62 = vadd.f32 %v7449_v1, %v7867_v39 }
 0x2df   : > { %1618 = vmatmul.bf16.gmra.mxu3 %v7555_v40  ;;  %v1453_v40 = vadd.f32 %v1452_v18, %v7879_v21 }
 0x2e1   : > { %2231 = vmatmul.f32.gmra.mxu0 %v2059_v51  ;;  %v2087_v51 = vmul.f32 %v1942_v28, %v761_v11  ;;  %v8101_v29 = vpop.f32.mrf.mxu3  ;;  %v2088_v11 = vmul.f32 %v1942_v28, %v1453_v40 }
 0x2e2   : > { %11658 = vst [vmem:[#allocation117_spill] sm:$0xff] %v8101_v29 }
 0x2e3   : > { %2312 = vmatmul.f32.gmra.mxu1 %v2086_v46  ;;  %v1929_v46 = vperm.slane %v1872_v55, 0  ;;  %v1895_v55 = vrot.slane %v7975_v42, 6 }
 0x2e5   : > { %v2061_v34 = vmul.f32 %v1929_v46, %v729_v35  ;;  %v8116_v28 = vperm.slane %v1895_v55, 0  ;;  %v8118_v35 = vperm.slane %v1896_v2, 0  ;;  %v2062_v40 = vmul.f32 %v1929_v46, %v1421_v63  ;;  %v1851_v2 = vpop.f32.mrf.mxu0 }
 0x2e7   : > { %11660 = vst [vmem:[#allocation119_spill] sm:$0xff] %v8116_v28 }
 0x2e8   : > { %1504 = vmatmul.bf16.gmra.mxu2 %v8093_v47  ;;  %11661 = vst [vmem:[#allocation120_spill] sm:$0xff] %v8118_v35 }
 0x2e9   : > { %2234 = vmatmul.f32.gmra.mxu0 %v2060_v60  ;;  %v1884_v60 = vrot.slane %v7944_v13, 2 }
 0x2eb   : > { %2315 = vmatmul.f32.gmra.mxu1 %v2087_v51  ;;  %v8109_v51 = vmul.f32 %v8099_v53, %v791_v7  ;;  %v1943_v18 = vperm.slane %v1884_v60, 0  ;;  %v796_v7 = vadd.f32 %v7538_v58, %v7867_v39  ;;  %v8124_v60 = vpop.f32.mrf.mxu3  ;;  %v11728_v53 = vld [vmem:[#allocation108_spill] sm:$0xff] }
 0x2ed   : > { %11659 = vst [vmem:[#allocation118_spill] sm:$0xff] %v8109_v51  ;;  %v2089_v25 = vmul.f32 %v1943_v18, %v764_v62  ;;  %v8131_v55 = vmul.f32 %v8118_v35, %v796_v7  ;;  %v8137_v62 = vadd.f32 %v1851_v2, %v7863_v52  ;;  %v11665_v7 = vld [vmem:[#allocation41_spill] sm:$0xff]  ;;  %v6632_v2 = vld [vmem:[%s7447_s13 + $0xa8] sm:$0xff] }
 0x2ef   : > { %1623 = vmatmul.bf16.gmra.mxu3 %v7570_v50  ;;  %v6631_v50 = vld [vmem:[%s7447_s13 + $0xa0] sm:$0xff]  ;;  %11663 = vst [vmem:[#allocation122_spill] sm:$0xff] %v8131_v55  ;;  %v1899_v37 = vrot.slane %v8137_v62, 3 }
 0x2f0   : > { %11664 = vst [vmem:[#allocation123_spill] sm:$0xff] %v8137_v62 }
 0x2f1   : > { %2237 = vmatmul.f32.gmra.mxu0 %v2061_v34  ;;  %v1455_v34 = vpop.f32.mrf.mxu2 }
 0x2f2   : > { %v1456_v46 = vadd.f32 %v1455_v34, %v7879_v21  ;;  %v11666_v34 = vld [vmem:[#allocation14_spill] sm:$0xff] }
 0x2f3   : > { %2318 = vmatmul.f32.gmra.mxu1 %v2088_v11  ;;  %v794_v11 = vadd.f32 %v7529_v14, %v7867_v39  ;;  %v1885_v14 = vrot.slane %v7944_v13, 3 }
 0x2f4   : > { %v2090_v58 = vmul.f32 %v1943_v18, %v1456_v46  ;;  %v11668_v46 = vld [vmem:[#allocation105_spill] sm:$0xff] }
 0x2f5   : > { %v8128_v1 = vmul.f32 %v8116_v28, %v794_v11  ;;  %v1944_v11 = vperm.slane %v1885_v14, 0 }
 0x2f7   : > { %11662 = vst [vmem:[#allocation121_spill] sm:$0xff] %v8128_v1 }
 0x2f8   : > { %1509 = vmatmul.bf16.gmra.mxu2 %v6631_v50  ;;  %v11497_v50 = vperm.slane %v8137_v62, 0 }
 0x2f9   : > { %2240 = vmatmul.f32.gmra.mxu0 %v2062_v40  ;;  %v1457_v63 = vpop.f32.mrf.mxu2  ;;  %v8139_v40 = vpop.f32.mrf.mxu3 }
 0x2fa   : > { %v1458_v29 = vadd.f32 %v1457_v63, %v7879_v21 }
 0x2fb   : > { %2321 = vmatmul.f32.gmra.mxu1 %v2089_v25  ;;  %v766_v25 = vadd.f32 %v11666_v34, %v7867_v39 }
 0x2fd   : > { %v2091_v36 = vmul.f32 %v1944_v11, %v766_v25  ;;  %v11672_v25 = vld [vmem:[#allocation28_spill] sm:$0xff] }
 0x2fe   : > { %v801_v38 = vadd.f32 %v11672_v25, %v7867_v39 }
 0x2ff   : > { %1628 = vmatmul.bf16.gmra.mxu3 %v11665_v7  ;;  %v1897_v7 = vrot.slane %v8137_v62, 1 }
 0x301   : > { %2243 = vmatmul.f32.gmra.mxu0 %v7906_v17  ;;  %v11667_v17 = vld [vmem:[#allocation26_spill] sm:$0xff]  ;;  %v1460_v14 = vpop.f32.mrf.mxu2  ;;  %v8155_v34 = vpop.f32.mrf.mxu3  ;;  %v8157_v10 = vperm.slane %v1897_v7, 0  ;;  %v1898_v7 = vrot.slane %v8137_v62, 2 }
 0x302   : > { %v799_v18 = vadd.f32 %v11667_v17, %v7867_v39  ;;  %v11671_v17 = vld [vmem:[#allocation106_spill] sm:$0xff] }
 0x303   : > { %2324 = vmatmul.f32.gmra.mxu1 %v2090_v58  ;;  %11670 = vst [vmem:[#allocation14_spill] sm:$0xff] %v8157_v10 }
 0x304   : > { %v8151_v58 = vmul.f32 %v11497_v50, %v799_v18  ;;  %v8163_v18 = vpop.f32.mrf.mxu0  ;;  %v8166_v50 = vmul.f32 %v8157_v10, %v801_v38  ;;  %v1900_v38 = vrot.slane %v8137_v62, 4  ;;  %v1903_v10 = vrot.slane %v8137_v62, 7 }
 0x305   : > { %11673 = vst [vmem:[#allocation26_spill] sm:$0xff] %v8163_v18 }
 0x306   : > { %11669 = vst [vmem:[#allocation41_spill] sm:$0xff] %v8151_v58 }
 0x307   : > { %11674 = vst [vmem:[#allocation105_spill] sm:$0xff] %v8166_v50 }
 0x308   : > { %1514 = vmatmul.bf16.gmra.mxu2 %v6632_v2 }
 0x309   : > { %2246 = vmatmul.f32.gmra.mxu0 %v11668_v46  ;;  %v2092_v46 = vmul.f32 %v1944_v11, %v1458_v29  ;;  %v1462_v2 = vpop.f32.mrf.mxu2  ;;  %v8172_v11 = vpop.f32.mrf.mxu3 }
 0x30a   : > { %11677 = vst [vmem:[#allocation106_spill] sm:$0xff] %v8172_v11 }
 0x30b   : > { %2327 = vmatmul.f32.gmra.mxu1 %v2091_v36  ;;  %v1886_v36 = vrot.slane %v7944_v13, 4  ;;  %v11678_v13 = vld [vmem:[#allocation107_spill] sm:$0xff] }
 0x30c   : > { %v8184_v58 = vpop.f32.mrf.mxu0 }
 0x30d   : > { %v1945_v63 = vperm.slane %v1886_v36, 0  ;;  %v1901_v36 = vrot.slane %v8137_v62, 5  ;;  %11681 = vst [vmem:[#allocation47_spill] sm:$0xff] %v8184_v58  ;;  %v11689_v58 = vld [vmem:[#allocation35_spill] sm:$0xff] }
 0x30f   : > { %1633 = vmatmul.bf16.gmra.mxu3 %v11675_v48  ;;  %v1902_v48 = vrot.slane %v8137_v62, 6  ;;  %v8191_v55 = vperm.slane %v1901_v36, 0  ;;  %v8198_v62 = vperm.slane %v1903_v10, 0 }
 0x311   : > { %2249 = vmatmul.f32.gmra.mxu0 %v11671_v17  ;;  %v11676_v17 = vld [vmem:[#allocation16_spill] sm:$0xff]  ;;  %v8193_v1 = vperm.slane %v1902_v48, 0  ;;  %11687 = vst [vmem:[#allocation126_spill] sm:$0xff] %v8198_v62  ;;  %v1465_v61 = vpop.f32.mrf.mxu2 }
 0x312   : > { %v769_v29 = vadd.f32 %v11676_v17, %v7867_v39  ;;  %v11680_v17 = vld [vmem:[#allocation30_spill] sm:$0xff]  ;;  %v11692_v48 = vld [vmem:[#allocation44_spill] sm:$0xff] }
 0x313   : > { %2330 = vmatmul.f32.gmra.mxu1 %v2092_v46  ;;  %v8176_v46 = vperm.slane %v1898_v7, 0  ;;  %v804_v50 = vadd.f32 %v11680_v17, %v7867_v39  ;;  %v8189_v7 = vperm.slane %v1900_v38, 0  ;;  %11684 = vst [vmem:[#allocation30_spill] sm:$0xff] %v8191_v55  ;;  %v11688_v17 = vld [vmem:[#allocation32_spill] sm:$0xff]  ;;  %v816_v11 = vadd.f32 %v11692_v48, %v7867_v39  ;;  %v6634_v48 = vld [vmem:[%s7447_s13 + $0xb8] sm:$0xff] }
 0x314   : > { %v2093_v25 = vmul.f32 %v1945_v63, %v769_v29  ;;  %v1461_v29 = vadd.f32 %v1460_v14, %v7879_v21  ;;  %11685 = vst [vmem:[#allocation124_spill] sm:$0xff] %v8193_v1  ;;  %v806_v51 = vadd.f32 %v11688_v17, %v7867_v39  ;;  %v809_v14 = vadd.f32 %v11689_v58, %v7867_v39  ;;  %v11691_v38 = vld [vmem:[#allocation40_spill] sm:$0xff] }
 0x315   : > { %11679 = vst [vmem:[#allocation28_spill] sm:$0xff] %v8176_v46  ;;  %v814_v36 = vadd.f32 %v11691_v38, %v7867_v39 }
 0x316   : > { %11683 = vst [vmem:[#allocation107_spill] sm:$0xff] %v8189_v7  ;;  %v2094_v10 = vmul.f32 %v1945_v63, %v1461_v29  ;;  %v8218_v58 = vmul.f32 %v8189_v7, %v809_v14  ;;  %v11699_v63 = vld [vmem:[#allocation52_spill] sm:$0xff]  ;;  %v8230_v29 = vpop.f32.mrf.mxu0  ;;  %v11706_v7 = vld [vmem:[#allocation62_spill] sm:$0xff] }
 0x317   : > { %v8224_v38 = vmul.f32 %v8193_v1, %v814_v36  ;;  %11700 = vst [vmem:[#allocation52_spill] sm:$0xff] %v8230_v29 }
 0x319   : > { %2252 = vmatmul.f32.gmra.mxu0 %v11678_v13  ;;  %v8187_v13 = vperm.slane %v1899_v37, 0  ;;  %v11690_v37 = vld [vmem:[#allocation37_spill] sm:$0xff]  ;;  %11697 = vst [vmem:[#allocation44_spill] sm:$0xff] %v8224_v38 }
 0x31a   : > { %v811_v35 = vadd.f32 %v11690_v37, %v7867_v39  ;;  %11695 = vst [vmem:[#allocation37_spill] sm:$0xff] %v8218_v58 }
 0x31b   : > { %2333 = vmatmul.f32.gmra.mxu1 %v2093_v25  ;;  %11682 = vst [vmem:[#allocation16_spill] sm:$0xff] %v8187_v13  ;;  %v8196_v25 = vmul.f32 %v8176_v46, %v804_v50  ;;  %v8211_v50 = vpop.f32.mrf.mxu3  ;;  %v8215_v17 = vmul.f32 %v8187_v13, %v806_v51  ;;  %v1467_v51 = vpop.f32.mrf.mxu2 }
 0x31c   : > { %11693 = vst [vmem:[#allocation32_spill] sm:$0xff] %v8211_v50  ;;  %v8221_v37 = vmul.f32 %v8191_v55, %v811_v35  ;;  %v1463_v35 = vadd.f32 %v1462_v2, %v7879_v21 }
 0x31d   : > { %11686 = vst [vmem:[#allocation125_spill] sm:$0xff] %v8196_v25  ;;  %v6633_v25 = vld [vmem:[%s7447_s13 + $0xb0] sm:$0xff] }
 0x31e   : > { %11694 = vst [vmem:[#allocation35_spill] sm:$0xff] %v8215_v17  ;;  %1519 = vmatmul.bf16.gmra.mxu2 %v6633_v25 }
 0x31f   : > { %11696 = vst [vmem:[#allocation40_spill] sm:$0xff] %v8221_v37  ;;  %1638 = vmatmul.bf16.gmra.mxu3 %v11699_v63 }
 0x321   : > { %2255 = vmatmul.f32.gmra.mxu0 %v7931_v56  ;;  %v8227_v56 = vmul.f32 %v8198_v62, %v816_v11  ;;  %v2096_v11 = vmul.f32 %v7960_v8, %v1463_v35 }
 0x323   : > { %2336 = vmatmul.f32.gmra.mxu1 %v2094_v10  ;;  %11698 = vst [vmem:[#allocation127_spill] sm:$0xff] %v8227_v56  ;;  %v8234_v14 = vpop.f32.mrf.mxu3  ;;  %v8240_v25 = vpop.f32.mrf.mxu2 }
 0x324   : > { %11701 = vst [vmem:[#allocation128_spill] sm:$0xff] %v8234_v14  ;;  %v11721_v14 = vld [vmem:[#allocation97_spill] sm:$0xff] }
 0x325   : > { %v1438_v50 = vadd.f32 %v11721_v14, %v7879_v21 }
 0x329   : > { %2258 = vmatmul.f32.gmra.mxu0 %v7933_v59  ;;  %v11703_v59 = vld [vmem:[#allocation57_spill] sm:$0xff] }
 0x32b   : > { %2339 = vmatmul.f32.gmra.mxu1 %v7978_v57  ;;  %v8242_v10 = vpop.f32.mrf.mxu3  ;;  %v8248_v35 = vpop.f32.mrf.mxu2 }
 0x32c   : > { %11702 = vst [vmem:[#allocation129_spill] sm:$0xff] %v8242_v10 }
 0x32e   : > { %v2214_v36 = vpop.f32.mrf.mxu0  ;;  %1524 = vmatmul.bf16.gmra.mxu2 %v6634_v48 }
 0x32f   : > { %1643 = vmatmul.bf16.gmra.mxu3 %v11703_v59 }
 0x331   : > { %2261 = vmatmul.f32.gmra.mxu0 %v7927_v15  ;;  %v1466_v15 = vadd.f32 %v1465_v61, %v7879_v21 }
 0x333   : > { %2342 = vmatmul.f32.gmra.mxu1 %v2096_v11  ;;  %v8252_v62 = vpop.f32.mrf.mxu3 }
 0x334   : > { %11704 = vst [vmem:[#allocation57_spill] sm:$0xff] %v8252_v62  ;;  %v11715_v62 = vld [vmem:[#allocation4_spill] sm:$0xff] }
 0x336   : > { %v2217_v63 = vpop.f32.mrf.mxu0 }
 0x337   : > { %v2598_v57 = vmax.f32 %v2214_v36, %v2217_v63 }
 0x338   : > { %v2298_v29 = vpop.f32.mrf.mxu1 }
 0x339   : > { %v2599_v56 = vrot.slane %v2598_v57, 4  ;;  %2264 = vmatmul.f32.gmra.mxu0 %v7929_v19  ;;  %v2098_v19 = vmul.f32 %v7962_v6, %v1466_v15  ;;  %v8261_v6 = vpop.f32.mrf.mxu2 }
 0x33b   : > { %v2600_v2 = vmax.f32 %v2598_v57, %v2599_v56  ;;  %2345 = vmatmul.f32.gmra.mxu1 %v7981_v22  ;;  %v11705_v22 = vld [vmem:[#allocation91_spill] sm:$0xff] }
 0x33c   : > { %v1433_v61 = vadd.f32 %v11705_v22, %v7879_v21 }
 0x33d   : > { %v2601_v8 = vrot.slane %v2600_v2, 2 }
 0x33e   : > { %v8250_v11 = vpop.f32.mrf.mxu0 }
 0x33f   : > { %v2602_v48 = vmax.f32 %v2600_v2, %v2601_v8  ;;  %1648 = vmatmul.bf16.gmra.mxu3 %v11706_v7  ;;  %v2072_v8 = vmul.f32 %v7935_v20, %v1433_v61  ;;  %v1468_v20 = vadd.f32 %v1467_v51, %v7879_v21 }
 0x340   : > { %v2301_v59 = vpop.f32.mrf.mxu1 }
 0x341   : > { %v2603_v38 = vrot.slane %v2602_v48, 1  ;;  %v2696_v1 = vmax.f32 %v2298_v29, %v2301_v59  ;;  %2267 = vmatmul.f32.gmra.mxu0 %v7939_v49 }
 0x343   : > { %v2604_v56 = vmax.f32 %v2602_v48, %v2603_v38  ;;  %v2697_v57 = vrot.slane %v2696_v1, 4  ;;  %2348 = vmatmul.f32.gmra.mxu1 %v2098_v19 }
 0x345   : > { %v3046_v55 = vsub.f32 %v2214_v36, %v2604_v56  ;;  %v3047_v37 = vsub.f32 %v2217_v63, %v2604_v56  ;;  %v2698_v58 = vmax.f32 %v2696_v1, %v2697_v57  ;;  %v8265_v36 = vpop.f32.mrf.mxu3 }
 0x346   : > { %v2223_v2 = vpop.f32.mrf.mxu0  ;;  %11707 = vst [vmem:[#allocation91_spill] sm:$0xff] %v8265_v36 }
 0x347   : > { %v3174_v13 = vmul.f32 1.442695, %v3046_v55  ;;  %v3176_v17 = vmul.f32 1.442695, %v3047_v37  ;;  %v2699_v46 = vrot.slane %v2698_v58, 2  ;;  %v2605_v49 = vmax.f32 %v8250_v11, %v2223_v2 }
 0x348   : > { %v8263_v38 = vpop.f32.mrf.mxu1 }
 0x349   : > { %6708 = vpow2.f32 %v3174_v13  ;;  %v2700_v15 = vmax.f32 %v2698_v58, %v2699_v46  ;;  %v2606_v48 = vrot.slane %v2605_v49, 4  ;;  %2270 = vmatmul.f32.gmra.mxu0 %v2072_v8  ;;  %v8281_v8 = vpop.f32.mrf.mxu2 }
 0x34a   : > { %6710 = vpow2.f32 %v3176_v17  ;;  %v2100_v17 = vmul.f32 %v7997_v31, %v1468_v20  ;;  %v11709_v20 = vld [vmem:[#allocation67_spill] sm:$0xff] }
 0x34b   : > { %v2701_v1 = vrot.slane %v2700_v15, 1  ;;  %v2607_v7 = vmax.f32 %v2605_v49, %v2606_v48  ;;  %2351 = vmatmul.f32.gmra.mxu1 %v8015_v33 }
 0x34d   : > { %v2702_v55 = vmax.f32 %v2700_v15, %v2701_v1  ;;  %v2608_v37 = vrot.slane %v2607_v7, 2  ;;  %v8285_v15 = vpop.f32.mrf.mxu3 }
 0x34e   : > { %v8269_v63 = vpop.f32.mrf.mxu0  ;;  %11708 = vst [vmem:[#allocation62_spill] sm:$0xff] %v8285_v15 }
 0x34f   : > { %v8271_v19 = vpop.eup %6708  ;;  %v3074_v56 = vsub.f32 %v2298_v29, %v2702_v55  ;;  %v3075_v13 = vsub.f32 %v2301_v59, %v2702_v55  ;;  %v2609_v46 = vmax.f32 %v2607_v7, %v2608_v37  ;;  %1653 = vmatmul.bf16.gmra.mxu3 %v11709_v20  ;;  %v1471_v20 = vadd.f32 %v8240_v25, %v7879_v21 }
 0x350   : > { %v8273_v58 = vpop.eup %6710  ;;  %v8275_v57 = vpop.f32.mrf.mxu1 }
 0x351   : > { %v3430_v33 = vadd.f32 %v8273_v58, %v8271_v19  ;;  %v3230_v22 = vmul.f32 1.442695, %v3074_v56  ;;  %v3232_v51 = vmul.f32 1.442695, %v3075_v13  ;;  %v2610_v61 = vrot.slane %v2609_v46, 1  ;;  %2273 = vmatmul.f32.gmra.mxu0 %v7941_v23 }
 0x352   : > { %v2703_v29 = vmax.f32 %v8263_v38, %v8275_v57 }
 0x353   : > { %v3431_v59 = vrot.slane %v3430_v33, 4  ;;  %6712 = vpow2.f32 %v3230_v22  ;;  %v2611_v49 = vmax.f32 %v2609_v46, %v2610_v61  ;;  %2354 = vmatmul.f32.gmra.mxu1 %v2100_v17  ;;  %v354_v17 = vld [vmem:[%s11487_s7 + $0x8] sm:$0xff] }
 0x354   : > { %6714 = vpow2.f32 %v3232_v51  ;;  %v2704_v31 = vrot.slane %v2703_v29, 4  ;;  %v8368_v28 = vperm.slane %v354_v17, 1 }
 0x355   : > { %v3432_v48 = vadd.f32 %v3431_v59, %v3430_v33  ;;  %v3048_v1 = vsub.f32 %v8250_v11, %v2611_v49  ;;  %v3049_v7 = vsub.f32 %v2223_v2, %v2611_v49  ;;  %v8303_v59 = vperm.slane %v354_v17, 0 }
 0x356   : > { %v2705_v23 = vmax.f32 %v2703_v29, %v2704_v31  ;;  %v8289_v55 = vpop.f32.mrf.mxu0 }
 0x357   : > { %v3433_v37 = vrot.slane %v3432_v48, 2  ;;  %v3178_v56 = vmul.f32 1.442695, %v3048_v1  ;;  %v3180_v13 = vmul.f32 1.442695, %v3049_v7  ;;  %v2612_v46 = vmax.f32 %v8269_v63, %v8289_v55  ;;  %11710 = vst [vmem:[#allocation67_spill] sm:$0xff] %v8303_v59  ;;  %v8308_v7 = vpop.f32.mrf.mxu2 }
 0x358   : > { %v2706_v22 = vrot.slane %v2705_v23, 2  ;;  %v8296_v33 = vpop.f32.mrf.mxu1  ;;  %11711 = vst [vmem:[#allocation130_spill] sm:$0xff] %v8308_v7 }
 0x359   : > { %v8298_v11 = vpop.eup %6712  ;;  %v3434_v2 = vadd.f32 %v3433_v37, %v3432_v48  ;;  %6716 = vpow2.f32 %v3178_v56  ;;  %v2613_v51 = vrot.slane %v2612_v46, 4  ;;  %2276 = vmatmul.f32.gmra.mxu0 %v7949_v3 }
 0x35a   : > { %v8301_v61 = vpop.eup %6714  ;;  %6718 = vpow2.f32 %v3180_v13  ;;  %v2707_v29 = vmax.f32 %v2705_v23, %v2706_v22  ;;  %v8314_v23 = vpop.f32.mrf.mxu3 }
 0x35b   : > { %v3435_v49 = vrot.slane %v3434_v2, 1  ;;  %v3528_v31 = vadd.f32 %v8301_v61, %v8298_v11  ;;  %v2614_v1 = vmax.f32 %v2612_v46, %v2613_v51  ;;  %2357 = vmatmul.f32.gmra.mxu1 %v8008_v16  ;;  %11712 = vst [vmem:[#allocation131_spill] sm:$0xff] %v8314_v23  ;;  %v11713_v46 = vld [vmem:[#allocation2_spill] sm:$0xff]  ;;  %v11714_v51 = vld [vmem:[#allocation3_spill] sm:$0xff] }
 0x35c   : > { %v2708_v48 = vrot.slane %v2707_v29, 1  ;;  %v8322_v16 = vadd.f32 %v11713_v46, %v8303_v59  ;;  %v8326_v36 = vadd.f32 %v11714_v51, %v8303_v59  ;;  %v8337_v46 = vadd.f32 %v11715_v62, %v8303_v59 }
 0x35d   : > { %v8312_v3 = vadd.f32 %v3435_v49, %v3434_v2  ;;  %v3529_v37 = vrot.slane %v3528_v31, 4  ;;  %v2615_v56 = vrot.slane %v2614_v1, 2 }
 0x35e   : > { %v2709_v13 = vmax.f32 %v2707_v29, %v2708_v48  ;;  %v8316_v22 = vpop.f32.mrf.mxu0 }
 0x35f   : > { %v8318_v15 = vpop.eup %6716  ;;  %6720 = vrcp.f32 %v8312_v3  ;;  %v3530_v2 = vadd.f32 %v3529_v37, %v3528_v31  ;;  %v2616_v48 = vmax.f32 %v2614_v1, %v2615_v56  ;;  %v11716_v31 = vperm.slane %v7975_v42, 0  ;;  %v11719_v37 = vld [vmem:[#allocation6_spill] sm:$0xff]  ;;  %v11722_v42 = vld [vmem:[#allocation7_spill] sm:$0xff]  ;;  %1658 = vmatmul.bf16.gmra.mxu3 %v11728_v53 }
 0x360   : > { %v8329_v25 = vpop.eup %6718  ;;  %v3076_v49 = vsub.f32 %v8263_v38, %v2709_v13  ;;  %v3077_v29 = vsub.f32 %v8275_v57, %v2709_v13  ;;  %v8333_v23 = vpop.f32.mrf.mxu1  ;;  %v11717_v57 = vld [vmem:[#allocation5_spill] sm:$0xff]  ;;  %v8352_v56 = vadd.f32 %v11719_v37, %v8303_v59  ;;  %v3889_v53 = vand.u32 2147483648, %v8312_v3 }
 0x361   : > { %v3437_v51 = vadd.f32 %v8329_v25, %v8318_v15  ;;  %v2710_v10 = vmax.f32 %v8296_v33, %v8333_v23  ;;  %2279 = vmatmul.f32.gmra.mxu0 %v7989_v27  ;;  %v2102_v38 = vmul.f32 %v11716_v31, %v1471_v20  ;;  %v8348_v1 = vadd.f32 %v11717_v57, %v8303_v59  ;;  %v11724_v20 = vld [vmem:[#allocation8_spill] sm:$0xff]  ;;  %v11726_v57 = vld [vmem:[#allocation9_spill] sm:$0xff] }
 0x362   : > { %11720 = vst [vmem:[#allocation3_spill] sm:$0xff] %v8352_v56  ;;  %v3531_v62 = vrot.slane %v3530_v2, 2  ;;  %v2617_v13 = vrot.slane %v2616_v48, 1  ;;  %v3234_v52 = vmul.f32 1.442695, %v3076_v49  ;;  %v8358_v27 = vadd.f32 %v11722_v42, %v8303_v59  ;;  %v8372_v42 = vpop.f32.mrf.mxu2 }
 0x363   : > { %11718 = vst [vmem:[#allocation2_spill] sm:$0xff] %v8348_v1  ;;  %v3438_v18 = vrot.slane %v3437_v51, 4  ;;  %v2711_v0 = vrot.slane %v2710_v10, 4  ;;  %2360 = vmatmul.f32.gmra.mxu1 %v2102_v38  ;;  %v8362_v31 = vadd.f32 %v11724_v20, %v8303_v59  ;;  %v8366_v37 = vadd.f32 %v11726_v57, %v8303_v59 }
 0x364   : > { %11723 = vst [vmem:[#allocation4_spill] sm:$0xff] %v8358_v27  ;;  %v3236_v56 = vmul.f32 1.442695, %v3077_v29  ;;  %v2618_v49 = vmax.f32 %v2616_v48, %v2617_v13  ;;  %v2076_v38 = vmul.f32 %v7964_v30, %v1438_v50  ;;  %v3887_v20 = vand.u32 2147483647, %v8312_v3  ;;  %v8380_v48 = vpop.f32.mrf.mxu3  ;;  %v11730_v13 = vld [vmem:[#allocation10_spill] sm:$0xff] }
 0x365   : > { %11725 = vst [vmem:[#allocation5_spill] sm:$0xff] %v8362_v31  ;;  %v6721_v1 = vpop.eup %6720  ;;  %v3439_v14 = vadd.f32 %v3438_v18, %v3437_v51  ;;  %v3532_v31 = vadd.f32 %v3531_v62, %v3530_v2  ;;  %v2712_v7 = vmax.f32 %v2710_v10, %v2711_v0  ;;  %6722 = vpow2.f32 %v3234_v52 }
 0x366   : > { %11727 = vst [vmem:[#allocation6_spill] sm:$0xff] %v8366_v37  ;;  %v3879_v27 = vmul.f32 %v6721_v1, %v8312_v3  ;;  %v8376_v57 = vpop.f32.mrf.mxu0  ;;  %v3050_v17 = vsub.f32 %v8269_v63, %v2618_v49  ;;  %v3051_v18 = vsub.f32 %v8289_v55, %v2618_v49  ;;  %6724 = vpow2.f32 %v3236_v56 }
 0x367   : > { %v3440_v29 = vrot.slane %v3439_v14, 2  ;;  %11729 = vst [vmem:[#allocation97_spill] sm:$0xff] %v8380_v48  ;;  %v2619_v50 = vmax.f32 %v8316_v22, %v8376_v57  ;;  %vm3884_vm0 = vweird.f32 %v6721_v1  ;;  %v3533_v63 = vrot.slane %v3532_v31, 1 }
 0x368   : > { %v3880_v30 = vsub.f32 1.0, %v3879_v27  ;;  %v8385_v51 = vpop.f32.mrf.mxu1  ;;  %v3182_v10 = vmul.f32 1.442695, %v3050_v17  ;;  %v3184_v2 = vmul.f32 1.442695, %v3051_v18  ;;  %v2713_v62 = vrot.slane %v2712_v7, 2 }
 0x369   : > { %v3441_v0 = vadd.f32 %v3440_v29, %v3439_v14  ;;  %2282 = vmatmul.f32.gmra.mxu0 %v2076_v38  ;;  %v2620_v55 = vrot.slane %v2619_v50, 4  ;;  %v8389_v27 = vadd.f32 %v11730_v13, %v8303_v59  ;;  %v1473_v56 = vadd.f32 %v8248_v35, %v7879_v21  ;;  %v11740_v13 = vld [vmem:[#allocation17_spill] sm:$0xff] }
 0x36a   : > { %v3881_v52 = vmul.f32 %v6721_v1, %v3880_v30  ;;  %6726 = vpow2.f32 %v3182_v10  ;;  %vm3883_vm1 = vweird.f32 %v8312_v3  ;;  %v1580_v29 = vadd.f32 %v8124_v60, %v8368_v28  ;;  %v11734_v60 = vld [vmem:[#allocation12_spill] sm:$0xff] }
 0x36b   : > { %11731 = vst [vmem:[#allocation7_spill] sm:$0xff] %v8389_v27  ;;  %v3442_v49 = vrot.slane %v3441_v0, 1  ;;  %2363 = vmatmul.f32.gmra.mxu1 %v8024_v44  ;;  %6728 = vpow2.f32 %v3184_v2  ;;  %v2621_v14 = vmax.f32 %v2619_v50, %v2620_v55  ;;  %v8395_v38 = vpop.eup %6722  ;;  %vm3885_vm2 = vmor %vm3883_vm1, %vm3884_vm0  ;;  %vm3888_vm3 = vcmp.eq.f32.partialorder %v3887_v20, 8.507059e+37  ;;  %v11732_v50 = vld [vmem:[#allocation11_spill] sm:$0xff] }
 0x36c   : > { %v3882_v37 = vadd.f32 %v6721_v1, %v3881_v52  ;;  %v3890_v17 = vor.u32 1.1754944e-38, %v3889_v53  ;;  %v8402_v35 = vpop.eup %6724  ;;  %v8404_v44 = vadd.f32 %v3533_v63, %v3532_v31  ;;  %v2714_v10 = vmax.f32 %v2712_v7, %v2713_v62  ;;  %v11736_v53 = vld [vmem:[#allocation13_spill] sm:$0xff]  ;;  %v11738_v7 = vld [vmem:[#allocation15_spill] sm:$0xff] }
 0x36d   : > { %v8400_v18 = vadd.f32 %v3442_v49, %v3441_v0  ;;  %v2622_v3 = vrot.slane %v2621_v14, 2  ;;  %v8410_v52 = vadd.f32 %v11732_v50, %v8303_v59  ;;  %v8414_v55 = vadd.f32 %v11734_v60, %v8303_v59  ;;  %v8439_v60 = vpop.f32.mrf.mxu3 }
 0x36e   : > { %v3886_v30 = vsel %vm3885_vm2, %v6721_v1, %v3882_v37  ;;  %v8406_v2 = vpop.f32.mrf.mxu0  ;;  %v8419_v1 = vadd.f32 %v11736_v53, %v8303_v59  ;;  %v8423_v31 = vadd.f32 %v11738_v7, %v8303_v59  ;;  %v8425_v37 = vpop.f32.mrf.mxu2  ;;  %v8433_v49 = vadd.f32 %v11740_v13, %v8303_v59  ;;  %11743 = vst [vmem:[#allocation12_spill] sm:$0xff] %v8439_v60 }
 0x36f   : > { %11733 = vst [vmem:[#allocation8_spill] sm:$0xff] %v8410_v52  ;;  %v3891_v20 = vsel %vm3888_vm3, %v3890_v17, %v3886_v30  ;;  %6730 = vrcp.f32 %v8400_v18  ;;  %v11742_v17 = vld [vmem:[#allocation18_spill] sm:$0xff]  ;;  %v2623_v50 = vmax.f32 %v2621_v14, %v2622_v3  ;;  %v2104_v53 = vmul.f32 %v8017_v43, %v1473_v56  ;;  %1663 = vmatmul.bf16.gmra.mxu3 %v8032_v32 }
 0x370   : > { %11735 = vst [vmem:[#allocation9_spill] sm:$0xff] %v8414_v55  ;;  %v3892_v0 = vmul.f32 %v8271_v19, %v3891_v20  ;;  %v3893_v63 = vmul.f32 %v8273_v58, %v3891_v20  ;;  %v8429_v62 = vpop.eup %6726  ;;  %v8437_v30 = vadd.f32 %v11742_v17, %v8303_v59  ;;  %6732 = vrcp.f32 %v8404_v44  ;;  %v8447_v13 = vpop.f32.mrf.mxu1  ;;  %v11744_v17 = vld [vmem:[#allocation19_spill] sm:$0xff] }
 0x371   : > { %11737 = vst [vmem:[#allocation108_spill] sm:$0xff] %v8419_v1  ;;  %2285 = vmatmul.f32.gmra.mxu0 %v8021_v26  ;;  %v8443_v19 = vpop.eup %6728  ;;  %v2715_v7 = vrot.slane %v2714_v10, 1  ;;  %v3535_v14 = vadd.f32 %v8402_v35, %v8395_v38  ;;  %v2624_v26 = vrot.slane %v2623_v50, 1  ;;  %v11752_v1 = vld [vmem:[#allocation23_spill] sm:$0xff]  ;;  %vm3899_vm4 = vweird.f32 %v8400_v18 }
 0x372   : > { %11739 = vst [vmem:[#allocation10_spill] sm:$0xff] %v8423_v31  ;;  %v4902_v58 = vmul.f32 %v3892_v0, %v8322_v16  ;;  %v4903_v20 = vmul.f32 %v3893_v63, %v1580_v29  ;;  %v3444_v43 = vadd.f32 %v8443_v19, %v8429_v62  ;;  %v11746_v16 = vld [vmem:[#allocation20_spill] sm:$0xff]  ;;  %v11748_v29 = vld [vmem:[#allocation21_spill] sm:$0xff]  ;;  %v11750_v0 = vld [vmem:[#allocation22_spill] sm:$0xff]  ;;  %v8473_v55 = vadd.f32 %v11752_v1, %v8303_v59 }
 0x373   : > { %11741 = vst [vmem:[#allocation11_spill] sm:$0xff] %v8433_v49  ;;  %v8451_v49 = vadd.f32 %v11744_v17, %v8303_v59  ;;  %2366 = vmatmul.f32.gmra.mxu1 %v2104_v53  ;;  %v8459_v56 = vadd.f32 %v11746_v16, %v8303_v59  ;;  %v8463_v3 = vadd.f32 %v11748_v29, %v8303_v59  ;;  %v3536_v1 = vrot.slane %v3535_v14, 4 }
 0x374   : > { %v8467_v63 = vadd.f32 %v11750_v0, %v8303_v59  ;;  %v8469_v17 = vadd.f32 %v4903_v20, %v4902_v58  ;;  %11753 = vst [vmem:[#allocation19_spill] sm:$0xff] %v8473_v55  ;;  %v3445_v53 = vrot.slane %v3444_v43, 4  ;;  %v2625_v52 = vmax.f32 %v2623_v50, %v2624_v26 }
 0x375   : > { %11745 = vst [vmem:[#allocation13_spill] sm:$0xff] %v8451_v49  ;;  %v6731_v31 = vpop.eup %6730  ;;  %v2717_v16 = vmax.f32 %v8385_v51, %v8447_v13  ;;  %v1476_v29 = vadd.f32 %v8261_v6, %v7879_v21  ;;  %v1582_v0 = vadd.f32 %v8139_v40, %v8368_v28  ;;  %v2716_v20 = vmax.f32 %v2714_v10, %v2715_v7 }
 0x376   : > { %11747 = vst [vmem:[#allocation15_spill] sm:$0xff] %v8459_v56  ;;  %v3895_v58 = vmul.f32 %v6731_v31, %v8400_v18  ;;  %v8483_v27 = vpop.f32.mrf.mxu0  ;;  %v3446_v55 = vadd.f32 %v3445_v53, %v3444_v43  ;;  %v3052_v50 = vsub.f32 %v8316_v22, %v2625_v52  ;;  %v3053_v26 = vsub.f32 %v8376_v57, %v2625_v52  ;;  %v8494_v7 = vpop.f32.mrf.mxu2 }
 0x377   : > { %11749 = vst [vmem:[#allocation17_spill] sm:$0xff] %v8463_v3  ;;  %v3905_v6 = vand.u32 2147483648, %v8400_v18  ;;  %v2718_v3 = vrot.slane %v2717_v16, 4  ;;  %v2626_v10 = vmax.f32 %v8406_v2, %v8483_v27  ;;  %vm3900_vm5 = vweird.f32 %v6731_v31  ;;  %v8497_v53 = vpop.f32.mrf.mxu3 }
 0x378   : > { %11751 = vst [vmem:[#allocation18_spill] sm:$0xff] %v8467_v63  ;;  %v8487_v63 = vpop.eup %6732  ;;  %v3896_v32 = vsub.f32 1.0, %v3895_v58  ;;  %v3447_v40 = vrot.slane %v3446_v55, 2  ;;  %v3186_v60 = vmul.f32 1.442695, %v3052_v50  ;;  %v3537_v56 = vadd.f32 %v3536_v1, %v3535_v14  ;;  %vm3901_vm6 = vmor %vm3899_vm4, %vm3900_vm5 }
 0x379   : > { %v3188_v48 = vmul.f32 1.442695, %v3053_v26  ;;  %2288 = vmatmul.f32.gmra.mxu0 %v8026_v5  ;;  %v3903_v57 = vand.u32 2147483647, %v8400_v18  ;;  %v2719_v52 = vmax.f32 %v2717_v16, %v2718_v3  ;;  %11754 = vst [vmem:[#allocation20_spill] sm:$0xff] %v8497_v53  ;;  %v2627_v58 = vrot.slane %v2626_v10, 4 }
 0x37a   : > { %v3897_v22 = vmul.f32 %v6731_v31, %v3896_v32  ;;  %v3448_v43 = vadd.f32 %v3447_v40, %v3446_v55  ;;  %6734 = vpow2.f32 %v3186_v60  ;;  %v4103_v50 = vmul.f32 %v8487_v63, %v8404_v44  ;;  %v11755_v53 = vld [vmem:[#allocation103_spill] sm:$0xff] }
 0x37b   : > { %2369 = vmatmul.f32.gmra.mxu1 %v8046_v41  ;;  %6736 = vpow2.f32 %v3188_v48  ;;  %v2720_v5 = vrot.slane %v2719_v52, 2  ;;  %v3906_v32 = vor.u32 1.1754944e-38, %v3905_v6  ;;  %v3078_v55 = vsub.f32 %v8296_v33, %v2716_v20  ;;  %v8514_v6 = vpop.f32.mrf.mxu1 }
 0x37c   : > { %v3898_v26 = vadd.f32 %v6731_v31, %v3897_v22  ;;  %v3449_v49 = vrot.slane %v3448_v43, 1  ;;  %v3079_v60 = vsub.f32 %v8333_v23, %v2716_v20  ;;  %vm3904_vm7 = vcmp.eq.f32.partialorder %v3903_v57, 8.507059e+37 }
 0x37d   : > { %v2628_v16 = vmax.f32 %v2626_v10, %v2627_v58  ;;  %v4104_v40 = vsub.f32 1.0, %v4103_v50  ;;  %v1443_v41 = vadd.f32 %v11755_v53, %v7879_v21  ;;  %v2721_v48 = vmax.f32 %v2719_v52, %v2720_v5 }
 0x37e   : > { %v3902_v3 = vsel %vm3901_vm6, %v6731_v31, %v3898_v26  ;;  %v8508_v14 = vadd.f32 %v3449_v49, %v3448_v43  ;;  %v1478_v18 = vadd.f32 %v8281_v8, %v7879_v21  ;;  %v2106_v23 = vmul.f32 %v8036_v9, %v1476_v29  ;;  %v8524_v52 = vpop.f32.mrf.mxu2  ;;  %v11756_v9 = vld [vmem:[#allocation24_spill] sm:$0xff] }
 0x37f   : > { %v3907_v22 = vsel %vm3904_vm7, %v3906_v32, %v3902_v3  ;;  %v3538_v20 = vrot.slane %v3537_v56, 2  ;;  %v3238_v10 = vmul.f32 1.442695, %v3078_v55  ;;  %v3240_v49 = vmul.f32 1.442695, %v3079_v60  ;;  %v1614_v60 = vpop.f32.mrf.mxu3  ;;  %1668 = vmatmul.bf16.gmra.mxu3 %v8065_v4 }
 0x380   : > { %v3908_v1 = vmul.f32 %v8318_v15, %v3907_v22  ;;  %v3909_v33 = vmul.f32 %v8329_v25, %v3907_v22  ;;  %v8517_v31 = vpop.eup %6734  ;;  %6738 = vrcp.f32 %v8508_v14  ;;  %v2629_v25 = vrot.slane %v2628_v16, 2 }
 0x381   : > { %2291 = vmatmul.f32.gmra.mxu0 %v8039_v24  ;;  %v8521_v57 = vpop.eup %6736  ;;  %v4105_v43 = vmul.f32 %v8487_v63, %v4104_v40  ;;  %v8529_v29 = vadd.f32 %v11756_v9, %v8303_v59  ;;  %v2722_v58 = vrot.slane %v2721_v48, 1  ;;  %v2080_v24 = vmul.f32 %v8029_v12, %v1443_v41 }
 0x382   : > { %v4904_v8 = vmul.f32 %v3908_v1, %v8326_v36  ;;  %v4905_v15 = vmul.f32 %v3909_v33, %v1582_v0  ;;  %v3451_v53 = vadd.f32 %v8521_v57, %v8517_v31  ;;  %v8536_v36 = vadd.f32 %v8155_v34, %v8368_v28 }
 0x383   : > { %11757 = vst [vmem:[#allocation21_spill] sm:$0xff] %v8529_v29  ;;  %2372 = vmatmul.f32.gmra.mxu1 %v2106_v23  ;;  %v4111_v50 = vand.u32 2147483647, %v8404_v44  ;;  %v8542_v26 = vmul.f32 %v8060_v54, %v1478_v18  ;;  %v3539_v5 = vadd.f32 %v3538_v20, %v3537_v56  ;;  %6740 = vpow2.f32 %v3238_v10 }
 0x384   : > { %v8538_v0 = vadd.f32 %v4905_v15, %v4904_v8  ;;  %v3452_v32 = vrot.slane %v3451_v53, 4  ;;  %v2723_v55 = vmax.f32 %v2721_v48, %v2722_v58  ;;  %6742 = vpow2.f32 %v3240_v49  ;;  %v8564_v49 = vpop.f32.mrf.mxu1  ;;  %v8573_v58 = vpop.f32.mrf.mxu0 }
 0x385   : > { %v2630_v12 = vmax.f32 %v2628_v16, %v2629_v25  ;;  %v4106_v3 = vadd.f32 %v8487_v63, %v4105_v43  ;;  %vm4108_vm8 = vweird.f32 %v8487_v63  ;;  %v4113_v56 = vand.u32 2147483648, %v8404_v44 }
 0x386   : > { %v6739_v34 = vpop.eup %6738  ;;  %v3453_v40 = vadd.f32 %v3452_v32, %v3451_v53  ;;  %v3080_v41 = vsub.f32 %v8385_v51, %v2723_v55  ;;  %v3081_v54 = vsub.f32 %v8447_v13, %v2723_v55  ;;  %v3919_v48 = vand.u32 2147483647, %v8508_v14  ;;  %v8571_v9 = vpop.f32.mrf.mxu2 }
 0x387   : > { %v3911_v22 = vmul.f32 %v6739_v34, %v8508_v14  ;;  %v8553_v4 = vadd.f32 %v1614_v60, %v8368_v28  ;;  %vm4107_vm9 = vweird.f32 %v8404_v44  ;;  %v3540_v16 = vrot.slane %v3539_v5, 1 }
 0x388   : > { %v3454_v18 = vrot.slane %v3453_v40, 2  ;;  %v3242_v1 = vmul.f32 1.442695, %v3080_v41  ;;  %v3244_v33 = vmul.f32 1.442695, %v3081_v54  ;;  %vm8556_vm10 = vmor %vm4107_vm9, %vm4108_vm8  ;;  %v3921_v13 = vand.u32 2147483648, %v8508_v14 }
 0x389   : > { %2294 = vmatmul.f32.gmra.mxu0 %v2080_v24  ;;  %v3912_v51 = vsub.f32 1.0, %v3911_v22  ;;  %v2631_v20 = vrot.slane %v2630_v12, 1  ;;  %v4110_v10 = vsel %vm8556_vm10, %v8487_v63, %v4106_v3  ;;  %v8566_v44 = vpop.eup %6740  ;;  %vm4112_vm11 = vcmp.eq.f32.partialorder %v4111_v50, 8.507059e+37 }
 0x38a   : > { %v3455_v8 = vadd.f32 %v3454_v18, %v3453_v40  ;;  %6744 = vpow2.f32 %v3242_v1  ;;  %v4114_v15 = vor.u32 1.1754944e-38, %v4113_v56  ;;  %v8569_v25 = vpop.eup %6742  ;;  %vm3916_vm12 = vweird.f32 %v6739_v34  ;;  %v11760_v18 = vld [vmem:[#allocation25_spill] sm:$0xff] }
 0x38b   : > { %2375 = vmatmul.f32.gmra.mxu1 %v8068_v45  ;;  %v3913_v43 = vmul.f32 %v6739_v34, %v3912_v51  ;;  %6746 = vpow2.f32 %v3244_v33  ;;  %v2632_v53 = vmax.f32 %v2630_v12, %v2631_v20  ;;  %v8575_v63 = vadd.f32 %v3540_v16, %v3539_v5 }
 0x38c   : > { %v3456_v24 = vrot.slane %v3455_v8, 1  ;;  %v4115_v32 = vsel %vm4112_vm11, %v4114_v15, %v4110_v10  ;;  %v2724_v50 = vmax.f32 %v8514_v6, %v8564_v49  ;;  %vm3915_vm13 = vweird.f32 %v8508_v14  ;;  %v11766_v10 = vld [vmem:[#allocation31_spill] sm:$0xff] }
 0x38d   : > { %v3914_v55 = vadd.f32 %v6739_v34, %v3913_v43  ;;  %v3054_v45 = vsub.f32 %v8406_v2, %v2632_v53  ;;  %v3055_v60 = vsub.f32 %v8483_v27, %v2632_v53  ;;  %vm3917_vm14 = vmor %vm3915_vm13, %vm3916_vm12  ;;  %v3922_v3 = vor.u32 1.1754944e-38, %v3921_v13  ;;  %v11764_v13 = vld [vmem:[#allocation29_spill] sm:$0xff]  ;;  %v8621_v43 = vpop.f32.mrf.mxu3 }
 0x38e   : > { %v3542_v12 = vadd.f32 %v8569_v25, %v8566_v44  ;;  %v8584_v40 = vadd.f32 %v3456_v24, %v3455_v8  ;;  %v4116_v5 = vmul.f32 %v8298_v11, %v4115_v32  ;;  %vm3920_vm15 = vcmp.eq.f32.partialorder %v3919_v48, 8.507059e+37  ;;  %v11762_v11 = vld [vmem:[#allocation27_spill] sm:$0xff] }
 0x38f   : > { %v3918_v41 = vsel %vm3917_vm14, %v6739_v34, %v3914_v55  ;;  %v3190_v54 = vmul.f32 1.442695, %v3054_v45  ;;  %v4117_v56 = vmul.f32 %v8301_v61, %v4115_v32  ;;  %v3192_v27 = vmul.f32 1.442695, %v3055_v60  ;;  %1673 = vmatmul.bf16.gmra.mxu3 %v8093_v47  ;;  %v8634_v32 = vpop.f32.mrf.mxu2  ;;  %v11770_v55 = vld [vmem:[#allocation38_spill] sm:$0xff] }
 0x390   : > { %v8588_v22 = vpop.eup %6744  ;;  %v3923_v14 = vsel %vm3920_vm15, %v3922_v3, %v3918_v41  ;;  %6748 = vrcp.f32 %v8584_v40  ;;  %v2725_v2 = vrot.slane %v2724_v50, 4  ;;  %v8595_v1 = vadd.f32 %v11760_v18, %v8303_v59  ;;  %v11780_v18 = vld [vmem:[#allocation130_spill] sm:$0xff] }
 0x391   : > { %v8591_v16 = vpop.eup %6746  ;;  %v8599_v34 = vadd.f32 %v11762_v11, %v8303_v59  ;;  %v3924_v48 = vmul.f32 %v8429_v62, %v3923_v14  ;;  %v3925_v61 = vmul.f32 %v8443_v19, %v3923_v14  ;;  %v3543_v33 = vrot.slane %v3542_v12, 4 }
 0x392   : > { %11761 = vst [vmem:[#allocation22_spill] sm:$0xff] %v8595_v1  ;;  %v8605_v23 = vadd.f32 %v8591_v16, %v8588_v22  ;;  %6750 = vpow2.f32 %v3190_v54  ;;  %v4930_v51 = vmul.f32 %v4116_v5, %v8437_v30  ;;  %v8611_v20 = vadd.f32 %v11764_v13, %v8303_v59  ;;  %v11776_v54 = vld [vmem:[#allocation46_spill] sm:$0xff] }
 0x393   : > { %11763 = vst [vmem:[#allocation23_spill] sm:$0xff] %v8599_v34  ;;  %2378 = vmatmul.f32.gmra.mxu1 %v8542_v26  ;;  %6752 = vrcp.f32 %v8575_v63  ;;  %v4906_v62 = vmul.f32 %v3924_v48, %v8337_v46  ;;  %v4907_v19 = vmul.f32 %v3925_v61, %v8536_v36  ;;  %v8618_v8 = vadd.f32 %v11766_v10, %v8303_v59  ;;  %v11768_v26 = vld [vmem:[#allocation34_spill] sm:$0xff] }
 0x394   : > { %11765 = vst [vmem:[#allocation103_spill] sm:$0xff] %v8611_v20  ;;  %6754 = vpow2.f32 %v3192_v27  ;;  %v4931_v15 = vmul.f32 %v4117_v56, %v8553_v4  ;;  %v2726_v30 = vmax.f32 %v2724_v50, %v2725_v2  ;;  %v8626_v53 = vadd.f32 %v11768_v26, %v8303_v59  ;;  %v8636_v4 = vpop.f32.mrf.mxu0  ;;  %v11788_v20 = vld [vmem:[#allocation113_spill] sm:$0xff] }
 0x395   : > { %11767 = vst [vmem:[#allocation24_spill] sm:$0xff] %v8618_v8  ;;  %v1483_v46 = vadd.f32 %v8372_v42, %v7879_v21  ;;  %v1486_v36 = vadd.f32 %v8425_v37, %v7879_v21  ;;  %v8632_v24 = vadd.f32 %v4907_v19, %v4906_v62  ;;  %v8640_v47 = vadd.f32 %v11770_v55, %v8303_v59  ;;  %v11772_v42 = vld [vmem:[#allocation42_spill] sm:$0xff]  ;;  %v11774_v37 = vld [vmem:[#allocation33_spill] sm:$0xff]  ;;  %v11782_v62 = vld [vmem:[#allocation119_spill] sm:$0xff] }
 0x396   : > { %11769 = vst [vmem:[#allocation25_spill] sm:$0xff] %v8626_v53  ;;  %v6749_v50 = vpop.eup %6748  ;;  %v3544_v45 = vadd.f32 %v3543_v33, %v3542_v12  ;;  %v8642_v60 = vadd.f32 %v4931_v15, %v4930_v51  ;;  %v2727_v3 = vrot.slane %v2726_v30, 2  ;;  %v8646_v5 = vadd.f32 %v11772_v42, %v8303_v59  ;;  %v11778_v12 = vld [vmem:[#allocation49_spill] sm:$0xff]  ;;  %v11781_v51 = vld [vmem:[#allocation116_spill] sm:$0xff] }
 0x397   : > { %11771 = vst [vmem:[#allocation27_spill] sm:$0xff] %v8640_v47  ;;  %v8650_v41 = vadd.f32 %v11774_v37, %v8303_v59  ;;  %v8654_v56 = vadd.f32 %v11776_v54, %v7867_v39  ;;  %v3927_v14 = vmul.f32 %v6749_v50, %v8584_v40  ;;  %v8661_v2 = vadd.f32 %v11778_v12, %v7867_v39  ;;  %v8684_v54 = vpop.f32.mrf.mxu1  ;;  %v11785_v12 = vld [vmem:[#allocation26_spill] sm:$0xff] }
 0x398   : > { %11773 = vst [vmem:[#allocation29_spill] sm:$0xff] %v8646_v5  ;;  %v8657_v27 = vpop.eup %6750  ;;  %v1481_v11 = vadd.f32 %v11780_v18, %v7879_v21  ;;  %v1488_v48 = vadd.f32 %v8494_v7, %v7879_v21  ;;  %v2728_v61 = vmax.f32 %v2726_v30, %v2727_v3  ;;  %v8670_v13 = vmul.f32 %v11781_v51, %v1483_v46  ;;  %v11783_v3 = vld [vmem:[#allocation114_spill] sm:$0xff] }
 0x399   : > { %11775 = vst [vmem:[#allocation31_spill] sm:$0xff] %v8650_v41  ;;  %v8667_v33 = vpop.eup %6752  ;;  %v8673_v19 = vmul.f32 %v11782_v62, %v1486_v36  ;;  %v3928_v10 = vsub.f32 1.0, %v3927_v14  ;;  %v2633_v15 = vmax.f32 %v8573_v58, %v8636_v4  ;;  %v3545_v55 = vrot.slane %v3544_v45, 2  ;;  %v11784_v14 = vld [vmem:[#allocation100_spill] sm:$0xff]  ;;  %v11787_v51 = vld [vmem:[#allocation106_spill] sm:$0xff] }
 0x39a   : > { %11777 = vst [vmem:[#allocation34_spill] sm:$0xff] %v8654_v56  ;;  %v8677_v26 = vpop.eup %6754  ;;  %v3935_v42 = vand.u32 2147483647, %v8584_v40  ;;  %v3937_v7 = vand.u32 2147483648, %v8584_v40  ;;  %v2729_v30 = vrot.slane %v2728_v61, 1  ;;  %vm3932_vm0 = vweird.f32 %v6749_v50 }
 0x39b   : > { %11779 = vst [vmem:[#allocation38_spill] sm:$0xff] %v8661_v2  ;;  %2381 = vmatmul.f32.gmra.mxu1 %v11783_v3  ;;  %v3929_v37 = vmul.f32 %v6749_v50, %v3928_v10  ;;  %v3458_v46 = vadd.f32 %v8677_v26, %v8657_v27  ;;  %v2634_v36 = vrot.slane %v2633_v15, 4  ;;  %v8688_v18 = vadd.f32 %v11785_v12, %v11784_v14 }
 0x39c   : > { %v1587_v62 = vadd.f32 %v11787_v51, %v8368_v28  ;;  %v2730_v59 = vmax.f32 %v2728_v61, %v2729_v30  ;;  %v4119_v2 = vmul.f32 %v8667_v33, %v8575_v63  ;;  %vm3931_vm1 = vweird.f32 %v8584_v40  ;;  %v8697_v51 = vpop.f32.mrf.mxu2  ;;  %v8699_v30 = vpop.f32.mrf.mxu0 }
 0x39d   : > { %11786 = vst [vmem:[#allocation42_spill] sm:$0xff] %v8688_v18  ;;  %v3930_v3 = vadd.f32 %v6749_v50, %v3929_v37  ;;  %v3459_v10 = vrot.slane %v3458_v46, 4  ;;  %v2635_v39 = vmax.f32 %v2633_v15, %v2634_v36  ;;  %v3546_v56 = vadd.f32 %v3545_v55, %v3544_v45  ;;  %vm3933_vm2 = vmor %vm3931_vm1, %vm3932_vm0  ;;  %v11789_v45 = vld [vmem:[#allocation120_spill] sm:$0xff] }
 0x39e   : > { %v3938_v41 = vor.u32 1.1754944e-38, %v3937_v7  ;;  %v3082_v5 = vsub.f32 %v8514_v6, %v2730_v59  ;;  %v3083_v12 = vsub.f32 %v8564_v49, %v2730_v59  ;;  %vm3936_vm3 = vcmp.eq.f32.partialorder %v3935_v42, 8.507059e+37 }
 0x39f   : > { %v3934_v47 = vsel %vm3933_vm2, %v6749_v50, %v3930_v3  ;;  %v3460_v53 = vadd.f32 %v3459_v10, %v3458_v46  ;;  %v2636_v61 = vrot.slane %v2635_v39, 2  ;;  %v4120_v40 = vsub.f32 1.0, %v4119_v2  ;;  %v11790_v46 = vld [vmem:[#allocation47_spill] sm:$0xff]  ;;  %v8718_v3 = vpop.f32.mrf.mxu1 }
 0x3a0   : > { %v3939_v37 = vsel %vm3936_vm3, %v3938_v41, %v3934_v47  ;;  %v3246_v8 = vmul.f32 1.442695, %v3082_v5  ;;  %v2110_v15 = vmul.f32 %v11788_v20, %v1481_v11  ;;  %v8703_v55 = vmul.f32 %v11789_v45, %v1488_v48  ;;  %v11792_v5 = vld [vmem:[#allocation2_spill] sm:$0xff] }
 0x3a1   : > { %v3940_v6 = vmul.f32 %v8517_v31, %v3939_v37  ;;  %v3941_v59 = vmul.f32 %v8521_v57, %v3939_v37  ;;  %v3461_v49 = vrot.slane %v3460_v53, 2  ;;  %v3547_v50 = vrot.slane %v3546_v56, 1 }
 0x3a2   : > { %6756 = vpow2.f32 %v3246_v8  ;;  %v3248_v42 = vmul.f32 1.442695, %v3083_v12  ;;  %v2637_v7 = vmax.f32 %v2635_v39, %v2636_v61  ;;  %v8709_v47 = vadd.f32 %v11790_v46, %v11784_v14 }
 0x3a3   : > { %2384 = vmatmul.f32.gmra.mxu1 %v2110_v15  ;;  %v4908_v41 = vmul.f32 %v3940_v6, %v11792_v5  ;;  %v4909_v20 = vmul.f32 %v3941_v59, %v1587_v62  ;;  %v3462_v2 = vadd.f32 %v3461_v49, %v3460_v53  ;;  %v4121_v31 = vmul.f32 %v8667_v33, %v4120_v40  ;;  %v11795_v5 = vld [vmem:[#allocation118_spill] sm:$0xff] }
 0x3a4   : > { %11791 = vst [vmem:[#allocation33_spill] sm:$0xff] %v8709_v47  ;;  %6758 = vpow2.f32 %v3248_v42  ;;  %v2638_v11 = vrot.slane %v2637_v7, 1  ;;  %v5031_v48 = vrot.slane %v8469_v17, 4  ;;  %v3550_v39 = vrot.slane %v8605_v23, 4  ;;  %v8738_v49 = vpop.f32.mrf.mxu2  ;;  %v8744_v42 = vpop.f32.mrf.mxu0 }
 0x3a5   : > { %v8715_v8 = vadd.f32 %v4909_v20, %v4908_v41  ;;  %v3463_v36 = vrot.slane %v3462_v2, 1  ;;  %v8720_v10 = vadd.f32 %v3547_v50, %v3546_v56  ;;  %v4122_v53 = vadd.f32 %v8667_v33, %v4121_v31 }
 0x3a6   : > { %v2639_v12 = vmax.f32 %v2637_v7, %v2638_v11  ;;  %vm4124_vm4 = vweird.f32 %v8667_v33  ;;  %v5038_v62 = vrot.slane %v8538_v0, 4  ;;  %vm4123_vm5 = vweird.f32 %v8575_v63 }
 0x3a7   : > { %v8725_v61 = vadd.f32 %v3463_v36, %v3462_v2  ;;  %v4129_v37 = vand.u32 2147483648, %v8575_v63  ;;  %v4127_v45 = vand.u32 2147483647, %v8575_v63  ;;  %v2731_v6 = vmax.f32 %v8684_v54, %v8718_v3  ;;  %vm8740_vm6 = vmor %vm4123_vm5, %vm4124_vm4 }
 0x3a8   : > { %v8729_v40 = vpop.eup %6756  ;;  %v3056_v15 = vsub.f32 %v8573_v58, %v2639_v12  ;;  %v3057_v56 = vsub.f32 %v8636_v4, %v2639_v12  ;;  %v3551_v59 = vadd.f32 %v3550_v39, %v8605_v23  ;;  %v1904_v58 = vrot.slane %v8688_v18, 1 }
 0x3a9   : > { %6760 = vrcp.f32 %v8725_v61  ;;  %v1907_v4 = vrot.slane %v8688_v18, 4  ;;  %v4126_v46 = vsel %vm8740_vm6, %v8667_v33, %v4122_v53  ;;  %v5032_v41 = vadd.f32 %v5031_v48, %v8469_v17 }
 0x3aa   : > { %v8748_v63 = vpop.eup %6758  ;;  %6762 = vrcp.f32 %v8720_v10  ;;  %v3194_v7 = vmul.f32 1.442695, %v3056_v15  ;;  %v3196_v23 = vmul.f32 1.442695, %v3057_v56  ;;  %v5039_v20 = vadd.f32 %v5038_v62, %v8538_v0 }
 0x3ab   : > { %2387 = vmatmul.f32.gmra.mxu1 %v11795_v5  ;;  %v8759_v2 = vadd.f32 %v8748_v63, %v8729_v40  ;;  %v4130_v11 = vor.u32 1.1754944e-38, %v4129_v37  ;;  %vm4128_vm7 = vcmp.eq.f32.partialorder %v4127_v45, 8.507059e+37  ;;  %v2732_v31 = vrot.slane %v2731_v6, 4  ;;  %v11799_v5 = vld [vmem:[#allocation13_spill] sm:$0xff] }
 0x3ac   : > { %6764 = vpow2.f32 %v3194_v7  ;;  %v2640_v39 = vmax.f32 %v8699_v30, %v8744_v42  ;;  %v3552_v36 = vrot.slane %v3551_v59, 2  ;;  %v1617_v33 = vadd.f32 %v8621_v43, %v8368_v28  ;;  %v11797_v43 = vld [vmem:[#allocation32_spill] sm:$0xff]  ;;  %v8787_v14 = vpop.f32.mrf.mxu2 }
 0x3ad   : > { %6766 = vpow2.f32 %v3196_v23  ;;  %v4131_v12 = vsel %vm4128_vm7, %v4130_v11, %v4126_v46  ;;  %v8767_v48 = vperm.slane %v1904_v58, 0  ;;  %v2733_v37 = vmax.f32 %v2731_v6, %v2732_v31  ;;  %11800 = vst [vmem:[#allocation130_spill] sm:$0xff] %v8787_v14 }
 0x3ae   : > { %v4132_v17 = vmul.f32 %v8395_v38, %v4131_v12  ;;  %v4133_v0 = vmul.f32 %v8402_v35, %v4131_v12  ;;  %v2641_v15 = vrot.slane %v2640_v39, 4  ;;  %v1909_v45 = vrot.slane %v8688_v18, 6 }
 0x3af   : > { %11796 = vst [vmem:[#allocation46_spill] sm:$0xff] %v8767_v48  ;;  %v6761_v62 = vpop.eup %6760  ;;  %v1590_v7 = vadd.f32 %v11797_v43, %v8368_v28  ;;  %v5033_v23 = vrot.slane %v5032_v41, 2  ;;  %v8777_v35 = vperm.slane %v1907_v4, 0  ;;  %v5040_v58 = vrot.slane %v5039_v20, 2 }
 0x3b0   : > { %v8772_v50 = vpop.eup %6762  ;;  %v3943_v38 = vmul.f32 %v6761_v62, %v8725_v61  ;;  %v3553_v46 = vadd.f32 %v3552_v36, %v3551_v59  ;;  %v4932_v11 = vmul.f32 %v4132_v17, %v11799_v5  ;;  %v4933_v6 = vmul.f32 %v4133_v0, %v1617_v33 }
 0x3b1   : > { %11798 = vst [vmem:[#allocation49_spill] sm:$0xff] %v8777_v35  ;;  %v3951_v56 = vand.u32 2147483647, %v8725_v61  ;;  %v2734_v53 = vrot.slane %v2733_v37, 2  ;;  %v2642_v57 = vmax.f32 %v2640_v39, %v2641_v15  ;;  %vm3948_vm8 = vweird.f32 %v6761_v62  ;;  %v8795_v15 = vpop.f32.mrf.mxu1 }
 0x3b2   : > { %v8780_v31 = vpop.eup %6764  ;;  %v3944_v12 = vsub.f32 1.0, %v3943_v38  ;;  %v3953_v4 = vand.u32 2147483648, %v8725_v61  ;;  %v8789_v59 = vadd.f32 %v4933_v6, %v4932_v11  ;;  %v4135_v36 = vmul.f32 %v8772_v50, %v8720_v10 }
 0x3b3   : > { %2390 = vmatmul.f32.gmra.mxu1 %v8670_v13  ;;  %v8784_v43 = vpop.eup %6766  ;;  %v2735_v0 = vmax.f32 %v2733_v37, %v2734_v53  ;;  %v2643_v39 = vrot.slane %v2642_v57, 2  ;;  %v8797_v13 = vadd.f32 %v5033_v23, %v5032_v41  ;;  %v8799_v38 = vadd.f32 %v5040_v58, %v5039_v20  ;;  %v8805_v20 = vpop.f32.mrf.mxu0 }
 0x3b4   : > { %11801 = vst [vmem:[#allocation116_spill] sm:$0xff] %v8789_v59  ;;  %v3945_v33 = vmul.f32 %v6761_v62, %v3944_v12  ;;  %v3465_v17 = vadd.f32 %v8784_v43, %v8780_v31  ;;  %vm3947_vm9 = vweird.f32 %v8725_v61  ;;  %v4136_v5 = vsub.f32 1.0, %v4135_v36 }
 0x3b5   : > { %v2736_v48 = vrot.slane %v2735_v0, 1  ;;  %v2644_v47 = vmax.f32 %v2642_v57, %v2643_v39  ;;  %v3554_v18 = vrot.slane %v3553_v46, 1  ;;  %vm3949_vm10 = vmor %vm3947_vm9, %vm3948_vm8  ;;  %vm3952_vm11 = vcmp.eq.f32.partialorder %v3951_v56, 8.507059e+37 }
 0x3b6   : > { %v3946_v11 = vadd.f32 %v6761_v62, %v3945_v33  ;;  %v3466_v6 = vrot.slane %v3465_v17, 4  ;;  %v3954_v12 = vor.u32 1.1754944e-38, %v3953_v4  ;;  %v8803_v53 = vperm.slane %v1909_v45, 0 }
 0x3b7   : > { %v2737_v41 = vmax.f32 %v2735_v0, %v2736_v48  ;;  %v2645_v23 = vrot.slane %v2644_v47, 1  ;;  %v5035_v61 = vrot.slane %v8797_v13, 1  ;;  %v5042_v58 = vrot.slane %v8799_v38, 1  ;;  %v11803_v48 = vld [vmem:[#allocation121_spill] sm:$0xff] }
 0x3b8   : > { %11802 = vst [vmem:[#allocation119_spill] sm:$0xff] %v8803_v53  ;;  %v3950_v37 = vsel %vm3949_vm10, %v6761_v62, %v3946_v11  ;;  %v3467_v34 = vadd.f32 %v3466_v6, %v3465_v17  ;;  %v4137_v57 = vmul.f32 %v8772_v50, %v4136_v5  ;;  %v8813_v62 = vpop.f32.mrf.mxu3  ;;  %v5045_v17 = vrot.slane %v8632_v24, 4  ;;  %v11804_v6 = vld [vmem:[#allocation3_spill] sm:$0xff] }
 0x3b9   : > { %v3955_v36 = vsel %vm3952_vm11, %v3954_v12, %v3950_v37  ;;  %v3084_v45 = vsub.f32 %v8684_v54, %v2737_v41  ;;  %v8817_v0 = vadd.f32 %v3554_v18, %v3553_v46  ;;  %v3085_v39 = vsub.f32 %v8718_v3, %v2737_v41  ;;  %v8829_v3 = vpop.f32.mrf.mxu1 }
 0x3ba   : > { %v3956_v33 = vmul.f32 %v8657_v27, %v3955_v36  ;;  %v3957_v56 = vmul.f32 %v8677_v26, %v3955_v36  ;;  %v3468_v4 = vrot.slane %v3467_v34, 2  ;;  %v2646_v11 = vmax.f32 %v2644_v47, %v2645_v23  ;;  %v8822_v36 = vpop.f32.mrf.mxu2 }
 0x3bb   : > { %2393 = vmatmul.f32.gmra.mxu1 %v11803_v48  ;;  %v3250_v37 = vmul.f32 1.442695, %v3084_v45  ;;  %v5129_v26 = vrot.slane %v8642_v60, 4  ;;  %11805 = vst [vmem:[#allocation114_spill] sm:$0xff] %v8822_v36  ;;  %v3252_v54 = vmul.f32 1.442695, %v3085_v39  ;;  %v4138_v47 = vadd.f32 %v8772_v50, %v4137_v57 }
 0x3bc   : > { %v4910_v5 = vmul.f32 %v3956_v33, %v11804_v6  ;;  %v4911_v12 = vmul.f32 %v3957_v56, %v1590_v7  ;;  %v3469_v27 = vadd.f32 %v3468_v4, %v3467_v34  ;;  %v3058_v1 = vsub.f32 %v8699_v30, %v2646_v11  ;;  %v11807_v57 = vld [vmem:[#allocation128_spill] sm:$0xff]  ;;  %v11808_v56 = vld [vmem:[#allocation129_spill] sm:$0xff] }
 0x3bd   : > { %v3059_v48 = vsub.f32 %v8744_v42, %v2646_v11  ;;  %6768 = vpow2.f32 %v3250_v37  ;;  %vm4140_vm12 = vweird.f32 %v8772_v50  ;;  %vm4139_vm13 = vweird.f32 %v8720_v10  ;;  %v8837_v42 = vpop.f32.mrf.mxu0  ;;  %v7110_v11 = vld [vmem:[%s7447_s13 + $0xa0] sm:$0xff]  ;;  %v11811_v6 = vld [vmem:[#allocation57_spill] sm:$0xff] }
 0x3be   : > { %v8826_v29 = vadd.f32 %v4911_v12, %v4910_v5  ;;  %v3470_v18 = vrot.slane %v3469_v27, 1  ;;  %6770 = vpow2.f32 %v3252_v54  ;;  %v3198_v34 = vmul.f32 1.442695, %v3058_v1  ;;  %vm8854_vm14 = vmor %vm4139_vm13, %vm4140_vm12  ;;  %v11812_v12 = vld [vmem:[#allocation91_spill] sm:$0xff] }
 0x3bf   : > { %v3200_v7 = vmul.f32 1.442695, %v3059_v48  ;;  %6772 = vrcp.f32 %v8817_v0  ;;  %v4145_v30 = vand.u32 2147483648, %v8720_v10  ;;  %v4143_v41 = vand.u32 2147483647, %v8720_v10 }
 0x3c0   : > { %11806 = vst [vmem:[#allocation26_spill] sm:$0xff] %v8826_v29  ;;  %v8833_v46 = vadd.f32 %v3470_v18, %v3469_v27  ;;  %6774 = vpow2.f32 %v3198_v34  ;;  %v2738_v1 = vmax.f32 %v8795_v15, %v8829_v3  ;;  %v2647_v23 = vmax.f32 %v8805_v20, %v8837_v42  ;;  %v8858_v39 = vpop.f32.mrf.mxu3  ;;  %1678 = vmatmul.bf16.gmra.mxu3 %v7110_v11 }
 0x3c1   : > { %v8846_v33 = vadd.f32 %v11807_v57, %v8368_v28  ;;  %v8850_v4 = vadd.f32 %v11808_v56, %v8368_v28  ;;  %v3557_v45 = vrot.slane %v8759_v2, 4  ;;  %v8864_v5 = vadd.f32 %v11811_v6, %v8368_v28 }
 0x3c2   : > { %6776 = vrcp.f32 %v8833_v46  ;;  %v8868_v27 = vadd.f32 %v11812_v12, %v8368_v28  ;;  %v4142_v37 = vsel %vm8854_vm14, %v8772_v50, %v4138_v47  ;;  %v8876_v48 = vadd.f32 %v5035_v61, %v8797_v13  ;;  %v11816_v47 = vld [vmem:[#allocation62_spill] sm:$0xff] }
 0x3c3   : > { %2396 = vmatmul.f32.gmra.mxu1 %v8673_v19  ;;  %6778 = vpow2.f32 %v3200_v7  ;;  %v8873_v54 = vpop.eup %6768  ;;  %v8879_v19 = vadd.f32 %v5042_v58, %v8799_v38  ;;  %v4146_v18 = vor.u32 1.1754944e-38, %v4145_v30  ;;  %v2739_v34 = vrot.slane %v2738_v1, 4 }
 0x3c4   : > { %11813 = vst [vmem:[#allocation106_spill] sm:$0xff] %v8868_v27  ;;  %v8881_v57 = vpop.eup %6770  ;;  %v5046_v56 = vadd.f32 %v5045_v17, %v8632_v24  ;;  %v5130_v7 = vadd.f32 %v5129_v26, %v8642_v60  ;;  %vm4144_vm15 = vcmp.eq.f32.partialorder %v4143_v41, 8.507059e+37  ;;  %v2648_v11 = vrot.slane %v2647_v23, 4  ;;  %v8896_v24 = vpop.f32.mrf.mxu2  ;;  %v11820_v41 = vld [vmem:[#allocation122_spill] sm:$0xff] }
 0x3c5   : > { %11814 = vst [vmem:[#allocation113_spill] sm:$0xff] %v8873_v54  ;;  %v8885_v10 = vpop.eup %6772  ;;  %v3558_v50 = vadd.f32 %v3557_v45, %v8759_v2  ;;  %v3563_v13 = vadd.f32 %v8881_v57, %v8873_v54  ;;  %v4147_v61 = vsel %vm4144_vm15, %v4146_v18, %v4142_v37  ;;  %v2740_v38 = vmax.f32 %v2738_v1, %v2739_v34 }
 0x3c6   : > { %11815 = vst [vmem:[#allocation120_spill] sm:$0xff] %v8881_v57  ;;  %v8890_v58 = vpop.eup %6774  ;;  %v8894_v30 = vadd.f32 %v11816_v47, %v8368_v28  ;;  %v1620_v60 = vadd.f32 %v8813_v62, %v8368_v28  ;;  %v4148_v17 = vmul.f32 %v8566_v44, %v4147_v61  ;;  %v4149_v2 = vmul.f32 %v8569_v25, %v4147_v61  ;;  %v11819_v47 = vld [vmem:[#allocation15_spill] sm:$0xff] }
 0x3c7   : > { %11818 = vst [vmem:[#allocation2_spill] sm:$0xff] %v8896_v24  ;;  %v8906_v1 = vadd.f32 %v8524_v52, %v7879_v21  ;;  %v2741_v45 = vrot.slane %v2740_v38, 2  ;;  %v2649_v6 = vmax.f32 %v2647_v23, %v2648_v11  ;;  %v5047_v62 = vrot.slane %v5046_v56, 2 }
 0x3c8   : > { %11817 = vst [vmem:[#allocation47_spill] sm:$0xff] %v8894_v30  ;;  %v6777_v26 = vpop.eup %6776  ;;  %v5131_v18 = vrot.slane %v5130_v7, 2  ;;  %v3559_v25 = vrot.slane %v3558_v50, 2  ;;  %v3967_v34 = vand.u32 2147483647, %v8833_v46  ;;  %v4934_v52 = vmul.f32 %v4148_v17, %v11819_v47 }
 0x3c9   : > { %v8908_v12 = vpop.eup %6778  ;;  %v3959_v44 = vmul.f32 %v6777_v26, %v8833_v46  ;;  %v4935_v11 = vmul.f32 %v4149_v2, %v1620_v60  ;;  %v2742_v24 = vmax.f32 %v2740_v38, %v2741_v45  ;;  %v2650_v30 = vrot.slane %v2649_v6, 2 }
 0x3ca   : > { %v3472_v61 = vadd.f32 %v8908_v12, %v8890_v58  ;;  %vm3964_vm0 = vweird.f32 %v6777_v26  ;;  %v3969_v37 = vand.u32 2147483648, %v8833_v46  ;;  %v4151_v14 = vmul.f32 %v8885_v10, %v8817_v0 }
 0x3cb   : > { %2399 = vmatmul.f32.gmra.mxu1 %v11820_v41  ;;  %v3960_v23 = vsub.f32 1.0, %v3959_v44  ;;  %v5142_v29 = vadd.f32 %v4935_v11, %v4934_v52  ;;  %v2743_v53 = vrot.slane %v2742_v24, 1  ;;  %v2651_v57 = vmax.f32 %v2649_v6, %v2650_v30 }
 0x3cc   : > { %v3473_v36 = vrot.slane %v3472_v61, 4  ;;  %v5048_v54 = vadd.f32 %v5047_v62, %v5046_v56  ;;  %v3560_v59 = vadd.f32 %v3559_v25, %v3558_v50  ;;  %vm3963_vm1 = vweird.f32 %v8833_v46  ;;  %v8925_v52 = vpop.f32.mrf.mxu2  ;;  %v11822_v62 = vld [vmem:[#allocation4_spill] sm:$0xff] }
 0x3cd   : > { %v3961_v27 = vmul.f32 %v6777_v26, %v3960_v23  ;;  %v3564_v60 = vrot.slane %v3563_v13, 4  ;;  %v2744_v38 = vmax.f32 %v2742_v24, %v2743_v53  ;;  %v2652_v2 = vrot.slane %v2651_v57, 1  ;;  %vm3965_vm2 = vmor %vm3963_vm1, %vm3964_vm0  ;;  %11821 = vst [vmem:[#allocation118_spill] sm:$0xff] %v8925_v52 }
 0x3ce   : > { %v3474_v17 = vadd.f32 %v3473_v36, %v3472_v61  ;;  %v8922_v45 = vadd.f32 %v5131_v18, %v5130_v7  ;;  %v3970_v44 = vor.u32 1.1754944e-38, %v3969_v37  ;;  %v4152_v35 = vsub.f32 1.0, %v4151_v14  ;;  %v8929_v36 = vpop.f32.mrf.mxu1 }
 0x3cf   : > { %v3962_v41 = vadd.f32 %v6777_v26, %v3961_v27  ;;  %vm3968_vm3 = vcmp.eq.f32.partialorder %v3967_v34, 8.507059e+37  ;;  %v3086_v56 = vsub.f32 %v8795_v15, %v2744_v38  ;;  %v3087_v46 = vsub.f32 %v8829_v3, %v2744_v38  ;;  %v11828_v38 = vld [vmem:[#allocation97_spill] sm:$0xff] }
 0x3d0   : > { %v3475_v47 = vrot.slane %v3474_v17, 2  ;;  %v3561_v27 = vrot.slane %v3560_v59, 1  ;;  %v2653_v7 = vmax.f32 %v2651_v57, %v2652_v2  ;;  %v3565_v24 = vadd.f32 %v3564_v60, %v3563_v13 }
 0x3d1   : > { %v3966_v23 = vsel %vm3965_vm2, %v6777_v26, %v3962_v41  ;;  %v3254_v26 = vmul.f32 1.442695, %v3086_v56  ;;  %v3256_v37 = vmul.f32 1.442695, %v3087_v46  ;;  %v4153_v3 = vmul.f32 %v8885_v10, %v4152_v35  ;;  %v11824_v35 = vld [vmem:[#allocation131_spill] sm:$0xff] }
 0x3d2   : > { %v3971_v53 = vsel %vm3968_vm3, %v3970_v44, %v3966_v23  ;;  %v3476_v50 = vadd.f32 %v3475_v47, %v3474_v17  ;;  %v3060_v15 = vsub.f32 %v8805_v20, %v2653_v7  ;;  %v5143_v34 = vrot.slane %v5142_v29, 4 }
 0x3d3   : > { %2402 = vmatmul.f32.gmra.mxu1 %v8703_v55  ;;  %v3972_v30 = vmul.f32 %v8780_v31, %v3971_v53  ;;  %v3973_v14 = vmul.f32 %v8784_v43, %v3971_v53  ;;  %6780 = vpow2.f32 %v3254_v26  ;;  %v3061_v55 = vsub.f32 %v8837_v42, %v2653_v7  ;;  %v11826_v42 = vld [vmem:[#allocation123_spill] sm:$0xff]  ;;  %v11829_v53 = vld [vmem:[#allocation41_spill] sm:$0xff] }
 0x3d4   : > { %v3477_v6 = vrot.slane %v3476_v50, 1  ;;  %6782 = vpow2.f32 %v3256_v37  ;;  %v3202_v31 = vmul.f32 1.442695, %v3060_v15  ;;  %v11823_v43 = vpack.c.bf16 %v8876_v48, %v8876_v48 }
 0x3d5   : > { %v4912_v18 = vmul.f32 %v3972_v30, %v11822_v62  ;;  %v4913_v25 = vmul.f32 %v3973_v14, %v8846_v33  ;;  %v5049_v20 = vrot.slane %v5048_v54, 1  ;;  %v8948_v61 = vadd.f32 %v11824_v35, %v8368_v28  ;;  %v8952_v33 = vpop.f32.mrf.mxu0  ;;  %v11831_v14 = vld [vmem:[#allocation12_spill] sm:$0xff] }
 0x3d6   : > { %v8938_v57 = vadd.f32 %v3477_v6, %v3476_v50  ;;  %v8944_v13 = vunpack.c.l.b16 %v11823_v43  ;;  %v11825_v17 = vpack.c.bf16 %v8879_v19, %v8879_v19  ;;  %v11827_v60 = vperm.slane %v11826_v42, 0  ;;  %v8985_v30 = vpop.f32.mrf.mxu1 }
 0x3d7   : > { %v8950_v11 = vadd.f32 %v4913_v25, %v4912_v18  ;;  %v8964_v2 = vadd.f32 %v11828_v38, %v8368_v28  ;;  %v8967_v44 = vadd.f32 %v3561_v27, %v3560_v59  ;;  %v3566_v47 = vrot.slane %v3565_v24, 2  ;;  %v8981_v27 = vpop.f32.mrf.mxu2 }
 0x3d8   : > { %v8957_v41 = vunpack.c.l.b16 %v11825_v17  ;;  %v2118_v48 = vmul.f32 %v11827_v60, %v8906_v1  ;;  %6784 = vrcp.f32 %v8938_v57  ;;  %v4154_v23 = vadd.f32 %v8885_v10, %v4153_v3  ;;  %11830 = vst [vmem:[#allocation32_spill] sm:$0xff] %v8981_v27 }
 0x3d9   : > { %vm4156_vm4 = vweird.f32 %v8885_v10  ;;  %v5133_v19 = vrot.slane %v8922_v45, 1  ;;  %v5144_v56 = vadd.f32 %v5143_v34, %v5142_v29  ;;  %6786 = vpow2.f32 %v3202_v31  ;;  %v8973_v1 = vpop.eup %6780 }
 0x3da   : > { %v3204_v46 = vmul.f32 1.442695, %v3061_v55  ;;  %v8975_v50 = vadd.f32 %v5049_v20, %v5048_v54  ;;  %v8979_v59 = vadd.f32 %v8571_v9, %v7879_v21  ;;  %vm4155_vm5 = vweird.f32 %v8817_v0  ;;  %v8987_v29 = vpop.eup %6782 }
 0x3db   : > { %2405 = vmatmul.f32.gmra.mxu1 %v11829_v53  ;;  %v4159_v7 = vand.u32 2147483647, %v8817_v0  ;;  %v8991_v26 = vadd.f32 %v11831_v14, %v8368_v28  ;;  %v8995_v54 = vadd.f32 %v8634_v32, %v7879_v21  ;;  %vm8999_vm6 = vmor %vm4155_vm5, %vm4156_vm4  ;;  %v4161_v6 = vand.u32 2147483648, %v8817_v0 }
 0x3dc   : > { %6788 = vpow2.f32 %v3204_v46  ;;  %v9005_v37 = vadd.f32 %v3566_v47, %v3565_v24  ;;  %v9009_v15 = vadd.f32 %v8987_v29, %v8973_v1  ;;  %v4158_v32 = vsel %vm8999_vm6, %v8885_v10, %v4154_v23 }
 0x3dd   : > { %6790 = vrcp.f32 %v8967_v44  ;;  %v9015_v62 = vadd.f32 %v5133_v19, %v8922_v45  ;;  %v5145_v18 = vrot.slane %v5144_v56, 2  ;;  %v4162_v25 = vor.u32 1.1754944e-38, %v4161_v6  ;;  %v9023_v31 = vpop.f32.mrf.mxu0  ;;  %v11835_v6 = vld [vmem:[#allocation17_spill] sm:$0xff] }
 0x3de   : > { %v6785_v3 = vpop.eup %6784  ;;  %v2745_v0 = vmax.f32 %v8929_v36, %v8985_v30  ;;  %vm4160_vm7 = vcmp.eq.f32.partialorder %v4159_v7, 8.507059e+37  ;;  %v1622_v45 = vadd.f32 %v8858_v39, %v8368_v28  ;;  %v2654_v35 = vmax.f32 %v8952_v33, %v9023_v31 }
 0x3df   : > { %11834 = vst [vmem:[#allocation13_spill] sm:$0xff] %v9015_v62  ;;  %v3975_v55 = vmul.f32 %v6785_v3, %v8938_v57  ;;  %v9025_v10 = vpop.eup %6786  ;;  %v4163_v43 = vsel %vm4160_vm7, %v4162_v25, %v4158_v32  ;;  %v3568_v17 = vrot.slane %v9005_v37, 1  ;;  %v3985_v60 = vand.u32 2147483648, %v8938_v57 }
 0x3e0   : > { %v2746_v20 = vrot.slane %v2745_v0, 4  ;;  %v4164_v38 = vmul.f32 %v8588_v22, %v4163_v43  ;;  %v5146_v23 = vadd.f32 %v5145_v18, %v5144_v56  ;;  %v4165_v19 = vmul.f32 %v8591_v16, %v4163_v43 }
 0x3e1   : > { %v3976_v42 = vsub.f32 1.0, %v3975_v55  ;;  %v2655_v53 = vrot.slane %v2654_v35, 4  ;;  %vm3980_vm8 = vweird.f32 %v6785_v3  ;;  %v3983_v14 = vand.u32 2147483647, %v8938_v57 }
 0x3e2   : > { %v9034_v47 = vpop.eup %6788  ;;  %v2747_v46 = vmax.f32 %v2745_v0, %v2746_v20  ;;  %v4936_v32 = vmul.f32 %v4164_v38, %v11835_v6  ;;  %v4937_v22 = vmul.f32 %v4165_v19, %v1622_v45  ;;  %vm3979_vm9 = vweird.f32 %v8938_v57 }
 0x3e3   : > { %2408 = vmatmul.f32.gmra.mxu1 %v2118_v48  ;;  %v9037_v39 = vpop.eup %6790  ;;  %v3977_v7 = vmul.f32 %v6785_v3, %v3976_v42  ;;  %v3479_v9 = vadd.f32 %v9034_v47, %v9025_v10  ;;  %v2656_v55 = vmax.f32 %v2654_v35, %v2655_v53  ;;  %v3986_v16 = vor.u32 1.1754944e-38, %v3985_v60  ;;  %v9044_v48 = vpop.f32.mrf.mxu2  ;;  %vm3981_vm10 = vmor %vm3979_vm9, %vm3980_vm8 }
 0x3e4   : > { %v2748_v25 = vrot.slane %v2747_v46, 2  ;;  %11836 = vst [vmem:[#allocation121_spill] sm:$0xff] %v9044_v48  ;;  %v5149_v0 = vadd.f32 %v4937_v22, %v4936_v32  ;;  %v4167_v42 = vmul.f32 %v9037_v39, %v8967_v44  ;;  %vm3984_vm11 = vcmp.eq.f32.partialorder %v3983_v14, 8.507059e+37  ;;  %v11837_v14 = vld [vmem:[#allocation105_spill] sm:$0xff] }
 0x3e5   : > { %v3978_v56 = vadd.f32 %v6785_v3, %v3977_v7  ;;  %v3480_v18 = vrot.slane %v3479_v9, 4  ;;  %v2657_v20 = vrot.slane %v2656_v55, 2  ;;  %v5147_v38 = vrot.slane %v5146_v23, 1 }
 0x3e6   : > { %v2749_v43 = vmax.f32 %v2747_v46, %v2748_v25  ;;  %v5150_v35 = vrot.slane %v5149_v0, 4  ;;  %v3571_v6 = vrot.slane %v9009_v15, 4  ;;  %v9051_v46 = vpop.f32.mrf.mxu1  ;;  %vm4172_vm12 = vweird.f32 %v9037_v39 }
 0x3e7   : > { %v3982_v34 = vsel %vm3981_vm10, %v6785_v3, %v3978_v56  ;;  %v3481_v45 = vadd.f32 %v3480_v18, %v3479_v9  ;;  %v2658_v7 = vmax.f32 %v2656_v55, %v2657_v20  ;;  %v4168_v3 = vsub.f32 1.0, %v4167_v42  ;;  %v11838_v9 = vld [vmem:[#allocation5_spill] sm:$0xff] }
 0x3e8   : > { %v3987_v19 = vsel %vm3984_vm11, %v3986_v16, %v3982_v34  ;;  %v2750_v53 = vrot.slane %v2749_v43, 1  ;;  %v5151_v22 = vadd.f32 %v5150_v35, %v5149_v0  ;;  %v9055_v34 = vadd.f32 %v3568_v17, %v9005_v37 }
 0x3e9   : > { %v3988_v57 = vmul.f32 %v8890_v58, %v3987_v19  ;;  %v3989_v60 = vmul.f32 %v8908_v12, %v3987_v19  ;;  %v3482_v32 = vrot.slane %v3481_v45, 2  ;;  %v2659_v24 = vrot.slane %v2658_v7, 1 }
 0x3ea   : > { %v2751_v25 = vmax.f32 %v2749_v43, %v2750_v53  ;;  %v5152_v12 = vrot.slane %v5151_v22, 2  ;;  %v5148_v43 = vadd.f32 %v5147_v38, %v5146_v23  ;;  %v3572_v42 = vadd.f32 %v3571_v6, %v9009_v15  ;;  %v11840_v15 = vld [vmem:[#allocation14_spill] sm:$0xff]  ;;  %v11841_v38 = vld [vmem:[#allocation20_spill] sm:$0xff] }
 0x3eb   : > { %2411 = vmatmul.f32.gmra.mxu1 %v11837_v14  ;;  %v4914_v55 = vmul.f32 %v3988_v57, %v11838_v9  ;;  %v4915_v58 = vmul.f32 %v3989_v60, %v8850_v4  ;;  %v3483_v56 = vadd.f32 %v3482_v32, %v3481_v45  ;;  %v2660_v20 = vmax.f32 %v2658_v7, %v2659_v24  ;;  %v9070_v24 = vpop.f32.mrf.mxu2  ;;  %v9072_v45 = vpop.f32.mrf.mxu0  ;;  %v11842_v57 = vld [vmem:[#allocation28_spill] sm:$0xff] }
 0x3ec   : > { %v3088_v16 = vsub.f32 %v8929_v36, %v2751_v25  ;;  %v3089_v18 = vsub.f32 %v8985_v30, %v2751_v25  ;;  %v5153_v35 = vadd.f32 %v5152_v12, %v5151_v22  ;;  %v4169_v53 = vmul.f32 %v9037_v39, %v4168_v3  ;;  %11839 = vst [vmem:[#allocation3_spill] sm:$0xff] %v9070_v24 }
 0x3ed   : > { %v9061_v0 = vadd.f32 %v4915_v58, %v4914_v55  ;;  %v3484_v19 = vrot.slane %v3483_v56, 1  ;;  %v3062_v17 = vsub.f32 %v8952_v33, %v2660_v20  ;;  %6792 = vrcp.f32 %v9055_v34 }
 0x3ee   : > { %v3258_v37 = vmul.f32 1.442695, %v3088_v16  ;;  %v3260_v36 = vmul.f32 1.442695, %v3089_v18  ;;  %v3063_v30 = vsub.f32 %v9023_v31, %v2660_v20  ;;  %v2120_v23 = vmul.f32 %v11840_v15, %v8979_v59  ;;  %v1624_v31 = vpop.f32.mrf.mxu3  ;;  %v9097_v58 = vpop.f32.mrf.mxu1 }
 0x3ef   : > { %v9067_v4 = vadd.f32 %v3484_v19, %v3483_v56  ;;  %v9078_v7 = vadd.f32 %v11841_v38, %v8368_v28  ;;  %v5154_v33 = vrot.slane %v5153_v35, 1  ;;  %v9082_v60 = vmul.f32 %v11842_v57, %v8995_v54 }
 0x3f0   : > { %6794 = vpow2.f32 %v3258_v37  ;;  %v5494_v6 = vpack.c.bf16 %v5148_v43, %v5148_v43  ;;  %v3573_v32 = vrot.slane %v3572_v42, 2  ;;  %v4170_v59 = vadd.f32 %v9037_v39, %v4169_v53 }
 0x3f1   : > { %6796 = vrcp.f32 %v9067_v4  ;;  %v5155_v25 = vadd.f32 %v5154_v33, %v5153_v35  ;;  %v11843_v3 = vpack.c.bf16 %v8975_v50, %v8975_v50  ;;  %v11845_v54 = vrot.slane %v8715_v8, 4 }
 0x3f2   : > { %6798 = vpow2.f32 %v3260_v36  ;;  %v3206_v55 = vmul.f32 1.442695, %v3062_v17  ;;  %v3208_v12 = vmul.f32 1.442695, %v3063_v30  ;;  %vm4171_vm13 = vweird.f32 %v8967_v44 }
 0x3f3   : > { %2414 = vmatmul.f32.gmra.mxu1 %v2120_v23  ;;  %v9092_v14 = vunpack.c.l.b16 %v11843_v3  ;;  %v5053_v9 = vadd.f32 %v11845_v54, %v8715_v8  ;;  %v5495_v56 = vpack.c.bf16 %v5155_v25, %v5155_v25  ;;  %v4175_v16 = vand.u32 2147483647, %v8967_v44  ;;  %v9101_v18 = vpop.eup %6792  ;;  %vm9105_vm14 = vmor %vm4171_vm13, %vm4172_vm12  ;;  %v9118_v15 = vpop.f32.mrf.mxu0 }
 0x3f4   : > { %v5623_v20 = vunpack.c.l.b16 %v5494_v6  ;;  %v3574_v50 = vadd.f32 %v3573_v32, %v3572_v42  ;;  %6800 = vpow2.f32 %v3206_v55  ;;  %v4177_v8 = vand.u32 2147483648, %v8967_v44  ;;  %v9126_v6 = vpop.f32.mrf.mxu2 }
 0x3f5   : > { %11844 = vst [vmem:[#allocation128_spill] sm:$0xff] %v9092_v14  ;;  %v5624_v35 = vunpack.c.l.b16 %v5495_v56  ;;  %6802 = vpow2.f32 %v3208_v12  ;;  %v4174_v37 = vsel %vm9105_vm14, %v9037_v39, %v4170_v59  ;;  %v2752_v42 = vmax.f32 %v9051_v46, %v9097_v58  ;;  %v7111_v59 = vld [vmem:[%s7447_s13 + $0xa8] sm:$0xff]  ;;  %v11848_v12 = vld [vmem:[#allocation125_spill] sm:$0xff] }
 0x3f6   : > { %v9110_v19 = vpop.eup %6794  ;;  %v5054_v53 = vrot.slane %v5053_v9, 2  ;;  %vm5671_vm15 = vcmask 1041409   ;;  %v1625_v36 = vadd.f32 %v1624_v31, %v8368_v28  ;;  %v4178_v30 = vor.u32 1.1754944e-38, %v4177_v8  ;;  %v9130_v31 = vpop.f32.mrf.mxu3  ;;  %1683 = vmatmul.bf16.gmra.mxu3 %v7111_v59 }
 0x3f7   : > { %v6797_v17 = vpop.eup %6796  ;;  %v9122_v23 = vsel %vm5671_vm15, %v5624_v35, %v5623_v20  ;;  %vm4176_vm0 = vcmp.eq.f32.partialorder %v4175_v16, 8.507059e+37  ;;  %v2753_v38 = vrot.slane %v2752_v42, 4  ;;  %v3575_v33 = vrot.slane %v3574_v50, 1 }
 0x3f8   : > { %v3991_v44 = vmul.f32 %v6797_v17, %v9067_v4  ;;  %v9124_v39 = vpop.eup %6798  ;;  %v4179_v57 = vsel %vm4176_vm0, %v4178_v30, %v4174_v37  ;;  %v2661_v32 = vmax.f32 %v9072_v45, %v9118_v15  ;;  %v4183_v25 = vmul.f32 %v9101_v18, %v9055_v34 }
 0x3f9   : > { %v9137_v54 = vadd.f32 %v9124_v39, %v9110_v19  ;;  %v4180_v55 = vmul.f32 %v8729_v40, %v4179_v57  ;;  %v4181_v56 = vmul.f32 %v8748_v63, %v4179_v57  ;;  %v3999_v20 = vand.u32 2147483647, %v9067_v4 }
 0x3fa   : > { %v3992_v3 = vsub.f32 1.0, %v3991_v44  ;;  %v9142_v16 = vpop.eup %6800  ;;  %v4001_v43 = vand.u32 2147483648, %v9067_v4  ;;  %v2754_v8 = vmax.f32 %v2752_v42, %v2753_v38  ;;  %v2662_v35 = vrot.slane %v2661_v32, 4  ;;  %v11849_v44 = vld [vmem:[#allocation18_spill] sm:$0xff] }
 0x3fb   : > { %2417 = vmatmul.f32.gmra.mxu1 %v11848_v12  ;;  %v9146_v37 = vpop.eup %6802  ;;  %vm3996_vm1 = vweird.f32 %v6797_v17  ;;  %v4938_v59 = vmul.f32 %v4180_v55, %v11849_v44  ;;  %v4939_v22 = vmul.f32 %v4181_v56, %v1625_v36  ;;  %v9149_v40 = vadd.f32 %v5054_v53, %v5053_v9 }
 0x3fc   : > { %v3993_v30 = vmul.f32 %v6797_v17, %v3992_v3  ;;  %v3486_v63 = vadd.f32 %v9146_v37, %v9142_v16  ;;  %v2755_v57 = vrot.slane %v2754_v8, 2  ;;  %v2663_v12 = vmax.f32 %v2661_v32, %v2662_v35 }
 0x3fd   : > { %vm3995_vm2 = vweird.f32 %v9067_v4  ;;  %v5156_v48 = vadd.f32 %v4939_v22, %v4938_v59  ;;  %v4184_v42 = vsub.f32 1.0, %v4183_v25  ;;  %v4002_v38 = vor.u32 1.1754944e-38, %v4001_v43  ;;  %v9161_v43 = vpop.f32.mrf.mxu1 }
 0x3fe   : > { %v3994_v24 = vadd.f32 %v6797_v17, %v3993_v30  ;;  %vm3997_vm3 = vmor %vm3995_vm2, %vm3996_vm1  ;;  %v3487_v27 = vrot.slane %v3486_v63, 4  ;;  %v2756_v3 = vmax.f32 %v2754_v8, %v2755_v57  ;;  %v2664_v52 = vrot.slane %v2663_v12, 2 }
 0x3ff   : > { %v9154_v62 = vadd.f32 %v3575_v33, %v3574_v50  ;;  %vm4000_vm4 = vcmp.eq.f32.partialorder %v3999_v20, 8.507059e+37  ;;  %v5157_v9 = vrot.slane %v5156_v48, 4  ;;  %v1498_v32 = vadd.f32 %v8697_v51, %v7879_v21 }
 0x400   : > { %v3998_v36 = vsel %vm3997_vm3, %v6797_v17, %v3994_v24  ;;  %v3488_v55 = vadd.f32 %v3487_v27, %v3486_v63  ;;  %v2757_v56 = vrot.slane %v2756_v3, 1  ;;  %v2665_v44 = vmax.f32 %v2663_v12, %v2664_v52  ;;  %v9164_v27 = vpop.f32.mrf.mxu2  ;;  %v11851_v52 = vld [vmem:[#allocation6_spill] sm:$0xff] }
 0x401   : > { %v4003_v53 = vsel %vm4000_vm4, %v4002_v38, %v3998_v36  ;;  %v4185_v25 = vmul.f32 %v9101_v18, %v4184_v42  ;;  %v5158_v50 = vadd.f32 %v5157_v9, %v5156_v48  ;;  %11850 = vst [vmem:[#allocation129_spill] sm:$0xff] %v9164_v27  ;;  %6804 = vrcp.f32 %v9154_v62 }
 0x402   : > { %v4004_v4 = vmul.f32 %v9025_v10, %v4003_v53  ;;  %v4005_v22 = vmul.f32 %v9034_v47, %v4003_v53  ;;  %v3489_v24 = vrot.slane %v3488_v55, 2  ;;  %v2758_v17 = vmax.f32 %v2756_v3, %v2757_v56  ;;  %v9170_v47 = vpop.f32.mrf.mxu0 }
 0x403   : > { %2420 = vmatmul.f32.gmra.mxu1 %v9082_v60  ;;  %v2666_v33 = vrot.slane %v2665_v44, 1  ;;  %vm4187_vm5 = vweird.f32 %v9055_v34  ;;  %v5159_v8 = vrot.slane %v5158_v50, 2  ;;  %v4186_v59 = vadd.f32 %v9101_v18, %v4185_v25 }
 0x404   : > { %v4916_v51 = vmul.f32 %v4004_v4, %v11851_v52  ;;  %v4917_v10 = vmul.f32 %v4005_v22, %v8864_v5  ;;  %v3490_v20 = vadd.f32 %v3489_v24, %v3488_v55  ;;  %v3090_v60 = vsub.f32 %v9051_v46, %v2758_v17  ;;  %v11855_v22 = vld [vmem:[#allocation16_spill] sm:$0xff] }
 0x405   : > { %v3091_v48 = vsub.f32 %v9097_v58, %v2758_v17  ;;  %v2667_v30 = vmax.f32 %v2665_v44, %v2666_v33  ;;  %vm4188_vm6 = vweird.f32 %v9101_v18  ;;  %v5160_v57 = vadd.f32 %v5159_v8, %v5158_v50  ;;  %v11854_v44 = vld [vmem:[#allocation35_spill] sm:$0xff]  ;;  %v9210_v33 = vpop.f32.mrf.mxu1 }
 0x406   : > { %v9174_v35 = vadd.f32 %v4917_v10, %v4916_v51  ;;  %v3491_v63 = vrot.slane %v3490_v20, 1  ;;  %v3262_v5 = vmul.f32 1.442695, %v3090_v60  ;;  %v3578_v42 = vrot.slane %v9137_v54, 4  ;;  %vm9195_vm7 = vmor %vm4187_vm5, %vm4188_vm6  ;;  %v11858_v10 = vld [vmem:[#allocation116_spill] sm:$0xff] }
 0x407   : > { %v3264_v12 = vmul.f32 1.442695, %v3091_v48  ;;  %v3064_v38 = vsub.f32 %v9072_v45, %v2667_v30  ;;  %v3065_v3 = vsub.f32 %v9118_v15, %v2667_v30  ;;  %v4193_v46 = vand.u32 2147483648, %v9055_v34  ;;  %v9185_v53 = vpop.eup %6804  ;;  %v11859_v30 = vld [vmem:[#allocation113_spill] sm:$0xff] }
 0x408   : > { %v9182_v58 = vadd.f32 %v3491_v63, %v3490_v20  ;;  %v5161_v36 = vrot.slane %v5160_v57, 1  ;;  %6806 = vpow2.f32 %v3262_v5  ;;  %v4191_v9 = vand.u32 2147483647, %v9055_v34  ;;  %v11856_v34 = vld [vmem:[#allocation49_spill] sm:$0xff]  ;;  %v1525_v51 = vpop.f32.mrf.mxu2  ;;  %v11860_v63 = vld [vmem:[#allocation120_spill] sm:$0xff] }
 0x409   : > { %v1501_v55 = vadd.f32 %v8738_v49, %v7879_v21  ;;  %v1521_v56 = vadd.f32 %v9126_v6, %v7879_v21  ;;  %6808 = vpow2.f32 %v3264_v12  ;;  %v3210_v45 = vmul.f32 1.442695, %v3064_v38 }
 0x40a   : > { %v5056_v4 = vrot.slane %v9149_v40, 1  ;;  %v2124_v25 = vmul.f32 %v11855_v22, %v1498_v32  ;;  %6810 = vrcp.f32 %v9182_v58  ;;  %v4190_v49 = vsel %vm9195_vm7, %v9101_v18, %v4186_v59  ;;  %v9216_v60 = vpop.f32.mrf.mxu0 }
 0x40b   : > { %2423 = vmatmul.f32.gmra.mxu1 %v11854_v44  ;;  %v3579_v6 = vadd.f32 %v3578_v42, %v9137_v54  ;;  %v5162_v24 = vadd.f32 %v5161_v36, %v5160_v57  ;;  %v9208_v50 = vmul.f32 %v11856_v34, %v1521_v56  ;;  %v4194_v17 = vor.u32 1.1754944e-38, %v4193_v46  ;;  %v11861_v42 = vld [vmem:[#allocation119_spill] sm:$0xff] }
 0x40c   : > { %6812 = vpow2.f32 %v3210_v45  ;;  %v3212_v52 = vmul.f32 1.442695, %v3065_v3  ;;  %v1627_v32 = vadd.f32 %v9130_v31, %v8368_v28  ;;  %vm4192_vm8 = vcmp.eq.f32.partialorder %v4191_v9, 8.507059e+37  ;;  %v11863_v9 = vld [vmem:[#allocation19_spill] sm:$0xff] }
 0x40d   : > { %11857 = vst [vmem:[#allocation57_spill] sm:$0xff] %v9208_v50  ;;  %v5136_v20 = vrot.slane %v11858_v10, 4  ;;  %v5496_v8 = vpack.c.bf16 %v5162_v24, %v5162_v24  ;;  %v4195_v18 = vsel %vm4192_vm8, %v4194_v17, %v4190_v49  ;;  %v1526_v54 = vadd.f32 %v1525_v51, %v7879_v21  ;;  %v11864_v44 = vld [vmem:[#allocation107_spill] sm:$0xff] }
 0x40e   : > { %v9218_v48 = vpop.eup %6806  ;;  %vm5673_vm9 = vcmask 1042434   ;;  %6814 = vpow2.f32 %v3212_v52  ;;  %v4196_v59 = vmul.f32 %v11859_v30, %v4195_v18  ;;  %v4197_v57 = vmul.f32 %v11860_v63, %v4195_v18 }
 0x40f   : > { %v9222_v5 = vpop.eup %6808  ;;  %v3580_v31 = vrot.slane %v3579_v6, 2  ;;  %v5625_v12 = vunpack.c.l.b16 %v5496_v8  ;;  %v9225_v38 = vmul.f32 %v11861_v42, %v1526_v54  ;;  %v2759_v3 = vmax.f32 %v9161_v43, %v9210_v33 }
 0x410   : > { %v6811_v46 = vpop.eup %6810  ;;  %v3584_v36 = vadd.f32 %v9222_v5, %v9218_v48  ;;  %v4940_v56 = vmul.f32 %v4196_v59, %v11863_v9  ;;  %v4941_v45 = vmul.f32 %v4197_v57, %v1627_v32  ;;  %v2668_v15 = vmax.f32 %v9170_v47, %v9216_v60 }
 0x411   : > { %11862 = vst [vmem:[#allocation91_spill] sm:$0xff] %v9225_v38  ;;  %v9235_v22 = vmul.f32 %v11864_v44, %v1501_v55  ;;  %v4007_v49 = vmul.f32 %v6811_v46, %v9182_v58  ;;  %v9240_v24 = vsel %vm5673_vm9, %v5625_v12, %v9122_v23  ;;  %v2760_v17 = vrot.slane %v2759_v3, 4  ;;  %v9251_v55 = vld [vmem:[%s7447_s13 + $0xc0] sm:$0xff] }
 0x412   : > { %11865 = vst [vmem:[#allocation62_spill] sm:$0xff] %v9240_v24  ;;  %v9242_v52 = vpop.eup %6812  ;;  %v9245_v51 = vadd.f32 %v5056_v4, %v9149_v40  ;;  %v5137_v32 = vadd.f32 %v5136_v20, %v11858_v10  ;;  %v9248_v8 = vadd.f32 %v4941_v45, %v4940_v56  ;;  %v2669_v18 = vrot.slane %v2668_v15, 4  ;;  %1529 = vmatmul.bf16.gmra.mxu2 %v9251_v55  ;;  %v11867_v12 = vld [vmem:[#allocation26_spill] sm:$0xff]  ;;  %v9266_v24 = vpop.f32.mrf.mxu0 }
 0x413   : > { %2426 = vmatmul.f32.gmra.mxu1 %v2124_v25  ;;  %v3581_v54 = vadd.f32 %v3580_v31, %v3579_v6  ;;  %v4008_v30 = vsub.f32 1.0, %v4007_v49  ;;  %v2761_v59 = vmax.f32 %v2759_v3, %v2760_v17  ;;  %v4199_v23 = vmul.f32 %v9185_v53, %v9154_v62  ;;  %v9262_v31 = vpop.f32.mrf.mxu1 }
 0x414   : > { %11866 = vst [vmem:[#allocation15_spill] sm:$0xff] %v9248_v8  ;;  %v9255_v63 = vpop.eup %6814  ;;  %v4015_v25 = vand.u32 2147483647, %v9182_v58  ;;  %v4017_v40 = vand.u32 2147483648, %v9182_v58  ;;  %v3585_v4 = vrot.slane %v3584_v36, 4  ;;  %v2670_v57 = vmax.f32 %v2668_v15, %v2669_v18  ;;  %v11868_v8 = vld [vmem:[#allocation37_spill] sm:$0xff] }
 0x415   : > { %v4009_v10 = vmul.f32 %v6811_v46, %v4008_v30  ;;  %vm4012_vm10 = vweird.f32 %v6811_v46  ;;  %v3493_v6 = vadd.f32 %v9255_v63, %v9242_v52  ;;  %v2762_v20 = vrot.slane %v2761_v59, 2 }
 0x416   : > { %v5059_v3 = vrot.slane %v11867_v12, 4  ;;  %v5138_v9 = vrot.slane %v5137_v32, 2  ;;  %v2671_v56 = vrot.slane %v2670_v57, 2  ;;  %v4200_v45 = vsub.f32 1.0, %v4199_v23 }
 0x417   : > { %v4010_v44 = vadd.f32 %v6811_v46, %v4009_v10  ;;  %vm4011_vm11 = vweird.f32 %v9182_v58  ;;  %v3494_v49 = vrot.slane %v3493_v6, 4  ;;  %v2763_v15 = vmax.f32 %v2761_v59, %v2762_v20  ;;  %v1629_v58 = vpop.f32.mrf.mxu3 }
 0x418   : > { %v3582_v17 = vrot.slane %v3581_v54, 1  ;;  %vm4013_vm12 = vmor %vm4011_vm11, %vm4012_vm10  ;;  %v4018_v18 = vor.u32 1.1754944e-38, %v4017_v40  ;;  %v3586_v30 = vadd.f32 %v3585_v4, %v3584_v36  ;;  %v2672_v38 = vmax.f32 %v2670_v57, %v2671_v56 }
 0x419   : > { %v4014_v50 = vsel %vm4013_vm12, %v6811_v46, %v4010_v44  ;;  %vm4016_vm13 = vcmp.eq.f32.partialorder %v4015_v25, 8.507059e+37  ;;  %v3495_v27 = vadd.f32 %v3494_v49, %v3493_v6  ;;  %v2764_v42 = vrot.slane %v2763_v15, 1 }
 0x41a   : > { %v9269_v34 = vadd.f32 %v5138_v9, %v5137_v32  ;;  %v4019_v23 = vsel %vm4016_vm13, %v4018_v18, %v4014_v50  ;;  %v2673_v10 = vrot.slane %v2672_v38, 1  ;;  %v4201_v59 = vmul.f32 %v9185_v53, %v4200_v45  ;;  %v11870_v9 = vld [vmem:[#allocation106_spill] sm:$0xff] }
 0x41b   : > { %2429 = vmatmul.f32.gmra.mxu1 %v11868_v8  ;;  %v4020_v20 = vmul.f32 %v9142_v16, %v4019_v23  ;;  %v4021_v36 = vmul.f32 %v9146_v37, %v4019_v23  ;;  %v3496_v40 = vrot.slane %v3495_v27, 2  ;;  %v2765_v4 = vmax.f32 %v2763_v15, %v2764_v42  ;;  %v11869_v8 = vld [vmem:[#allocation7_spill] sm:$0xff]  ;;  %v9302_v23 = vpop.f32.mrf.mxu0 }
 0x41c   : > { %v5060_v46 = vadd.f32 %v5059_v3, %v11867_v12  ;;  %v9275_v25 = vadd.f32 %v3582_v17, %v3581_v54  ;;  %v3587_v57 = vrot.slane %v3586_v30, 2  ;;  %v2674_v6 = vmax.f32 %v2672_v38, %v2673_v10  ;;  %v9285_v3 = vpop.f32.mrf.mxu1 }
 0x41d   : > { %v4918_v32 = vmul.f32 %v4020_v20, %v11869_v8  ;;  %v4919_v50 = vmul.f32 %v4021_v36, %v11870_v9  ;;  %v3497_v56 = vadd.f32 %v3496_v40, %v3495_v27  ;;  %v3092_v44 = vsub.f32 %v9161_v43, %v2765_v4 }
 0x41e   : > { %v3093_v45 = vsub.f32 %v9210_v33, %v2765_v4  ;;  %v3066_v16 = vsub.f32 %v9170_v47, %v2674_v6  ;;  %v4202_v37 = vadd.f32 %v9185_v53, %v4201_v59  ;;  %vm4204_vm14 = vweird.f32 %v9185_v53  ;;  %v7112_v59 = vld [vmem:[%s7447_s13 + $0xb0] sm:$0xff] }
 0x41f   : > { %v5086_v42 = vadd.f32 %v4919_v50, %v4918_v32  ;;  %v3498_v54 = vrot.slane %v3497_v56, 1  ;;  %v3266_v12 = vmul.f32 1.442695, %v3092_v44  ;;  %v3067_v38 = vsub.f32 %v9216_v60, %v2674_v6  ;;  %v9304_v10 = vpop.f32.mrf.mxu3  ;;  %1688 = vmatmul.bf16.gmra.mxu3 %v7112_v59 }
 0x420   : > { %6816 = vrcp.f32 %v9275_v25  ;;  %v3268_v27 = vmul.f32 1.442695, %v3093_v45  ;;  %v3214_v43 = vmul.f32 1.442695, %v3066_v16  ;;  %vm4203_vm0 = vweird.f32 %v9154_v62  ;;  %v11874_v16 = vld [vmem:[#allocation130_spill] sm:$0xff] }
 0x421   : > { %v9289_v33 = vadd.f32 %v3498_v54, %v3497_v56  ;;  %6818 = vpow2.f32 %v3266_v12  ;;  %v3216_v47 = vmul.f32 1.442695, %v3067_v38  ;;  %v4207_v49 = vand.u32 2147483647, %v9154_v62  ;;  %vm9297_vm1 = vmor %vm4203_vm0, %vm4204_vm14 }
 0x422   : > { %v5481_v60 = vpack.c.bf16 %v9245_v51, %v9245_v51  ;;  %v5061_v15 = vrot.slane %v5060_v46, 2  ;;  %6820 = vpow2.f32 %v3268_v27  ;;  %v4209_v18 = vand.u32 2147483648, %v9154_v62 }
 0x423   : > { %2432 = vmatmul.f32.gmra.mxu1 %v9235_v22  ;;  %v5140_v22 = vrot.slane %v9269_v34, 1  ;;  %v3588_v20 = vadd.f32 %v3587_v57, %v3586_v30  ;;  %6822 = vrcp.f32 %v9289_v33  ;;  %v4206_v51 = vsel %vm9297_vm1, %v9185_v53, %v4202_v37 }
 0x424   : > { %v5087_v36 = vrot.slane %v5086_v42, 4  ;;  %6824 = vpow2.f32 %v3214_v43  ;;  %v4210_v40 = vor.u32 1.1754944e-38, %v4209_v18  ;;  %v2766_v62 = vmax.f32 %v9262_v31, %v9285_v3  ;;  %v11876_v43 = vld [vmem:[#allocation21_spill] sm:$0xff] }
 0x425   : > { %6826 = vpow2.f32 %v3216_v47  ;;  %v1630_v4 = vadd.f32 %v1629_v58, %v8368_v28  ;;  %vm4208_vm2 = vcmp.eq.f32.partialorder %v4207_v49, 8.507059e+37  ;;  %v2675_v6 = vmax.f32 %v9266_v24, %v9302_v23  ;;  %v9339_v49 = vpop.f32.mrf.mxu1 }
 0x426   : > { %v9317_v30 = vpop.eup %6816  ;;  %v9319_v57 = vunpack.c.l.b16 %v5481_v60  ;;  %v5062_v8 = vadd.f32 %v5061_v15, %v5060_v46  ;;  %v4211_v32 = vsel %vm4208_vm2, %v4210_v40, %v4206_v51  ;;  %v2767_v53 = vrot.slane %v2766_v62, 4  ;;  %v6636_v60 = vld [vmem:[%s7447_s13 + $0xc8] sm:$0xff]  ;;  %v11877_v15 = vld [vmem:[#allocation40_spill] sm:$0xff] }
 0x427   : > { %v9321_v9 = vpop.eup %6818  ;;  %v3589_v50 = vrot.slane %v3588_v20, 1  ;;  %v4212_v56 = vmul.f32 %v8973_v1, %v4211_v32  ;;  %v4213_v44 = vmul.f32 %v8987_v29, %v4211_v32  ;;  %v2676_v58 = vrot.slane %v2675_v6, 4  ;;  %1534 = vmatmul.bf16.gmra.mxu2 %v6636_v60  ;;  %v9365_v60 = vpop.f32.mrf.mxu0 }
 0x428   : > { %11873 = vst [vmem:[#allocation122_spill] sm:$0xff] %v9319_v57  ;;  %v9325_v45 = vpop.eup %6820  ;;  %v1503_v37 = vadd.f32 %v11874_v16, %v7879_v21  ;;  %v9330_v54 = vadd.f32 %v5140_v22, %v9269_v34  ;;  %v5088_v46 = vadd.f32 %v5087_v36, %v5086_v42  ;;  %v2768_v12 = vmax.f32 %v2766_v62, %v2767_v53  ;;  %v11878_v42 = vld [vmem:[#allocation114_spill] sm:$0xff] }
 0x429   : > { %v6823_v38 = vpop.eup %6822  ;;  %v9334_v27 = vadd.f32 %v9325_v45, %v9321_v9  ;;  %v4942_v1 = vmul.f32 %v4212_v56, %v11876_v43  ;;  %v4943_v47 = vmul.f32 %v4213_v44, %v1630_v4  ;;  %v4215_v29 = vmul.f32 %v9317_v30, %v9275_v25 }
 0x42a   : > { %11875 = vst [vmem:[#allocation4_spill] sm:$0xff] %v9330_v54  ;;  %v9343_v34 = vpop.eup %6824  ;;  %v9347_v17 = vadd.f32 %v11878_v42, %v7879_v21  ;;  %v4023_v18 = vmul.f32 %v6823_v38, %v9289_v33  ;;  %v2769_v59 = vrot.slane %v2768_v12, 2  ;;  %v2677_v22 = vmax.f32 %v2675_v6, %v2676_v58 }
 0x42b   : > { %2435 = vmatmul.f32.gmra.mxu1 %v11877_v15  ;;  %v9350_v51 = vpop.eup %6826  ;;  %v5063_v36 = vrot.slane %v5062_v8, 1  ;;  %v9352_v40 = vadd.f32 %v3589_v50, %v3588_v20  ;;  %v4031_v62 = vand.u32 2147483647, %v9289_v33  ;;  %v9355_v4 = vadd.f32 %v4943_v47, %v4942_v1  ;;  %v11880_v1 = vld [vmem:[#allocation30_spill] sm:$0xff] }
 0x42c   : > { %v4024_v32 = vsub.f32 1.0, %v4023_v18  ;;  %v3500_v53 = vadd.f32 %v9350_v51, %v9343_v34  ;;  %v2770_v56 = vmax.f32 %v2768_v12, %v2769_v59  ;;  %v2678_v44 = vrot.slane %v2677_v22, 2 }
 0x42d   : > { %11879 = vst [vmem:[#allocation131_spill] sm:$0xff] %v9355_v4  ;;  %v5089_v16 = vrot.slane %v5088_v46, 2  ;;  %vm4028_vm3 = vweird.f32 %v6823_v38  ;;  %v4033_v6 = vand.u32 2147483648, %v9289_v33  ;;  %v4216_v58 = vsub.f32 1.0, %v4215_v29 }
 0x42e   : > { %v4025_v43 = vmul.f32 %v6823_v38, %v4024_v32  ;;  %v3501_v15 = vrot.slane %v3500_v53, 4  ;;  %v2771_v20 = vrot.slane %v2770_v56, 1  ;;  %v2679_v50 = vmax.f32 %v2677_v22, %v2678_v44  ;;  %v9369_v22 = vpop.f32.mrf.mxu1 }
 0x42f   : > { %v9360_v42 = vadd.f32 %v5063_v36, %v5062_v8  ;;  %v2128_v47 = vmul.f32 %v11880_v1, %v1503_v37  ;;  %6828 = vrcp.f32 %v9352_v40  ;;  %vm4027_vm4 = vweird.f32 %v9289_v33  ;;  %v11882_v1 = vld [vmem:[#allocation47_spill] sm:$0xff] }
 0x430   : > { %v4026_v12 = vadd.f32 %v6823_v38, %v4025_v43  ;;  %v3502_v18 = vadd.f32 %v3501_v15, %v3500_v53  ;;  %v2772_v59 = vmax.f32 %v2770_v56, %v2771_v20  ;;  %v2680_v4 = vrot.slane %v2679_v50, 1  ;;  %vm4029_vm5 = vmor %vm4027_vm4, %vm4028_vm3  ;;  %v11881_v15 = vld [vmem:[#allocation8_spill] sm:$0xff] }
 0x431   : > { %v5090_v57 = vadd.f32 %v5089_v16, %v5088_v46  ;;  %vm4032_vm6 = vcmp.eq.f32.partialorder %v4031_v62, 8.507059e+37  ;;  %v4034_v29 = vor.u32 1.1754944e-38, %v4033_v6  ;;  %v4217_v8 = vmul.f32 %v9317_v30, %v4216_v58 }
 0x432   : > { %v4030_v37 = vsel %vm4029_vm5, %v6823_v38, %v4026_v12  ;;  %v3503_v36 = vrot.slane %v3502_v18, 2  ;;  %v3094_v33 = vsub.f32 %v9262_v31, %v2772_v59  ;;  %v3095_v32 = vsub.f32 %v9285_v3, %v2772_v59 }
 0x433   : > { %2438 = vmatmul.f32.gmra.mxu1 %v2128_v47  ;;  %v4035_v44 = vsel %vm4032_vm6, %v4034_v29, %v4030_v37  ;;  %v3592_v53 = vrot.slane %v9334_v27, 4  ;;  %v2681_v56 = vmax.f32 %v2679_v50, %v2680_v4  ;;  %vm4220_vm7 = vweird.f32 %v9317_v30 }
 0x434   : > { %v4036_v46 = vmul.f32 %v9242_v52, %v4035_v44  ;;  %v4037_v62 = vmul.f32 %v9255_v63, %v4035_v44  ;;  %v3504_v16 = vadd.f32 %v3503_v36, %v3502_v18  ;;  %v3270_v6 = vmul.f32 1.442695, %v3094_v33 }
 0x435   : > { %v9377_v58 = vpop.eup %6828  ;;  %v5091_v38 = vrot.slane %v5090_v57, 1  ;;  %v3272_v43 = vmul.f32 1.442695, %v3095_v32  ;;  %v3068_v31 = vsub.f32 %v9266_v24, %v2681_v56  ;;  %v4218_v3 = vadd.f32 %v9317_v30, %v4217_v8 }
 0x436   : > { %v4920_v20 = vmul.f32 %v4036_v46, %v11881_v15  ;;  %v4921_v4 = vmul.f32 %v4037_v62, %v11882_v1  ;;  %v3505_v50 = vrot.slane %v3504_v16, 1  ;;  %6830 = vpow2.f32 %v3270_v6 }
 0x437   : > { %v3593_v52 = vadd.f32 %v3592_v53, %v9334_v27  ;;  %v3069_v63 = vsub.f32 %v9302_v23, %v2681_v56  ;;  %v3218_v47 = vmul.f32 1.442695, %v3068_v31  ;;  %vm4219_vm8 = vweird.f32 %v9275_v25  ;;  %v9396_v27 = vpop.f32.mrf.mxu0 }
 0x438   : > { %v5093_v12 = vadd.f32 %v4921_v4, %v4920_v20  ;;  %v9386_v18 = vadd.f32 %v3505_v50, %v3504_v16  ;;  %6832 = vpow2.f32 %v3272_v43  ;;  %v4223_v24 = vand.u32 2147483647, %v9275_v25  ;;  %vm9391_vm10 = vmor %vm4219_vm8, %vm4220_vm7 }
 0x439   : > { %v5092_v59 = vadd.f32 %v5091_v38, %v5090_v57  ;;  %6834 = vpow2.f32 %v3218_v47  ;;  %v3220_v29 = vmul.f32 1.442695, %v3069_v63  ;;  %v4225_v23 = vand.u32 2147483648, %v9275_v25 }
 0x43a   : > { %v5066_v37 = vrot.slane %v8950_v11, 4  ;;  %v5094_v36 = vrot.slane %v5093_v12, 4  ;;  %6836 = vrcp.f32 %v9386_v18  ;;  %v4222_v57 = vsel %vm9391_vm10, %v9317_v30, %v4218_v3  ;;  %v11885_v30 = vld [vmem:[#allocation124_spill] sm:$0xff] }
 0x43b   : > { %v3594_v33 = vrot.slane %v3593_v52, 2  ;;  %6838 = vpow2.f32 %v3220_v29  ;;  %v1632_v32 = vadd.f32 %v9304_v10, %v8368_v28  ;;  %v4226_v44 = vor.u32 1.1754944e-38, %v4225_v23 }
 0x43c   : > { %v9405_v53 = vpop.eup %6830  ;;  %v5095_v25 = vadd.f32 %v5094_v36, %v5093_v12  ;;  %vm4224_vm11 = vcmp.eq.f32.partialorder %v4223_v24, 8.507059e+37  ;;  %v2773_v56 = vmax.f32 %v9339_v49, %v9369_v22  ;;  %v2682_v46 = vmax.f32 %v9365_v60, %v9396_v27  ;;  %v11886_v12 = vld [vmem:[#allocation22_spill] sm:$0xff] }
 0x43d   : > { %v9415_v16 = vmul.f32 %v11885_v30, %v9347_v17  ;;  %v5486_v6 = vpack.c.bf16 %v5092_v59, %v5092_v59  ;;  %v4227_v10 = vsel %vm4224_vm11, %v4226_v44, %v4222_v57  ;;  %v9424_v1 = vadd.f32 %v5066_v37, %v8950_v11  ;;  %v6637_v30 = vld [vmem:[%s7447_s13 + $0xd0] sm:$0xff] }
 0x43e   : > { %v9417_v38 = vpop.eup %6832  ;;  %v5096_v43 = vrot.slane %v5095_v25, 2  ;;  %v4228_v31 = vmul.f32 %v9110_v19, %v4227_v10  ;;  %v4229_v3 = vmul.f32 %v9124_v39, %v4227_v10  ;;  %v2774_v15 = vrot.slane %v2773_v56, 4  ;;  %1539 = vmatmul.bf16.gmra.mxu2 %v6637_v30 }
 0x43f   : > { %v9421_v20 = vpop.eup %6834  ;;  %v3595_v4 = vadd.f32 %v3594_v33, %v3593_v52  ;;  %v3598_v17 = vadd.f32 %v9417_v38, %v9405_v53  ;;  %v2683_v50 = vrot.slane %v2682_v46, 4  ;;  %v5615_v39 = vunpack.c.l.b16 %v5486_v6  ;;  %v11888_v6 = vld [vmem:[#allocation44_spill] sm:$0xff] }
 0x440   : > { %v6837_v63 = vpop.eup %6836  ;;  %v5097_v47 = vadd.f32 %v5096_v43, %v5095_v25  ;;  %v4944_v24 = vmul.f32 %v4228_v31, %v11886_v12  ;;  %v4945_v59 = vmul.f32 %v4229_v3, %v1632_v32  ;;  %v2775_v19 = vmax.f32 %v2773_v56, %v2774_v15  ;;  %v9437_v56 = vpop.f32.mrf.mxu1  ;;  %2441 = vmatmul.f32.gmra.mxu1 %v11888_v6 }
 0x441   : > { %v9429_v29 = vpop.eup %6838  ;;  %v4039_v8 = vmul.f32 %v6837_v63, %v9386_v18  ;;  %v3599_v23 = vrot.slane %v3598_v17, 4  ;;  %v2684_v11 = vmax.f32 %v2682_v46, %v2683_v50  ;;  %v3596_v33 = vrot.slane %v3595_v4, 1 }
 0x442   : > { %v5098_v37 = vrot.slane %v5097_v47, 1  ;;  %v3507_v52 = vadd.f32 %v9429_v29, %v9421_v20  ;;  %v9434_v36 = vadd.f32 %v4945_v59, %v4944_v24  ;;  %v2776_v57 = vrot.slane %v2775_v19, 2 }
 0x443   : > { %v4040_v44 = vsub.f32 1.0, %v4039_v8  ;;  %v4049_v32 = vand.u32 2147483648, %v9386_v18  ;;  %v2685_v25 = vrot.slane %v2684_v11, 2  ;;  %v4231_v31 = vmul.f32 %v9377_v58, %v9352_v40 }
 0x444   : > { %11887 = vst [vmem:[#allocation123_spill] sm:$0xff] %v9434_v36  ;;  %v5099_v10 = vadd.f32 %v5098_v37, %v5097_v47  ;;  %v3508_v43 = vrot.slane %v3507_v52, 4  ;;  %v2777_v46 = vmax.f32 %v2775_v19, %v2776_v57  ;;  %vm4044_vm12 = vweird.f32 %v6837_v63 }
 0x445   : > { %v4041_v3 = vmul.f32 %v6837_v63, %v4040_v44  ;;  %v4047_v15 = vand.u32 2147483647, %v9386_v18  ;;  %v2686_v50 = vmax.f32 %v2684_v11, %v2685_v25  ;;  %v3600_v24 = vadd.f32 %v3599_v23, %v3598_v17  ;;  %v9447_v25 = vpop.f32.mrf.mxu0 }
 0x446   : > { %v5487_v12 = vpack.c.bf16 %v5099_v10, %v5099_v10  ;;  %v3509_v59 = vadd.f32 %v3508_v43, %v3507_v52  ;;  %v2778_v8 = vrot.slane %v2777_v46, 1  ;;  %vm4043_vm13 = vweird.f32 %v9386_v18 }
 0x447   : > { %v4042_v62 = vadd.f32 %v6837_v63, %v4041_v3  ;;  %v4050_v6 = vor.u32 1.1754944e-38, %v4049_v32  ;;  %v2687_v47 = vrot.slane %v2686_v50, 1  ;;  %vm4045_vm14 = vmor %vm4043_vm13, %vm4044_vm12  ;;  %v4232_v36 = vsub.f32 1.0, %v4231_v31 }
 0x448   : > { %v5616_v37 = vunpack.c.l.b16 %v5487_v12  ;;  %v3510_v19 = vrot.slane %v3509_v59, 2  ;;  %v2779_v57 = vmax.f32 %v2777_v46, %v2778_v8  ;;  %v9445_v44 = vadd.f32 %v3596_v33, %v3595_v4  ;;  %v1634_v33 = vpop.f32.mrf.mxu3  ;;  %v11889_v46 = vld [vmem:[#allocation9_spill] sm:$0xff] }
 0x449   : > { %v4046_v14 = vsel %vm4045_vm14, %v6837_v63, %v4042_v62  ;;  %vm4048_vm0 = vcmp.eq.f32.partialorder %v4047_v15, 8.507059e+37  ;;  %v2688_v11 = vmax.f32 %v2686_v50, %v2687_v47  ;;  %v3601_v52 = vrot.slane %v3600_v24, 2  ;;  %v9456_v62 = vpop.f32.mrf.mxu1  ;;  %2444 = vmatmul.f32.gmra.mxu1 %v9415_v16  ;;  %v11890_v50 = vld [vmem:[#allocation2_spill] sm:$0xff] }
 0x44a   : > { %v9450_v17 = vsel %vm5671_vm15, %v5616_v37, %v5615_v39  ;;  %v4051_v23 = vsel %vm4048_vm0, %v4050_v6, %v4046_v14  ;;  %v3511_v18 = vadd.f32 %v3510_v19, %v3509_v59  ;;  %v5068_v32 = vrot.slane %v9424_v1, 2 }
 0x44b   : > { %v4052_v30 = vmul.f32 %v9343_v34, %v4051_v23  ;;  %v4053_v10 = vmul.f32 %v9350_v51, %v4051_v23  ;;  %v3096_v4 = vsub.f32 %v9339_v49, %v2779_v57  ;;  %v3097_v39 = vsub.f32 %v9369_v22, %v2779_v57  ;;  %v11892_v57 = vld [vmem:[#allocation126_spill] sm:$0xff] }
 0x44c   : > { %v3512_v63 = vrot.slane %v3511_v18, 1  ;;  %v3070_v14 = vsub.f32 %v9365_v60, %v2688_v11  ;;  %v4233_v43 = vmul.f32 %v9377_v58, %v4232_v36  ;;  %6840 = vrcp.f32 %v9445_v44 }
 0x44d   : > { %v4922_v34 = vmul.f32 %v4052_v30, %v11889_v46  ;;  %v4923_v51 = vmul.f32 %v4053_v10, %v8948_v61  ;;  %v3274_v31 = vmul.f32 1.442695, %v3096_v4  ;;  %v3602_v49 = vadd.f32 %v3601_v52, %v3600_v24  ;;  %v9481_v8 = vpop.f32.mrf.mxu0 }
 0x44e   : > { %v9465_v3 = vadd.f32 %v3512_v63, %v3511_v18  ;;  %v3276_v15 = vmul.f32 1.442695, %v3097_v39  ;;  %v3071_v16 = vsub.f32 %v9396_v27, %v2688_v11  ;;  %v1508_v22 = vadd.f32 %v11890_v50, %v7879_v21 }
 0x44f   : > { %v9470_v12 = vadd.f32 %v4923_v51, %v4922_v34  ;;  %6842 = vpow2.f32 %v3274_v31  ;;  %v3222_v60 = vmul.f32 1.442695, %v3070_v14  ;;  %v9473_v36 = vadd.f32 %v5068_v32, %v9424_v1  ;;  %v7113_v32 = vld [vmem:[%s7447_s13 + $0xb8] sm:$0xff] }
 0x450   : > { %6844 = vrcp.f32 %v9465_v3  ;;  %v4234_v61 = vadd.f32 %v9377_v58, %v4233_v43  ;;  %vm4236_vm1 = vweird.f32 %v9377_v58  ;;  %v5073_v27 = vrot.slane %v9061_v0, 4  ;;  %v9500_v18 = vpop.f32.mrf.mxu3  ;;  %1693 = vmatmul.bf16.gmra.mxu3 %v7113_v32 }
 0x451   : > { %6846 = vpow2.f32 %v3276_v15  ;;  %v3224_v59 = vmul.f32 1.442695, %v3071_v16  ;;  %v3603_v6 = vrot.slane %v3602_v49, 1  ;;  %vm4235_vm2 = vweird.f32 %v9352_v40 }
 0x452   : > { %6848 = vpow2.f32 %v3222_v60  ;;  %v4239_v1 = vand.u32 2147483647, %v9352_v40  ;;  %v9485_v47 = vpop.eup %6840  ;;  %v11891_v37 = vpack.c.bf16 %v9360_v42, %v9360_v42  ;;  %v9493_v11 = vmul.f32 %v11892_v57, %v1508_v22  ;;  %vm9495_vm3 = vmor %vm4235_vm2, %vm4236_vm1  ;;  %v9526_v22 = vpop.f32.mrf.mxu1  ;;  %v11895_v60 = vld [vmem:[#allocation127_spill] sm:$0xff] }
 0x453   : > { %6850 = vpow2.f32 %v3224_v59  ;;  %v4241_v52 = vand.u32 2147483648, %v9352_v40  ;;  %v4238_v42 = vsel %vm9495_vm3, %v9377_v58, %v4234_v61  ;;  %v2780_v10 = vmax.f32 %v9437_v56, %v9456_v62  ;;  %2447 = vmatmul.f32.gmra.mxu1 %v11895_v60 }
 0x454   : > { %v9490_v19 = vunpack.c.l.b16 %v11891_v37  ;;  %v2689_v4 = vmax.f32 %v9447_v25, %v9481_v8  ;;  %v9514_v40 = vadd.f32 %v5073_v27, %v9061_v0  ;;  %v1635_v14 = vadd.f32 %v1634_v33, %v8368_v28  ;;  %v6638_v33 = vld [vmem:[%s7447_s13 + $0xd8] sm:$0xff] }
 0x455   : > { %v9511_v63 = vpop.eup %6842  ;;  %v4242_v43 = vor.u32 1.1754944e-38, %v4241_v52  ;;  %v9518_v34 = vadd.f32 %v3603_v6, %v3602_v49  ;;  %vm4240_vm4 = vcmp.eq.f32.partialorder %v4239_v1, 8.507059e+37  ;;  %v2781_v58 = vrot.slane %v2780_v10, 4  ;;  %1544 = vmatmul.bf16.gmra.mxu2 %v6638_v33 }
 0x456   : > { %v6845_v46 = vpop.eup %6844  ;;  %v2690_v51 = vrot.slane %v2689_v4, 4  ;;  %v4063_v16 = vand.u32 2147483647, %v9465_v3  ;;  %v4247_v0 = vmul.f32 %v9485_v47, %v9445_v44  ;;  %v5101_v37 = vrot.slane %v9470_v12, 4 }
 0x457   : > { %v9520_v31 = vpop.eup %6846  ;;  %v4055_v15 = vmul.f32 %v6845_v46, %v9465_v3  ;;  %v4243_v50 = vsel %vm4240_vm4, %v4242_v43, %v4238_v42  ;;  %v2782_v6 = vmax.f32 %v2780_v10, %v2781_v58  ;;  %v4065_v23 = vand.u32 2147483648, %v9465_v3  ;;  %v11896_v43 = vld [vmem:[#allocation23_spill] sm:$0xff] }
 0x458   : > { %v9530_v49 = vpop.eup %6848  ;;  %v3605_v61 = vadd.f32 %v9520_v31, %v9511_v63  ;;  %v4244_v27 = vmul.f32 %v9218_v48, %v4243_v50  ;;  %v4245_v59 = vmul.f32 %v9222_v5, %v4243_v50  ;;  %v2691_v52 = vmax.f32 %v2689_v4, %v2690_v51 }
 0x459   : > { %v9536_v1 = vpop.eup %6850  ;;  %v4056_v57 = vsub.f32 1.0, %v4055_v15  ;;  %vm4060_vm5 = vweird.f32 %v6845_v46  ;;  %v2783_v5 = vrot.slane %v2782_v6, 2  ;;  %v4248_v15 = vsub.f32 1.0, %v4247_v0 }
 0x45a   : > { %v3606_v32 = vrot.slane %v3605_v61, 4  ;;  %v3514_v42 = vadd.f32 %v9536_v1, %v9530_v49  ;;  %v4946_v60 = vmul.f32 %v4244_v27, %v11896_v43  ;;  %v4947_v24 = vmul.f32 %v4245_v59, %v1635_v14 }
 0x45b   : > { %v4057_v48 = vmul.f32 %v6845_v46, %v4056_v57  ;;  %v2692_v10 = vrot.slane %v2691_v52, 2  ;;  %vm4059_vm6 = vweird.f32 %v9465_v3  ;;  %v2784_v4 = vmax.f32 %v2782_v6, %v2783_v5 }
 0x45c   : > { %v3607_v58 = vadd.f32 %v3606_v32, %v3605_v61  ;;  %v3515_v50 = vrot.slane %v3514_v42, 4  ;;  %v9543_v30 = vadd.f32 %v4947_v24, %v4946_v60  ;;  %v5102_v33 = vadd.f32 %v5101_v37, %v9470_v12  ;;  %vm4061_vm7 = vmor %vm4059_vm6, %vm4060_vm5  ;;  %v9547_v61 = vpop.f32.mrf.mxu1  ;;  %2450 = vmatmul.f32.gmra.mxu1 %v9493_v11 }
 0x45d   : > { %v4058_v39 = vadd.f32 %v6845_v46, %v4057_v48  ;;  %v2693_v51 = vmax.f32 %v2691_v52, %v2692_v10  ;;  %v4066_v54 = vor.u32 1.1754944e-38, %v4065_v23  ;;  %vm4064_vm8 = vcmp.eq.f32.partialorder %v4063_v16, 8.507059e+37 }
 0x45e   : > { %v3608_v27 = vrot.slane %v3607_v58, 2  ;;  %v3516_v14 = vadd.f32 %v3515_v50, %v3514_v42  ;;  %v2785_v57 = vrot.slane %v2784_v4, 1  ;;  %v4249_v3 = vmul.f32 %v9485_v47, %v4248_v15 }
 0x45f   : > { %v4062_v59 = vsel %vm4061_vm7, %v6845_v46, %v4058_v39  ;;  %v2694_v43 = vrot.slane %v2693_v51, 1  ;;  %v5103_v52 = vrot.slane %v5102_v33, 2  ;;  %6852 = vrcp.f32 %v9518_v34  ;;  %v11897_v46 = vld [vmem:[#allocation108_spill] sm:$0xff] }
 0x460   : > { %v4067_v24 = vsel %vm4064_vm8, %v4066_v54, %v4062_v59  ;;  %v3609_v0 = vadd.f32 %v3608_v27, %v3607_v58  ;;  %v3517_v32 = vrot.slane %v3516_v14, 2  ;;  %v2786_v37 = vmax.f32 %v2784_v4, %v2785_v57  ;;  %v6639_v27 = vld [vmem:[%s7447_s13 + $0xe0] sm:$0xff] }
 0x461   : > { %v4068_v6 = vmul.f32 %v9421_v20, %v4067_v24  ;;  %v4069_v12 = vmul.f32 %v9429_v29, %v4067_v24  ;;  %v2695_v23 = vmax.f32 %v2693_v51, %v2694_v43  ;;  %vm4252_vm10 = vweird.f32 %v9485_v47 }
 0x462   : > { %v3518_v39 = vadd.f32 %v3517_v32, %v3516_v14  ;;  %v3098_v11 = vsub.f32 %v9437_v56, %v2786_v37  ;;  %v3099_v42 = vsub.f32 %v9456_v62, %v2786_v37  ;;  %v3610_v60 = vrot.slane %v3609_v0, 1 }
 0x463   : > { %v4924_v16 = vmul.f32 %v4068_v6, %v11897_v46  ;;  %v4925_v54 = vmul.f32 %v4069_v12, %v8964_v2  ;;  %v3072_v29 = vsub.f32 %v9447_v25, %v2695_v23  ;;  %v4250_v48 = vadd.f32 %v9485_v47, %v4249_v3 }
 0x464   : > { %v3519_v20 = vrot.slane %v3518_v39, 1  ;;  %v3278_v10 = vmul.f32 1.442695, %v3098_v11  ;;  %v3280_v58 = vmul.f32 1.442695, %v3099_v42  ;;  %v3073_v50 = vsub.f32 %v9481_v8, %v2695_v23  ;;  %v9574_v8 = vpop.f32.mrf.mxu1 }
 0x465   : > { %v5107_v5 = vadd.f32 %v4925_v54, %v4924_v16  ;;  %v3226_v4 = vmul.f32 1.442695, %v3072_v29  ;;  %vm4251_vm11 = vweird.f32 %v9445_v44  ;;  %v4255_v2 = vand.u32 2147483647, %v9445_v44  ;;  %v9577_v14 = vpop.eup %6852  ;;  %1549 = vmatmul.bf16.gmra.mxu2 %v6639_v27  ;;  %v11902_v54 = vld [vmem:[#allocation103_spill] sm:$0xff] }
 0x466   : > { %v9562_v15 = vadd.f32 %v3519_v20, %v3518_v39  ;;  %v5075_v56 = vrot.slane %v9514_v40, 2  ;;  %6854 = vpow2.f32 %v3278_v10  ;;  %v3228_v62 = vmul.f32 1.442695, %v3073_v50  ;;  %vm9569_vm12 = vmor %vm4251_vm11, %vm4252_vm10 }
 0x467   : > { %v4257_v51 = vand.u32 2147483648, %v9445_v44  ;;  %v11900_v59 = vrot.slane %v9174_v35, 4  ;;  %v5108_v43 = vrot.slane %v5107_v5, 4  ;;  %v4254_v24 = vsel %vm9569_vm12, %v9485_v47, %v4250_v48  ;;  %v1639_v48 = vpop.f32.mrf.mxu3 }
 0x468   : > { %6856 = vrcp.f32 %v9562_v15  ;;  %v9588_v32 = vadd.f32 %v5103_v52, %v5102_v33  ;;  %v9590_v44 = vadd.f32 %v3610_v60, %v3609_v0  ;;  %v1637_v6 = vadd.f32 %v9500_v18, %v8368_v28 }
 0x469   : > { %v9582_v57 = vadd.f32 %v11900_v59, %v9174_v35  ;;  %6858 = vpow2.f32 %v3280_v58  ;;  %v4258_v3 = vor.u32 1.1754944e-38, %v4257_v51  ;;  %vm4256_vm13 = vcmp.eq.f32.partialorder %v4255_v2, 8.507059e+37 }
 0x46a   : > { %6860 = vpow2.f32 %v3226_v4  ;;  %v2787_v35 = vmax.f32 %v9526_v22, %v9547_v61  ;;  %v11901_v12 = vrot.slane %v9473_v36, 1  ;;  %v9602_v47 = vadd.f32 %v5075_v56, %v9514_v40 }
 0x46b   : > { %6862 = vpow2.f32 %v3228_v62  ;;  %v4259_v33 = vsel %vm4256_vm13, %v4258_v3, %v4254_v24  ;;  %v5109_v0 = vadd.f32 %v5108_v43, %v5107_v5  ;;  %v5082_v46 = vrot.slane %v9582_v57, 2 }
 0x46c   : > { %v9599_v37 = vadd.f32 %v11901_v12, %v9473_v36  ;;  %v4260_v23 = vmul.f32 %v9321_v9, %v4259_v33  ;;  %v4261_v52 = vmul.f32 %v9325_v45, %v4259_v33  ;;  %v2788_v18 = vrot.slane %v2787_v35, 4  ;;  %v9606_v39 = vpop.eup %6854  ;;  %v9620_v10 = vpop.f32.mrf.mxu1 }
 0x46d   : > { %v5105_v16 = vrot.slane %v9588_v32, 1  ;;  %6864 = vrcp.f32 %v9590_v44  ;;  %v4263_v36 = vmul.f32 %v9577_v14, %v9518_v34  ;;  %vm4075_vm14 = vweird.f32 %v9562_v15 }
 0x46e   : > { %v6857_v40 = vpop.eup %6856  ;;  %v4948_v11 = vmul.f32 %v4260_v23, %v11902_v54  ;;  %v4949_v9 = vmul.f32 %v4261_v52, %v1637_v6  ;;  %v2789_v42 = vmax.f32 %v2787_v35, %v2788_v18  ;;  %v4079_v20 = vand.u32 2147483647, %v9562_v15 }
 0x46f   : > { %v9615_v45 = vpop.eup %6858  ;;  %v4071_v60 = vmul.f32 %v6857_v40, %v9562_v15  ;;  %v4081_v29 = vand.u32 2147483648, %v9562_v15  ;;  %v4264_v5 = vsub.f32 1.0, %v4263_v36  ;;  %v5110_v50 = vrot.slane %v5109_v0, 2 }
 0x470   : > { %v9622_v58 = vpop.eup %6860  ;;  %v3612_v4 = vadd.f32 %v9615_v45, %v9606_v39  ;;  %v9626_v2 = vadd.f32 %v4949_v9, %v4948_v11  ;;  %v2790_v56 = vrot.slane %v2789_v42, 2  ;;  %vm4268_vm0 = vweird.f32 %v9577_v14 }
 0x471   : > { %v9628_v62 = vpop.eup %6862  ;;  %v4072_v25 = vsub.f32 1.0, %v4071_v60  ;;  %v4265_v51 = vmul.f32 %v9577_v14, %v4264_v5  ;;  %v4273_v27 = vand.u32 2147483648, %v9518_v34  ;;  %v4271_v3 = vand.u32 2147483647, %v9518_v34 }
 0x472   : > { %v3613_v59 = vrot.slane %v3612_v4, 4  ;;  %v3521_v43 = vadd.f32 %v9628_v62, %v9622_v58  ;;  %v2791_v24 = vmax.f32 %v2789_v42, %v2790_v56  ;;  %vm4076_vm1 = vweird.f32 %v6857_v40 }
 0x473   : > { %v9636_v6 = vpop.eup %6864  ;;  %v4073_v35 = vmul.f32 %v6857_v40, %v4072_v25  ;;  %v4266_v12 = vadd.f32 %v9577_v14, %v4265_v51  ;;  %vm4267_vm2 = vweird.f32 %v9518_v34  ;;  %vm9640_vm3 = vcmp.eq.f32.partialorder %v4079_v20, 8.507059e+37  ;;  %vm4077_vm5 = vmor %vm4075_vm14, %vm4076_vm1  ;;  %v1641_v25 = vpop.f32.mrf.mxu3  ;;  %1698 = vmatmul.bf16.gmra.mxu3 %v9251_v55 }
 0x474   : > { %v3614_v23 = vadd.f32 %v3613_v59, %v3612_v4  ;;  %v3522_v52 = vrot.slane %v3521_v43, 4  ;;  %v2792_v18 = vrot.slane %v2791_v24, 1  ;;  %vm4269_vm4 = vmor %vm4267_vm2, %vm4268_vm0  ;;  %v4082_v54 = vor.u32 1.1754944e-38, %v4081_v29  ;;  %v9650_v51 = vpop.f32.mrf.mxu1  ;;  %v6640_v59 = vld [vmem:[%s7447_s13 + $0xe8] sm:$0xff] }
 0x475   : > { %v4074_v36 = vadd.f32 %v6857_v40, %v4073_v35  ;;  %v4270_v11 = vsel %vm4269_vm4, %v9577_v14, %v4266_v12  ;;  %v4274_v9 = vor.u32 1.1754944e-38, %v4273_v27  ;;  %vm4272_vm6 = vcmp.eq.f32.partialorder %v4271_v3, 8.507059e+37  ;;  %1554 = vmatmul.bf16.gmra.mxu2 %v6640_v59  ;;  %v11905_v35 = vld [vmem:[#allocation10_spill] sm:$0xff] }
 0x476   : > { %v3615_v34 = vrot.slane %v3614_v23, 2  ;;  %v3523_v42 = vadd.f32 %v3522_v52, %v3521_v43  ;;  %v2793_v60 = vmax.f32 %v2791_v24, %v2792_v18  ;;  %v5111_v20 = vadd.f32 %v5110_v50, %v5109_v0 }
 0x477   : > { %v4078_v5 = vsel %vm4077_vm5, %v6857_v40, %v4074_v36  ;;  %v1640_v4 = vadd.f32 %v1639_v48, %v8368_v28  ;;  %v4275_v56 = vsel %vm4272_vm6, %v4274_v9, %v4270_v11  ;;  %v2794_v27 = vmax.f32 %v9574_v8, %v9620_v10 }
 0x478   : > { %v4083_v14 = vsel %vm9640_vm3, %v4082_v54, %v4078_v5  ;;  %v3616_v15 = vadd.f32 %v3615_v34, %v3614_v23  ;;  %v3524_v29 = vrot.slane %v3523_v42, 2  ;;  %v3100_v48 = vsub.f32 %v9526_v22, %v2793_v60 }
 0x479   : > { %v4084_v0 = vmul.f32 %v9530_v49, %v4083_v14  ;;  %v4085_v40 = vmul.f32 %v9536_v1, %v4083_v14  ;;  %v3101_v50 = vsub.f32 %v9547_v61, %v2793_v60  ;;  %v4276_v55 = vmul.f32 %v9405_v53, %v4275_v56  ;;  %v11906_v61 = vld [vmem:[#allocation24_spill] sm:$0xff] }
 0x47a   : > { %v3617_v43 = vrot.slane %v3616_v15, 1  ;;  %v3525_v24 = vadd.f32 %v3524_v29, %v3523_v42  ;;  %v4279_v3 = vmul.f32 %v9636_v6, %v9590_v44  ;;  %v3282_v23 = vmul.f32 1.442695, %v3100_v48 }
 0x47b   : > { %v4926_v12 = vmul.f32 %v4084_v0, %v11905_v35  ;;  %v4927_v33 = vmul.f32 %v4085_v40, %v8991_v26  ;;  %v3284_v49 = vmul.f32 1.442695, %v3101_v50  ;;  %v4277_v22 = vmul.f32 %v9417_v38, %v4275_v56 }
 0x47c   : > { %v9667_v52 = vadd.f32 %v3617_v43, %v3616_v15  ;;  %v3526_v1 = vrot.slane %v3525_v24, 1  ;;  %v4950_v18 = vmul.f32 %v4276_v55, %v11906_v61  ;;  %v9674_v53 = vadd.f32 %v5105_v16, %v9588_v32  ;;  %v9681_v60 = vpop.f32.mrf.mxu1 }
 0x47d   : > { %v5114_v36 = vadd.f32 %v4927_v33, %v4926_v12  ;;  %6866 = vpow2.f32 %v3282_v23  ;;  %v2795_v54 = vrot.slane %v2794_v27, 4  ;;  %v4951_v11 = vmul.f32 %v4277_v22, %v1640_v4 }
 0x47e   : > { %6868 = vrcp.f32 %v9667_v52  ;;  %v9677_v26 = vadd.f32 %v3526_v1, %v3525_v24  ;;  %v4280_v9 = vsub.f32 1.0, %v4279_v3  ;;  %v5483_v34 = vpack.c.bf16 %v9599_v37, %v9599_v37 }
 0x47f   : > { %v5115_v38 = vrot.slane %v5114_v36, 4  ;;  %6870 = vpow2.f32 %v3284_v49  ;;  %v2796_v42 = vmax.f32 %v2794_v27, %v2795_v54  ;;  %v5077_v32 = vrot.slane %v9602_v47, 1 }
 0x480   : > { %v9687_v16 = vadd.f32 %v5082_v46, %v9582_v57  ;;  %v5112_v5 = vrot.slane %v5111_v20, 1  ;;  %6872 = vrcp.f32 %v9677_v26  ;;  %v5488_v4 = vpack.c.bf16 %v9674_v53, %v9674_v53 }
 0x481   : > { %v5198_v56 = vadd.f32 %v4951_v11, %v4950_v18  ;;  %v2797_v59 = vrot.slane %v2796_v42, 2  ;;  %v4281_v14 = vmul.f32 %v9636_v6, %v4280_v9  ;;  %v5116_v15 = vadd.f32 %v5115_v38, %v5114_v36 }
 0x482   : > { %v4095_v29 = vand.u32 2147483647, %v9677_v26  ;;  %vm4283_vm7 = vweird.f32 %v9590_v44  ;;  %vm4284_vm8 = vweird.f32 %v9636_v6  ;;  %v4287_v40 = vand.u32 2147483647, %v9590_v44 }
 0x483   : > { %v9696_v27 = vpop.eup %6866  ;;  %v5199_v57 = vrot.slane %v5198_v56, 4  ;;  %v2798_v46 = vmax.f32 %v2796_v42, %v2797_v59  ;;  %v4282_v0 = vadd.f32 %v9636_v6, %v4281_v14  ;;  %v9702_v50 = vadd.f32 %v5112_v5, %v5111_v20  ;;  %vm9705_vm10 = vmor %vm4283_vm7, %vm4284_vm8  ;;  %v6674_v5 = vld [vmem:[%s11485_s5 + $0x78] sm:$0xff] }
 0x484   : > { %v9700_v48 = vpop.eup %6868  ;;  %v1642_v43 = vadd.f32 %v1641_v25, %v8368_v28  ;;  %v4289_v55 = vand.u32 2147483648, %v9590_v44  ;;  %v2801_v3 = vmax.f32 %v9650_v51, %v9681_v60  ;;  %vm4091_vm11 = vweird.f32 %v9677_v26  ;;  %v9726_v54 = vpop.f32.mrf.mxu1  ;;  %5790 = vmatpush.bf16.msra.mxu2 %v6674_v5 }
 0x485   : > { %v9712_v35 = vpop.eup %6870  ;;  %v5200_v12 = vadd.f32 %v5199_v57, %v5198_v56  ;;  %v2799_v33 = vrot.slane %v2798_v46, 1  ;;  %v4286_v20 = vsel %vm9705_vm10, %v9636_v6, %v4282_v0  ;;  %v4097_v23 = vand.u32 2147483648, %v9677_v26  ;;  %v6641_v6 = vld [vmem:[%s7447_s13 + $0xf0] sm:$0xff] }
 0x486   : > { %v6873_v25 = vpop.eup %6872  ;;  %v3619_v44 = vadd.f32 %v9712_v35, %v9696_v27  ;;  %v4290_v49 = vor.u32 1.1754944e-38, %v4289_v55  ;;  %v2802_v1 = vrot.slane %v2801_v3, 4  ;;  %v5117_v22 = vrot.slane %v5116_v15, 2  ;;  %1559 = vmatmul.bf16.gmra.mxu2 %v6641_v6  ;;  %v1644_v6 = vpop.f32.mrf.mxu3 }
 0x487   : > { %v4087_v61 = vmul.f32 %v6873_v25, %v9677_v26  ;;  %vm9722_vm12 = vcmp.eq.f32.partialorder %v4095_v29, 8.507059e+37  ;;  %v5201_v36 = vrot.slane %v5200_v12, 2  ;;  %vm4288_vm13 = vcmp.eq.f32.partialorder %v4287_v40, 8.507059e+37  ;;  %v6672_v26 = vld [vmem:[%s11485_s5 + $0x68] sm:$0xff] }
 0x488   : > { %v3620_v11 = vrot.slane %v3619_v44, 4  ;;  %v2800_v9 = vmax.f32 %v2798_v46, %v2799_v33  ;;  %v4291_v38 = vsel %vm4288_vm13, %v4290_v49, %v4286_v20  ;;  %v4295_v42 = vmul.f32 %v9700_v48, %v9667_v52  ;;  %v11911_v33 = vld [vmem:[#allocation25_spill] sm:$0xff] }
 0x489   : > { %v4088_v56 = vsub.f32 1.0, %v4087_v61  ;;  %v5202_v59 = vadd.f32 %v5201_v36, %v5200_v12  ;;  %v4292_v14 = vmul.f32 %v9511_v63, %v4291_v38  ;;  %v2803_v29 = vmax.f32 %v2801_v3, %v2802_v1  ;;  %v6673_v63 = vld [vmem:[%s11485_s5 + $0x70] sm:$0xff] }
 0x48a   : > { %v3621_v57 = vadd.f32 %v3620_v11, %v3619_v44  ;;  %v3102_v0 = vsub.f32 %v9574_v8, %v2800_v9  ;;  %v3103_v40 = vsub.f32 %v9620_v10, %v2800_v9  ;;  %v4293_v46 = vmul.f32 %v9520_v31, %v4291_v38  ;;  %5791 = vmatpush.bf16.msra.mxu2 %v6673_v63 }
 0x48b   : > { %v4089_v24 = vmul.f32 %v6873_v25, %v4088_v56  ;;  %vm4092_vm14 = vweird.f32 %v6873_v25  ;;  %v5203_v55 = vrot.slane %v5202_v59, 1  ;;  %v4952_v20 = vmul.f32 %v4292_v14, %v11911_v33 }
 0x48c   : > { %v3622_v49 = vrot.slane %v3621_v57, 2  ;;  %v3286_v61 = vmul.f32 1.442695, %v3102_v0  ;;  %v3288_v12 = vmul.f32 1.442695, %v3103_v40  ;;  %v4953_v36 = vmul.f32 %v4293_v46, %v1642_v43  ;;  %vm4093_vm1 = vmor %vm4091_vm11, %vm4092_vm14  ;;  %v9749_v38 = vpop.f32.mrf.mxu1 }
 0x48d   : > { %v4090_v3 = vadd.f32 %v6873_v25, %v4089_v24  ;;  %v4098_v8 = vor.u32 1.1754944e-38, %v4097_v23  ;;  %v2804_v44 = vrot.slane %v2803_v29, 2  ;;  %vm4299_vm0 = vweird.f32 %v9667_v52 }
 0x48e   : > { %v9743_v31 = vadd.f32 %v5117_v22, %v5116_v15  ;;  %v3623_v10 = vadd.f32 %v3622_v49, %v3621_v57  ;;  %6874 = vpow2.f32 %v3286_v61  ;;  %v5205_v1 = vadd.f32 %v4953_v36, %v4952_v20  ;;  %5792 = vmatpush.bf16.msra.mxu2 %v6672_v26  ;;  %v6671_v20 = vld [vmem:[%s11485_s5 + $0x60] sm:$0xff]  ;;  %v6670_v26 = vld [vmem:[%s11485_s5 + $0x58] sm:$0xff] }
 0x48f   : > { %v4094_v43 = vsel %vm4093_vm1, %v6873_v25, %v4090_v3  ;;  %v9747_v11 = vadd.f32 %v5203_v55, %v5202_v59  ;;  %6876 = vpow2.f32 %v3288_v12  ;;  %v2805_v9 = vmax.f32 %v2803_v29, %v2804_v44 }
 0x490   : > { %v4099_v23 = vsel %vm9722_vm12, %v4098_v8, %v4094_v43  ;;  %v3624_v15 = vrot.slane %v3623_v10, 1  ;;  %v5206_v22 = vrot.slane %v5205_v1, 4  ;;  %v4296_v5 = vsub.f32 1.0, %v4295_v42  ;;  %v11912_v42 = vld [vmem:[#allocation11_spill] sm:$0xff] }
 0x491   : > { %v4100_v56 = vmul.f32 %v9622_v58, %v4099_v23  ;;  %v4101_v25 = vmul.f32 %v9628_v62, %v4099_v23  ;;  %v2806_v59 = vrot.slane %v2805_v9, 1  ;;  %v1645_v14 = vadd.f32 %v1644_v6, %v8368_v28  ;;  %v1646_v6 = vpop.f32.mrf.mxu3  ;;  %v7114_v23 = vld [vmem:[%s7447_s13 + $0xc8] sm:$0xff] }
 0x492   : > { %v9759_v29 = vadd.f32 %v3624_v15, %v3623_v10  ;;  %v5207_v57 = vadd.f32 %v5206_v22, %v5205_v1  ;;  %v4297_v18 = vmul.f32 %v9700_v48, %v4296_v5  ;;  %vm4300_vm2 = vweird.f32 %v9700_v48  ;;  %5793 = vmatpush.bf16.msra.mxu2 %v6671_v20  ;;  %1703 = vmatmul.bf16.gmra.mxu3 %v7114_v23 }
 0x493   : > { %v4928_v0 = vmul.f32 %v4100_v56, %v11912_v42  ;;  %v4929_v40 = vmul.f32 %v4101_v25, %v9078_v7  ;;  %v2807_v46 = vmax.f32 %v2805_v9, %v2806_v59  ;;  %v4303_v58 = vand.u32 2147483647, %v9667_v52  ;;  %vm9782_vm3 = vmor %vm4299_vm0, %vm4300_vm2  ;;  %v6642_v9 = vld [vmem:[%s7447_s13 + $0xf8] sm:$0xff] }
 0x494   : > { %v9766_v24 = vpop.eup %6874  ;;  %6878 = vrcp.f32 %v9759_v29  ;;  %v5208_v62 = vrot.slane %v5207_v57, 2  ;;  %v4298_v55 = vadd.f32 %v9700_v48, %v4297_v18  ;;  %v4305_v33 = vand.u32 2147483648, %v9667_v52  ;;  %v9797_v43 = vpop.f32.mrf.mxu1 }
 0x495   : > { %v9774_v49 = vpop.eup %6876  ;;  %v5121_v61 = vadd.f32 %v4929_v40, %v4928_v0  ;;  %v3104_v7 = vsub.f32 %v9650_v51, %v2807_v46  ;;  %v3105_v12 = vsub.f32 %v9681_v60, %v2807_v46  ;;  %vm9786_vm4 = vcmp.eq.f32.partialorder %v4303_v58, 8.507059e+37  ;;  %v11917_v40 = vld [vmem:[#allocation27_spill] sm:$0xff] }
 0x496   : > { %v3626_v3 = vadd.f32 %v9774_v49, %v9766_v24  ;;  %v5209_v8 = vadd.f32 %v5208_v62, %v5207_v57  ;;  %v4302_v51 = vsel %vm9782_vm3, %v9700_v48, %v4298_v55  ;;  %v4306_v60 = vor.u32 1.1754944e-38, %v4305_v33  ;;  %1564 = vmatmul.bf16.gmra.mxu2 %v6642_v9 }
 0x497   : > { %v5122_v44 = vrot.slane %v5121_v61, 4  ;;  %v3290_v52 = vmul.f32 1.442695, %v3104_v7  ;;  %v3292_v10 = vmul.f32 1.442695, %v3105_v12  ;;  %v2808_v1 = vmax.f32 %v9726_v54, %v9749_v38  ;;  %5794 = vmatpush.bf16.msra.mxu2 %v6670_v26 }
 0x498   : > { %v5502_v15 = vpack.c.bf16 %v9747_v11, %v9747_v11  ;;  %v3627_v22 = vrot.slane %v3626_v3, 4  ;;  %v5210_v5 = vrot.slane %v5209_v8, 1  ;;  %v4307_v48 = vsel %vm9786_vm4, %v4306_v60, %v4302_v51 }
 0x499   : > { %v5123_v56 = vadd.f32 %v5122_v44, %v5121_v61  ;;  %6880 = vpow2.f32 %v3290_v52  ;;  %v4308_v25 = vmul.f32 %v9606_v39, %v4307_v48  ;;  %v4309_v59 = vmul.f32 %v9615_v45, %v4307_v48  ;;  %v6669_v45 = vld [vmem:[%s11485_s5 + $0x50] sm:$0xff] }
 0x49a   : > { %v6879_v57 = vpop.eup %6878  ;;  %v3628_v18 = vadd.f32 %v3627_v22, %v3626_v3  ;;  %v5211_v42 = vadd.f32 %v5210_v5, %v5209_v8  ;;  %6882 = vpow2.f32 %v3292_v10  ;;  %v2809_v11 = vrot.slane %v2808_v1, 4  ;;  %v6668_v5 = vld [vmem:[%s11485_s5 + $0x48] sm:$0xff] }
 0x49b   : > { %v5124_v0 = vrot.slane %v5123_v56, 2  ;;  %v4954_v46 = vmul.f32 %v4308_v25, %v11917_v40  ;;  %v4955_v58 = vmul.f32 %v4309_v59, %v1645_v14  ;;  %v4311_v62 = vmul.f32 %v6879_v57, %v9759_v29  ;;  %5795 = vmatpush.bf16.msra.mxu2 %v6669_v45 }
 0x49c   : > { %v5119_v55 = vrot.slane %v9743_v31, 1  ;;  %v3629_v33 = vrot.slane %v3628_v18, 2  ;;  %v5503_v20 = vpack.c.bf16 %v5211_v42, %v5211_v42  ;;  %v2810_v39 = vmax.f32 %v2808_v1, %v2809_v11  ;;  %v9820_v10 = vpop.f32.mrf.mxu1 }
 0x49d   : > { %v5125_v61 = vadd.f32 %v5124_v0, %v5123_v56  ;;  %v5631_v7 = vunpack.c.l.b16 %v5502_v15  ;;  %v5212_v12 = vadd.f32 %v4955_v58, %v4954_v46  ;;  %v4312_v36 = vsub.f32 1.0, %v4311_v62  ;;  %v6667_v58 = vld [vmem:[%s11485_s5 + $0x40] sm:$0xff] }
 0x49e   : > { %v3630_v63 = vadd.f32 %v3629_v33, %v3628_v18  ;;  %v5632_v3 = vunpack.c.l.b16 %v5503_v20  ;;  %v2811_v8 = vrot.slane %v2810_v39, 2  ;;  %vm4316_vm5 = vweird.f32 %v6879_v57 }
 0x49f   : > { %v9816_v14 = vpop.eup %6880  ;;  %v5213_v51 = vrot.slane %v5212_v12, 4  ;;  %v4313_v60 = vmul.f32 %v6879_v57, %v4312_v36  ;;  %v4319_v44 = vand.u32 2147483647, %v9759_v29  ;;  %v4321_v52 = vand.u32 2147483648, %v9759_v29  ;;  %5796 = vmatpush.bf16.msra.mxu2 %v6668_v5 }
 0x4a0   : > { %v9822_v1 = vpop.eup %6882  ;;  %v3631_v9 = vrot.slane %v3630_v63, 1  ;;  %v9825_v23 = vsel %vm5671_vm15, %v5632_v3, %v5631_v7  ;;  %v2812_v15 = vmax.f32 %v2810_v39, %v2811_v8  ;;  %v1647_v22 = vadd.f32 %v1646_v6, %v8368_v28  ;;  %v11918_v8 = vld [vmem:[#allocation29_spill] sm:$0xff] }
 0x4a1   : > { %v5126_v48 = vrot.slane %v5125_v61, 1  ;;  %v5214_v26 = vadd.f32 %v5213_v51, %v5212_v12  ;;  %v4314_v56 = vadd.f32 %v6879_v57, %v4313_v60  ;;  %vm4315_vm6 = vweird.f32 %v9759_v29 }
 0x4a2   : > { %v9832_v25 = vadd.f32 %v3631_v9, %v3630_v63  ;;  %v2813_v59 = vrot.slane %v2812_v15, 1  ;;  %vm4317_vm7 = vmor %vm4315_vm6, %vm4316_vm5  ;;  %v4322_v18 = vor.u32 1.1754944e-38, %v4321_v52  ;;  %v2815_v42 = vmax.f32 %v9797_v43, %v9820_v10 }
 0x4a3   : > { %v3633_v6 = vadd.f32 %v9822_v1, %v9816_v14  ;;  %v5215_v11 = vrot.slane %v5214_v26, 2  ;;  %v4318_v0 = vsel %vm4317_vm7, %v6879_v57, %v4314_v56  ;;  %vm4320_vm8 = vcmp.eq.f32.partialorder %v4319_v44, 8.507059e+37  ;;  %5797 = vmatpush.bf16.msra.mxu2 %v6667_v58 }
 0x4a4   : > { %6884 = vrcp.f32 %v9832_v25  ;;  %v2814_v40 = vmax.f32 %v2812_v15, %v2813_v59  ;;  %v4323_v29 = vsel %vm4320_vm8, %v4322_v18, %v4318_v0  ;;  %v2816_v46 = vrot.slane %v2815_v42, 4  ;;  %v9872_v0 = vpop.f32.mrf.mxu1 }
 0x4a5   : > { %v5120_v62 = vadd.f32 %v5119_v55, %v9743_v31  ;;  %v5127_v33 = vadd.f32 %v5126_v48, %v5125_v61  ;;  %v5216_v20 = vadd.f32 %v5215_v11, %v5214_v26  ;;  %v4324_v39 = vmul.f32 %v9696_v27, %v4323_v29 }
 0x4a6   : > { %v3106_v45 = vsub.f32 %v9726_v54, %v2814_v40  ;;  %v3107_v57 = vsub.f32 %v9749_v38, %v2814_v40  ;;  %v4325_v7 = vmul.f32 %v9712_v35, %v4323_v29  ;;  %v2817_v12 = vmax.f32 %v2815_v42, %v2816_v46 }
 0x4a7   : > { %v5489_v36 = vpack.c.bf16 %v9702_v50, %v9702_v50  ;;  %v3634_v63 = vrot.slane %v3633_v6, 4  ;;  %v5217_v3 = vrot.slane %v5216_v20, 1  ;;  %v4956_v51 = vmul.f32 %v4324_v39, %v11918_v8 }
 0x4a8   : > { %v3294_v31 = vmul.f32 1.442695, %v3106_v45  ;;  %v3296_v55 = vmul.f32 1.442695, %v3107_v57  ;;  %v4957_v61 = vmul.f32 %v4325_v7, %v1647_v22  ;;  %v2818_v60 = vrot.slane %v2817_v12, 2  ;;  %v11919_v45 = vld [vmem:[#allocation128_spill] sm:$0xff] }
 0x4a9   : > { %v9854_v27 = vunpack.c.l.b16 %v5483_v34  ;;  %v5490_v54 = vpack.c.bf16 %v5120_v62, %v5120_v62  ;;  %v5491_v35 = vpack.c.bf16 %v5127_v33, %v5127_v33  ;;  %v5218_v38 = vadd.f32 %v5217_v3, %v5216_v20  ;;  %v9888_v20 = vpop.f32.mrf.mxu2 }
 0x4aa   : > { %v6885_v44 = vpop.eup %6884  ;;  %v5084_v52 = vrot.slane %v9687_v16, 1  ;;  %6886 = vpow2.f32 %v3294_v31  ;;  %v9857_v50 = vadd.f32 %v4957_v61, %v4956_v51  ;;  %v2819_v9 = vmax.f32 %v2817_v12, %v2818_v60  ;;  %v11920_v12 = vld [vmem:[#allocation122_spill] sm:$0xff] }
 0x4ab   : > { %v5078_v15 = vadd.f32 %v5077_v32, %v9602_v47  ;;  %v5504_v22 = vpack.c.bf16 %v5218_v38, %v5218_v38  ;;  %6888 = vpow2.f32 %v3296_v55  ;;  %v4327_v37 = vmul.f32 %v6885_v44, %v9832_v25 }
 0x4ac   : > { %v5617_v34 = vunpack.c.l.b16 %v5488_v4  ;;  %v5618_v5 = vunpack.c.l.b16 %v5489_v36  ;;  %v3635_v48 = vadd.f32 %v3634_v63, %v3633_v6  ;;  %v2820_v26 = vrot.slane %v2819_v9, 1  ;;  %v1649_v4 = vpop.f32.mrf.mxu3 }
 0x4ad   : > { %v9866_v56 = vunpack.c.l.b16 %v5490_v54  ;;  %v9868_v59 = vunpack.c.l.b16 %v5491_v35  ;;  %v5633_v18 = vunpack.c.l.b16 %v5504_v22  ;;  %v4328_v42 = vsub.f32 1.0, %v4327_v37  ;;  %v11921_v35 = vld [vmem:[#allocation31_spill] sm:$0xff] }
 0x4ae   : > { %v2821_v11 = vmax.f32 %v2819_v9, %v2820_v26  ;;  %v4335_v47 = vand.u32 2147483647, %v9832_v25  ;;  %v4337_v32 = vand.u32 2147483648, %v9832_v25  ;;  %v5085_v40 = vadd.f32 %v5084_v52, %v9687_v16  ;;  %v11923_v26 = vld [vmem:[#allocation42_spill] sm:$0xff] }
 0x4af   : > { %v9877_v53 = vsel %vm5673_vm9, %v5633_v18, %v9825_v23  ;;  %v4329_v6 = vmul.f32 %v6885_v44, %v4328_v42  ;;  %vm4332_vm10 = vweird.f32 %v6885_v44  ;;  %v5672_v29 = vsel %vm5671_vm15, %v8957_v41, %v8944_v13 }
 0x4b0   : > { %v9882_v46 = vpop.eup %6886  ;;  %v3636_v58 = vrot.slane %v3635_v48, 2  ;;  %v3108_v62 = vsub.f32 %v9797_v43, %v2821_v11  ;;  %vm4331_vm11 = vweird.f32 %v9832_v25  ;;  %v5484_v33 = vpack.c.bf16 %v5078_v15, %v5078_v15  ;;  %v9909_v15 = vpop.f32.mrf.mxu1 }
 0x4b1   : > { %v9886_v16 = vpop.eup %6888  ;;  %v4330_v23 = vadd.f32 %v6885_v44, %v4329_v6  ;;  %v5485_v39 = vpack.c.bf16 %v5085_v40, %v5085_v40  ;;  %v5674_v57 = vsel %vm5673_vm9, %v11919_v45, %v5672_v29  ;;  %vm5675_vm12 = vcmask 1043459   ;;  %vm4333_vm13 = vmor %vm4331_vm11, %vm4332_vm10  ;;  %v1530_v42 = vpop.f32.mrf.mxu2  ;;  %v11927_v40 = vld [vmem:[#allocation4_spill] sm:$0xff]  ;;  %v11929_v29 = vld [vmem:[#allocation33_spill] sm:$0xff] }
 0x4b2   : > { %v3640_v13 = vadd.f32 %v9886_v16, %v9882_v46  ;;  %v3109_v41 = vsub.f32 %v9820_v10, %v2821_v11  ;;  %v1650_v43 = vadd.f32 %v1649_v4, %v8368_v28  ;;  %v4338_v25 = vor.u32 1.1754944e-38, %v4337_v32  ;;  %v11925_v11 = vld [vmem:[#allocation13_spill] sm:$0xff] }
 0x4b3   : > { %v4334_v7 = vsel %vm4333_vm13, %v6885_v44, %v4330_v23  ;;  %vm4336_vm14 = vcmp.eq.f32.partialorder %v4335_v47, 8.507059e+37  ;;  %v5676_v36 = vsel %vm5675_vm12, %v11920_v12, %v5674_v57  ;;  %vm5677_vm0 = vcmask 1044484   ;;  %v11931_v57 = vld [vmem:[#allocation118_spill] sm:$0xff]  ;;  %v11934_v12 = vld [vmem:[#allocation51_spill] sm:$0xff] }
 0x4b4   : > { %v3641_v63 = vrot.slane %v3640_v13, 4  ;;  %v3298_v3 = vmul.f32 1.442695, %v3108_v62  ;;  %v4339_v8 = vsel %vm4336_vm14, %v4338_v25, %v4334_v7  ;;  %v5613_v51 = vunpack.c.l.b16 %v5484_v33  ;;  %v11933_v7 = vld [vmem:[#allocation101_spill] sm:$0xff] }
 0x4b5   : > { %v4340_v31 = vmul.f32 %v9766_v24, %v4339_v8  ;;  %v4341_v55 = vmul.f32 %v9774_v49, %v4339_v8  ;;  %v5614_v10 = vunpack.c.l.b16 %v5485_v39  ;;  %v5678_v61 = vsel %vm5677_vm0, %v9490_v19, %v5676_v36 }
 0x4b6   : > { %v3637_v60 = vadd.f32 %v3636_v58, %v3635_v48  ;;  %v3300_v54 = vmul.f32 1.442695, %v3109_v41  ;;  %vm5679_vm1 = vcmask 1045509   ;;  %vm5681_vm2 = vcmask 1046534   ;;  %v11922_v48 = vld [vmem:[#allocation34_spill] sm:$0xff] }
 0x4b7   : > { %v4958_v38 = vmul.f32 %v4340_v31, %v11921_v35  ;;  %v4959_v44 = vmul.f32 %v4341_v55, %v1650_v43  ;;  %v5680_v52 = vsel %vm5679_vm1, %v9854_v27, %v5678_v61  ;;  %vm5683_vm3 = vcmask 1047559   ;;  %v11938_v61 = vld [vmem:[#allocation46_spill] sm:$0xff] }
 0x4b8   : > { %v3642_v9 = vadd.f32 %v3641_v63, %v3640_v13  ;;  %6890 = vpow2.f32 %v3298_v3  ;;  %v5682_v24 = vsel %vm5681_vm2, %v5613_v51, %v5680_v52  ;;  %v5686_v49 = vsel %vm5673_vm9, %v5617_v34, %v9450_v17  ;;  %v11936_v51 = vld [vmem:[#allocation54_spill] sm:$0xff] }
 0x4b9   : > { %v9911_v19 = vadd.f32 %v4959_v44, %v4958_v38  ;;  %v5684_v22 = vsel %vm5683_vm3, %v5614_v10, %v5682_v24  ;;  %v5687_v37 = vsel %vm5675_vm12, %v5618_v5, %v5686_v49  ;;  %v11924_v18 = vperm.slane %v11923_v26, 0  ;;  %v11937_v10 = vld [vmem:[#allocation38_spill] sm:$0xff] }
 0x4ba   : > { %v11926_v47 = vpack.c.bf16 %v11925_v11, %v11925_v11  ;;  %6892 = vpow2.f32 %v3300_v54  ;;  %v5688_v17 = vsel %vm5677_vm0, %v9866_v56, %v5687_v37  ;;  %v1531_v34 = vadd.f32 %v1530_v42, %v7879_v21  ;;  %v7115_v42 = vld [vmem:[%s7447_s13 + $0xd0] sm:$0xff] }
 0x4bb   : > { %v2133_v27 = vmul.f32 %v11924_v18, %v11922_v48  ;;  %v11928_v4 = vpack.c.bf16 %v11927_v40, %v11927_v40  ;;  %v5689_v5 = vsel %vm5679_vm1, %v9868_v59, %v5688_v17  ;;  %v11534_v58 = vperm.slane %v11929_v29, 0  ;;  %v9978_v17 = vpop.f32.mrf.mxu1 }
 0x4bc   : > { %v5621_v32 = vunpack.c.l.b16 %v11926_v47  ;;  %v2822_v62 = vmax.f32 %v9872_v0, %v9909_v15  ;;  %v11930_v33 = vrot.slane %v11923_v26, 2  ;;  %v3638_v56 = vrot.slane %v3637_v60, 1 }
 0x4bd   : > { %v5622_v6 = vunpack.c.l.b16 %v11928_v4  ;;  %2453 = vmatmul.f32.gmra.mxu1 %v2133_v27  ;;  %v3643_v39 = vrot.slane %v3642_v9, 2  ;;  %v1511_v13 = vadd.f32 %v11931_v57, %v7879_v21  ;;  %v9942_v59 = vmul.f32 %v11534_v58, %v1531_v34 }
 0x4be   : > { %v9934_v23 = vperm.slane %v11930_v33, 0  ;;  %v5690_v45 = vsel %vm5681_vm2, %v5621_v32, %v5689_v5  ;;  %v2823_v43 = vrot.slane %v2822_v62, 4  ;;  %v9944_v25 = vpop.eup %6890  ;;  %v824_v36 = vadd.f32 %v11934_v12, %v11933_v7 }
 0x4bf   : > { %v5691_v41 = vsel %vm5683_vm3, %v5622_v6, %v5690_v45  ;;  %11932 = vst [vmem:[#allocation97_spill] sm:$0xff] %v9942_v59  ;;  %v11935_v63 = vrot.slane %v11923_v26, 3  ;;  %v826_v31 = vadd.f32 %v11936_v51, %v11933_v7  ;;  %v2135_v54 = vmul.f32 %v11938_v61, %v11937_v10  ;;  %v11945_v51 = vld [vmem:[#allocation15_spill] sm:$0xff] }
 0x4c0   : > { %v5734_v8 = vpack.c.b16 %v5691_v41, %v5684_v22  ;;  %v2824_v55 = vmax.f32 %v2822_v62, %v2823_v43  ;;  %v9956_v35 = vpop.eup %6892  ;;  %v9958_v38 = vadd.f32 %v3638_v56, %v3637_v60  ;;  %v3644_v44 = vadd.f32 %v3643_v39, %v3642_v9  ;;  %v1532_v60 = vpop.f32.mrf.mxu2  ;;  %v11942_v62 = vld [vmem:[#allocation56_spill] sm:$0xff]  ;;  %v11943_v43 = vld [vmem:[#allocation59_spill] sm:$0xff] }
 0x4c1   : > { %v9950_v3 = vperm.slane %v11935_v63, 0  ;;  %v1911_v52 = vrot.slane %v11929_v29, 1  ;;  %v9962_v24 = vmul.f32 %v9934_v23, %v824_v36  ;;  %v11939_v49 = vmov %v11924_v18  ;;  %v9971_v9 = vpop.f32.mrf.mxu3  ;;  %1708 = vmatmul.bf16.gmra.mxu3 %v7115_v42  ;;  %v11944_v63 = vld [vmem:[#allocation49_spill] sm:$0xff] }
 0x4c2   : > { %5798 = vmatmul.bf16.vlgmr.msra.gmra.mxu2 %v5734_v8  ;;  %v2134_v22 = vmul.f32 %v11939_v49, %v1511_v13  ;;  %v2825_v37 = vrot.slane %v2824_v55, 2  ;;  %v3647_v18 = vadd.f32 %v9956_v35, %v9944_v25  ;;  %6894 = vrcp.f32 %v9958_v38 }
 0x4c3   : > { %v9967_v48 = vmul.f32 %v9950_v3, %v826_v31  ;;  %v3645_v11 = vrot.slane %v3644_v44, 1  ;;  %v1533_v47 = vadd.f32 %v1532_v60, %v7879_v21  ;;  %v9976_v32 = vperm.slane %v1911_v52, 0  ;;  %v10008_v49 = vpop.f32.mrf.mxu1 }
 0x4c4   : > { %v2826_v27 = vmax.f32 %v2824_v55, %v2825_v37  ;;  %v1908_v40 = vrot.slane %v11923_v26, 5  ;;  %v3648_v6 = vrot.slane %v3647_v18, 4  ;;  %v829_v33 = vadd.f32 %v11942_v62, %v11933_v7  ;;  %v11952_v62 = vld [vmem:[#allocation121_spill] sm:$0xff] }
 0x4c5   : > { %2456 = vmatmul.f32.gmra.mxu1 %v2134_v22  ;;  %11940 = vst [vmem:[#allocation41_spill] sm:$0xff] %v9976_v32  ;;  %v9982_v4 = vmul.f32 %v9976_v32, %v1533_v47  ;;  %v1910_v56 = vrot.slane %v11923_v26, 7  ;;  %v9987_v39 = vadd.f32 %v3645_v11, %v3644_v44  ;;  %v1912_v45 = vrot.slane %v11929_v29, 2  ;;  %v11948_v22 = vld [vmem:[#allocation32_spill] sm:$0xff] }
 0x4c6   : > { %v2827_v34 = vrot.slane %v2826_v27, 1  ;;  %v831_v12 = vadd.f32 %v11943_v43, %v11933_v7  ;;  %v9996_v36 = vperm.slane %v1908_v40, 0  ;;  %v9999_v8 = vmul.f32 %v11944_v63, %v829_v33  ;;  %v11951_v47 = vld [vmem:[#allocation64_spill] sm:$0xff] }
 0x4c7   : > { %11941 = vst [vmem:[#allocation12_spill] sm:$0xff] %v9982_v4  ;;  %v5164_v26 = vrot.slane %v11945_v51, 4  ;;  %v3649_v31 = vadd.f32 %v3648_v6, %v3647_v18  ;;  %6896 = vrcp.f32 %v9987_v39  ;;  %v10006_v52 = vperm.slane %v1912_v45, 0 }
 0x4c8   : > { %v2828_v5 = vmax.f32 %v2826_v27, %v2827_v34  ;;  %v9992_v41 = vpop.eup %6894  ;;  %v1535_v44 = vpop.f32.mrf.mxu2  ;;  %v1513_v37 = vadd.f32 %v11948_v22, %v7879_v21  ;;  %v11949_v27 = vld [vmem:[#allocation61_spill] sm:$0xff]  ;;  %v10022_v11 = vmul.f32 %v9996_v36, %v831_v12  ;;  %v836_v34 = vadd.f32 %v11951_v47, %v11933_v7  ;;  %v11957_v22 = vld [vmem:[#allocation67_spill] sm:$0xff] }
 0x4c9   : > { %11947 = vst [vmem:[#allocation105_spill] sm:$0xff] %v10006_v52  ;;  %v4343_v18 = vmul.f32 %v9992_v41, %v9958_v38  ;;  %v834_v60 = vadd.f32 %v11949_v27, %v11933_v7  ;;  %v5165_v40 = vadd.f32 %v5164_v26, %v11945_v51  ;;  %v3650_v6 = vrot.slane %v3649_v31, 2  ;;  %v11956_v51 = vld [vmem:[#allocation3_spill] sm:$0xff]  ;;  %v11958_v27 = vld [vmem:[#allocation36_spill] sm:$0xff] }
 0x4ca   : > { %v3110_v57 = vsub.f32 %v9872_v0, %v2828_v5  ;;  %v3111_v13 = vsub.f32 %v9909_v15, %v2828_v5  ;;  %v10002_v0 = vperm.slane %v1910_v56, 0  ;;  %v1536_v15 = vadd.f32 %v1535_v44, %v7879_v21  ;;  %v11953_v56 = vld [vmem:[#allocation131_spill] sm:$0xff] }
 0x4cb   : > { %v1516_v33 = vadd.f32 %v11952_v62, %v7879_v21  ;;  %v5171_v45 = vrot.slane %v11953_v56, 4  ;;  %v2136_v43 = vmul.f32 %v11938_v61, %v1513_v37  ;;  %v4344_v63 = vsub.f32 1.0, %v4343_v18 }
 0x4cc   : > { %v3302_v55 = vmul.f32 1.442695, %v3110_v57  ;;  %v3304_v10 = vmul.f32 1.442695, %v3111_v13  ;;  %11946 = vst [vmem:[#allocation17_spill] sm:$0xff] %v10002_v0  ;;  %v10019_v42 = vmul.f32 %v10006_v52, %v1536_v15  ;;  %v11954_v57 = vld [vmem:[#allocation119_spill] sm:$0xff]  ;;  %v1518_v26 = vadd.f32 %v11956_v51, %v7879_v21 }
 0x4cd   : > { %2459 = vmatmul.f32.gmra.mxu1 %v2135_v54  ;;  %v2829_v54 = vmax.f32 %v9978_v17, %v10008_v49  ;;  %v10031_v13 = vmul.f32 %v11954_v57, %v834_v60  ;;  %v1913_v44 = vrot.slane %v11929_v29, 3  ;;  %v10046_v60 = vadd.f32 %v11958_v27, %v11957_v22  ;;  %v11961_v57 = vld [vmem:[#allocation45_spill] sm:$0xff] }
 0x4ce   : > { %6898 = vpow2.f32 %v3302_v55  ;;  %11950 = vst [vmem:[#allocation5_spill] sm:$0xff] %v10019_v42  ;;  %v10035_v55 = vmul.f32 %v10002_v0, %v836_v34  ;;  %v5166_v47 = vrot.slane %v5165_v40, 2  ;;  %v3651_v61 = vadd.f32 %v3650_v6, %v3649_v31 }
 0x4cf   : > { %6900 = vpow2.f32 %v3304_v10  ;;  %v2830_v5 = vrot.slane %v2829_v54, 4  ;;  %v10037_v10 = vpop.eup %6896  ;;  %v10060_v51 = vadd.f32 %v11961_v57, %v11957_v22  ;;  %v5172_v27 = vadd.f32 %v5171_v45, %v11953_v56  ;;  %v10077_v56 = vpop.f32.mrf.mxu1 }
 0x4d0   : > { %11955 = vst [vmem:[#allocation14_spill] sm:$0xff] %v10035_v55  ;;  %v10064_v31 = vmul.f32 %v9934_v23, %v1516_v33  ;;  %v4345_v6 = vmul.f32 %v9992_v41, %v4344_v63  ;;  %v1537_v58 = vpop.f32.mrf.mxu2  ;;  %v10070_v42 = vmul.f32 %v9950_v3, %v1518_v26  ;;  %v10075_v52 = vperm.slane %v1913_v44, 0 }
 0x4d1   : > { %v2831_v12 = vmax.f32 %v2829_v54, %v2830_v5  ;;  %v11959_v54 = vld [vmem:[#allocation39_spill] sm:$0xff]  ;;  %v1538_v57 = vadd.f32 %v1537_v58, %v7879_v21  ;;  %v10079_v23 = vadd.f32 %v5166_v47, %v5165_v40  ;;  %v3652_v33 = vrot.slane %v3651_v61, 1 }
 0x4d2   : > { %v10052_v34 = vadd.f32 %v11959_v54, %v11957_v22  ;;  %v11960_v5 = vld [vmem:[#allocation43_spill] sm:$0xff]  ;;  %v4359_v54 = vmul.f32 %v10037_v10, %v9987_v39  ;;  %11962 = vst [vmem:[#allocation20_spill] sm:$0xff] %v10075_v52  ;;  %v1914_v26 = vrot.slane %v11929_v29, 4  ;;  %v4346_v32 = vadd.f32 %v9992_v41, %v4345_v6 }
 0x4d3   : > { %v2832_v37 = vrot.slane %v2831_v12, 2  ;;  %v10056_v62 = vadd.f32 %v11960_v5, %v11957_v22  ;;  %v10083_v3 = vmul.f32 %v10075_v52, %v1538_v57  ;;  %vm4348_vm4 = vweird.f32 %v9992_v41 }
 0x4d4   : > { %v10042_v15 = vpop.eup %6898  ;;  %v4360_v63 = vsub.f32 1.0, %v4359_v54  ;;  %v5185_v40 = vrot.slane %v9543_v30, 4  ;;  %v4353_v54 = vand.u32 2147483648, %v9958_v38  ;;  %vm4364_vm5 = vweird.f32 %v10037_v10 }
 0x4d5   : > { %2462 = vmatmul.f32.gmra.mxu1 %v2136_v43  ;;  %v10048_v18 = vpop.eup %6900  ;;  %v2833_v43 = vmax.f32 %v2831_v12, %v2832_v37  ;;  %v5173_v12 = vrot.slane %v5172_v27, 2  ;;  %v11963_v37 = vld [vmem:[#allocation123_spill] sm:$0xff]  ;;  %11964 = vst [vmem:[#allocation28_spill] sm:$0xff] %v10083_v3  ;;  %v10092_v59 = vadd.f32 %v3652_v33, %v3651_v61  ;;  %vm4347_vm6 = vweird.f32 %v9958_v38 }
 0x4d6   : > { %v3654_v5 = vadd.f32 %v10048_v18, %v10042_v15  ;;  %v5178_v4 = vrot.slane %v11963_v37, 4  ;;  %v4361_v44 = vmul.f32 %v10037_v10, %v4360_v63  ;;  %v4351_v57 = vand.u32 2147483647, %v9958_v38  ;;  %vm10098_vm7 = vmor %vm4347_vm6, %vm4348_vm4 }
 0x4d7   : > { %v2834_v45 = vrot.slane %v2833_v43, 1  ;;  %v4369_v6 = vand.u32 2147483648, %v9987_v39  ;;  %vm4363_vm8 = vweird.f32 %v9987_v39  ;;  %v4367_v61 = vand.u32 2147483647, %v9987_v39  ;;  %v10121_v55 = vpop.f32.mrf.mxu1 }
 0x4d8   : > { %v3655_v47 = vrot.slane %v3654_v5, 4  ;;  %v4362_v63 = vadd.f32 %v10037_v10, %v4361_v44  ;;  %v5220_v33 = vrot.slane %v9857_v50, 4  ;;  %v4350_v38 = vsel %vm10098_vm7, %v9992_v41, %v4346_v32  ;;  %vm10111_vm10 = vmor %vm4363_vm8, %vm4364_vm5  ;;  %v1540_v52 = vpop.f32.mrf.mxu2 }
 0x4d9   : > { %v2835_v58 = vmax.f32 %v2833_v43, %v2834_v45  ;;  %v4354_v7 = vor.u32 1.1754944e-38, %v4353_v54  ;;  %v1541_v0 = vadd.f32 %v1540_v52, %v7879_v21  ;;  %v5179_v32 = vadd.f32 %v5178_v4, %v11963_v37 }
 0x4da   : > { %v3656_v44 = vadd.f32 %v3655_v47, %v3654_v5  ;;  %v4366_v39 = vsel %vm10111_vm10, %v10037_v10, %v4362_v63  ;;  %6902 = vrcp.f32 %v10092_v59  ;;  %vm4352_vm11 = vcmp.eq.f32.partialorder %v4351_v57, 8.507059e+37  ;;  %v1654_v10 = vpop.f32.mrf.mxu3 }
 0x4db   : > { %v3112_v45 = vsub.f32 %v9978_v17, %v2835_v58  ;;  %v10115_v17 = vperm.slane %v1914_v26, 0  ;;  %v4370_v41 = vor.u32 1.1754944e-38, %v4369_v6  ;;  %vm4368_vm13 = vcmp.eq.f32.partialorder %v4367_v61, 8.507059e+37 }
 0x4dc   : > { %v5186_v26 = vadd.f32 %v5185_v40, %v9543_v30  ;;  %v2836_v52 = vmax.f32 %v10077_v56, %v10121_v55  ;;  %v5168_v4 = vrot.slane %v10079_v23, 1  ;;  %v10132_v37 = vadd.f32 %v5173_v12, %v5172_v27 }
 0x4dd   : > { %2465 = vmatmul.f32.gmra.mxu1 %v9962_v24  ;;  %v3113_v24 = vsub.f32 %v10008_v49, %v2835_v58  ;;  %v4355_v49 = vsel %vm4352_vm11, %v4354_v7, %v4350_v38  ;;  %v3306_v58 = vmul.f32 1.442695, %v3112_v45  ;;  %v10126_v5 = vmul.f32 %v10115_v17, %v1541_v0 }
 0x4de   : > { %v4371_v47 = vsel %vm4368_vm13, %v4370_v41, %v4366_v39  ;;  %v5221_v54 = vadd.f32 %v5220_v33, %v9857_v50  ;;  %v3657_v7 = vrot.slane %v3656_v44, 2  ;;  %v1652_v57 = vadd.f32 %v9971_v9, %v8368_v28 }
 0x4df   : > { %v3308_v3 = vmul.f32 1.442695, %v3113_v24  ;;  %v4356_v0 = vmul.f32 %v9816_v14, %v4355_v49  ;;  %v4357_v30 = vmul.f32 %v9822_v1, %v4355_v49  ;;  %v2837_v40 = vrot.slane %v2836_v52, 4  ;;  %v11969_v14 = vld [vmem:[#allocation129_spill] sm:$0xff] }
 0x4e0   : > { %6904 = vpow2.f32 %v3306_v58  ;;  %v1655_v6 = vadd.f32 %v1654_v10, %v8368_v28  ;;  %v4372_v43 = vmul.f32 %v9882_v46, %v4371_v47  ;;  %v4373_v27 = vmul.f32 %v9886_v16, %v4371_v47  ;;  %v10143_v12 = vpop.eup %6902  ;;  %v1542_v10 = vpop.f32.mrf.mxu2 }
 0x4e1   : > { %v5180_v50 = vrot.slane %v5179_v32, 2  ;;  %v5187_v45 = vrot.slane %v5186_v26, 2  ;;  %6906 = vpow2.f32 %v3308_v3  ;;  %v2838_v9 = vmax.f32 %v2836_v52, %v2837_v40  ;;  %v7116_v52 = vld [vmem:[%s7447_s13 + $0xd8] sm:$0xff] }
 0x4e2   : > { %v10147_v63 = vadd.f32 %v11969_v14, %v7879_v21  ;;  %v5227_v1 = vrot.slane %v9911_v19, 4  ;;  %v1915_v61 = vrot.slane %v11929_v29, 5  ;;  %v10152_v46 = vadd.f32 %v5168_v4, %v10079_v23  ;;  %v1656_v47 = vpop.f32.mrf.mxu3  ;;  %1713 = vmatmul.bf16.gmra.mxu3 %v7116_v52 }
 0x4e3   : > { %v5175_v16 = vrot.slane %v10132_v37, 1  ;;  %v5222_v33 = vrot.slane %v5221_v54, 2  ;;  %v2839_v38 = vrot.slane %v2838_v9, 2  ;;  %v4960_v24 = vmul.f32 %v4356_v0, %v10046_v60 }
 0x4e4   : > { %v4961_v39 = vmul.f32 %v4357_v30, %v1652_v57  ;;  %v4962_v41 = vmul.f32 %v4372_v43, %v10052_v34  ;;  %v4963_v49 = vmul.f32 %v4373_v27, %v1655_v6  ;;  %v10157_v58 = vadd.f32 %v5180_v50, %v5179_v32  ;;  %v10170_v32 = vpop.f32.mrf.mxu1 }
 0x4e5   : > { %2468 = vmatmul.f32.gmra.mxu1 %v10064_v31  ;;  %v3658_v31 = vadd.f32 %v3657_v7, %v3656_v44  ;;  %v10159_v3 = vadd.f32 %v5187_v45, %v5186_v26  ;;  %v2840_v44 = vmax.f32 %v2838_v9, %v2839_v38  ;;  %v4375_v23 = vmul.f32 %v10143_v12, %v10092_v59 }
 0x4e6   : > { %v10164_v4 = vpop.eup %6904  ;;  %v5228_v60 = vadd.f32 %v5227_v1, %v9911_v19  ;;  %v1543_v34 = vadd.f32 %v1542_v10, %v7879_v21  ;;  %v10168_v57 = vperm.slane %v1915_v61, 0  ;;  %v5192_v0 = vrot.slane %v9626_v2, 4 }
 0x4e7   : > { %v3659_v7 = vrot.slane %v3658_v31, 1  ;;  %v10172_v26 = vpop.eup %6906  ;;  %v10175_v30 = vadd.f32 %v5222_v33, %v5221_v54  ;;  %v2841_v40 = vrot.slane %v2840_v44, 1  ;;  %v4376_v6 = vsub.f32 1.0, %v4375_v23 }
 0x4e8   : > { %v5233_v43 = vadd.f32 %v4961_v39, %v4960_v24  ;;  %v5240_v27 = vadd.f32 %v4963_v49, %v4962_v41  ;;  %v10179_v19 = vmul.f32 %v10168_v57, %v1543_v34  ;;  %v4385_v50 = vand.u32 2147483648, %v10092_v59  ;;  %v1545_v52 = vpop.f32.mrf.mxu2 }
 0x4e9   : > { %v2842_v45 = vmax.f32 %v2840_v44, %v2841_v40  ;;  %v4377_v9 = vmul.f32 %v10143_v12, %v4376_v6  ;;  %vm4380_vm14 = vweird.f32 %v10143_v12  ;;  %v4383_v14 = vand.u32 2147483647, %v10092_v59 }
 0x4ea   : > { %v5229_v54 = vrot.slane %v5228_v60, 2  ;;  %v10185_v1 = vadd.f32 %v3659_v7, %v3658_v31  ;;  %v1916_v61 = vrot.slane %v11929_v29, 6  ;;  %vm4379_vm4 = vweird.f32 %v10092_v59 }
 0x4eb   : > { %v3114_v33 = vsub.f32 %v10077_v56, %v2842_v45  ;;  %v3115_v38 = vsub.f32 %v10121_v55, %v2842_v45  ;;  %v4378_v24 = vadd.f32 %v10143_v12, %v4377_v9  ;;  %v5234_v39 = vrot.slane %v5233_v43, 4  ;;  %vm4381_vm5 = vmor %vm4379_vm4, %vm4380_vm14 }
 0x4ec   : > { %v5241_v41 = vrot.slane %v5240_v27, 4  ;;  %v1657_v49 = vadd.f32 %v1656_v47, %v8368_v28  ;;  %v4386_v31 = vor.u32 1.1754944e-38, %v4385_v50  ;;  %vm4384_vm6 = vcmp.eq.f32.partialorder %v4383_v14, 8.507059e+37  ;;  %v10200_v59 = vpop.f32.mrf.mxu1 }
 0x4ed   : > { %2471 = vmatmul.f32.gmra.mxu1 %v9967_v48  ;;  %v3661_v48 = vadd.f32 %v10172_v26, %v10164_v4  ;;  %v3310_v44 = vmul.f32 1.442695, %v3114_v33  ;;  %v3312_v10 = vmul.f32 1.442695, %v3115_v38  ;;  %v4382_v23 = vsel %vm4381_vm5, %v10143_v12, %v4378_v24 }
 0x4ee   : > { %6908 = vrcp.f32 %v10185_v1  ;;  %v4387_v56 = vsel %vm4384_vm6, %v4386_v31, %v4382_v23  ;;  %v1546_v55 = vadd.f32 %v1545_v52, %v7879_v21  ;;  %v10198_v7 = vperm.slane %v1916_v61, 0 }
 0x4ef   : > { %v3662_v34 = vrot.slane %v3661_v48, 4  ;;  %6910 = vpow2.f32 %v3310_v44  ;;  %v4388_v47 = vmul.f32 %v9944_v25, %v4387_v56  ;;  %v4389_v40 = vmul.f32 %v9956_v35, %v4387_v56 }
 0x4f0   : > { %v5193_v12 = vadd.f32 %v5192_v0, %v9626_v2  ;;  %6912 = vpow2.f32 %v3312_v10  ;;  %v10207_v6 = vmul.f32 %v10198_v7, %v1546_v55  ;;  %v2843_v50 = vmax.f32 %v10170_v32, %v10200_v59 }
 0x4f1   : > { %v5235_v45 = vadd.f32 %v5234_v39, %v5233_v43  ;;  %v5242_v9 = vadd.f32 %v5241_v41, %v5240_v27  ;;  %v4964_v14 = vmul.f32 %v4388_v47, %v10056_v62  ;;  %v4965_v61 = vmul.f32 %v4389_v40, %v1657_v49  ;;  %v11970_v27 = vld [vmem:[#allocation100_spill] sm:$0xff] }
 0x4f2   : > { %v10215_v25 = vadd.f32 %v5175_v16, %v10132_v37  ;;  %v5224_v35 = vrot.slane %v10175_v30, 1  ;;  %v5230_v2 = vadd.f32 %v5229_v54, %v5228_v60  ;;  %v5182_v0 = vrot.slane %v10157_v58, 1  ;;  %v11971_v62 = vld [vmem:[#allocation52_spill] sm:$0xff] }
 0x4f3   : > { %v5189_v33 = vrot.slane %v10159_v3, 1  ;;  %v3663_v38 = vadd.f32 %v3662_v34, %v3661_v48  ;;  %v5247_v24 = vadd.f32 %v4965_v61, %v4964_v14  ;;  %v10224_v39 = vadd.f32 %v11971_v62, %v11970_v27 }
 0x4f4   : > { %v10220_v43 = vpop.eup %6908  ;;  %v5194_v41 = vrot.slane %v5193_v12, 2  ;;  %v1917_v37 = vrot.slane %v11929_v29, 7  ;;  %v10231_v60 = vmul.f32 %v9996_v36, %v10147_v63  ;;  %v5497_v54 = vpack.c.bf16 %v10152_v46, %v10152_v46 }
 0x4f5   : > { %2474 = vmatmul.f32.gmra.mxu1 %v10070_v42  ;;  %v2844_v42 = vrot.slane %v2843_v50, 4  ;;  %v10227_v16 = vpop.eup %6910  ;;  %v5236_v48 = vrot.slane %v5235_v45, 2  ;;  %v5243_v31 = vrot.slane %v5242_v9, 2  ;;  %v10240_v23 = vadd.f32 %v5224_v35, %v10175_v30 }
 0x4f6   : > { %v10235_v44 = vpop.eup %6912  ;;  %v5231_v52 = vrot.slane %v5230_v2, 1  ;;  %v10243_v55 = vadd.f32 %v5182_v0, %v10157_v58  ;;  %v10246_v36 = vadd.f32 %v5189_v33, %v10159_v3  ;;  %v3664_v63 = vrot.slane %v3663_v38, 2 }
 0x4f7   : > { %v2845_v49 = vmax.f32 %v2843_v50, %v2844_v42  ;;  %v5248_v34 = vrot.slane %v5247_v24, 4  ;;  %v10249_v47 = vadd.f32 %v5194_v41, %v5193_v12  ;;  %v1547_v50 = vpop.f32.mrf.mxu2  ;;  %v10251_v14 = vperm.slane %v1917_v37, 0  ;;  %v10258_v42 = vpop.f32.mrf.mxu1 }
 0x4f8   : > { %v4391_v30 = vmul.f32 %v10220_v43, %v10185_v1  ;;  %v5237_v61 = vadd.f32 %v5236_v48, %v5235_v45  ;;  %v5244_v35 = vadd.f32 %v5243_v31, %v5242_v9  ;;  %v3668_v58 = vadd.f32 %v10235_v44, %v10227_v16 }
 0x4f9   : > { %v2846_v56 = vrot.slane %v2845_v49, 2  ;;  %v1548_v3 = vadd.f32 %v1547_v50, %v7879_v21  ;;  %v10262_v12 = vadd.f32 %v5231_v52, %v5230_v2  ;;  %v3665_v27 = vadd.f32 %v3664_v63, %v3663_v38 }
 0x4fa   : > { %v4392_v33 = vsub.f32 1.0, %v4391_v30  ;;  %v5249_v62 = vadd.f32 %v5248_v34, %v5247_v24  ;;  %v4401_v45 = vand.u32 2147483648, %v10185_v1  ;;  %vm4396_vm7 = vweird.f32 %v10220_v43  ;;  %v11972_v30 = vld [vmem:[#allocation57_spill] sm:$0xff] }
 0x4fb   : > { %v2847_v40 = vmax.f32 %v2845_v49, %v2846_v56  ;;  %v10265_v41 = vmul.f32 %v10251_v14, %v1548_v3  ;;  %v1659_v49 = vpop.f32.mrf.mxu3  ;;  %v4399_v48 = vand.u32 2147483647, %v10185_v1  ;;  %v5238_v31 = vrot.slane %v5237_v61, 1 }
 0x4fc   : > { %v4393_v37 = vmul.f32 %v10220_v43, %v4392_v33  ;;  %v5245_v2 = vrot.slane %v5244_v35, 1  ;;  %v11540_v52 = vperm.slane %v10224_v39, 0  ;;  %vm4395_vm8 = vweird.f32 %v10185_v1 }
 0x4fd   : > { %2477 = vmatmul.f32.gmra.mxu1 %v9999_v8  ;;  %v5505_v8 = vpack.c.bf16 %v10240_v23, %v10240_v23  ;;  %v2848_v0 = vrot.slane %v2847_v40, 1  ;;  %v3669_v23 = vrot.slane %v3668_v58, 4  ;;  %v3666_v63 = vrot.slane %v3665_v27, 1  ;;  %vm4397_vm10 = vmor %vm4395_vm8, %vm4396_vm7 }
 0x4fe   : > { %v4394_v56 = vadd.f32 %v10220_v43, %v4393_v37  ;;  %v5250_v34 = vrot.slane %v5249_v62, 2  ;;  %v4402_v50 = vor.u32 1.1754944e-38, %v4401_v45  ;;  %vm4400_vm11 = vcmp.eq.f32.partialorder %v4399_v48, 8.507059e+37 }
 0x4ff   : > { %v2849_v9 = vmax.f32 %v2847_v40, %v2848_v0  ;;  %v1660_v40 = vadd.f32 %v1659_v49, %v8368_v28  ;;  %v5239_v10 = vadd.f32 %v5238_v31, %v5237_v61  ;;  %v10280_v1 = vpop.f32.mrf.mxu1  ;;  %v10290_v61 = vadd.f32 %v3666_v63, %v3665_v27 }
 0x500   : > { %v4398_v33 = vsel %vm4397_vm10, %v10220_v43, %v4394_v56  ;;  %v11973_v27 = vpack.c.bf16 %v10215_v25, %v10215_v25 }
 0x501   : > { %v3116_v38 = vsub.f32 %v10170_v32, %v2849_v9  ;;  %v3117_v24 = vsub.f32 %v10200_v59, %v2849_v9  ;;  %v1550_v32 = vpop.f32.mrf.mxu2  ;;  %v3670_v59 = vadd.f32 %v3669_v23, %v3668_v58  ;;  %v4403_v9 = vsel %vm4400_vm11, %v4402_v50, %v4398_v33 }
 0x502   : > { %v1551_v37 = vadd.f32 %v1550_v32, %v7879_v21  ;;  %v4404_v49 = vmul.f32 %v10042_v15, %v4403_v9  ;;  %v4405_v45 = vmul.f32 %v10048_v18, %v4403_v9  ;;  %v5499_v15 = vpack.c.bf16 %v10243_v55, %v10243_v55 }
 0x503   : > { %v3314_v3 = vmul.f32 1.442695, %v3116_v38  ;;  %v3316_v0 = vmul.f32 1.442695, %v3117_v24  ;;  %v2850_v38 = vmax.f32 %v10258_v42, %v10280_v1  ;;  %v5246_v24 = vadd.f32 %v5245_v2, %v5244_v35 }
 0x504   : > { %v10288_v43 = vmul.f32 %v11540_v52, %v1551_v37  ;;  %v4966_v58 = vmul.f32 %v4404_v49, %v10060_v51  ;;  %v4967_v48 = vmul.f32 %v4405_v45, %v1660_v40  ;;  %v5506_v18 = vpack.c.bf16 %v10262_v12, %v10262_v12  ;;  %v7117_v49 = vld [vmem:[%s7447_s13 + $0xe0] sm:$0xff] }
 0x505   : > { %2480 = vmatmul.f32.gmra.mxu1 %v11972_v30  ;;  %6914 = vpow2.f32 %v3314_v3  ;;  %v5251_v30 = vadd.f32 %v5250_v34, %v5249_v62  ;;  %v2851_v31 = vrot.slane %v2850_v38, 4  ;;  %v5507_v23 = vpack.c.bf16 %v5239_v10, %v5239_v10 }
 0x506   : > { %6916 = vpow2.f32 %v3316_v0  ;;  %v1918_v35 = vrot.slane %v10224_v39, 1  ;;  %v5196_v62 = vrot.slane %v10249_v47, 1  ;;  %v3671_v2 = vrot.slane %v3670_v59, 2 }
 0x507   : > { %v5254_v56 = vadd.f32 %v4967_v48, %v4966_v58  ;;  %v2852_v34 = vmax.f32 %v2850_v38, %v2851_v31  ;;  %v5626_v51 = vunpack.c.l.b16 %v5497_v54  ;;  %v5627_v63 = vunpack.c.l.b16 %v11973_v27  ;;  %v11974_v38 = vld [vmem:[#allocation62_spill] sm:$0xff] }
 0x508   : > { %v5634_v55 = vunpack.c.l.b16 %v5505_v8  ;;  %v5252_v40 = vrot.slane %v5251_v30, 1  ;;  %v5500_v12 = vpack.c.bf16 %v10246_v36, %v10246_v36  ;;  %6918 = vrcp.f32 %v10290_v61  ;;  %v1661_v36 = vpop.f32.mrf.mxu3  ;;  %1718 = vmatmul.bf16.gmra.mxu3 %v7117_v49 }
 0x509   : > { %v5508_v50 = vpack.c.bf16 %v5246_v24, %v5246_v24  ;;  %v2853_v3 = vrot.slane %v2852_v34, 2  ;;  %v5628_v54 = vunpack.c.l.b16 %v5499_v15  ;;  %v5635_v0 = vunpack.c.l.b16 %v5506_v18  ;;  %v1552_v37 = vpop.f32.mrf.mxu2 }
 0x50a   : > { %v5636_v25 = vunpack.c.l.b16 %v5507_v23  ;;  %v10313_v33 = vperm.slane %v1918_v35, 0  ;;  %v3672_v8 = vadd.f32 %v3671_v2, %v3670_v59  ;;  %v5197_v9 = vadd.f32 %v5196_v62, %v10249_v47 }
 0x50b   : > { %v10306_v10 = vpop.eup %6914  ;;  %v2854_v32 = vmax.f32 %v2852_v34, %v2853_v3  ;;  %v5253_v45 = vadd.f32 %v5252_v40, %v5251_v30  ;;  %v5694_v24 = vsel %vm5675_vm12, %v5626_v51, %v11974_v38  ;;  %v5701_v58 = vsel %vm5675_vm12, %v5634_v55, %v9877_v53 }
 0x50c   : > { %v10311_v46 = vpop.eup %6916  ;;  %v1553_v48 = vadd.f32 %v1552_v37, %v7879_v21  ;;  %v5629_v59 = vunpack.c.l.b16 %v5500_v12  ;;  %v5637_v31 = vunpack.c.l.b16 %v5508_v50  ;;  %v5501_v18 = vpack.c.bf16 %v5197_v9, %v5197_v9 }
 0x50d   : > { %2483 = vmatmul.f32.gmra.mxu1 %v10022_v11  ;;  %v3675_v11 = vadd.f32 %v10311_v46, %v10306_v10  ;;  %v2855_v15 = vrot.slane %v2854_v32, 1  ;;  %v5509_v23 = vpack.c.bf16 %v5253_v45, %v5253_v45  ;;  %v5695_v47 = vsel %vm5677_vm0, %v5627_v63, %v5694_v24 }
 0x50e   : > { %v5702_v35 = vsel %vm5677_vm0, %v5635_v0, %v5701_v58  ;;  %v10327_v62 = vmul.f32 %v10313_v33, %v1553_v48  ;;  %v6919_v30 = vpop.eup %6918  ;;  %v3673_v2 = vrot.slane %v3672_v8, 1  ;;  %v5255_v34 = vrot.slane %v5254_v56, 4 }
 0x50f   : > { %v2856_v51 = vmax.f32 %v2854_v32, %v2855_v15  ;;  %v5630_v27 = vunpack.c.l.b16 %v5501_v18  ;;  %v5638_v53 = vunpack.c.l.b16 %v5509_v23  ;;  %v5696_v55 = vsel %vm5679_vm1, %v5628_v54, %v5695_v47  ;;  %v10337_v32 = vpop.f32.mrf.mxu1 }
 0x510   : > { %v5703_v40 = vsel %vm5679_vm1, %v5636_v25, %v5702_v35  ;;  %v3676_v12 = vrot.slane %v3675_v11, 4  ;;  %v5697_v3 = vsel %vm5681_vm2, %v5629_v59, %v5696_v55  ;;  %v4407_v9 = vmul.f32 %v6919_v30, %v10290_v61 }
 0x511   : > { %v3118_v63 = vsub.f32 %v10258_v42, %v2856_v51  ;;  %v3119_v50 = vsub.f32 %v10280_v1, %v2856_v51  ;;  %v5704_v0 = vsel %vm5681_vm2, %v5637_v31, %v5703_v40  ;;  %v10339_v37 = vadd.f32 %v3673_v2, %v3672_v8  ;;  %v1555_v59 = vpop.f32.mrf.mxu2 }
 0x512   : > { %v1919_v25 = vrot.slane %v10224_v39, 2  ;;  %v5698_v45 = vsel %vm5683_vm3, %v5630_v27, %v5697_v3  ;;  %v5705_v42 = vsel %vm5683_vm3, %v5638_v53, %v5704_v0  ;;  %v4408_v1 = vsub.f32 1.0, %v4407_v9 }
 0x513   : > { %v3318_v54 = vmul.f32 1.442695, %v3118_v63  ;;  %v3320_v49 = vmul.f32 1.442695, %v3119_v50  ;;  %v3677_v38 = vadd.f32 %v3676_v12, %v3675_v11  ;;  %v5735_v24 = vpack.c.b16 %v5705_v42, %v5698_v45  ;;  %v11976_v42 = vld [vmem:[#allocation91_spill] sm:$0xff] }
 0x514   : > { %vm4412_vm13 = vweird.f32 %v6919_v30  ;;  %v4409_v58 = vmul.f32 %v6919_v30, %v4408_v1  ;;  %v4415_v48 = vand.u32 2147483647, %v10290_v61  ;;  %v4417_v8 = vand.u32 2147483648, %v10290_v61 }
 0x515   : > { %2486 = vmatmul.f32.gmra.mxu1 %v10231_v60  ;;  %v5256_v60 = vadd.f32 %v5255_v34, %v5254_v56  ;;  %6920 = vpow2.f32 %v3318_v54  ;;  %5803 = vmatmul.bf16.gmra.mxu2 %v5735_v24  ;;  %v1556_v31 = vadd.f32 %v1555_v59, %v7879_v21  ;;  %v10347_v56 = vperm.slane %v1919_v25, 0 }
 0x516   : > { %6922 = vpow2.f32 %v3320_v49  ;;  %v4410_v18 = vadd.f32 %v6919_v30, %v4409_v58  ;;  %vm4411_vm14 = vweird.f32 %v10290_v61  ;;  %v4418_v11 = vor.u32 1.1754944e-38, %v4417_v8 }
 0x517   : > { %v5257_v15 = vrot.slane %v5256_v60, 2  ;;  %6924 = vrcp.f32 %v10339_v37  ;;  %vm4413_vm4 = vmor %vm4411_vm14, %vm4412_vm13  ;;  %v10353_v23 = vmul.f32 %v10347_v56, %v1556_v31  ;;  %v3678_v47 = vrot.slane %v3677_v38, 2  ;;  %v2439_v34 = vpop.f32.mrf.mxu1 }
 0x518   : > { %v1662_v35 = vadd.f32 %v1661_v36, %v8368_v28  ;;  %v4414_v2 = vsel %vm4413_vm4, %v6919_v30, %v4410_v18  ;;  %vm4416_vm5 = vcmp.eq.f32.partialorder %v4415_v48, 8.507059e+37  ;;  %v2857_v61 = vmax.f32 %v10337_v32, %v2439_v34 }
 0x519   : > { %v4419_v27 = vsel %vm4416_vm5, %v4418_v11, %v4414_v2  ;;  %v5258_v40 = vadd.f32 %v5257_v15, %v5256_v60  ;;  %v3679_v50 = vadd.f32 %v3678_v47, %v3677_v38  ;;  %v1920_v49 = vrot.slane %v10224_v39, 3  ;;  %v11977_v11 = vld [vmem:[#allocation50_spill] sm:$0xff] }
 0x51a   : > { %v4420_v12 = vmul.f32 %v10164_v4, %v4419_v27  ;;  %v4421_v63 = vmul.f32 %v10172_v26, %v4419_v27  ;;  %v2858_v30 = vrot.slane %v2857_v61, 4  ;;  %v1557_v26 = vpop.f32.mrf.mxu2  ;;  %v1921_v38 = vrot.slane %v10224_v39, 4 }
 0x51b   : > { %v10356_v51 = vpop.eup %6920  ;;  %v5259_v25 = vrot.slane %v5258_v40, 1  ;;  %v3680_v1 = vrot.slane %v3679_v50, 1  ;;  %v10369_v58 = vperm.slane %v1920_v49, 0  ;;  %v1558_v15 = vadd.f32 %v1557_v26, %v7879_v21 }
 0x51c   : > { %v10359_v53 = vpop.eup %6922  ;;  %v4969_v0 = vmul.f32 %v4421_v63, %v1662_v35  ;;  %v2859_v54 = vmax.f32 %v2857_v61, %v2858_v30  ;;  %v973_v47 = vadd.f32 %v11977_v11, %v11957_v22  ;;  %v1528_v35 = vadd.f32 %v9888_v20, %v7879_v21  ;;  %v1664_v63 = vpop.f32.mrf.mxu3  ;;  %v11979_v11 = vld [vmem:[#allocation17_spill] sm:$0xff] }
 0x51d   : > { %2489 = vmatmul.f32.gmra.mxu1 %v10031_v13  ;;  %v11975_v13 = vld [vmem:[#allocation48_spill] sm:$0xff]  ;;  %v3682_v36 = vadd.f32 %v10359_v53, %v10356_v51  ;;  %v6925_v9 = vpop.eup %6924  ;;  %v5260_v8 = vadd.f32 %v5259_v25, %v5258_v40  ;;  %v10380_v61 = vadd.f32 %v3680_v1, %v3679_v50  ;;  %v4433_v40 = vand.u32 2147483648, %v10339_v37  ;;  %v11978_v25 = vld [vmem:[#allocation14_spill] sm:$0xff] }
 0x51e   : > { %v970_v55 = vadd.f32 %v11975_v13, %v11957_v22  ;;  %v2860_v60 = vrot.slane %v2859_v54, 2  ;;  %v4423_v48 = vmul.f32 %v6925_v9, %v10339_v37  ;;  %vm4428_vm6 = vweird.f32 %v6925_v9 }
 0x51f   : > { %v3683_v59 = vrot.slane %v3682_v36, 4  ;;  %v10374_v18 = vpop.f32.mrf.mxu1  ;;  %v10387_v20 = vperm.slane %v1921_v38, 0  ;;  %vm4427_vm7 = vweird.f32 %v10339_v37  ;;  %6926 = vrcp.f32 %v10380_v61 }
 0x520   : > { %v4968_v3 = vmul.f32 %v4420_v12, %v970_v55  ;;  %v2861_v24 = vmax.f32 %v2859_v54, %v2860_v60  ;;  %v4424_v27 = vsub.f32 1.0, %v4423_v48  ;;  %v10383_v55 = vmul.f32 %v10369_v58, %v1558_v15  ;;  %vm4429_vm8 = vmor %vm4427_vm7, %vm4428_vm6 }
 0x521   : > { %v3684_v54 = vadd.f32 %v3683_v59, %v3682_v36  ;;  %v1665_v1 = vadd.f32 %v1664_v63, %v8368_v28  ;;  %vm4443_vm13 = vweird.f32 %v10380_v61 }
 0x522   : > { %v5261_v45 = vadd.f32 %v4969_v0, %v4968_v3  ;;  %v2862_v2 = vrot.slane %v2861_v24, 1  ;;  %v4425_v30 = vmul.f32 %v6925_v9, %v4424_v27  ;;  %v4431_v3 = vand.u32 2147483647, %v10339_v37  ;;  %v1560_v48 = vpop.f32.mrf.mxu2 }
 0x523   : > { %v5510_v0 = vpack.c.bf16 %v5260_v8, %v5260_v8  ;;  %v3685_v38 = vrot.slane %v3684_v54, 2 }
 0x524   : > { %v5262_v4 = vrot.slane %v5261_v45, 4  ;;  %v2863_v12 = vmax.f32 %v2861_v24, %v2862_v2  ;;  %vm4432_vm10 = vcmp.eq.f32.partialorder %v4431_v3, 8.507059e+37  ;;  %v2148_v2 = vmul.f32 %v11979_v11, %v1528_v35 }
 0x525   : > { %2492 = vmatmul.f32.gmra.mxu1 %v11976_v42  ;;  %v4426_v42 = vadd.f32 %v6925_v9, %v4425_v30  ;;  %v10405_v63 = vpop.eup %6926  ;;  %v5639_v30 = vunpack.c.l.b16 %v5510_v0  ;;  %v3686_v3 = vadd.f32 %v3685_v38, %v3684_v54  ;;  %v1922_v35 = vrot.slane %v10224_v39, 5 }
 0x526   : > { %v5263_v31 = vadd.f32 %v5262_v4, %v5261_v45  ;;  %v3120_v50 = vsub.f32 %v10337_v32, %v2863_v12  ;;  %v3121_v45 = vsub.f32 %v2439_v34, %v2863_v12  ;;  %v4434_v4 = vor.u32 1.1754944e-38, %v4433_v40 }
 0x527   : > { %v4430_v26 = vsel %vm4429_vm8, %v6925_v9, %v4426_v42  ;;  %v1561_v32 = vadd.f32 %v1560_v48, %v7879_v21  ;;  %v10395_v34 = vpop.f32.mrf.mxu1  ;;  %v3687_v54 = vrot.slane %v3686_v3, 1  ;;  %v1666_v48 = vpop.f32.mrf.mxu3  ;;  %v4439_v38 = vmul.f32 %v10405_v63, %v10380_v61 }
 0x528   : > { %v5264_v13 = vrot.slane %v5263_v31, 2  ;;  %v3322_v24 = vmul.f32 1.442695, %v3120_v50  ;;  %v3324_v36 = vmul.f32 1.442695, %v3121_v45  ;;  %v4435_v59 = vsel %vm4432_vm10, %v4434_v4, %v4430_v26 }
 0x529   : > { %v4436_v37 = vmul.f32 %v10227_v16, %v4435_v59  ;;  %v2864_v15 = vmax.f32 %v10374_v18, %v10395_v34  ;;  %v10403_v27 = vmul.f32 %v10387_v20, %v1561_v32  ;;  %v10423_v32 = vperm.slane %v1922_v35, 0 }
 0x52a   : > { %v5265_v49 = vadd.f32 %v5264_v13, %v5263_v31  ;;  %6928 = vpow2.f32 %v3322_v24  ;;  %v4437_v31 = vmul.f32 %v10235_v44, %v4435_v59  ;;  %v1562_v26 = vpop.f32.mrf.mxu2  ;;  %vm4444_vm11 = vweird.f32 %v10405_v63 }
 0x52b   : > { %6930 = vpow2.f32 %v3324_v36  ;;  %v4970_v13 = vmul.f32 %v4436_v37, %v973_v47  ;;  %v2865_v12 = vrot.slane %v2864_v15, 4  ;;  %v1563_v59 = vadd.f32 %v1562_v26, %v7879_v21  ;;  %vm4445_vm14 = vmor %vm4443_vm13, %vm4444_vm11 }
 0x52c   : > { %v5266_v60 = vrot.slane %v5265_v49, 1  ;;  %v4971_v40 = vmul.f32 %v4437_v31, %v1665_v1  ;;  %v11981_v1 = vld [vmem:[#allocation66_spill] sm:$0xff]  ;;  %v11982_v31 = vperm.slane %v11929_v29, 0  ;;  %v4447_v29 = vand.u32 2147483647, %v10380_v61 }
 0x52d   : > { %2495 = vmatmul.f32.gmra.mxu1 %v11978_v25 }
 0x52e   : > { %v5267_v8 = vadd.f32 %v5266_v60, %v5265_v49  ;;  %v5268_v44 = vadd.f32 %v4971_v40, %v4970_v13  ;;  %v2866_v49 = vmax.f32 %v2864_v15, %v2865_v12  ;;  %v11980_v60 = vld [vmem:[#allocation101_spill] sm:$0xff]  ;;  %v1923_v13 = vrot.slane %v10224_v39, 6 }
 0x52f   : > { %v839_v0 = vadd.f32 %v11981_v1, %v11980_v60  ;;  %v10425_v37 = vpop.f32.mrf.mxu1  ;;  %v10430_v40 = vadd.f32 %v3687_v54, %v3686_v3  ;;  %v10433_v12 = vmul.f32 %v10423_v32, %v1563_v59  ;;  %vm4448_vm4 = vcmp.eq.f32.partialorder %v4447_v29, 8.507059e+37 }
 0x530   : > { %v5511_v9 = vpack.c.bf16 %v5267_v8, %v5267_v8  ;;  %v10411_v50 = vpop.eup %6928  ;;  %v5269_v45 = vrot.slane %v5268_v44, 4  ;;  %v2867_v47 = vrot.slane %v2866_v49, 2  ;;  %v7118_v8 = vld [vmem:[%s7447_s13 + $0xe8] sm:$0xff]  ;;  %v10441_v1 = vperm.slane %v1923_v13, 0 }
 0x531   : > { %v10413_v42 = vpop.eup %6930  ;;  %1723 = vmatmul.bf16.gmra.mxu3 %v7118_v8  ;;  %v2149_v15 = vmul.f32 %v11982_v31, %v839_v0  ;;  %6932 = vrcp.f32 %v10430_v40  ;;  %v1667_v0 = vadd.f32 %v1666_v48, %v8368_v28  ;;  %vm4459_vm6 = vweird.f32 %v10430_v40 }
 0x532   : > { %v5640_v16 = vunpack.c.l.b16 %v5511_v9  ;;  %v3689_v4 = vadd.f32 %v10413_v42, %v10411_v50  ;;  %v5270_v24 = vadd.f32 %v5269_v45, %v5268_v44  ;;  %v2868_v36 = vmax.f32 %v2866_v49, %v2867_v47  ;;  %v1565_v8 = vpop.f32.mrf.mxu2 }
 0x533   : > { %v4440_v9 = vsub.f32 1.0, %v4439_v38  ;;  %v4449_v49 = vand.u32 2147483648, %v10380_v61 }
 0x534   : > { %v10408_v25 = vsel %vm5671_vm15, %v5640_v16, %v5639_v30  ;;  %v5271_v11 = vrot.slane %v5270_v24, 2  ;;  %v3690_v35 = vrot.slane %v3689_v4, 4 }
 0x535   : > { %2498 = vmatmul.f32.gmra.mxu1 %v2148_v2  ;;  %v2869_v2 = vrot.slane %v2868_v36, 1  ;;  %v4441_v44 = vmul.f32 %v10405_v63, %v4440_v9  ;;  %v4450_v38 = vor.u32 1.1754944e-38, %v4449_v49 }
 0x536   : > { %v5272_v30 = vadd.f32 %v5271_v11, %v5270_v24  ;;  %v3691_v59 = vadd.f32 %v3690_v35, %v3689_v4  ;;  %v11984_v4 = vld [vmem:[#allocation97_spill] sm:$0xff] }
 0x537   : > { %v2870_v16 = vmax.f32 %v2868_v36, %v2869_v2  ;;  %v4442_v54 = vadd.f32 %v10405_v63, %v4441_v44  ;;  %v2451_v31 = vpop.f32.mrf.mxu1 }
 0x538   : > { %v5273_v45 = vrot.slane %v5272_v30, 1  ;;  %v3692_v44 = vrot.slane %v3691_v59, 2 }
 0x539   : > { %v3122_v47 = vsub.f32 %v10374_v18, %v2870_v16  ;;  %v3123_v3 = vsub.f32 %v10395_v34, %v2870_v16  ;;  %v4446_v18 = vsel %vm4445_vm14, %v10405_v63, %v4442_v54  ;;  %v1566_v34 = vadd.f32 %v1565_v8, %v7879_v21  ;;  %v6933_v16 = vpop.eup %6932 }
 0x53a   : > { %v5274_v24 = vadd.f32 %v5273_v45, %v5272_v30  ;;  %v4451_v2 = vsel %vm4448_vm4, %v4450_v38, %v4446_v18  ;;  %v2871_v30 = vmax.f32 %v10425_v37, %v2451_v31  ;;  %v11986_v38 = vld [vmem:[#allocation41_spill] sm:$0xff]  ;;  %vm4460_vm5 = vweird.f32 %v6933_v16 }
 0x53b   : > { %v3326_v36 = vmul.f32 1.442695, %v3122_v47  ;;  %v3328_v26 = vmul.f32 1.442695, %v3123_v3  ;;  %v4452_v61 = vmul.f32 %v10306_v10, %v4451_v2  ;;  %v4453_v9 = vmul.f32 %v10311_v46, %v4451_v2  ;;  %v11985_v10 = vld [vmem:[#allocation69_spill] sm:$0xff]  ;;  %vm4461_vm7 = vmor %vm4459_vm6, %vm4460_vm5 }
 0x53c   : > { %v5512_v11 = vpack.c.bf16 %v5274_v24, %v5274_v24  ;;  %v10454_v13 = vmul.f32 %v10441_v1, %v1566_v34  ;;  %v2872_v45 = vrot.slane %v2871_v30, 4  ;;  %v841_v46 = vadd.f32 %v11985_v10, %v11980_v60  ;;  %v1567_v34 = vpop.f32.mrf.mxu2 }
 0x53d   : > { %2501 = vmatmul.f32.gmra.mxu1 %v2149_v15  ;;  %v11983_v15 = vld [vmem:[#allocation53_spill] sm:$0xff]  ;;  %6934 = vpow2.f32 %v3326_v36  ;;  %v4973_v35 = vmul.f32 %v4453_v9, %v1667_v0  ;;  %v3693_v36 = vadd.f32 %v3692_v44, %v3691_v59 }
 0x53e   : > { %v975_v48 = vadd.f32 %v11983_v15, %v11957_v22  ;;  %6936 = vpow2.f32 %v3328_v26  ;;  %v5641_v63 = vunpack.c.l.b16 %v5512_v11  ;;  %v2873_v54 = vmax.f32 %v2871_v30, %v2872_v45 }
 0x53f   : > { %v1924_v26 = vrot.slane %v10224_v39, 7  ;;  %v2151_v0 = vmul.f32 %v11986_v38, %v841_v46  ;;  %v4455_v15 = vmul.f32 %v6933_v16, %v10430_v40  ;;  %v1568_v11 = vadd.f32 %v1567_v34, %v7879_v21  ;;  %v7119_v21 = vld [vmem:[%s11487_s7 + $0x8] sm:$0xff]  ;;  %v11987_v34 = vld [vmem:[#allocation12_spill] sm:$0xff] }
 0x540   : > { %v4972_v49 = vmul.f32 %v4452_v61, %v975_v48  ;;  %v10460_v29 = vsel %vm5673_vm9, %v5641_v63, %v10408_v25  ;;  %v2874_v8 = vrot.slane %v2873_v54, 2  ;;  %v3694_v48 = vrot.slane %v3693_v36, 1  ;;  %v10478_v61 = vpop.f32.mrf.mxu1 }
 0x541   : > { %v10476_v2 = vperm.slane %v1924_v26, 0  ;;  %v4456_v9 = vsub.f32 1.0, %v4455_v15  ;;  %v4465_v30 = vand.u32 2147483648, %v10430_v40  ;;  %v4463_v45 = vand.u32 2147483647, %v10430_v40  ;;  %v11988_v40 = vld [vmem:[#allocation55_spill] sm:$0xff] }
 0x542   : > { %v10464_v47 = vadd.f32 %v4973_v35, %v4972_v49  ;;  %v2875_v18 = vmax.f32 %v2873_v54, %v2874_v8  ;;  %v1669_v49 = vpop.f32.mrf.mxu3  ;;  %v10485_v10 = vadd.f32 %v3694_v48, %v3693_v36  ;;  %v10490_v46 = vperm.slane %v7119_v21, 2 }
 0x543   : > { %v10466_v3 = vpop.eup %6934  ;;  %v10481_v63 = vmul.f32 %v10476_v2, %v1568_v11  ;;  %v4457_v35 = vmul.f32 %v6933_v16, %v4456_v9  ;;  %v1670_v8 = vadd.f32 %v1669_v49, %v8368_v28  ;;  %vm4464_vm8 = vcmp.eq.f32.partialorder %v4463_v45, 8.507059e+37 }
 0x544   : > { %v10468_v24 = vpop.eup %6936  ;;  %v2876_v59 = vrot.slane %v2875_v18, 1  ;;  %6938 = vrcp.f32 %v10485_v10  ;;  %vm4475_vm11 = vweird.f32 %v10485_v10 }
 0x545   : > { %2504 = vmatmul.f32.gmra.mxu1 %v11984_v4  ;;  %v3696_v25 = vadd.f32 %v10468_v24, %v10466_v3  ;;  %v4458_v38 = vadd.f32 %v6933_v16, %v4457_v35  ;;  %v5799_v11 = vpop.f32.mrf.mxu2 }
 0x546   : > { %v2877_v44 = vmax.f32 %v2875_v18, %v2876_v59  ;;  %v4466_v18 = vor.u32 1.1754944e-38, %v4465_v30  ;;  %v11989_v30 = vld [vmem:[#allocation71_spill] sm:$0xff] }
 0x547   : > { %v3697_v4 = vrot.slane %v3696_v25, 4  ;;  %v4462_v48 = vsel %vm4461_vm7, %v6933_v16, %v4458_v38  ;;  %v844_v16 = vadd.f32 %v11989_v30, %v11980_v60 }
 0x548   : > { %v3124_v54 = vsub.f32 %v10425_v37, %v2877_v44  ;;  %v3125_v26 = vsub.f32 %v2451_v31, %v2877_v44  ;;  %v4467_v59 = vsel %vm4464_vm8, %v4466_v18, %v4462_v48  ;;  %v10498_v37 = vadd.f32 %v5799_v11, %v10490_v46  ;;  %v2457_v31 = vpop.f32.mrf.mxu1 }
 0x549   : > { %v4468_v9 = vmul.f32 %v10356_v51, %v4467_v59  ;;  %v2878_v44 = vmax.f32 %v10478_v61, %v2457_v31 }
 0x54a   : > { %v3330_v36 = vmul.f32 1.442695, %v3124_v54  ;;  %v3332_v15 = vmul.f32 1.442695, %v3125_v26  ;;  %5819 = vadd.xlane.f32.xlu0 %v10498_v37  ;;  %v11990_v54 = vld [vmem:[#allocation105_spill] sm:$0xff]  ;;  %v6939_v51 = vpop.eup %6938 }
 0x54b   : > { %v2879_v21 = vrot.slane %v2878_v44, 4  ;;  %v2153_v26 = vmul.f32 %v11990_v54, %v844_v16  ;;  %vm4476_vm10 = vweird.f32 %v6939_v51  ;;  %v11992_v54 = vld [vmem:[#allocation5_spill] sm:$0xff] }
 0x54c   : > { %6940 = vpow2.f32 %v3330_v36  ;;  %vm4477_vm13 = vmor %vm4475_vm11, %vm4476_vm10 }
 0x54d   : > { %2507 = vmatmul.f32.gmra.mxu1 %v2151_v0  ;;  %v3698_v0 = vadd.f32 %v3697_v4, %v3696_v25  ;;  %v978_v25 = vadd.f32 %v11988_v40, %v11957_v22  ;;  %v4469_v4 = vmul.f32 %v10359_v53, %v4467_v59  ;;  %6942 = vpow2.f32 %v3332_v15  ;;  %v1671_v59 = vpop.f32.mrf.mxu3 }
 0x54e   : > { %v2880_v18 = vmax.f32 %v2878_v44, %v2879_v21  ;;  %v4471_v40 = vmul.f32 %v6939_v51, %v10485_v10  ;;  %v4479_v21 = vand.u32 2147483647, %v10485_v10 }
 0x54f   : > { %v3699_v49 = vrot.slane %v3698_v0, 2  ;;  %v4974_v35 = vmul.f32 %v4468_v9, %v978_v25  ;;  %v4975_v45 = vmul.f32 %v4469_v4, %v1670_v8  ;;  %v5801_v8 = vpop.f32.mrf.mxu2  ;;  %v7120_v25 = vld [vmem:[%s7447_s13 + $0xf0] sm:$0xff] }
 0x550   : > { %v2881_v15 = vrot.slane %v2880_v18, 2  ;;  %1728 = vmatmul.bf16.gmra.mxu3 %v7120_v25  ;;  %v10520_v30 = vadd.f32 %v5801_v8, %v10490_v46  ;;  %v10522_v16 = vpop.f32.mrf.mxu1  ;;  %v4472_v44 = vsub.f32 1.0, %v4471_v40  ;;  %v11993_v40 = vld [vmem:[#allocation58_spill] sm:$0xff]  ;;  %vm4480_vm14 = vcmp.eq.f32.partialorder %v4479_v21, 8.507059e+37 }
 0x551   : > { %v10509_v38 = vadd.f32 %v4975_v45, %v4974_v35  ;;  %v980_v52 = vadd.f32 %v11993_v40, %v11957_v22 }
 0x552   : > { %v10511_v53 = vpop.eup %6940  ;;  %v2882_v11 = vmax.f32 %v2880_v18, %v2881_v15  ;;  %11991 = vst [vmem:[#allocation125_spill] sm:$0xff] %v10520_v30  ;;  %5821 = vadd.xlane.f32.xlu0 %v10520_v30  ;;  %v4473_v45 = vmul.f32 %v6939_v51, %v4472_v44  ;;  %v1672_v44 = vadd.f32 %v1671_v59, %v8368_v28 }
 0x553   : > { %v10513_v36 = vpop.eup %6942 }
 0x554   : > { %v3703_v48 = vadd.f32 %v10513_v36, %v10511_v53  ;;  %v4474_v25 = vadd.f32 %v6939_v51, %v4473_v45 }
 0x555   : > { %2510 = vmatmul.f32.gmra.mxu1 %v11987_v34  ;;  %v3700_v34 = vadd.f32 %v3699_v49, %v3698_v0  ;;  %v2883_v0 = vrot.slane %v2882_v11, 1  ;;  %v4481_v49 = vand.u32 2147483648, %v10485_v10  ;;  %v11995_v10 = vld [vmem:[#allocation20_spill] sm:$0xff] }
 0x556   : > { %v3704_v4 = vrot.slane %v3703_v48, 4 }
 0x557   : > { %v3701_v9 = vrot.slane %v3700_v34, 1  ;;  %v2884_v35 = vmax.f32 %v2882_v11, %v2883_v0  ;;  %v11994_v11 = vld [vmem:[#allocation73_spill] sm:$0xff]  ;;  %v4482_v30 = vor.u32 1.1754944e-38, %v4481_v49 }
 0x558   : > { %v3705_v18 = vadd.f32 %v3704_v4, %v3703_v48  ;;  %v846_v0 = vadd.f32 %v11994_v11, %v11980_v60  ;;  %v2463_v48 = vpop.f32.mrf.mxu1 }
 0x559   : > { %v3126_v15 = vsub.f32 %v10478_v61, %v2884_v35  ;;  %v3127_v8 = vsub.f32 %v2457_v31, %v2884_v35  ;;  %v2885_v59 = vmax.f32 %v10522_v16, %v2463_v48 }
 0x55a   : > { %v3706_v61 = vrot.slane %v3705_v18, 2  ;;  %v2155_v4 = vmul.f32 %v11995_v10, %v846_v0 }
 0x55d   : > { %2513 = vmatmul.f32.gmra.mxu1 %v2153_v26  ;;  %v10528_v26 = vadd.f32 %v3701_v9, %v3700_v34  ;;  %v3336_v34 = vmul.f32 1.442695, %v3127_v8  ;;  %v4478_v9 = vsel %vm4477_vm13, %v6939_v51, %v4474_v25  ;;  %v2886_v8 = vrot.slane %v2885_v59, 4 }
 0x55e   : > { %v4483_v31 = vsel %vm4480_vm14, %v4482_v30, %v4478_v9  ;;  %v3707_v51 = vadd.f32 %v3706_v61, %v3705_v18  ;;  %v11996_v61 = vld [vmem:[#allocation28_spill] sm:$0xff] }
 0x55f   : > { %6944 = vrcp.f32 %v10528_v26  ;;  %v4484_v35 = vmul.f32 %v10411_v50, %v4483_v31  ;;  %v4485_v45 = vmul.f32 %v10413_v42, %v4483_v31  ;;  %v2887_v25 = vmax.f32 %v2885_v59, %v2886_v8  ;;  %v11997_v59 = vld [vmem:[#allocation75_spill] sm:$0xff] }
 0x560   : > { %v3708_v50 = vrot.slane %v3707_v51, 1  ;;  %vm4491_vm5 = vweird.f32 %v10528_v26 }
 0x561   : > { %v4976_v49 = vmul.f32 %v4484_v35, %v980_v52  ;;  %v2888_v11 = vrot.slane %v2887_v25, 2 }
 0x562   : > { %v10554_v31 = vadd.f32 %v3708_v50, %v3707_v51 }
 0x564   : > { %vm4507_vm10 = vweird.f32 %v10554_v31 }
 0x565   : > { %2516 = vmatmul.f32.gmra.mxu1 %v11992_v54  ;;  %v3334_v54 = vmul.f32 1.442695, %v3126_v15  ;;  %v4977_v15 = vmul.f32 %v4485_v45, %v1672_v44  ;;  %v6945_v30 = vpop.eup %6944  ;;  %v10551_v44 = vpop.f32.mrf.mxu1  ;;  %v4497_v45 = vand.u32 2147483648, %v10528_v26 }
 0x566   : > { %v4487_v52 = vmul.f32 %v6945_v30, %v10528_v26  ;;  %vm4492_vm4 = vweird.f32 %v6945_v30 }
 0x567   : > { %6946 = vpow2.f32 %v3334_v54  ;;  %v10542_v21 = vadd.f32 %v4977_v15, %v4976_v49  ;;  %v2889_v54 = vmax.f32 %v2887_v25, %v2888_v11  ;;  %v849_v49 = vadd.f32 %v11997_v59, %v11980_v60  ;;  %v1674_v11 = vpop.f32.mrf.mxu3  ;;  %vm4493_vm6 = vmor %vm4491_vm5, %vm4492_vm4 }
 0x568   : > { %6948 = vpow2.f32 %v3336_v34  ;;  %v4488_v9 = vsub.f32 1.0, %v4487_v52  ;;  %v4495_v15 = vand.u32 2147483647, %v10528_v26 }
 0x569   : > { %v2890_v18 = vrot.slane %v2889_v54, 1  ;;  %6950 = vrcp.f32 %v10554_v31  ;;  %v2157_v51 = vmul.f32 %v10115_v17, %v849_v49 }
 0x56a   : > { %v4489_v35 = vmul.f32 %v6945_v30, %v4488_v9  ;;  %v1675_v9 = vadd.f32 %v1674_v11, %v8368_v28  ;;  %vm4496_vm7 = vcmp.eq.f32.partialorder %v4495_v15, 8.507059e+37 }
 0x56c   : > { %v4490_v52 = vadd.f32 %v6945_v30, %v4489_v35 }
 0x56d   : > { %2519 = vmatmul.f32.gmra.mxu1 %v2155_v4  ;;  %v10544_v40 = vpop.eup %6946  ;;  %v2891_v4 = vmax.f32 %v2889_v54, %v2890_v18  ;;  %v2469_v18 = vpop.f32.mrf.mxu1 }
 0x56e   : > { %v10546_v0 = vpop.eup %6948 }
 0x56f   : > { %v3710_v42 = vadd.f32 %v10546_v0, %v10544_v40  ;;  %v3128_v8 = vsub.f32 %v10522_v16, %v2891_v4  ;;  %v3129_v25 = vsub.f32 %v2463_v48, %v2891_v4  ;;  %v2892_v16 = vmax.f32 %v10551_v44, %v2469_v18  ;;  %v11998_v48 = vld [vmem:[#allocation60_spill] sm:$0xff]  ;;  %v6951_v49 = vpop.eup %6950 }
 0x570   : > { %v983_v4 = vadd.f32 %v11998_v48, %v11957_v22  ;;  %vm4508_vm8 = vweird.f32 %v6951_v49 }
 0x571   : > { %v3711_v34 = vrot.slane %v3710_v42, 4  ;;  %v3340_v54 = vmul.f32 1.442695, %v3129_v25  ;;  %vm4509_vm11 = vmor %vm4507_vm10, %vm4508_vm8 }
 0x573   : > { %v3712_v10 = vadd.f32 %v3711_v34, %v3710_v42  ;;  %v3338_v42 = vmul.f32 1.442695, %v3128_v8  ;;  %v4498_v34 = vor.u32 1.1754944e-38, %v4497_v45  ;;  %v2893_v45 = vrot.slane %v2892_v16, 4 }
 0x575   : > { %2522 = vmatmul.f32.gmra.mxu1 %v11996_v61  ;;  %v3713_v50 = vrot.slane %v3712_v10, 2  ;;  %v4494_v61 = vsel %vm4493_vm6, %v6945_v30, %v4490_v52  ;;  %6952 = vpow2.f32 %v3338_v42  ;;  %v2894_v15 = vmax.f32 %v2892_v16, %v2893_v45 }
 0x576   : > { %v4499_v35 = vsel %vm4496_vm7, %v4498_v34, %v4494_v61  ;;  %6954 = vpow2.f32 %v3340_v54  ;;  %v1676_v54 = vpop.f32.mrf.mxu3  ;;  %v7121_v61 = vld [vmem:[%s7447_s13 + $0xf8] sm:$0xff] }
 0x577   : > { %v4500_v17 = vmul.f32 %v10466_v3, %v4499_v35  ;;  %v4501_v26 = vmul.f32 %v10468_v24, %v4499_v35  ;;  %v3714_v59 = vadd.f32 %v3713_v50, %v3712_v10  ;;  %v2895_v11 = vrot.slane %v2894_v15, 2  ;;  %v10577_v24 = vpop.f32.mrf.mxu1  ;;  %1733 = vmatmul.bf16.gmra.mxu3 %v7121_v61  ;;  %v11999_v50 = vld [vmem:[#allocation77_spill] sm:$0xff] }
 0x578   : > { %v4503_v3 = vmul.f32 %v6951_v49, %v10554_v31 }
 0x579   : > { %v4978_v8 = vmul.f32 %v4500_v17, %v983_v4  ;;  %v4979_v30 = vmul.f32 %v4501_v26, %v1675_v9  ;;  %v3715_v42 = vrot.slane %v3714_v59, 1  ;;  %v851_v9 = vadd.f32 %v11999_v50, %v11980_v60 }
 0x57a   : > { %v4504_v48 = vsub.f32 1.0, %v4503_v3  ;;  %v4511_v17 = vand.u32 2147483647, %v10554_v31  ;;  %v4513_v26 = vand.u32 2147483648, %v10554_v31 }
 0x57b   : > { %v10570_v25 = vadd.f32 %v4979_v30, %v4978_v8  ;;  %v10572_v52 = vpop.eup %6952  ;;  %v10585_v4 = vadd.f32 %v3715_v42, %v3714_v59  ;;  %v1677_v59 = vadd.f32 %v1676_v54, %v8368_v28 }
 0x57c   : > { %v10574_v34 = vpop.eup %6954  ;;  %v4505_v8 = vmul.f32 %v6951_v49, %v4504_v48  ;;  %vm4512_vm13 = vcmp.eq.f32.partialorder %v4511_v17, 8.507059e+37  ;;  %v4514_v42 = vor.u32 1.1754944e-38, %v4513_v26 }
 0x57d   : > { %2525 = vmatmul.f32.gmra.mxu1 %v2157_v51  ;;  %v2896_v51 = vmax.f32 %v2894_v15, %v2895_v11  ;;  %v3717_v10 = vadd.f32 %v10574_v34, %v10572_v52  ;;  %v2159_v15 = vmul.f32 %v10168_v57, %v851_v9  ;;  %6956 = vrcp.f32 %v10585_v4 }
 0x57e   : > { %v4506_v61 = vadd.f32 %v6951_v49, %v4505_v8  ;;  %vm4523_vm4 = vweird.f32 %v10585_v4 }
 0x57f   : > { %v2897_v16 = vrot.slane %v2896_v51, 1  ;;  %v3718_v35 = vrot.slane %v3717_v10, 4 }
 0x581   : > { %v2898_v45 = vmax.f32 %v2896_v51, %v2897_v16  ;;  %v3719_v30 = vadd.f32 %v3718_v35, %v3717_v10  ;;  %v4510_v16 = vsel %vm4509_vm11, %v6951_v49, %v4506_v61  ;;  %v2475_v10 = vpop.f32.mrf.mxu1 }
 0x582   : > { %v4515_v48 = vsel %vm4512_vm13, %v4514_v42, %v4510_v16  ;;  %v2899_v57 = vmax.f32 %v10577_v24, %v2475_v10 }
 0x583   : > { %v3131_v11 = vsub.f32 %v2469_v18, %v2898_v45  ;;  %v3720_v3 = vrot.slane %v3719_v30, 2  ;;  %v4516_v31 = vmul.f32 %v10511_v53, %v4515_v48  ;;  %v4517_v54 = vmul.f32 %v10513_v36, %v4515_v48 }
 0x584   : > { %v2900_v9 = vrot.slane %v2899_v57, 4 }
 0x585   : > { %2528 = vmatmul.f32.gmra.mxu1 %v10126_v5  ;;  %v3130_v5 = vsub.f32 %v10551_v44, %v2898_v45  ;;  %v3344_v50 = vmul.f32 1.442695, %v3131_v11  ;;  %v12000_v44 = vld [vmem:[#allocation63_spill] sm:$0xff]  ;;  %v3721_v35 = vadd.f32 %v3720_v3, %v3719_v30  ;;  %v4981_v26 = vmul.f32 %v4517_v54, %v1677_v59  ;;  %v6957_v45 = vpop.eup %6956 }
 0x586   : > { %v985_v18 = vadd.f32 %v12000_v44, %v11957_v22  ;;  %v2901_v49 = vmax.f32 %v2899_v57, %v2900_v9  ;;  %v4519_v53 = vmul.f32 %v6957_v45, %v10585_v4  ;;  %v12001_v3 = vld [vmem:[#allocation79_spill] sm:$0xff]  ;;  %v4529_v57 = vand.u32 2147483648, %v10585_v4 }
 0x587   : > { %v3342_v51 = vmul.f32 1.442695, %v3130_v5  ;;  %vm4524_vm14 = vweird.f32 %v6957_v45  ;;  %v4527_v54 = vand.u32 2147483647, %v10585_v4  ;;  %v12002_v4 = vld [vmem:[#allocation65_spill] sm:$0xff] }
 0x588   : > { %v4980_v17 = vmul.f32 %v4516_v31, %v985_v18  ;;  %v2902_v5 = vrot.slane %v2901_v49, 2  ;;  %v4520_v59 = vsub.f32 1.0, %v4519_v53  ;;  %v1679_v18 = vpop.f32.mrf.mxu3  ;;  %vm4525_vm5 = vmor %vm4523_vm4, %vm4524_vm14 }
 0x589   : > { %6958 = vpow2.f32 %v3342_v51  ;;  %v10606_v51 = vpop.f32.mrf.mxu1  ;;  %vm4528_vm6 = vcmp.eq.f32.partialorder %v4527_v54, 8.507059e+37 }
 0x58a   : > { %6960 = vpow2.f32 %v3344_v50  ;;  %v10599_v8 = vadd.f32 %v4981_v26, %v4980_v17  ;;  %v2903_v42 = vmax.f32 %v2901_v49, %v2902_v5  ;;  %v854_v50 = vadd.f32 %v12001_v3, %v11980_v60 }
 0x58b   : > { %v4521_v31 = vmul.f32 %v6957_v45, %v4520_v59  ;;  %v4530_v5 = vor.u32 1.1754944e-38, %v4529_v57 }
 0x58c   : > { %v2904_v30 = vrot.slane %v2903_v42, 1 }
 0x58d   : > { %2531 = vmatmul.f32.gmra.mxu1 %v2159_v15  ;;  %v3722_v15 = vrot.slane %v3721_v35, 1  ;;  %v4522_v49 = vadd.f32 %v6957_v45, %v4521_v31 }
 0x58e   : > { %v2905_v44 = vmax.f32 %v2903_v42, %v2904_v30 }
 0x58f   : > { %v10601_v11 = vpop.eup %6958  ;;  %v10613_v16 = vadd.f32 %v3722_v15, %v3721_v35  ;;  %v1680_v35 = vadd.f32 %v1679_v18, %v8368_v28  ;;  %v4526_v53 = vsel %vm4525_vm5, %v6957_v45, %v4522_v49 }
 0x590   : > { %v10603_v61 = vpop.eup %6960  ;;  %v3132_v17 = vsub.f32 %v10577_v24, %v2905_v44  ;;  %v3133_v26 = vsub.f32 %v2475_v10, %v2905_v44 }
 0x591   : > { %v3724_v36 = vadd.f32 %v10603_v61, %v10601_v11  ;;  %6962 = vrcp.f32 %v10613_v16  ;;  %v2481_v30 = vpop.f32.mrf.mxu1  ;;  %vm4539_vm8 = vweird.f32 %v10613_v16 }
 0x592   : > { %v3346_v15 = vmul.f32 1.442695, %v3132_v17  ;;  %v3348_v42 = vmul.f32 1.442695, %v3133_v26  ;;  %v2906_v24 = vmax.f32 %v10606_v51, %v2481_v30 }
 0x593   : > { %v3725_v48 = vrot.slane %v3724_v36, 4 }
 0x594   : > { %6964 = vpow2.f32 %v3346_v15 }
 0x595   : > { %2534 = vmatmul.f32.gmra.mxu1 %v10179_v19  ;;  %v2161_v19 = vmul.f32 %v10198_v7, %v854_v50  ;;  %v3726_v9 = vadd.f32 %v3725_v48, %v3724_v36  ;;  %v988_v7 = vadd.f32 %v12002_v4, %v11957_v22  ;;  %v4531_v36 = vsel %vm4528_vm6, %v4530_v5, %v4526_v53 }
 0x596   : > { %v4532_v59 = vmul.f32 %v10544_v40, %v4531_v36  ;;  %v4533_v3 = vmul.f32 %v10546_v0, %v4531_v36  ;;  %6966 = vpow2.f32 %v3348_v42  ;;  %v2907_v50 = vrot.slane %v2906_v24, 4 }
 0x597   : > { %v3727_v10 = vrot.slane %v3726_v9, 2  ;;  %v6963_v45 = vpop.eup %6962  ;;  %v4545_v36 = vand.u32 2147483648, %v10613_v16 }
 0x598   : > { %v4982_v48 = vmul.f32 %v4532_v59, %v988_v7  ;;  %v4983_v57 = vmul.f32 %v4533_v3, %v1680_v35  ;;  %v2908_v44 = vmax.f32 %v2906_v24, %v2907_v50  ;;  %v5804_v49 = vpop.f32.mrf.mxu2  ;;  %v4535_v40 = vmul.f32 %v6963_v45, %v10613_v16 }
 0x599   : > { %v3728_v18 = vadd.f32 %v3727_v10, %v3726_v9  ;;  %v10636_v15 = vadd.f32 %v5804_v49, %v10490_v46  ;;  %v10638_v9 = vpop.f32.mrf.mxu1  ;;  %v1681_v10 = vpop.f32.mrf.mxu3  ;;  %vm4540_vm7 = vweird.f32 %v6963_v45  ;;  %v4543_v3 = vand.u32 2147483647, %v10613_v16 }
 0x59a   : > { %v5310_v31 = vadd.f32 %v4983_v57, %v4982_v48  ;;  %v2909_v54 = vrot.slane %v2908_v44, 2  ;;  %v4536_v53 = vsub.f32 1.0, %v4535_v40  ;;  %v12005_v40 = vld [vmem:[#allocation68_spill] sm:$0xff]  ;;  %vm4541_vm10 = vmor %vm4539_vm8, %vm4540_vm7 }
 0x59b   : > { %v3729_v0 = vrot.slane %v3728_v18, 1  ;;  %12003 = vst [vmem:[#allocation18_spill] sm:$0xff] %v10636_v15  ;;  %5823 = vadd.xlane.f32.xlu1 %v10636_v15  ;;  %vm4544_vm11 = vcmp.eq.f32.partialorder %v4543_v3, 8.507059e+37 }
 0x59c   : > { %v2910_v26 = vmax.f32 %v2908_v44, %v2909_v54  ;;  %v5311_v35 = vrot.slane %v5310_v31, 4  ;;  %v4537_v59 = vmul.f32 %v6963_v45, %v4536_v53  ;;  %v4546_v53 = vor.u32 1.1754944e-38, %v4545_v36 }
 0x59d   : > { %2537 = vmatmul.f32.gmra.mxu1 %v2161_v19  ;;  %v10627_v19 = vpop.eup %6964  ;;  %v10645_v50 = vadd.f32 %v3729_v0, %v3728_v18 }
 0x59e   : > { %v10630_v17 = vpop.eup %6966  ;;  %v2911_v42 = vrot.slane %v2910_v26, 1  ;;  %v5312_v48 = vadd.f32 %v5311_v35, %v5310_v31  ;;  %v4538_v49 = vadd.f32 %v6963_v45, %v4537_v59 }
 0x59f   : > { %v3731_v5 = vadd.f32 %v10630_v17, %v10627_v19  ;;  %6968 = vrcp.f32 %v10645_v50  ;;  %vm4555_vm14 = vweird.f32 %v10645_v50 }
 0x5a0   : > { %v2912_v24 = vmax.f32 %v2910_v26, %v2911_v42  ;;  %v1682_v42 = vadd.f32 %v1681_v10, %v8368_v28  ;;  %v4542_v31 = vsel %vm4541_vm10, %v6963_v45, %v4538_v49 }
 0x5a1   : > { %v3732_v7 = vrot.slane %v3731_v5, 4  ;;  %v2487_v35 = vpop.f32.mrf.mxu1 }
 0x5a2   : > { %v3134_v44 = vsub.f32 %v10606_v51, %v2912_v24  ;;  %v3135_v54 = vsub.f32 %v2481_v30, %v2912_v24  ;;  %v5313_v51 = vrot.slane %v5312_v48, 2  ;;  %v4547_v30 = vsel %vm4544_vm11, %v4546_v53, %v4542_v31 }
 0x5a3   : > { %v3733_v26 = vadd.f32 %v3732_v7, %v3731_v5  ;;  %v4548_v5 = vmul.f32 %v10572_v52, %v4547_v30  ;;  %v2913_v7 = vmax.f32 %v10638_v9, %v2487_v35 }
 0x5a4   : > { %v3350_v18 = vmul.f32 1.442695, %v3134_v44  ;;  %v3352_v0 = vmul.f32 1.442695, %v3135_v54  ;;  %v5314_v59 = vadd.f32 %v5313_v51, %v5312_v48 }
 0x5a5   : > { %2540 = vmatmul.f32.gmra.mxu1 %v10207_v6  ;;  %v12004_v6 = vld [vmem:[#allocation81_spill] sm:$0xff]  ;;  %v3734_v36 = vrot.slane %v3733_v26, 2  ;;  %v2914_v10 = vrot.slane %v2913_v7, 4  ;;  %v6969_v44 = vpop.eup %6968 }
 0x5a6   : > { %v856_v4 = vadd.f32 %v12004_v6, %v11980_v60  ;;  %v990_v6 = vadd.f32 %v12005_v40, %v11957_v22  ;;  %6970 = vpow2.f32 %v3350_v18  ;;  %v5315_v53 = vrot.slane %v5314_v59, 1 }
 0x5a7   : > { %6972 = vpow2.f32 %v3352_v0  ;;  %v3735_v54 = vadd.f32 %v3734_v36, %v3733_v26  ;;  %v4551_v48 = vmul.f32 %v6969_v44, %v10645_v50  ;;  %v12006_v0 = vld [vmem:[#allocation83_spill] sm:$0xff]  ;;  %vm4556_vm13 = vweird.f32 %v6969_v44 }
 0x5a8   : > { %v2163_v57 = vmul.f32 %v10251_v14, %v856_v4  ;;  %v5806_v14 = vpop.f32.mrf.mxu2  ;;  %v4549_v4 = vmul.f32 %v10574_v34, %v4547_v30  ;;  %v4984_v45 = vmul.f32 %v4548_v5, %v990_v6  ;;  %v859_v31 = vadd.f32 %v12006_v0, %v11980_v60  ;;  %vm4557_vm4 = vmor %vm4555_vm14, %vm4556_vm13 }
 0x5a9   : > { %v10655_v16 = vadd.f32 %v5806_v14, %v10490_v46  ;;  %v3736_v26 = vrot.slane %v3735_v54, 1  ;;  %v10671_v14 = vpop.f32.mrf.mxu1  ;;  %v4552_v5 = vsub.f32 1.0, %v4551_v48 }
 0x5aa   : > { %v4985_v24 = vmul.f32 %v4549_v4, %v1682_v42  ;;  %v5316_v4 = vadd.f32 %v5315_v53, %v5314_v59  ;;  %v1684_v59 = vpop.f32.mrf.mxu3 }
 0x5ab   : > { %5825 = vadd.xlane.f32.xlu1 %v10655_v16 }
 0x5ac   : > { %v5317_v3 = vadd.f32 %v4985_v24, %v4984_v45  ;;  %v10662_v49 = vpop.eup %6970 }
 0x5ad   : > { %2543 = vmatmul.f32.gmra.mxu1 %v2163_v57  ;;  %v2915_v57 = vmax.f32 %v2913_v7, %v2914_v10  ;;  %v10664_v40 = vpop.eup %6972  ;;  %v12007_v7 = vperm.slane %v10224_v39, 0  ;;  %v4553_v10 = vmul.f32 %v6969_v44, %v4552_v5  ;;  %v12008_v39 = vld [vmem:[#allocation70_spill] sm:$0xff] }
 0x5ae   : > { %v5318_v52 = vrot.slane %v5317_v3, 4  ;;  %v3738_v18 = vadd.f32 %v10664_v40, %v10662_v49  ;;  %v993_v53 = vadd.f32 %v12008_v39, %v11957_v22 }
 0x5af   : > { %v2916_v34 = vrot.slane %v2915_v57, 2  ;;  %v2165_v36 = vmul.f32 %v12007_v7, %v859_v31 }
 0x5b0   : > { %v5319_v6 = vadd.f32 %v5318_v52, %v5317_v3  ;;  %v4561_v3 = vand.u32 2147483648, %v10645_v50  ;;  %v4559_v52 = vand.u32 2147483647, %v10645_v50 }
 0x5b1   : > { %v2917_v42 = vmax.f32 %v2915_v57, %v2916_v34  ;;  %v10676_v57 = vadd.f32 %v3736_v26, %v3735_v54 }
 0x5b2   : > { %v5320_v51 = vrot.slane %v5319_v6, 2  ;;  %vm4560_vm5 = vcmp.eq.f32.partialorder %v4559_v52, 8.507059e+37 }
 0x5b3   : > { %v2918_v30 = vrot.slane %v2917_v42, 1  ;;  %6974 = vrcp.f32 %v10676_v57  ;;  %vm4571_vm7 = vweird.f32 %v10676_v57 }
 0x5b4   : > { %v5321_v45 = vadd.f32 %v5320_v51, %v5319_v6  ;;  %v5518_v6 = vpack.c.bf16 %v5316_v4, %v5316_v4  ;;  %v4562_v51 = vor.u32 1.1754944e-38, %v4561_v3 }
 0x5b5   : > { %2546 = vmatmul.f32.gmra.mxu1 %v10265_v41  ;;  %v3739_v41 = vrot.slane %v3738_v18, 4  ;;  %v2919_v24 = vmax.f32 %v2917_v42, %v2918_v30  ;;  %v4554_v42 = vadd.f32 %v6969_v44, %v4553_v10 }
 0x5b6   : > { %v5322_v0 = vrot.slane %v5321_v45, 1  ;;  %v5647_v7 = vunpack.c.l.b16 %v5518_v6 }
 0x5b7   : > { %v3740_v34 = vadd.f32 %v3739_v41, %v3738_v18  ;;  %v3136_v15 = vsub.f32 %v10638_v9, %v2919_v24  ;;  %v3137_v48 = vsub.f32 %v2487_v35, %v2919_v24  ;;  %v1685_v18 = vadd.f32 %v1684_v59, %v8368_v28  ;;  %v2493_v35 = vpop.f32.mrf.mxu1 }
 0x5b8   : > { %v5323_v31 = vadd.f32 %v5322_v0, %v5321_v45  ;;  %v4558_v9 = vsel %vm4557_vm4, %v6969_v44, %v4554_v42  ;;  %v2920_v4 = vmax.f32 %v10671_v14, %v2493_v35 }
 0x5b9   : > { %v3354_v54 = vmul.f32 1.442695, %v3136_v15  ;;  %v3356_v26 = vmul.f32 1.442695, %v3137_v48  ;;  %v3741_v41 = vrot.slane %v3740_v34, 2  ;;  %v4563_v5 = vsel %vm4560_vm5, %v4562_v51, %v4558_v9  ;;  %v6975_v52 = vpop.eup %6974 }
 0x5ba   : > { %v5519_v30 = vpack.c.bf16 %v5323_v31, %v5323_v31  ;;  %v4564_v50 = vmul.f32 %v10601_v11, %v4563_v5  ;;  %v4565_v15 = vmul.f32 %v10603_v61, %v4563_v5  ;;  %v2921_v10 = vrot.slane %v2920_v4, 4  ;;  %v12009_v61 = vld [vmem:[#allocation85_spill] sm:$0xff] }
 0x5bb   : > { %6976 = vpow2.f32 %v3354_v54  ;;  %v3742_v44 = vadd.f32 %v3741_v41, %v3740_v34  ;;  %v861_v39 = vadd.f32 %v12009_v61, %v11980_v60  ;;  %v4567_v54 = vmul.f32 %v6975_v52, %v10676_v57 }
 0x5bc   : > { %6978 = vpow2.f32 %v3356_v26  ;;  %v4986_v45 = vmul.f32 %v4564_v50, %v993_v53  ;;  %v4987_v24 = vmul.f32 %v4565_v15, %v1685_v18  ;;  %v2922_v48 = vmax.f32 %v2920_v4, %v2921_v10 }
 0x5bd   : > { %2549 = vmatmul.f32.gmra.mxu1 %v2165_v36  ;;  %v5648_v36 = vunpack.c.l.b16 %v5519_v30  ;;  %v3743_v42 = vrot.slane %v3742_v44, 1  ;;  %v2167_v51 = vmul.f32 %v10313_v33, %v861_v39  ;;  %v4568_v30 = vsub.f32 1.0, %v4567_v54 }
 0x5be   : > { %v5324_v0 = vadd.f32 %v4987_v24, %v4986_v45  ;;  %v2923_v53 = vrot.slane %v2922_v48, 2  ;;  %v4575_v50 = vand.u32 2147483647, %v10676_v57  ;;  %v4577_v15 = vand.u32 2147483648, %v10676_v57 }
 0x5bf   : > { %v10691_v3 = vsel %vm5671_vm15, %v5648_v36, %v5647_v7  ;;  %v10702_v26 = vpop.f32.mrf.mxu1  ;;  %v10705_v5 = vadd.f32 %v3743_v42, %v3742_v44  ;;  %v1686_v36 = vpop.f32.mrf.mxu3  ;;  %v4569_v45 = vmul.f32 %v6975_v52, %v4568_v30  ;;  %vm4572_vm6 = vweird.f32 %v6975_v52 }
 0x5c0   : > { %v5325_v6 = vrot.slane %v5324_v0, 4  ;;  %v2924_v31 = vmax.f32 %v2922_v48, %v2923_v53  ;;  %v1687_v44 = vadd.f32 %v1686_v36, %v8368_v28  ;;  %vm4573_vm8 = vmor %vm4571_vm7, %vm4572_vm6  ;;  %vm4576_vm10 = vcmp.eq.f32.partialorder %v4575_v50, 8.507059e+37 }
 0x5c1   : > { %v10693_v59 = vpop.eup %6976  ;;  %v4570_v48 = vadd.f32 %v6975_v52, %v4569_v45  ;;  %6980 = vrcp.f32 %v10705_v5  ;;  %v4578_v61 = vor.u32 1.1754944e-38, %v4577_v15  ;;  %vm4587_vm13 = vweird.f32 %v10705_v5 }
 0x5c2   : > { %v10695_v11 = vpop.eup %6978  ;;  %v5326_v34 = vadd.f32 %v5325_v6, %v5324_v0  ;;  %v2925_v41 = vrot.slane %v2924_v31, 1 }
 0x5c3   : > { %v4574_v42 = vsel %vm4573_vm8, %v6975_v52, %v4570_v48 }
 0x5c4   : > { %v5327_v9 = vrot.slane %v5326_v34, 2  ;;  %v2926_v7 = vmax.f32 %v2924_v31, %v2925_v41  ;;  %v4579_v54 = vsel %vm4576_vm10, %v4578_v61, %v4574_v42 }
 0x5c5   : > { %2552 = vmatmul.f32.gmra.mxu1 %v10288_v43  ;;  %v3745_v43 = vadd.f32 %v10695_v11, %v10693_v59 }
 0x5c6   : > { %v5328_v4 = vadd.f32 %v5327_v9, %v5326_v34  ;;  %v3138_v10 = vsub.f32 %v10671_v14, %v2926_v7  ;;  %v3139_v0 = vsub.f32 %v2493_v35, %v2926_v7 }
 0x5c7   : > { %v3746_v18 = vrot.slane %v3745_v43, 4  ;;  %v2499_v34 = vpop.f32.mrf.mxu1  ;;  %v6981_v50 = vpop.eup %6980 }
 0x5c8   : > { %v5329_v33 = vrot.slane %v5328_v4, 1  ;;  %v3358_v6 = vmul.f32 1.442695, %v3138_v10  ;;  %v3360_v53 = vmul.f32 1.442695, %v3139_v0  ;;  %v2927_v14 = vmax.f32 %v10702_v26, %v2499_v34 }
 0x5c9   : > { %v3747_v24 = vadd.f32 %v3746_v18, %v3745_v43  ;;  %v12010_v43 = vld [vmem:[#allocation72_spill] sm:$0xff]  ;;  %v4581_v18 = vmul.f32 %v10630_v17, %v4579_v54  ;;  %v4583_v48 = vmul.f32 %v6981_v50, %v10705_v5  ;;  %vm4588_vm11 = vweird.f32 %v6981_v50 }
 0x5ca   : > { %v5330_v39 = vadd.f32 %v5329_v33, %v5328_v4  ;;  %v995_v57 = vadd.f32 %v12010_v43, %v11957_v22  ;;  %6982 = vpow2.f32 %v3358_v6  ;;  %v2928_v9 = vrot.slane %v2927_v14, 4  ;;  %v12011_v4 = vld [vmem:[#allocation87_spill] sm:$0xff]  ;;  %vm4589_vm14 = vmor %vm4587_vm13, %vm4588_vm11 }
 0x5cb   : > { %v3748_v31 = vrot.slane %v3747_v24, 2  ;;  %6984 = vpow2.f32 %v3360_v53  ;;  %v4989_v30 = vmul.f32 %v4581_v18, %v1687_v44  ;;  %v864_v7 = vadd.f32 %v12011_v4, %v11980_v60 }
 0x5cc   : > { %v5520_v35 = vpack.c.bf16 %v5330_v39, %v5330_v39  ;;  %v2929_v15 = vmax.f32 %v2927_v14, %v2928_v9  ;;  %v4584_v39 = vsub.f32 1.0, %v4583_v48  ;;  %v4593_v43 = vand.u32 2147483648, %v10705_v5 }
 0x5cd   : > { %2555 = vmatmul.f32.gmra.mxu1 %v2167_v51  ;;  %v4580_v51 = vmul.f32 %v10627_v19, %v4579_v54  ;;  %v3749_v36 = vadd.f32 %v3748_v31, %v3747_v24  ;;  %v4591_v31 = vand.u32 2147483647, %v10705_v5  ;;  %v12012_v5 = vld [vmem:[#allocation74_spill] sm:$0xff] }
 0x5ce   : > { %v5649_v41 = vunpack.c.l.b16 %v5520_v35  ;;  %v2930_v17 = vrot.slane %v2929_v15, 2  ;;  %v4585_v42 = vmul.f32 %v6981_v50, %v4584_v39 }
 0x5cf   : > { %v4988_v52 = vmul.f32 %v4580_v51, %v995_v57  ;;  %v3750_v44 = vrot.slane %v3749_v36, 1  ;;  %v10735_v61 = vpop.f32.mrf.mxu1  ;;  %v1689_v51 = vpop.f32.mrf.mxu3  ;;  %vm4592_vm4 = vcmp.eq.f32.partialorder %v4591_v31, 8.507059e+37 }
 0x5d0   : > { %v10723_v45 = vsel %vm5673_vm9, %v5649_v41, %v10691_v3  ;;  %v10727_v33 = vpop.eup %6982  ;;  %v2931_v0 = vmax.f32 %v2929_v15, %v2930_v17  ;;  %v4586_v35 = vadd.f32 %v6981_v50, %v4585_v42  ;;  %v4594_v41 = vor.u32 1.1754944e-38, %v4593_v43 }
 0x5d1   : > { %v10725_v19 = vadd.f32 %v4989_v30, %v4988_v52  ;;  %v10730_v10 = vpop.eup %6984 }
 0x5d2   : > { %v3752_v24 = vadd.f32 %v10730_v10, %v10727_v33  ;;  %v2932_v3 = vrot.slane %v2931_v0, 1  ;;  %v4590_v30 = vsel %vm4589_vm14, %v6981_v50, %v4586_v35  ;;  %v12013_v50 = vld [vmem:[#allocation89_spill] sm:$0xff] }
 0x5d4   : > { %v3753_v6 = vrot.slane %v3752_v24, 4  ;;  %v2933_v53 = vmax.f32 %v2931_v0, %v2932_v3  ;;  %v866_v0 = vadd.f32 %v12013_v50, %v11980_v60 }
 0x5d5   : > { %2558 = vmatmul.f32.gmra.mxu1 %v10327_v62  ;;  %v2169_v62 = vmul.f32 %v10347_v56, %v864_v7  ;;  %v10738_v56 = vadd.f32 %v3750_v44, %v3749_v36  ;;  %v998_v7 = vadd.f32 %v12012_v5, %v11957_v22 }
 0x5d6   : > { %v3754_v57 = vadd.f32 %v3753_v6, %v3752_v24  ;;  %v3140_v54 = vsub.f32 %v10702_v26, %v2933_v53  ;;  %v3141_v14 = vsub.f32 %v2499_v34, %v2933_v53  ;;  %v1690_v26 = vadd.f32 %v1689_v51, %v8368_v28 }
 0x5d7   : > { %6986 = vrcp.f32 %v10738_v56  ;;  %v2505_v15 = vpop.f32.mrf.mxu1  ;;  %v4595_v34 = vsel %vm4592_vm4, %v4594_v41, %v4590_v30  ;;  %v2171_v39 = vmul.f32 %v10369_v58, %v866_v0  ;;  %v5276_v41 = vrot.slane %v10464_v47, 4 }
 0x5d8   : > { %v3362_v18 = vmul.f32 1.442695, %v3140_v54  ;;  %v3364_v9 = vmul.f32 1.442695, %v3141_v14  ;;  %v3755_v52 = vrot.slane %v3754_v57, 2  ;;  %v2934_v4 = vmax.f32 %v10735_v61, %v2505_v15 }
 0x5d9   : > { %v4596_v36 = vmul.f32 %v10662_v49, %v4595_v34  ;;  %v4597_v17 = vmul.f32 %v10664_v40, %v4595_v34  ;;  %vm4603_vm6 = vweird.f32 %v10738_v56 }
 0x5da   : > { %6988 = vpow2.f32 %v3362_v18  ;;  %v3756_v48 = vadd.f32 %v3755_v52, %v3754_v57 }
 0x5db   : > { %6990 = vpow2.f32 %v3364_v9  ;;  %v4991_v44 = vmul.f32 %v4597_v17, %v1690_v26  ;;  %v5277_v17 = vadd.f32 %v5276_v41, %v10464_v47  ;;  %v4607_v47 = vand.u32 2147483647, %v10738_v56 }
 0x5dc   : > { %v3757_v40 = vrot.slane %v3756_v48, 1 }
 0x5dd   : > { %2561 = vmatmul.f32.gmra.mxu1 %v2169_v62  ;;  %v2935_v62 = vrot.slane %v2934_v4, 4  ;;  %v10753_v3 = vpop.eup %6986  ;;  %vm4608_vm8 = vcmp.eq.f32.partialorder %v4607_v47, 8.507059e+37 }
 0x5de   : > { %v4599_v31 = vmul.f32 %v10753_v3, %v10738_v56  ;;  %v10768_v35 = vadd.f32 %v3757_v40, %v3756_v48  ;;  %vm4604_vm5 = vweird.f32 %v10753_v3  ;;  %v4609_v48 = vand.u32 2147483648, %v10738_v56 }
 0x5df   : > { %v2936_v24 = vmax.f32 %v2934_v4, %v2935_v62  ;;  %v10766_v54 = vpop.f32.mrf.mxu1  ;;  %vm10789_vm7 = vmor %vm4603_vm6, %vm4604_vm5 }
 0x5e0   : > { %v10756_v6 = vpop.eup %6988  ;;  %v4600_v9 = vsub.f32 1.0, %v4599_v31  ;;  %6992 = vrcp.f32 %v10768_v35  ;;  %vm4619_vm11 = vweird.f32 %v10768_v35 }
 0x5e1   : > { %v2937_v42 = vrot.slane %v2936_v24, 2  ;;  %v10760_v49 = vpop.eup %6990 }
 0x5e2   : > { %v3759_v43 = vadd.f32 %v10760_v49, %v10756_v6  ;;  %v4601_v5 = vmul.f32 %v10753_v3, %v4600_v9 }
 0x5e3   : > { %v2938_v57 = vmax.f32 %v2936_v24, %v2937_v42  ;;  %v5278_v24 = vrot.slane %v5277_v17, 2 }
 0x5e4   : > { %v3760_v14 = vrot.slane %v3759_v43, 4 }
 0x5e5   : > { %2564 = vmatmul.f32.gmra.mxu1 %v10353_v23  ;;  %v4990_v23 = vmul.f32 %v4596_v36, %v998_v7  ;;  %v2939_v58 = vrot.slane %v2938_v57, 1 }
 0x5e6   : > { %v3761_v51 = vadd.f32 %v3760_v14, %v3759_v43  ;;  %v6993_v0 = vpop.eup %6992 }
 0x5e7   : > { %v10758_v53 = vadd.f32 %v4991_v44, %v4990_v23  ;;  %v2940_v18 = vmax.f32 %v2938_v57, %v2939_v58  ;;  %v10775_v7 = vpop.f32.mrf.mxu1  ;;  %v12017_v57 = vld [vmem:[#allocation76_spill] sm:$0xff]  ;;  %v4615_v41 = vmul.f32 %v6993_v0, %v10768_v35  ;;  %vm4620_vm10 = vweird.f32 %v6993_v0 }
 0x5e8   : > { %v3762_v26 = vrot.slane %v3761_v51, 2  ;;  %v2941_v36 = vmax.f32 %v10766_v54, %v10775_v7  ;;  %v1000_v31 = vadd.f32 %v12017_v57, %v11957_v22  ;;  %vm4621_vm13 = vmor %vm4619_vm11, %vm4620_vm10 }
 0x5e9   : > { %v3142_v52 = vsub.f32 %v10735_v61, %v2940_v18  ;;  %v3143_v30 = vsub.f32 %v2505_v15, %v2940_v18  ;;  %v12014_v61 = vld [vmem:[#allocation92_spill] sm:$0xff]  ;;  %v4610_v18 = vor.u32 1.1754944e-38, %v4609_v48  ;;  %v4625_v48 = vand.u32 2147483648, %v10768_v35 }
 0x5ea   : > { %v869_v15 = vadd.f32 %v12014_v61, %v11980_v60  ;;  %v2942_v62 = vrot.slane %v2941_v36, 4  ;;  %v3763_v50 = vadd.f32 %v3762_v26, %v3761_v51  ;;  %v5290_v51 = vrot.slane %v10542_v21, 4 }
 0x5eb   : > { %v3366_v34 = vmul.f32 1.442695, %v3142_v52  ;;  %v3368_v4 = vmul.f32 1.442695, %v3143_v30  ;;  %v12018_v30 = vld [vmem:[#allocation94_spill] sm:$0xff]  ;;  %v4616_v61 = vsub.f32 1.0, %v4615_v41 }
 0x5ec   : > { %v2943_v23 = vmax.f32 %v2941_v36, %v2942_v62  ;;  %v2173_v44 = vmul.f32 %v10387_v20, %v869_v15  ;;  %v3764_v14 = vrot.slane %v3763_v50, 1  ;;  %v1691_v20 = vpop.f32.mrf.mxu3  ;;  %v871_v26 = vadd.f32 %v12018_v30, %v11980_v60 }
 0x5ed   : > { %2567 = vmatmul.f32.gmra.mxu1 %v2171_v39  ;;  %6994 = vpow2.f32 %v3366_v34  ;;  %v5283_v39 = vrot.slane %v10509_v38, 4  ;;  %v10808_v34 = vadd.f32 %v5278_v24, %v5277_v17  ;;  %v1692_v47 = vadd.f32 %v1691_v20, %v8368_v28 }
 0x5ee   : > { %6996 = vpow2.f32 %v3368_v4  ;;  %v2944_v40 = vrot.slane %v2943_v23, 2  ;;  %v10813_v15 = vadd.f32 %v3764_v14, %v3763_v50  ;;  %v4626_v14 = vor.u32 1.1754944e-38, %v4625_v48 }
 0x5ef   : > { %v10804_v52 = vpop.f32.mrf.mxu1  ;;  %v5280_v48 = vrot.slane %v10808_v34, 1 }
 0x5f0   : > { %v2945_v9 = vmax.f32 %v2943_v23, %v2944_v40  ;;  %v5291_v23 = vadd.f32 %v5290_v51, %v10542_v21  ;;  %v5297_v21 = vrot.slane %v10570_v25, 4  ;;  %6998 = vrcp.f32 %v10813_v15 }
 0x5f1   : > { %vm4635_vm5 = vweird.f32 %v10813_v15 }
 0x5f2   : > { %v2946_v36 = vrot.slane %v2945_v9, 1 }
 0x5f3   : > { %v10793_v43 = vpop.eup %6994 }
 0x5f4   : > { %v10800_v56 = vpop.eup %6996  ;;  %v2947_v17 = vmax.f32 %v2945_v9, %v2946_v36  ;;  %v1694_v57 = vpop.f32.mrf.mxu3 }
 0x5f5   : > { %2570 = vmatmul.f32.gmra.mxu1 %v10383_v55  ;;  %v4602_v55 = vadd.f32 %v10753_v3, %v4601_v5  ;;  %v3766_v4 = vadd.f32 %v10800_v56, %v10793_v43 }
 0x5f6   : > { %v3144_v50 = vsub.f32 %v10766_v54, %v2947_v17  ;;  %v3145_v42 = vsub.f32 %v10775_v7, %v2947_v17 }
 0x5f7   : > { %v4606_v58 = vsel %vm10789_vm7, %v10753_v3, %v4602_v55  ;;  %v5284_v3 = vadd.f32 %v5283_v39, %v10509_v38  ;;  %v3767_v62 = vrot.slane %v3766_v4, 4  ;;  %v4623_v55 = vand.u32 2147483647, %v10768_v35  ;;  %v10827_v54 = vpop.f32.mrf.mxu1 }
 0x5f8   : > { %v4611_v5 = vsel %vm4608_vm8, %v4610_v18, %v4606_v58  ;;  %v3370_v20 = vmul.f32 1.442695, %v3144_v50  ;;  %v1695_v35 = vadd.f32 %v1694_v57, %v8368_v28  ;;  %v12021_v50 = vld [vmem:[#allocation80_spill] sm:$0xff] }
 0x5f9   : > { %v3768_v24 = vadd.f32 %v3767_v62, %v3766_v4  ;;  %v4612_v38 = vmul.f32 %v10693_v59, %v4611_v5  ;;  %v4613_v39 = vmul.f32 %v10695_v11, %v4611_v5  ;;  %vm4624_vm14 = vcmp.eq.f32.partialorder %v4623_v55, 8.507059e+37  ;;  %v10838_v55 = vpop.eup %6998 }
 0x5fa   : > { %v3372_v11 = vmul.f32 1.442695, %v3145_v42  ;;  %7000 = vpow2.f32 %v3370_v20  ;;  %v5285_v30 = vrot.slane %v5284_v3, 2  ;;  %v5292_v4 = vrot.slane %v5291_v23, 2 }
 0x5fb   : > { %v3769_v59 = vrot.slane %v3768_v24, 2  ;;  %v4992_v7 = vmul.f32 %v4612_v38, %v1000_v31  ;;  %v4993_v51 = vmul.f32 %v4613_v39, %v1692_v47  ;;  %v5298_v31 = vadd.f32 %v5297_v21, %v10570_v25 }
 0x5fc   : > { %7002 = vpow2.f32 %v3372_v11  ;;  %v2175_v62 = vmul.f32 %v10423_v32, %v871_v26  ;;  %v10846_v25 = vadd.f32 %v12021_v50, %v11957_v22  ;;  %v10850_v32 = vadd.f32 %v5292_v4, %v5291_v23 }
 0x5fd   : > { %2573 = vmatmul.f32.gmra.mxu1 %v2173_v44  ;;  %v4617_v44 = vmul.f32 %v6993_v0, %v4616_v61  ;;  %v3770_v61 = vadd.f32 %v3769_v59, %v3768_v24  ;;  %v5345_v47 = vadd.f32 %v4993_v51, %v4992_v7  ;;  %v10848_v24 = vadd.f32 %v5285_v30, %v5284_v3 }
 0x5fe   : > { %v5299_v57 = vrot.slane %v5298_v31, 2  ;;  %v10864_v11 = vadd.f32 %v5280_v48, %v10808_v34  ;;  %v5294_v34 = vrot.slane %v10850_v32, 1  ;;  %v4641_v4 = vand.u32 2147483648, %v10813_v15 }
 0x5ff   : > { %v4618_v40 = vadd.f32 %v6993_v0, %v4617_v44  ;;  %v10869_v7 = vpop.f32.mrf.mxu1  ;;  %v5346_v51 = vrot.slane %v5345_v47, 4  ;;  %vm4636_vm4 = vweird.f32 %v10838_v55 }
 0x600   : > { %v10852_v42 = vpop.eup %7000  ;;  %vm4637_vm6 = vmor %vm4635_vm5, %vm4636_vm4  ;;  %v4642_v50 = vor.u32 1.1754944e-38, %v4641_v4 }
 0x601   : > { %v4622_v58 = vsel %vm4621_vm13, %v6993_v0, %v4618_v40  ;;  %v12019_v0 = vld [vmem:[#allocation78_spill] sm:$0xff]  ;;  %v12022_v40 = vld [vmem:[#allocation99_spill] sm:$0xff] }
 0x602   : > { %v4627_v18 = vsel %vm4624_vm14, %v4626_v14, %v4622_v58  ;;  %v1003_v36 = vadd.f32 %v12019_v0, %v11957_v22  ;;  %v10856_v21 = vadd.f32 %v12022_v40, %v11980_v60  ;;  %v3771_v14 = vrot.slane %v3770_v61, 1  ;;  %v10861_v20 = vpop.eup %7002  ;;  %v1696_v0 = vpop.f32.mrf.mxu3 }
 0x603   : > { %v4628_v9 = vmul.f32 %v10727_v33, %v4627_v18  ;;  %v4629_v41 = vmul.f32 %v10730_v10, %v4627_v18  ;;  %v5332_v33 = vrot.slane %v10725_v19, 4  ;;  %v12020_v10 = vld [vmem:[#allocation96_spill] sm:$0xff]  ;;  %v4631_v58 = vmul.f32 %v10838_v55, %v10813_v15 }
 0x604   : > { %v874_v44 = vadd.f32 %v12020_v10, %v11980_v60  ;;  %v5339_v60 = vrot.slane %v10758_v53, 4  ;;  %v10877_v30 = vadd.f32 %v3771_v14, %v3770_v61 }
 0x605   : > { %2576 = vmatmul.f32.gmra.mxu1 %v10403_v27  ;;  %v2948_v27 = vmax.f32 %v10804_v52, %v10827_v54  ;;  %v4994_v38 = vmul.f32 %v4628_v9, %v1003_v36  ;;  %v4995_v39 = vmul.f32 %v4629_v41, %v1695_v35  ;;  %v5333_v3 = vadd.f32 %v5332_v33, %v10725_v19 }
 0x606   : > { %v10859_v59 = vmul.f32 %v10441_v1, %v874_v44  ;;  %v3773_v1 = vadd.f32 %v10861_v20, %v10852_v42  ;;  %v4632_v9 = vsub.f32 1.0, %v4631_v58  ;;  %v5300_v19 = vadd.f32 %v5299_v57, %v5298_v31 }
 0x607   : > { %v2949_v5 = vrot.slane %v2948_v27, 4  ;;  %v5352_v18 = vadd.f32 %v4995_v39, %v4994_v38  ;;  %v5304_v41 = vrot.slane %v10599_v8, 4  ;;  %v5334_v48 = vrot.slane %v5333_v3, 2 }
 0x608   : > { %v4633_v36 = vmul.f32 %v10838_v55, %v4632_v9  ;;  %v5340_v33 = vadd.f32 %v5339_v60, %v10758_v53  ;;  %7004 = vrcp.f32 %v10877_v30  ;;  %v3774_v38 = vrot.slane %v3773_v1, 4 }
 0x609   : > { %v2950_v17 = vmax.f32 %v2948_v27, %v2949_v5  ;;  %v5287_v27 = vrot.slane %v10848_v24, 1  ;;  %v5353_v10 = vrot.slane %v5352_v18, 4  ;;  %v1697_v39 = vadd.f32 %v1696_v0, %v8368_v28  ;;  %v12023_v0 = vld [vmem:[#allocation82_spill] sm:$0xff] }
 0x60a   : > { %v4634_v44 = vadd.f32 %v10838_v55, %v4633_v36  ;;  %v5301_v58 = vrot.slane %v5300_v19, 1  ;;  %v5305_v60 = vadd.f32 %v5304_v41, %v10599_v8  ;;  %vm4651_vm10 = vweird.f32 %v10877_v30 }
 0x60b   : > { %v2951_v26 = vrot.slane %v2950_v17, 2  ;;  %v5354_v57 = vadd.f32 %v5353_v10, %v5352_v18  ;;  %v10904_v18 = vadd.f32 %v12023_v0, %v11957_v22 }
 0x60d   : > { %2579 = vmatmul.f32.gmra.mxu1 %v2175_v62  ;;  %v2952_v23 = vmax.f32 %v2950_v17, %v2951_v26  ;;  %v4639_v62 = vand.u32 2147483647, %v10813_v15  ;;  %v5347_v17 = vadd.f32 %v5346_v51, %v5345_v47  ;;  %v4638_v26 = vsel %vm4637_vm6, %v10838_v55, %v4634_v44 }
 0x60e   : > { %v5335_v51 = vadd.f32 %v5334_v48, %v5333_v3  ;;  %v5355_v41 = vrot.slane %v5354_v57, 2  ;;  %v10919_v48 = vadd.f32 %v5301_v58, %v5300_v19  ;;  %v4655_v58 = vand.u32 2147483647, %v10877_v30 }
 0x60f   : > { %v2953_v35 = vrot.slane %v2952_v23, 1  ;;  %vm4640_vm7 = vcmp.eq.f32.partialorder %v4639_v62, 8.507059e+37  ;;  %v10917_v62 = vadd.f32 %v5294_v34, %v10850_v32 }
 0x610   : > { %v4643_v40 = vsel %vm4640_vm7, %v4642_v50, %v4638_v26  ;;  %v5356_v44 = vadd.f32 %v5355_v41, %v5354_v57  ;;  %v1699_v57 = vpop.f32.mrf.mxu3  ;;  %vm4656_vm13 = vcmp.eq.f32.partialorder %v4655_v58, 8.507059e+37 }
 0x611   : > { %v2954_v5 = vmax.f32 %v2952_v23, %v2953_v35  ;;  %v4644_v14 = vmul.f32 %v10756_v6, %v4643_v40  ;;  %v4645_v23 = vmul.f32 %v10760_v49, %v4643_v40  ;;  %v3775_v35 = vadd.f32 %v3774_v38, %v3773_v1 }
 0x612   : > { %v10907_v6 = vadd.f32 %v5287_v27, %v10848_v24  ;;  %v5513_v1 = vpack.c.bf16 %v10864_v11, %v10864_v11  ;;  %v5515_v50 = vpack.c.bf16 %v10917_v62, %v10917_v62  ;;  %v1700_v41 = vadd.f32 %v1699_v57, %v8368_v28 }
 0x613   : > { %v3146_v31 = vsub.f32 %v10804_v52, %v2954_v5  ;;  %v3147_v61 = vsub.f32 %v10827_v54, %v2954_v5  ;;  %v5341_v52 = vrot.slane %v5340_v33, 2  ;;  %v5348_v54 = vrot.slane %v5347_v17, 2  ;;  %v10900_v5 = vpop.eup %7004 }
 0x614   : > { %v4996_v9 = vmul.f32 %v4644_v14, %v10846_v25  ;;  %v4997_v4 = vmul.f32 %v4645_v23, %v1697_v39  ;;  %v10912_v25 = vmul.f32 %v10476_v2, %v10856_v21  ;;  %v5514_v2 = vpack.c.bf16 %v10907_v6, %v10907_v6 }
 0x615   : > { %2582 = vmatmul.f32.gmra.mxu1 %v10433_v12  ;;  %v3374_v53 = vmul.f32 1.442695, %v3146_v31  ;;  %v3376_v47 = vmul.f32 1.442695, %v3147_v61  ;;  %v10892_v12 = vpop.f32.mrf.mxu1  ;;  %v5342_v49 = vadd.f32 %v5341_v52, %v5340_v33  ;;  %v5349_v8 = vadd.f32 %v5348_v54, %v5347_v17 }
 0x616   : > { %v2955_v15 = vmax.f32 %v10869_v7, %v10892_v12  ;;  %v5359_v3 = vadd.f32 %v4997_v4, %v4996_v9  ;;  %v5306_v33 = vrot.slane %v5305_v60, 2  ;;  %v3776_v17 = vrot.slane %v3775_v35, 2 }
 0x617   : > { %7006 = vpow2.f32 %v3374_v53  ;;  %v5343_v21 = vrot.slane %v5342_v49, 1  ;;  %v4647_v32 = vmul.f32 %v10900_v5, %v10877_v30  ;;  %v5350_v19 = vrot.slane %v5349_v8, 1 }
 0x618   : > { %7008 = vpow2.f32 %v3376_v47  ;;  %v2956_v55 = vrot.slane %v2955_v15, 4  ;;  %v5360_v10 = vrot.slane %v5359_v3, 4  ;;  %v5516_v53 = vpack.c.bf16 %v10919_v48, %v10919_v48 }
 0x619   : > { %v4648_v26 = vsub.f32 1.0, %v4647_v32  ;;  %v10937_v52 = vadd.f32 %v5306_v33, %v5305_v60  ;;  %v3777_v40 = vadd.f32 %v3776_v17, %v3775_v35  ;;  %vm4652_vm8 = vweird.f32 %v10900_v5 }
 0x61a   : > { %v2957_v36 = vmax.f32 %v2955_v15, %v2956_v55  ;;  %v5361_v39 = vadd.f32 %v5360_v10, %v5359_v3  ;;  %v4657_v15 = vand.u32 2147483648, %v10877_v30  ;;  %v5344_v55 = vadd.f32 %v5343_v21, %v5342_v49  ;;  %vm4653_vm11 = vmor %vm4651_vm10, %vm4652_vm8 }
 0x61b   : > { %v4649_v23 = vmul.f32 %v10900_v5, %v4648_v26  ;;  %v5351_v9 = vadd.f32 %v5350_v19, %v5349_v8  ;;  %v5357_v4 = vrot.slane %v5356_v44, 1  ;;  %v3778_v6 = vrot.slane %v3777_v40, 1 }
 0x61c   : > { %v2958_v24 = vrot.slane %v2957_v36, 2  ;;  %v5362_v0 = vrot.slane %v5361_v39, 2  ;;  %v4658_v3 = vor.u32 1.1754944e-38, %v4657_v15  ;;  %v5522_v17 = vpack.c.bf16 %v5344_v55, %v5344_v55 }
 0x61d   : > { %2585 = vmatmul.f32.gmra.mxu1 %v10859_v59  ;;  %v10921_v27 = vpop.eup %7006  ;;  %v5336_v59 = vrot.slane %v5335_v51, 1  ;;  %v10929_v34 = vpop.f32.mrf.mxu1  ;;  %v4650_v35 = vadd.f32 %v10900_v5, %v4649_v23  ;;  %v5358_v30 = vadd.f32 %v5357_v4, %v5356_v44  ;;  %v5523_v10 = vpack.c.bf16 %v5351_v9, %v5351_v9 }
 0x61e   : > { %v10923_v31 = vpop.eup %7008  ;;  %v2959_v61 = vmax.f32 %v2957_v36, %v2958_v24  ;;  %v5363_v48 = vadd.f32 %v5362_v0, %v5361_v39  ;;  %v5642_v44 = vunpack.c.l.b16 %v5513_v1 }
 0x61f   : > { %v3780_v38 = vadd.f32 %v10923_v31, %v10921_v27  ;;  %v5337_v54 = vadd.f32 %v5336_v59, %v5335_v51  ;;  %v4654_v49 = vsel %vm4653_vm11, %v10900_v5, %v4650_v35  ;;  %v10956_v5 = vadd.f32 %v3778_v6, %v3777_v40 }
 0x620   : > { %v2960_v47 = vrot.slane %v2959_v61, 1  ;;  %v5364_v39 = vrot.slane %v5363_v48, 1  ;;  %v5644_v40 = vunpack.c.l.b16 %v5515_v50  ;;  %v5652_v23 = vunpack.c.l.b16 %v5523_v10 }
 0x621   : > { %v3781_v36 = vrot.slane %v3780_v38, 4  ;;  %vm4667_vm4 = vweird.f32 %v10956_v5 }
 0x622   : > { %v2961_v14 = vmax.f32 %v2959_v61, %v2960_v47  ;;  %v5643_v47 = vunpack.c.l.b16 %v5514_v2  ;;  %v5365_v55 = vadd.f32 %v5364_v39, %v5363_v48  ;;  %v5708_v2 = vsel %vm5675_vm12, %v5642_v44, %v10460_v29 }
 0x623   : > { %v3782_v61 = vadd.f32 %v3781_v36, %v3780_v38  ;;  %v4671_v44 = vand.u32 2147483647, %v10956_v5 }
 0x624   : > { %v3148_v60 = vsub.f32 %v10869_v7, %v2961_v14  ;;  %v3149_v51 = vsub.f32 %v10892_v12, %v2961_v14  ;;  %v5521_v7 = vpack.c.bf16 %v5337_v54, %v5337_v54  ;;  %v4659_v12 = vsel %vm4656_vm13, %v4658_v3, %v4654_v49 }
 0x625   : > { %2588 = vmatmul.f32.gmra.mxu1 %v10454_v13  ;;  %v10950_v8 = vpop.f32.mrf.mxu1  ;;  %v4660_v33 = vmul.f32 %v10793_v43, %v4659_v12  ;;  %v4661_v59 = vmul.f32 %v10800_v56, %v4659_v12  ;;  %v5308_v43 = vrot.slane %v10937_v52, 1  ;;  %v5524_v54 = vpack.c.bf16 %v5358_v30, %v5358_v30 }
 0x626   : > { %v3378_v62 = vmul.f32 1.442695, %v3148_v60  ;;  %v3380_v13 = vmul.f32 1.442695, %v3149_v51  ;;  %v2962_v24 = vmax.f32 %v10929_v34, %v10950_v8  ;;  %v5650_v26 = vunpack.c.l.b16 %v5521_v7 }
 0x627   : > { %v4998_v32 = vmul.f32 %v4660_v33, %v10904_v18  ;;  %v4999_v19 = vmul.f32 %v4661_v59, %v1700_v41  ;;  %v5645_v14 = vunpack.c.l.b16 %v5516_v53  ;;  %v5651_v18 = vunpack.c.l.b16 %v5522_v17 }
 0x628   : > { %7010 = vpow2.f32 %v3378_v62  ;;  %v2963_v21 = vrot.slane %v2962_v24, 4  ;;  %v5309_v58 = vadd.f32 %v5308_v43, %v10937_v52  ;;  %v5653_v9 = vunpack.c.l.b16 %v5524_v54  ;;  %v1701_v43 = vpop.f32.mrf.mxu3 }
 0x629   : > { %7012 = vpow2.f32 %v3380_v13  ;;  %v5366_v15 = vadd.f32 %v4999_v19, %v4998_v32  ;;  %v5709_v53 = vsel %vm5677_vm0, %v5643_v47, %v5708_v2  ;;  %v5715_v4 = vsel %vm5675_vm12, %v5650_v26, %v10723_v45 }
 0x62a   : > { %v2964_v56 = vmax.f32 %v2962_v24, %v2963_v21  ;;  %7014 = vrcp.f32 %v10956_v5  ;;  %v5517_v60 = vpack.c.bf16 %v5309_v58, %v5309_v58  ;;  %v5525_v51 = vpack.c.bf16 %v5365_v55, %v5365_v55 }
 0x62b   : > { %v5710_v35 = vsel %vm5679_vm1, %v5644_v40, %v5709_v53  ;;  %v5716_v36 = vsel %vm5677_vm0, %v5651_v18, %v5715_v4  ;;  %v5367_v21 = vrot.slane %v5366_v15, 4  ;;  %v1702_v40 = vadd.f32 %v1701_v43, %v8368_v28 }
 0x62c   : > { %v2965_v38 = vrot.slane %v2964_v56, 2  ;;  %v5711_v52 = vsel %vm5681_vm2, %v5645_v14, %v5710_v35  ;;  %v5646_v41 = vunpack.c.l.b16 %v5517_v60  ;;  %v5654_v3 = vunpack.c.l.b16 %v5525_v51 }
 0x62d   : > { %2591 = vmatmul.f32.gmra.mxu1 %v10912_v25  ;;  %v3783_v25 = vrot.slane %v3782_v61, 2  ;;  %v5717_v62 = vsel %vm5679_vm1, %v5652_v23, %v5716_v36  ;;  %v10988_v10 = vpop.f32.mrf.mxu1  ;;  %v5368_v39 = vadd.f32 %v5367_v21, %v5366_v15  ;;  %vm4672_vm6 = vcmp.eq.f32.partialorder %v4671_v44, 8.507059e+37  ;;  %v12024_v23 = vld [vmem:[#allocation84_spill] sm:$0xff] }
 0x62e   : > { %v10964_v57 = vpop.eup %7010  ;;  %v2966_v1 = vmax.f32 %v2964_v56, %v2965_v38  ;;  %v5718_v45 = vsel %vm5681_vm2, %v5653_v9, %v5717_v62  ;;  %v5712_v48 = vsel %vm5683_vm3, %v5646_v41, %v5711_v52  ;;  %v1010_v15 = vadd.f32 %v12024_v23, %v11957_v22 }
 0x62f   : > { %v10967_v11 = vpop.eup %7012  ;;  %v3784_v6 = vadd.f32 %v3783_v25, %v3782_v61  ;;  %v5719_v12 = vsel %vm5683_vm3, %v5654_v3, %v5718_v45 }
 0x630   : > { %v3787_v50 = vadd.f32 %v10967_v11, %v10964_v57  ;;  %v2967_v0 = vrot.slane %v2966_v1, 1  ;;  %v7015_v13 = vpop.eup %7014  ;;  %v5736_v30 = vpack.c.b16 %v5719_v12, %v5712_v48 }
 0x631   : > { %v3785_v24 = vrot.slane %v3784_v6, 1  ;;  %v4663_v17 = vmul.f32 %v7015_v13, %v10956_v5  ;;  %vm4668_vm14 = vweird.f32 %v7015_v13 }
 0x632   : > { %v2968_v29 = vmax.f32 %v2966_v1, %v2967_v0  ;;  %v3788_v33 = vrot.slane %v3787_v50, 4  ;;  %5808 = vmatmul.bf16.gmra.mxu2 %v5736_v30  ;;  %vm4669_vm5 = vmor %vm4667_vm4, %vm4668_vm14  ;;  %v5369_v1 = vrot.slane %v5368_v39, 2  ;;  %v1704_v30 = vpop.f32.mrf.mxu3 }
 0x633   : > { %v4664_v61 = vsub.f32 1.0, %v4663_v17 }
 0x634   : > { %v3150_v49 = vsub.f32 %v10929_v34, %v2968_v29  ;;  %v3151_v7 = vsub.f32 %v10950_v8, %v2968_v29  ;;  %v10990_v34 = vadd.f32 %v3785_v24, %v3784_v6  ;;  %v4673_v8 = vand.u32 2147483648, %v10956_v5 }
 0x635   : > { %2594 = vmatmul.f32.gmra.mxu1 %v10481_v63  ;;  %v3789_v32 = vadd.f32 %v3788_v33, %v3787_v50  ;;  %v4665_v19 = vmul.f32 %v7015_v13, %v4664_v61  ;;  %v2535_v38 = vpop.f32.mrf.mxu1  ;;  %v5370_v51 = vadd.f32 %v5369_v1, %v5368_v39  ;;  %v1705_v39 = vadd.f32 %v1704_v30, %v8368_v28 }
 0x636   : > { %v3382_v63 = vmul.f32 1.442695, %v3150_v49  ;;  %v3384_v59 = vmul.f32 1.442695, %v3151_v7  ;;  %v4674_v47 = vor.u32 1.1754944e-38, %v4673_v8  ;;  %v2969_v5 = vmax.f32 %v10988_v10, %v2535_v38 }
 0x637   : > { %v4666_v56 = vadd.f32 %v7015_v13, %v4665_v19  ;;  %v3790_v54 = vrot.slane %v3789_v32, 2  ;;  %v4689_v12 = vand.u32 2147483648, %v10990_v34  ;;  %vm4683_vm8 = vweird.f32 %v10990_v34 }
 0x638   : > { %7016 = vpow2.f32 %v3382_v63  ;;  %v2970_v9 = vrot.slane %v2969_v5, 4  ;;  %v4687_v63 = vand.u32 2147483647, %v10990_v34 }
 0x639   : > { %7018 = vpow2.f32 %v3384_v59  ;;  %v4670_v14 = vsel %vm4669_vm5, %v7015_v13, %v4666_v56  ;;  %v3791_v50 = vadd.f32 %v3790_v54, %v3789_v32  ;;  %v12025_v59 = vld [vmem:[#allocation86_spill] sm:$0xff]  ;;  %v4690_v56 = vor.u32 1.1754944e-38, %v4689_v12 }
 0x63a   : > { %7020 = vrcp.f32 %v10990_v34  ;;  %v4675_v25 = vsel %vm4672_vm6, %v4674_v47, %v4670_v14  ;;  %v2971_v60 = vmax.f32 %v2969_v5, %v2970_v9  ;;  %v1013_v17 = vadd.f32 %v12025_v59, %v11957_v22  ;;  %v1706_v30 = vpop.f32.mrf.mxu3 }
 0x63b   : > { %v4676_v55 = vmul.f32 %v10852_v42, %v4675_v25  ;;  %v4677_v2 = vmul.f32 %v10861_v20, %v4675_v25  ;;  %v3792_v36 = vrot.slane %v3791_v50, 1  ;;  %v5371_v42 = vrot.slane %v5370_v51, 1 }
 0x63c   : > { %v2972_v52 = vrot.slane %v2971_v60, 2  ;;  %vm4688_vm11 = vcmp.eq.f32.partialorder %v4687_v63, 8.507059e+37 }
 0x63d   : > { %v5000_v53 = vmul.f32 %v4676_v55, %v1010_v15  ;;  %v5001_v4 = vmul.f32 %v4677_v2, %v1702_v40  ;;  %v11009_v62 = vpop.f32.mrf.mxu1  ;;  %v11011_v7 = vadd.f32 %v3792_v36, %v3791_v50  ;;  %v5372_v21 = vadd.f32 %v5371_v42, %v5370_v51 }
 0x63e   : > { %v10996_v26 = vpop.eup %7016  ;;  %v2973_v41 = vmax.f32 %v2971_v60, %v2972_v52 }
 0x63f   : > { %v10999_v18 = vpop.eup %7018  ;;  %v5373_v6 = vadd.f32 %v5001_v4, %v5000_v53  ;;  %7022 = vrcp.f32 %v11011_v7  ;;  %v5526_v23 = vpack.c.bf16 %v5372_v21, %v5372_v21  ;;  %v4705_v12 = vand.u32 2147483648, %v11011_v7 }
 0x640   : > { %v3794_v58 = vadd.f32 %v10999_v18, %v10996_v26  ;;  %v7021_v0 = vpop.eup %7020  ;;  %v2974_v45 = vrot.slane %v2973_v41, 1  ;;  %vm4699_vm14 = vweird.f32 %v11011_v7 }
 0x641   : > { %v5374_v29 = vrot.slane %v5373_v6, 4  ;;  %v4679_v3 = vmul.f32 %v7021_v0, %v10990_v34  ;;  %vm4684_vm7 = vweird.f32 %v7021_v0  ;;  %v5655_v50 = vunpack.c.l.b16 %v5526_v23 }
 0x642   : > { %v3795_v35 = vrot.slane %v3794_v58, 4  ;;  %v2975_v24 = vmax.f32 %v2973_v41, %v2974_v45  ;;  %vm4685_vm10 = vmor %vm4683_vm8, %vm4684_vm7 }
 0x643   : > { %v5375_v20 = vadd.f32 %v5374_v29, %v5373_v6  ;;  %v4680_v49 = vsub.f32 1.0, %v4679_v3 }
 0x644   : > { %v3796_v13 = vadd.f32 %v3795_v35, %v3794_v58  ;;  %v3152_v32 = vsub.f32 %v10988_v10, %v2975_v24  ;;  %v3153_v19 = vsub.f32 %v2535_v38, %v2975_v24 }
 0x645   : > { %v5376_v48 = vrot.slane %v5375_v20, 2  ;;  %v4681_v33 = vmul.f32 %v7021_v0, %v4680_v49  ;;  %v2541_v14 = vpop.f32.mrf.mxu1  ;;  %v7023_v9 = vpop.eup %7022 }
 0x646   : > { %v3797_v61 = vrot.slane %v3796_v13, 2  ;;  %v3386_v47 = vmul.f32 1.442695, %v3152_v32  ;;  %v3388_v54 = vmul.f32 1.442695, %v3153_v19  ;;  %v2976_v10 = vmax.f32 %v11009_v62, %v2541_v14 }
 0x647   : > { %v5377_v8 = vadd.f32 %v5376_v48, %v5375_v20  ;;  %v4682_v44 = vadd.f32 %v7021_v0, %v4681_v33  ;;  %v4695_v36 = vmul.f32 %v7023_v9, %v11011_v7  ;;  %v4703_v48 = vand.u32 2147483647, %v11011_v7 }
 0x648   : > { %v3798_v38 = vadd.f32 %v3797_v61, %v3796_v13  ;;  %7024 = vpow2.f32 %v3386_v47  ;;  %v2977_v58 = vrot.slane %v2976_v10, 4  ;;  %vm4700_vm13 = vweird.f32 %v7023_v9 }
 0x649   : > { %v5378_v43 = vrot.slane %v5377_v8, 1  ;;  %v4686_v40 = vsel %vm4685_vm10, %v7021_v0, %v4682_v44  ;;  %7026 = vpow2.f32 %v3388_v54  ;;  %v4696_v20 = vsub.f32 1.0, %v4695_v36  ;;  %vm4701_vm4 = vmor %vm4699_vm14, %vm4700_vm13 }
 0x64a   : > { %v4691_v25 = vsel %vm4688_vm11, %v4690_v56, %v4686_v40  ;;  %v2978_v4 = vmax.f32 %v2976_v10, %v2977_v58  ;;  %v3799_v0 = vrot.slane %v3798_v38, 1  ;;  %v1707_v32 = vadd.f32 %v1706_v30, %v8368_v28 }
 0x64b   : > { %v5379_v15 = vadd.f32 %v5378_v43, %v5377_v8  ;;  %v4692_v34 = vmul.f32 %v10921_v27, %v4691_v25  ;;  %v4693_v5 = vmul.f32 %v10923_v31, %v4691_v25  ;;  %v4697_v33 = vmul.f32 %v7023_v9, %v4696_v20  ;;  %v1709_v20 = vpop.f32.mrf.mxu3 }
 0x64c   : > { %v2979_v35 = vrot.slane %v2978_v4, 2  ;;  %v11032_v41 = vadd.f32 %v3799_v0, %v3798_v38  ;;  %vm4704_vm5 = vcmp.eq.f32.partialorder %v4703_v48, 8.507059e+37  ;;  %v4706_v19 = vor.u32 1.1754944e-38, %v4705_v12 }
 0x64d   : > { %v5527_v1 = vpack.c.bf16 %v5379_v15, %v5379_v15  ;;  %v5002_v55 = vmul.f32 %v4692_v34, %v1013_v17  ;;  %v5003_v2 = vmul.f32 %v4693_v5, %v1705_v39  ;;  %v11030_v29 = vpop.f32.mrf.mxu1  ;;  %v4698_v61 = vadd.f32 %v7023_v9, %v4697_v33 }
 0x64e   : > { %v11025_v6 = vpop.eup %7024  ;;  %v2980_v31 = vmax.f32 %v2978_v4, %v2979_v35  ;;  %7028 = vrcp.f32 %v11032_v41  ;;  %vm4715_vm7 = vweird.f32 %v11032_v41  ;;  %v1710_v30 = vadd.f32 %v1709_v20, %v8368_v28 }
 0x64f   : > { %v5656_v53 = vunpack.c.l.b16 %v5527_v1  ;;  %v5380_v60 = vadd.f32 %v5003_v2, %v5002_v55  ;;  %v11027_v27 = vpop.eup %7026  ;;  %v4702_v56 = vsel %vm4701_vm4, %v7023_v9, %v4698_v61 }
 0x650   : > { %v3801_v3 = vadd.f32 %v11027_v27, %v11025_v6  ;;  %v2981_v13 = vrot.slane %v2980_v31, 1  ;;  %v4707_v40 = vsel %vm4704_vm5, %v4706_v19, %v4702_v56 }
 0x651   : > { %v5720_v51 = vsel %vm5671_vm15, %v5656_v53, %v5655_v50  ;;  %v5381_v52 = vrot.slane %v5380_v60, 4  ;;  %v4708_v7 = vmul.f32 %v10964_v57, %v4707_v40  ;;  %v4709_v15 = vmul.f32 %v10967_v11, %v4707_v40 }
 0x652   : > { %v3802_v45 = vrot.slane %v3801_v3, 4  ;;  %v2982_v24 = vmax.f32 %v2980_v31, %v2981_v13 }
 0x653   : > { %v5382_v42 = vadd.f32 %v5381_v52, %v5380_v60  ;;  %v5005_v1 = vmul.f32 %v4709_v15, %v1707_v32 }
 0x654   : > { %v3803_v63 = vadd.f32 %v3802_v45, %v3801_v3  ;;  %v3154_v17 = vsub.f32 %v11009_v62, %v2982_v24  ;;  %v3155_v21 = vsub.f32 %v2541_v14, %v2982_v24  ;;  %v12026_v62 = vld [vmem:[#allocation88_spill] sm:$0xff]  ;;  %v7029_v25 = vpop.eup %7028  ;;  %v4719_v3 = vand.u32 2147483647, %v11032_v41 }
 0x655   : > { %v5383_v49 = vrot.slane %v5382_v42, 2  ;;  %v2547_v47 = vpop.f32.mrf.mxu1  ;;  %v1015_v14 = vadd.f32 %v12026_v62, %v11957_v22  ;;  %v4711_v0 = vmul.f32 %v7029_v25, %v11032_v41  ;;  %vm4716_vm6 = vweird.f32 %v7029_v25 }
 0x656   : > { %v3804_v44 = vrot.slane %v3803_v63, 2  ;;  %v3390_v43 = vmul.f32 1.442695, %v3154_v17  ;;  %v3392_v39 = vmul.f32 1.442695, %v3155_v21  ;;  %v2983_v23 = vmax.f32 %v11030_v29, %v2547_v47  ;;  %vm4717_vm8 = vmor %vm4715_vm7, %vm4716_vm6 }
 0x657   : > { %v5384_v59 = vadd.f32 %v5383_v49, %v5382_v42  ;;  %v5004_v5 = vmul.f32 %v4708_v7, %v1015_v14  ;;  %v4712_v31 = vsub.f32 1.0, %v4711_v0  ;;  %v4721_v42 = vand.u32 2147483648, %v11032_v41 }
 0x658   : > { %7030 = vpow2.f32 %v3390_v43  ;;  %v2984_v38 = vrot.slane %v2983_v23, 4  ;;  %v3805_v34 = vadd.f32 %v3804_v44, %v3803_v63  ;;  %vm4720_vm10 = vcmp.eq.f32.partialorder %v4719_v3, 8.507059e+37 }
 0x659   : > { %v5385_v8 = vrot.slane %v5384_v59, 1  ;;  %7032 = vpow2.f32 %v3392_v39  ;;  %v11047_v2 = vadd.f32 %v5005_v1, %v5004_v5  ;;  %v4713_v45 = vmul.f32 %v7029_v25, %v4712_v31 }
 0x65a   : > { %v2985_v55 = vmax.f32 %v2983_v23, %v2984_v38  ;;  %v3806_v57 = vrot.slane %v3805_v34, 1  ;;  %v4722_v33 = vor.u32 1.1754944e-38, %v4721_v42 }
 0x65b   : > { %v5386_v54 = vadd.f32 %v5385_v8, %v5384_v59  ;;  %v4714_v24 = vadd.f32 %v7029_v25, %v4713_v45 }
 0x65c   : > { %v2986_v50 = vrot.slane %v2985_v55, 2  ;;  %v11061_v36 = vadd.f32 %v3806_v57, %v3805_v34  ;;  %v1711_v57 = vpop.f32.mrf.mxu3 }
 0x65d   : > { %v5528_v10 = vpack.c.bf16 %v5386_v54, %v5386_v54  ;;  %v11057_v60 = vpop.f32.mrf.mxu1  ;;  %v4718_v21 = vsel %vm4717_vm8, %v7029_v25, %v4714_v24 }
 0x65e   : > { %v11052_v53 = vpop.eup %7030  ;;  %v2987_v11 = vmax.f32 %v2985_v55, %v2986_v50  ;;  %7034 = vrcp.f32 %v11061_v36  ;;  %v4723_v8 = vsel %vm4720_vm10, %v4722_v33, %v4718_v21  ;;  %v4737_v55 = vand.u32 2147483648, %v11061_v36 }
 0x65f   : > { %v5657_v58 = vunpack.c.l.b16 %v5528_v10  ;;  %v11054_v4 = vpop.eup %7032  ;;  %v4724_v41 = vmul.f32 %v10996_v26, %v4723_v8  ;;  %v4725_v44 = vmul.f32 %v10999_v18, %v4723_v8  ;;  %vm4731_vm13 = vweird.f32 %v11061_v36 }
 0x660   : > { %v3808_v35 = vadd.f32 %v11054_v4, %v11052_v53  ;;  %v2988_v52 = vrot.slane %v2987_v11, 1  ;;  %v4738_v3 = vor.u32 1.1754944e-38, %v4737_v55 }
 0x661   : > { %v11050_v9 = vsel %vm5673_vm9, %v5657_v58, %v5720_v51  ;;  %v4735_v58 = vand.u32 2147483647, %v11061_v36 }
 0x662   : > { %v3809_v51 = vrot.slane %v3808_v35, 4  ;;  %v2989_v13 = vmax.f32 %v2987_v11, %v2988_v52 }
 0x663   : > { %vm4736_vm4 = vcmp.eq.f32.partialorder %v4735_v58, 8.507059e+37 }
 0x664   : > { %v3810_v49 = vadd.f32 %v3809_v51, %v3808_v35  ;;  %v3156_v48 = vsub.f32 %v11030_v29, %v2989_v13  ;;  %v3157_v12 = vsub.f32 %v2547_v47, %v2989_v13  ;;  %v12027_v29 = vld [vmem:[#allocation90_spill] sm:$0xff]  ;;  %v5007_v47 = vmul.f32 %v4725_v44, %v1710_v30  ;;  %v7035_v54 = vpop.eup %7034 }
 0x665   : > { %v2553_v61 = vpop.f32.mrf.mxu1  ;;  %v1018_v19 = vadd.f32 %v12027_v29, %v11957_v22  ;;  %v4727_v26 = vmul.f32 %v7035_v54, %v11061_v36  ;;  %vm4732_vm11 = vweird.f32 %v7035_v54  ;;  %v1712_v51 = vadd.f32 %v1711_v57, %v8368_v28 }
 0x666   : > { %v3811_v63 = vrot.slane %v3810_v49, 2  ;;  %v3394_v59 = vmul.f32 1.442695, %v3156_v48  ;;  %v3396_v17 = vmul.f32 1.442695, %v3157_v12  ;;  %v2990_v32 = vmax.f32 %v11057_v60, %v2553_v61  ;;  %vm4733_vm14 = vmor %vm4731_vm13, %vm4732_vm11 }
 0x667   : > { %v5006_v56 = vmul.f32 %v4724_v41, %v1018_v19  ;;  %v4728_v34 = vsub.f32 1.0, %v4727_v26 }
 0x668   : > { %7036 = vpow2.f32 %v3394_v59  ;;  %v2991_v43 = vrot.slane %v2990_v32, 4  ;;  %v3812_v39 = vadd.f32 %v3811_v63, %v3810_v49 }
 0x669   : > { %7038 = vpow2.f32 %v3396_v17  ;;  %v11074_v23 = vadd.f32 %v5007_v47, %v5006_v56  ;;  %v4729_v11 = vmul.f32 %v7035_v54, %v4728_v34 }
 0x66a   : > { %v2992_v40 = vmax.f32 %v2990_v32, %v2991_v43  ;;  %v3813_v7 = vrot.slane %v3812_v39, 1 }
 0x66b   : > { %v4730_v31 = vadd.f32 %v7035_v54, %v4729_v11 }
 0x66c   : > { %v2993_v62 = vrot.slane %v2992_v40, 2  ;;  %v11085_v5 = vadd.f32 %v3813_v7, %v3812_v39 }
 0x66d   : > { %v11081_v10 = vpop.f32.mrf.mxu1  ;;  %v4734_v45 = vsel %vm4733_vm14, %v7035_v54, %v4730_v31 }
 0x66e   : > { %v11076_v14 = vpop.eup %7036  ;;  %v2994_v25 = vmax.f32 %v2992_v40, %v2993_v62  ;;  %7040 = vrcp.f32 %v11085_v5  ;;  %v4739_v48 = vsel %vm4736_vm4, %v4738_v3, %v4734_v45  ;;  %v4751_v40 = vand.u32 2147483647, %v11085_v5 }
 0x66f   : > { %v11078_v15 = vpop.eup %7038  ;;  %v4740_v36 = vmul.f32 %v11025_v6, %v4739_v48  ;;  %v4741_v30 = vmul.f32 %v11027_v27, %v4739_v48  ;;  %v4753_v62 = vand.u32 2147483648, %v11085_v5  ;;  %vm4747_vm6 = vweird.f32 %v11085_v5 }
 0x670   : > { %v3815_v18 = vadd.f32 %v11078_v15, %v11076_v14  ;;  %v2995_v38 = vrot.slane %v2994_v25, 1  ;;  %vm4752_vm8 = vcmp.eq.f32.partialorder %v4751_v40, 8.507059e+37 }
 0x671   : > { %v5009_v17 = vmul.f32 %v4741_v30, %v1712_v51  ;;  %v4754_v55 = vor.u32 1.1754944e-38, %v4753_v62 }
 0x672   : > { %v3816_v1 = vrot.slane %v3815_v18, 4  ;;  %v2996_v50 = vmax.f32 %v2994_v25, %v2995_v38  ;;  %v1714_v25 = vpop.f32.mrf.mxu3 }
 0x673   : > { %v1715_v58 = vadd.f32 %v1714_v25, %v8368_v28 }
 0x674   : > { %v3817_v0 = vadd.f32 %v3816_v1, %v3815_v18  ;;  %v3158_v35 = vsub.f32 %v11057_v60, %v2996_v50  ;;  %v3159_v52 = vsub.f32 %v2553_v61, %v2996_v50  ;;  %v12028_v60 = vld [vmem:[#allocation93_spill] sm:$0xff]  ;;  %v7041_v21 = vpop.eup %7040 }
 0x675   : > { %v2559_v49 = vpop.f32.mrf.mxu1  ;;  %v1020_v24 = vadd.f32 %v12028_v60, %v11957_v22  ;;  %v4743_v6 = vmul.f32 %v7041_v21, %v11085_v5  ;;  %vm4748_vm5 = vweird.f32 %v7041_v21 }
 0x676   : > { %v3818_v42 = vrot.slane %v3817_v0, 2  ;;  %v3398_v13 = vmul.f32 1.442695, %v3158_v35  ;;  %v3400_v20 = vmul.f32 1.442695, %v3159_v52  ;;  %v2997_v12 = vmax.f32 %v11081_v10, %v2559_v49  ;;  %vm4749_vm7 = vmor %vm4747_vm6, %vm4748_vm5 }
 0x677   : > { %v5008_v59 = vmul.f32 %v4740_v36, %v1020_v24  ;;  %v4744_v56 = vsub.f32 1.0, %v4743_v6 }
 0x678   : > { %7042 = vpow2.f32 %v3398_v13  ;;  %v2998_v33 = vrot.slane %v2997_v12, 4  ;;  %v3819_v63 = vadd.f32 %v3818_v42, %v3817_v0 }
 0x679   : > { %7044 = vpow2.f32 %v3400_v20  ;;  %v11098_v8 = vadd.f32 %v5009_v17, %v5008_v59  ;;  %v4745_v26 = vmul.f32 %v7041_v21, %v4744_v56 }
 0x67a   : > { %v2999_v61 = vmax.f32 %v2997_v12, %v2998_v33  ;;  %v3820_v19 = vrot.slane %v3819_v63, 1  ;;  %v1716_v6 = vpop.f32.mrf.mxu3 }
 0x67b   : > { %v4746_v1 = vadd.f32 %v7041_v21, %v4745_v26  ;;  %v1717_v62 = vadd.f32 %v1716_v6, %v8368_v28 }
 0x67c   : > { %v3000_v32 = vrot.slane %v2999_v61, 2  ;;  %v11109_v47 = vadd.f32 %v3820_v19, %v3819_v63 }
 0x67d   : > { %v11105_v43 = vpop.f32.mrf.mxu1  ;;  %v4750_v0 = vsel %vm4749_vm7, %v7041_v21, %v4746_v1 }
 0x67e   : > { %v11100_v29 = vpop.eup %7042  ;;  %v3001_v44 = vmax.f32 %v2999_v61, %v3000_v32  ;;  %7046 = vrcp.f32 %v11109_v47  ;;  %v4755_v52 = vsel %vm4752_vm8, %v4754_v55, %v4750_v0  ;;  %v4767_v32 = vand.u32 2147483647, %v11109_v47 }
 0x67f   : > { %v11102_v41 = vpop.eup %7044  ;;  %v4756_v5 = vmul.f32 %v11052_v53, %v4755_v52  ;;  %v4757_v3 = vmul.f32 %v11054_v4, %v4755_v52  ;;  %v4769_v19 = vand.u32 2147483648, %v11109_v47  ;;  %vm4763_vm11 = vweird.f32 %v11109_v47 }
 0x680   : > { %v3822_v27 = vadd.f32 %v11102_v41, %v11100_v29  ;;  %v3002_v39 = vrot.slane %v3001_v44, 1  ;;  %vm4768_vm14 = vcmp.eq.f32.partialorder %v4767_v32, 8.507059e+37 }
 0x681   : > { %v5011_v45 = vmul.f32 %v4757_v3, %v1715_v58 }
 0x682   : > { %v3823_v54 = vrot.slane %v3822_v27, 4  ;;  %v3003_v7 = vmax.f32 %v3001_v44, %v3002_v39 }
 0x684   : > { %v3824_v18 = vadd.f32 %v3823_v54, %v3822_v27  ;;  %v3160_v38 = vsub.f32 %v11081_v10, %v3003_v7  ;;  %v3161_v34 = vsub.f32 %v2559_v49, %v3003_v7  ;;  %v12029_v10 = vld [vmem:[#allocation95_spill] sm:$0xff]  ;;  %v7047_v49 = vpop.eup %7046  ;;  %v4770_v7 = vor.u32 1.1754944e-38, %v4769_v19 }
 0x685   : > { %v2565_v35 = vpop.f32.mrf.mxu1  ;;  %v1023_v51 = vadd.f32 %v12029_v10, %v11957_v22  ;;  %v4759_v53 = vmul.f32 %v7047_v49, %v11109_v47  ;;  %vm4764_vm10 = vweird.f32 %v7047_v49 }
 0x686   : > { %v3825_v50 = vrot.slane %v3824_v18, 2  ;;  %v3402_v57 = vmul.f32 1.442695, %v3160_v38  ;;  %v3404_v11 = vmul.f32 1.442695, %v3161_v34  ;;  %v3004_v31 = vmax.f32 %v11105_v43, %v2565_v35  ;;  %vm4765_vm13 = vmor %vm4763_vm11, %vm4764_vm10 }
 0x687   : > { %v5010_v20 = vmul.f32 %v4756_v5, %v1023_v51  ;;  %v4760_v17 = vsub.f32 1.0, %v4759_v53  ;;  %v7140_v51 = vmov 128.0  }
 0x688   : > { %7048 = vpow2.f32 %v3402_v57  ;;  %v3005_v42 = vrot.slane %v3004_v31, 4  ;;  %v3826_v13 = vadd.f32 %v3825_v50, %v3824_v18 }
 0x689   : > { %7050 = vpow2.f32 %v3404_v11  ;;  %v11122_v12 = vadd.f32 %v5011_v45, %v5010_v20  ;;  %v4761_v27 = vmul.f32 %v7047_v49, %v4760_v17 }
 0x68a   : > { %v3006_v48 = vmax.f32 %v3004_v31, %v3005_v42  ;;  %v3827_v36 = vrot.slane %v3826_v13, 1 }
 0x68b   : > { %v4762_v40 = vadd.f32 %v7047_v49, %v4761_v27 }
 0x68c   : > { %v3007_v60 = vrot.slane %v3006_v48, 2  ;;  %v11133_v21 = vadd.f32 %v3827_v36, %v3826_v13 }
 0x68d   : > { %v11129_v63 = vpop.f32.mrf.mxu1  ;;  %v4766_v38 = vsel %vm4765_vm13, %v7047_v49, %v4762_v40 }
 0x68e   : > { %v11124_v24 = vpop.eup %7048  ;;  %v3008_v33 = vmax.f32 %v3006_v48, %v3007_v60  ;;  %7052 = vrcp.f32 %v11133_v21  ;;  %v4771_v1 = vsel %vm4768_vm14, %v4770_v7, %v4766_v38  ;;  %vm4779_vm5 = vweird.f32 %v11133_v21 }
 0x68f   : > { %v11126_v30 = vpop.eup %7050  ;;  %v4772_v47 = vmul.f32 %v11076_v14, %v4771_v1  ;;  %v4773_v50 = vmul.f32 %v11078_v15, %v4771_v1 }
 0x690   : > { %v3829_v4 = vadd.f32 %v11126_v30, %v11124_v24  ;;  %v3009_v59 = vrot.slane %v3008_v33, 1 }
 0x692   : > { %v3830_v61 = vrot.slane %v3829_v4, 4  ;;  %v3010_v44 = vmax.f32 %v3008_v33, %v3009_v59  ;;  %v4785_v33 = vand.u32 2147483648, %v11133_v21  ;;  %v1719_v59 = vpop.f32.mrf.mxu3 }
 0x694   : > { %v3831_v39 = vadd.f32 %v3830_v61, %v3829_v4  ;;  %v3162_v56 = vsub.f32 %v11105_v43, %v3010_v44  ;;  %v3163_v54 = vsub.f32 %v2565_v35, %v3010_v44  ;;  %v12030_v43 = vld [vmem:[#allocation98_spill] sm:$0xff]  ;;  %v5013_v35 = vmul.f32 %v4773_v50, %v1717_v62  ;;  %v7053_v52 = vpop.eup %7052 }
 0x695   : > { %v2571_v34 = vpop.f32.mrf.mxu1  ;;  %v1025_v55 = vadd.f32 %v12030_v43, %v11957_v22  ;;  %v4775_v15 = vmul.f32 %v7053_v52, %v11133_v21  ;;  %vm4780_vm4 = vweird.f32 %v7053_v52  ;;  %v4783_v61 = vand.u32 2147483647, %v11133_v21  ;;  %v12031_v21 = vld [vmem:[#allocation102_spill] sm:$0xff] }
 0x696   : > { %v3832_v25 = vrot.slane %v3831_v39, 2  ;;  %v3406_v26 = vmul.f32 1.442695, %v3162_v56  ;;  %v3408_v18 = vmul.f32 1.442695, %v3163_v54  ;;  %v3011_v58 = vmax.f32 %v11129_v63, %v2571_v34  ;;  %vm4781_vm6 = vmor %vm4779_vm5, %vm4780_vm4 }
 0x697   : > { %v5012_v0 = vmul.f32 %v4772_v47, %v1025_v55  ;;  %v4776_v48 = vsub.f32 1.0, %v4775_v15  ;;  %v4786_v56 = vor.u32 1.1754944e-38, %v4785_v33  ;;  %vm4784_vm7 = vcmp.eq.f32.partialorder %v4783_v61, 8.507059e+37 }
 0x698   : > { %7054 = vpow2.f32 %v3406_v26  ;;  %v3012_v57 = vrot.slane %v3011_v58, 4  ;;  %v3833_v11 = vadd.f32 %v3832_v25, %v3831_v39  ;;  %v1720_v39 = vadd.f32 %v1719_v59, %v8368_v28 }
 0x699   : > { %7056 = vpow2.f32 %v3408_v18  ;;  %v11146_v10 = vadd.f32 %v5013_v35, %v5012_v0  ;;  %v4777_v17 = vmul.f32 %v7053_v52, %v4776_v48  ;;  %v1028_v25 = vadd.f32 %v12031_v21, %v11957_v22 }
 0x69a   : > { %v3013_v31 = vmax.f32 %v3011_v58, %v3012_v57  ;;  %7058 = vrcp.f32 %v7140_v51  ;;  %v3834_v42 = vrot.slane %v3833_v11, 1 }
 0x69b   : > { %v4778_v6 = vadd.f32 %v7053_v52, %v4777_v17  ;;  %v1721_v17 = vpop.f32.mrf.mxu3 }
 0x69c   : > { %v3014_v5 = vrot.slane %v3013_v31, 2  ;;  %v11157_v60 = vadd.f32 %v3834_v42, %v3833_v11  ;;  %v1722_v21 = vadd.f32 %v1721_v17, %v8368_v28 }
 0x69d   : > { %v11153_v20 = vpop.f32.mrf.mxu1  ;;  %v4782_v62 = vsel %vm4781_vm6, %v7053_v52, %v4778_v6 }
 0x69e   : > { %v11148_v3 = vpop.eup %7054  ;;  %v3015_v14 = vmax.f32 %v3013_v31, %v3014_v5  ;;  %7060 = vrcp.f32 %v11157_v60  ;;  %v4787_v26 = vsel %vm4784_vm7, %v4786_v56, %v4782_v62  ;;  %vm4795_vm11 = vweird.f32 %v11157_v60 }
 0x69f   : > { %v11150_v13 = vpop.eup %7056  ;;  %v4788_v38 = vmul.f32 %v11100_v29, %v4787_v26 }
 0x6a0   : > { %v3836_v45 = vadd.f32 %v11150_v13, %v11148_v3  ;;  %v3016_v49 = vrot.slane %v3015_v14, 1  ;;  %v11160_v53 = vpop.eup %7058 }
 0x6a1   : > { %v5836_v27 = vmul.f32 128.0, %v11160_v53  ;;  %v5014_v43 = vmul.f32 %v4788_v38, %v1028_v25  ;;  %vm5840_vm8 = vweird.f32 %v11160_v53 }
 0x6a2   : > { %v3837_v36 = vrot.slane %v3836_v45, 4  ;;  %v3017_v4 = vmax.f32 %v3015_v14, %v3016_v49 }
 0x6a3   : > { %v5837_v58 = vsub.f32 1.0, %v5836_v27 }
 0x6a4   : > { %v3838_v32 = vadd.f32 %v3837_v36, %v3836_v45  ;;  %v3164_v19 = vsub.f32 %v11129_v63, %v3017_v4  ;;  %v3165_v44 = vsub.f32 %v2571_v34, %v3017_v4  ;;  %v4789_v34 = vmul.f32 %v11102_v41, %v4787_v26  ;;  %v7061_v47 = vpop.eup %7060 }
 0x6a5   : > { %v2577_v7 = vpop.f32.mrf.mxu1  ;;  %v5838_v52 = vmul.f32 %v11160_v53, %v5837_v58  ;;  %v4791_v41 = vmul.f32 %v7061_v47, %v11157_v60  ;;  %v4801_v4 = vand.u32 2147483648, %v11157_v60  ;;  %vm4796_vm10 = vweird.f32 %v7061_v47 }
 0x6a6   : > { %v3410_v54 = vmul.f32 1.442695, %v3164_v19  ;;  %v3412_v40 = vmul.f32 1.442695, %v3165_v44  ;;  %v3018_v63 = vmax.f32 %v11153_v20, %v2577_v7  ;;  %v3839_v18 = vrot.slane %v3838_v32, 2  ;;  %v12032_v19 = vld [vmem:[#allocation104_spill] sm:$0xff]  ;;  %vm4797_vm13 = vmor %vm4795_vm11, %vm4796_vm10 }
 0x6a7   : > { %v5015_v55 = vmul.f32 %v4789_v34, %v1720_v39  ;;  %v4792_v48 = vsub.f32 1.0, %v4791_v41  ;;  %v5839_v36 = vadd.f32 %v11160_v53, %v5838_v52  ;;  %v1030_v44 = vadd.f32 %v12032_v19, %v11957_v22  ;;  %v11212_v41 = vpop.xlane.xlu1 %5823 }
 0x6a8   : > { %7062 = vpow2.f32 %v3410_v54  ;;  %v3019_v1 = vrot.slane %v3018_v63, 4  ;;  %v3840_v57 = vadd.f32 %v3839_v18, %v3838_v32  ;;  %v4799_v32 = vand.u32 2147483647, %v11157_v60 }
 0x6a9   : > { %7064 = vpow2.f32 %v3412_v40  ;;  %v5422_v11 = vadd.f32 %v5015_v55, %v5014_v43  ;;  %v4793_v61 = vmul.f32 %v7061_v47, %v4792_v48  ;;  %v11200_v40 = vsel %vm5840_vm8, %v11160_v53, %v5839_v36  ;;  %v5820_v53 = vpop.xlane.xlu0 %5819 }
 0x6aa   : > { %v3020_v50 = vmax.f32 %v3018_v63, %v3019_v1  ;;  %v3841_v5 = vrot.slane %v3840_v57, 1  ;;  %v4802_v25 = vor.u32 1.1754944e-38, %v4801_v4  ;;  %vm4800_vm14 = vcmp.eq.f32.partialorder %v4799_v32, 8.507059e+37 }
 0x6ab   : > { %v5423_v14 = vrot.slane %v5422_v11, 4  ;;  %v4794_v54 = vadd.f32 %v7061_v47, %v4793_v61 }
 0x6ac   : > { %v3021_v0 = vrot.slane %v3020_v50, 2  ;;  %v11193_v6 = vadd.f32 %v3841_v5, %v3840_v57 }
 0x6ad   : > { %v11184_v45 = vpop.f32.mrf.mxu1  ;;  %v5424_v27 = vadd.f32 %v5423_v14, %v5422_v11  ;;  %v4798_v18 = vsel %vm4797_vm13, %v7061_v47, %v4794_v54  ;;  %v5842_v11 = vmul.f32 %v11200_v40, %v5820_v53 }
 0x6ae   : > { %v11173_v35 = vpop.eup %7062  ;;  %v3022_v51 = vmax.f32 %v3020_v50, %v3021_v0  ;;  %7066 = vrcp.f32 %v11193_v6  ;;  %vm4811_vm5 = vweird.f32 %v11193_v6 }
 0x6af   : > { %v11176_v31 = vpop.eup %7064 }
 0x6b0   : > { %v3843_v42 = vadd.f32 %v11176_v31, %v11173_v35  ;;  %v3023_v49 = vrot.slane %v3022_v51, 1 }
 0x6b2   : > { %v3844_v33 = vrot.slane %v3843_v42, 4  ;;  %v3024_v59 = vmax.f32 %v3022_v51, %v3023_v49  ;;  %v11219_v49 = vsub.f32 %v10498_v37, %v5842_v11 }
 0x6b4   : > { %v3166_v39 = vsub.f32 %v11153_v20, %v3024_v59  ;;  %v3167_v56 = vsub.f32 %v2577_v7, %v3024_v59  ;;  %v3845_v62 = vadd.f32 %v3844_v33, %v3843_v42  ;;  %v5425_v20 = vrot.slane %v5424_v27, 2 }
 0x6b5   : > { %v5809_v29 = vpop.f32.mrf.mxu2  ;;  %v4803_v7 = vsel %vm4800_vm14, %v4802_v25, %v4798_v18  ;;  %v2583_v34 = vpop.f32.mrf.mxu1  ;;  %v5858_v37 = vmul.f32 %v11219_v49, %v11219_v49  ;;  %v12033_v18 = vld [vmem:[#allocation109_spill] sm:$0xff] }
 0x6b6   : > { %v11182_v15 = vadd.f32 %v5809_v29, %v10490_v46  ;;  %v3414_v26 = vmul.f32 1.442695, %v3166_v39  ;;  %v3416_v63 = vmul.f32 1.442695, %v3167_v56  ;;  %v4804_v1 = vmul.f32 %v11124_v24, %v4803_v7  ;;  %v7067_v29 = vpop.eup %7066 }
 0x6b7   : > { %v4805_v58 = vmul.f32 %v11126_v30, %v4803_v7  ;;  %v3025_v43 = vmax.f32 %v11184_v45, %v2583_v34  ;;  %v3846_v55 = vrot.slane %v3845_v62, 2  ;;  %v5426_v0 = vadd.f32 %v5425_v20, %v5424_v27 }
 0x6b8   : > { %5827 = vadd.xlane.f32.xlu2 %v11182_v15  ;;  %7068 = vpow2.f32 %v3414_v26  ;;  %v5016_v47 = vmul.f32 %v4804_v1, %v1030_v44  ;;  %v4807_v59 = vmul.f32 %v7067_v29, %v11193_v6  ;;  %v4817_v56 = vand.u32 2147483648, %v11193_v6  ;;  %v1724_v1 = vpop.f32.mrf.mxu3 }
 0x6b9   : > { %7070 = vpow2.f32 %v3416_v63  ;;  %v5017_v50 = vmul.f32 %v4805_v58, %v1722_v21  ;;  %v3026_v57 = vrot.slane %v3025_v43, 4  ;;  %v3847_v24 = vadd.f32 %v3846_v55, %v3845_v62  ;;  %v5826_v58 = vpop.xlane.xlu1 %5825 }
 0x6ba   : > { %v5427_v48 = vrot.slane %v5426_v0, 1  ;;  %v4808_v27 = vsub.f32 1.0, %v4807_v59  ;;  %vm4812_vm4 = vweird.f32 %v7067_v29  ;;  %v4815_v63 = vand.u32 2147483647, %v11193_v6 }
 0x6bb   : > { %v5429_v52 = vadd.f32 %v5017_v50, %v5016_v47  ;;  %v3027_v51 = vmax.f32 %v3025_v43, %v3026_v57  ;;  %v3848_v17 = vrot.slane %v3847_v24, 1  ;;  %v4818_v47 = vor.u32 1.1754944e-38, %v4817_v56  ;;  %vm4813_vm6 = vmor %vm4811_vm5, %vm4812_vm4 }
 0x6bc   : > { %v5428_v39 = vadd.f32 %v5427_v48, %v5426_v0  ;;  %v4809_v25 = vmul.f32 %v7067_v29, %v4808_v27  ;;  %vm4816_vm7 = vcmp.eq.f32.partialorder %v4815_v63, 8.507059e+37 }
 0x6bd   : > { %v5811_v38 = vpop.f32.mrf.mxu2  ;;  %v5430_v30 = vrot.slane %v5429_v52, 4  ;;  %v3028_v42 = vrot.slane %v3027_v51, 2  ;;  %v11224_v61 = vpop.f32.mrf.mxu1  ;;  %v11229_v26 = vadd.f32 %v3848_v17, %v3847_v24 }
 0x6be   : > { %v11205_v60 = vadd.f32 %v5811_v38, %v10490_v46  ;;  %v11214_v5 = vpop.eup %7068  ;;  %v1033_v38 = vadd.f32 %v12033_v18, %v11957_v22  ;;  %v5534_v43 = vpack.c.bf16 %v5428_v39, %v5428_v39  ;;  %v4810_v55 = vadd.f32 %v7067_v29, %v4809_v25 }
 0x6bf   : > { %v11216_v14 = vpop.eup %7070  ;;  %v5431_v33 = vadd.f32 %v5430_v30, %v5429_v52  ;;  %v3029_v4 = vmax.f32 %v3027_v51, %v3028_v42  ;;  %7072 = vrcp.f32 %v11229_v26  ;;  %v1725_v52 = vadd.f32 %v1724_v1, %v8368_v28 }
 0x6c0   : > { %5829 = vadd.xlane.f32.xlu2 %v11205_v60  ;;  %v3850_v36 = vadd.f32 %v11216_v14, %v11214_v5  ;;  %v4814_v51 = vsel %vm4813_vm6, %v7067_v29, %v4810_v55  ;;  %vm4827_vm8 = vweird.f32 %v11229_v26 }
 0x6c1   : > { %v5432_v19 = vrot.slane %v5431_v33, 2  ;;  %v3030_v44 = vrot.slane %v3029_v4, 1  ;;  %v4819_v30 = vsel %vm4816_vm7, %v4818_v47, %v4814_v51 }
 0x6c2   : > { %v3851_v32 = vrot.slane %v3850_v36, 4  ;;  %v4820_v6 = vmul.f32 %v11148_v3, %v4819_v30  ;;  %v4821_v42 = vmul.f32 %v11150_v13, %v4819_v30 }
 0x6c3   : > { %v5433_v62 = vadd.f32 %v5432_v19, %v5431_v33  ;;  %v3031_v21 = vmax.f32 %v3029_v4, %v3030_v44 }
 0x6c4   : > { %v3852_v54 = vadd.f32 %v3851_v32, %v3850_v36  ;;  %v5663_v36 = vunpack.c.l.b16 %v5534_v43  ;;  %v5018_v59 = vmul.f32 %v4820_v6, %v1033_v38  ;;  %v5019_v17 = vmul.f32 %v4821_v42, %v1725_v52  ;;  %v12034_v43 = vld [vmem:[#allocation110_spill] sm:$0xff]  ;;  %v1726_v52 = vpop.f32.mrf.mxu3 }
 0x6c5   : > { %v5434_v20 = vrot.slane %v5433_v62, 1  ;;  %v3168_v7 = vsub.f32 %v11184_v45, %v3031_v21  ;;  %v3169_v53 = vsub.f32 %v2583_v34, %v3031_v21  ;;  %v2589_v45 = vpop.f32.mrf.mxu1  ;;  %v5845_v34 = vmul.f32 %v11200_v40, %v5826_v58  ;;  %v7073_v19 = vpop.eup %7072 }
 0x6c6   : > { %v3853_v50 = vrot.slane %v3852_v54, 2  ;;  %v3032_v48 = vmax.f32 %v11224_v61, %v2589_v45  ;;  %v5436_v27 = vadd.f32 %v5019_v17, %v5018_v59  ;;  %v5388_v38 = vrot.slane %v11047_v2, 4 }
 0x6c7   : > { %v5435_v57 = vadd.f32 %v5434_v20, %v5433_v62  ;;  %v3418_v11 = vmul.f32 1.442695, %v3168_v7  ;;  %v3420_v0 = vmul.f32 1.442695, %v3169_v53  ;;  %v11247_v44 = vsub.f32 %v10655_v16, %v5845_v34 }
 0x6c8   : > { %5866 = vadd.xlane.f32.xlu2 %v5858_v37  ;;  %v3854_v33 = vadd.f32 %v3853_v50, %v3852_v54  ;;  %v3033_v29 = vrot.slane %v3032_v48, 4  ;;  %v5437_v37 = vrot.slane %v5436_v27, 4  ;;  %v4823_v16 = vmul.f32 %v7073_v19, %v11229_v26 }
 0x6c9   : > { %v5535_v24 = vpack.c.bf16 %v5435_v57, %v5435_v57  ;;  %7074 = vpow2.f32 %v3418_v11  ;;  %v5861_v63 = vmul.f32 %v11247_v44, %v11247_v44  ;;  %v1035_v55 = vadd.f32 %v12034_v43, %v11957_v22 }
 0x6ca   : > { %7076 = vpow2.f32 %v3420_v0  ;;  %v3034_v39 = vmax.f32 %v3032_v48, %v3033_v29  ;;  %v3855_v13 = vrot.slane %v3854_v33, 1  ;;  %v5438_v21 = vadd.f32 %v5437_v37, %v5436_v27 }
 0x6cb   : > { %v5664_v4 = vunpack.c.l.b16 %v5535_v24  ;;  %v4824_v58 = vsub.f32 1.0, %v4823_v16  ;;  %v4831_v50 = vand.u32 2147483647, %v11229_v26  ;;  %v4833_v57 = vand.u32 2147483648, %v11229_v26 }
 0x6cc   : > { %v3035_v54 = vrot.slane %v3034_v39, 2  ;;  %v11261_v20 = vadd.f32 %v3855_v13, %v3854_v33  ;;  %v5439_v53 = vrot.slane %v5438_v21, 2  ;;  %v5389_v34 = vadd.f32 %v5388_v38, %v11047_v2 }
 0x6cd   : > { %v11244_v32 = vsel %vm5671_vm15, %v5664_v4, %v5663_v36  ;;  %v11258_v18 = vpop.f32.mrf.mxu1  ;;  %v4825_v51 = vmul.f32 %v7073_v19, %v4824_v58  ;;  %vm4828_vm15 = vweird.f32 %v7073_v19  ;;  %v1727_v33 = vadd.f32 %v1726_v52, %v8368_v28 }
 0x6ce   : > { %v3036_v25 = vmax.f32 %v3034_v39, %v3035_v54  ;;  %v5440_v11 = vadd.f32 %v5439_v53, %v5438_v21  ;;  %7078 = vrcp.f32 %v11261_v20  ;;  %vm4829_vm10 = vmor %vm4827_vm8, %vm4828_vm15  ;;  %vm4832_vm11 = vcmp.eq.f32.partialorder %v4831_v50, 8.507059e+37  ;;  %v12035_v50 = vld [vmem:[#allocation111_spill] sm:$0xff] }
 0x6cf   : > { %v11249_v3 = vpop.eup %7074  ;;  %v4826_v48 = vadd.f32 %v7073_v19, %v4825_v51  ;;  %v4834_v4 = vor.u32 1.1754944e-38, %v4833_v57  ;;  %v5395_v39 = vrot.slane %v11074_v23, 4  ;;  %v1038_v57 = vadd.f32 %v12035_v50, %v11957_v22 }
 0x6d0   : > { %v11251_v56 = vpop.eup %7076  ;;  %v3037_v1 = vrot.slane %v3036_v25, 1  ;;  %5872 = vadd.xlane.f32.xlu2 %v5861_v63  ;;  %v5441_v30 = vrot.slane %v5440_v11, 1 }
 0x6d1   : > { %v3857_v62 = vadd.f32 %v11251_v56, %v11249_v3  ;;  %v4830_v2 = vsel %vm4829_vm10, %v7073_v19, %v4826_v48  ;;  %v11283_v53 = vadd.f32 %v5395_v39, %v11074_v23  ;;  %v12036_v23 = vld [vmem:[#allocation112_spill] sm:$0xff] }
 0x6d2   : > { %v3038_v0 = vmax.f32 %v3036_v25, %v3037_v1  ;;  %v5442_v59 = vadd.f32 %v5441_v30, %v5440_v11  ;;  %v4835_v13 = vsel %vm4832_vm11, %v4834_v4, %v4830_v2  ;;  %v5402_v1 = vrot.slane %v11098_v8, 4  ;;  %v1729_v30 = vpop.f32.mrf.mxu3 }
 0x6d3   : > { %v3858_v7 = vrot.slane %v3857_v62, 4  ;;  %v4836_v37 = vmul.f32 %v11173_v35, %v4835_v13  ;;  %v4837_v54 = vmul.f32 %v11176_v31, %v4835_v13  ;;  %v11299_v11 = vadd.f32 %v12036_v23, %v11957_v22 }
 0x6d4   : > { %v3170_v6 = vsub.f32 %v11224_v61, %v3038_v0  ;;  %v3171_v42 = vsub.f32 %v2589_v45, %v3038_v0  ;;  %v5536_v45 = vpack.c.bf16 %v5442_v59, %v5442_v59  ;;  %v5397_v51 = vrot.slane %v11283_v53, 2 }
 0x6d5   : > { %v3859_v47 = vadd.f32 %v3858_v7, %v3857_v62  ;;  %v11272_v27 = vpop.f32.mrf.mxu1  ;;  %v7079_v62 = vpop.eup %7078  ;;  %v5020_v63 = vmul.f32 %v4836_v37, %v1035_v55  ;;  %v5021_v16 = vmul.f32 %v4837_v54, %v1727_v33  ;;  %v5390_v7 = vrot.slane %v5389_v34, 2 }
 0x6d6   : > { %v3422_v17 = vmul.f32 1.442695, %v3170_v6  ;;  %v3424_v29 = vmul.f32 1.442695, %v3171_v42  ;;  %v3039_v61 = vmax.f32 %v11258_v18, %v11272_v27  ;;  %v5665_v25 = vunpack.c.l.b16 %v5536_v45 }
 0x6d7   : > { %v3860_v24 = vrot.slane %v3859_v47, 2  ;;  %v5443_v31 = vadd.f32 %v5021_v16, %v5020_v63  ;;  %v5409_v55 = vrot.slane %v11122_v12, 4  ;;  %v11302_v52 = vadd.f32 %v5390_v7, %v5389_v34 }
 0x6d8   : > { %7080 = vpow2.f32 %v3422_v17  ;;  %v3040_v19 = vrot.slane %v3039_v61, 4  ;;  %v11287_v35 = vsel %vm5673_vm9, %v5665_v25, %v11244_v32  ;;  %v4839_v32 = vmul.f32 %v7079_v62, %v11261_v20 }
 0x6d9   : > { %v3861_v36 = vadd.f32 %v3860_v24, %v3859_v47  ;;  %7082 = vpow2.f32 %v3424_v29  ;;  %v4847_v6 = vand.u32 2147483647, %v11261_v20  ;;  %v11309_v48 = vadd.f32 %v5402_v1, %v11098_v8 }
 0x6da   : > { %v3041_v38 = vmax.f32 %v3039_v61, %v3040_v19  ;;  %v4840_v33 = vsub.f32 1.0, %v4839_v32  ;;  %v4849_v4 = vand.u32 2147483648, %v11261_v20  ;;  %v11313_v59 = vadd.f32 %v5409_v55, %v11122_v12  ;;  %v1731_v55 = vpop.f32.mrf.mxu3 }
 0x6db   : > { %v3862_v26 = vrot.slane %v3861_v36, 1  ;;  %v5444_v17 = vrot.slane %v5443_v31, 4  ;;  %vm4843_vm9 = vweird.f32 %v11261_v20  ;;  %vm4844_vm13 = vweird.f32 %v7079_v62 }
 0x6dc   : > { %v3042_v58 = vrot.slane %v3041_v38, 2  ;;  %v4841_v39 = vmul.f32 %v7079_v62, %v4840_v33  ;;  %v1730_v8 = vadd.f32 %v1729_v30, %v8368_v28  ;;  %vm11318_vm14 = vcmp.eq.f32.partialorder %v4847_v6, 8.507059e+37  ;;  %vm4845_vm4 = vmor %vm4843_vm9, %vm4844_vm13 }
 0x6dd   : > { %v11279_v21 = vadd.f32 %v3862_v26, %v3861_v36  ;;  %v4850_v54 = vor.u32 1.1754944e-38, %v4849_v4  ;;  %v5392_v6 = vrot.slane %v11302_v52, 1 }
 0x6de   : > { %v11290_v43 = vpop.eup %7080  ;;  %v3043_v0 = vmax.f32 %v3041_v38, %v3042_v58  ;;  %v4842_v37 = vadd.f32 %v7079_v62, %v4841_v39  ;;  %v5445_v58 = vadd.f32 %v5444_v17, %v5443_v31  ;;  %v1732_v31 = vadd.f32 %v1731_v55, %v8368_v28 }
 0x6df   : > { %7084 = vrcp.f32 %v11279_v21  ;;  %v11293_v47 = vpop.eup %7082  ;;  %v4863_v20 = vand.u32 2147483647, %v11279_v21  ;;  %v4865_v63 = vand.u32 2147483648, %v11279_v21  ;;  %vm4859_vm6 = vweird.f32 %v11279_v21 }
 0x6e0   : > { %v3864_v24 = vadd.f32 %v11293_v47, %v11290_v43  ;;  %v3044_v36 = vrot.slane %v3043_v0, 1  ;;  %v4846_v7 = vsel %vm4845_vm4, %v7079_v62, %v4842_v37  ;;  %v5404_v17 = vrot.slane %v11309_v48, 2 }
 0x6e1   : > { %vm4864_vm15 = vcmp.eq.f32.partialorder %v4863_v20, 8.507059e+37  ;;  %v4866_v62 = vor.u32 1.1754944e-38, %v4865_v63  ;;  %v12039_v20 = vld [vmem:[#allocation115_spill] sm:$0xff] }
 0x6e2   : > { %v3865_v34 = vrot.slane %v3864_v24, 4  ;;  %v3045_v2 = vmax.f32 %v3043_v0, %v3044_v36 }
 0x6e4   : > { %v3866_v26 = vadd.f32 %v3865_v34, %v3864_v24  ;;  %v3172_v12 = vsub.f32 %v11258_v18, %v3045_v2  ;;  %v3173_v45 = vsub.f32 %v11272_v27, %v3045_v2  ;;  %v4851_v18 = vsel %vm11318_vm14, %v4850_v54, %v4846_v7 }
 0x6e5   : > { %v7085_v42 = vpop.eup %7084  ;;  %v4852_v27 = vmul.f32 %v11214_v5, %v4851_v18  ;;  %v4853_v50 = vmul.f32 %v11216_v14, %v4851_v18  ;;  %v5398_v5 = vadd.f32 %v5397_v51, %v11283_v53 }
 0x6e6   : > { %v4855_v29 = vmul.f32 %v7085_v42, %v11279_v21  ;;  %v3867_v19 = vrot.slane %v3866_v26, 2  ;;  %v3426_v16 = vmul.f32 1.442695, %v3172_v12  ;;  %v3428_v38 = vmul.f32 1.442695, %v3173_v45 }
 0x6e7   : > { %vm4860_vm5 = vweird.f32 %v7085_v42  ;;  %v5022_v32 = vmul.f32 %v4852_v27, %v1038_v57  ;;  %v5023_v24 = vmul.f32 %v4853_v50, %v1730_v8  ;;  %v5446_v21 = vrot.slane %v5445_v58, 2 }
 0x6e8   : > { %v4856_v61 = vsub.f32 1.0, %v4855_v29  ;;  %v3868_v1 = vadd.f32 %v3867_v19, %v3866_v26  ;;  %7086 = vpow2.f32 %v3426_v16  ;;  %vm4861_vm7 = vmor %vm4859_vm6, %vm4860_vm5  ;;  %v5411_v57 = vrot.slane %v11313_v59, 2 }
 0x6e9   : > { %7088 = vpow2.f32 %v3428_v38  ;;  %v5450_v14 = vadd.f32 %v5023_v24, %v5022_v32  ;;  %v5416_v29 = vrot.slane %v11146_v10, 4  ;;  %v5447_v51 = vadd.f32 %v5446_v21, %v5445_v58 }
 0x6ea   : > { %v4857_v25 = vmul.f32 %v7085_v42, %v4856_v61  ;;  %v3869_v0 = vrot.slane %v3868_v1, 1  ;;  %v5399_v61 = vrot.slane %v5398_v5, 1  ;;  %v5405_v12 = vadd.f32 %v5404_v17, %v11309_v48 }
 0x6eb   : > { %v5451_v2 = vrot.slane %v5450_v14, 4  ;;  %v5412_v45 = vadd.f32 %v5411_v57, %v11313_v59  ;;  %v5417_v37 = vadd.f32 %v5416_v29, %v11146_v10  ;;  %v5448_v16 = vrot.slane %v5447_v51, 1 }
 0x6ec   : > { %v4858_v23 = vadd.f32 %v7085_v42, %v4857_v25  ;;  %v11333_v36 = vadd.f32 %v3869_v0, %v3868_v1  ;;  %v5400_v18 = vadd.f32 %v5399_v61, %v5398_v5  ;;  %v5406_v48 = vrot.slane %v5405_v12, 1 }
 0x6ed   : > { %v5452_v8 = vadd.f32 %v5451_v2, %v5450_v14  ;;  %v5413_v55 = vrot.slane %v5412_v45, 1  ;;  %v5418_v59 = vrot.slane %v5417_v37, 2  ;;  %v5449_v0 = vadd.f32 %v5448_v16, %v5447_v51 }
 0x6ee   : > { %v4862_v30 = vsel %vm4861_vm7, %v7085_v42, %v4858_v23  ;;  %7090 = vrcp.f32 %v11333_v36  ;;  %v11342_v42 = vpop.eup %7086  ;;  %v4881_v32 = vand.u32 2147483648, %v11333_v36  ;;  %v5407_v5 = vadd.f32 %v5406_v48, %v5405_v12 }
 0x6ef   : > { %v4867_v33 = vsel %vm4864_vm15, %v4866_v62, %v4862_v30  ;;  %v11345_v53 = vpop.eup %7088  ;;  %v4879_v62 = vand.u32 2147483647, %v11333_v36  ;;  %v5414_v14 = vadd.f32 %v5413_v55, %v5412_v45  ;;  %vm4875_vm10 = vweird.f32 %v11333_v36 }
 0x6f0   : > { %v4868_v4 = vmul.f32 %v11249_v3, %v4867_v33  ;;  %v4869_v34 = vmul.f32 %v11251_v56, %v4867_v33  ;;  %v5393_v3 = vadd.f32 %v5392_v6, %v11302_v52  ;;  %v3871_v56 = vadd.f32 %v11345_v53, %v11342_v42  ;;  %v1734_v6 = vpop.f32.mrf.mxu3 }
 0x6f1   : > { %v1043_v52 = vadd.f32 %v12039_v20, %v11957_v22  ;;  %v5530_v33 = vpack.c.bf16 %v5400_v18, %v5400_v18  ;;  %v5537_v29 = vpack.c.bf16 %v5449_v0, %v5449_v0  ;;  %v1735_v2 = vadd.f32 %v1734_v6, %v8368_v28 }
 0x6f2   : > { %v5024_v39 = vmul.f32 %v4868_v4, %v11299_v11  ;;  %v5025_v26 = vmul.f32 %v4869_v34, %v1732_v31  ;;  %v3872_v54 = vrot.slane %v3871_v56, 4  ;;  %v5453_v11 = vrot.slane %v5452_v8, 2 }
 0x6f3   : > { %v5529_v63 = vpack.c.bf16 %v5393_v3, %v5393_v3  ;;  %v5419_v4 = vadd.f32 %v5418_v59, %v5417_v37  ;;  %vm4880_vm9 = vcmp.eq.f32.partialorder %v4879_v62, 8.507059e+37 }
 0x6f4   : > { %v5457_v13 = vadd.f32 %v5025_v26, %v5024_v39  ;;  %v7091_v25 = vpop.eup %7090  ;;  %v3873_v38 = vadd.f32 %v3872_v54, %v3871_v56  ;;  %v5454_v7 = vadd.f32 %v5453_v11, %v5452_v8  ;;  %v4882_v39 = vor.u32 1.1754944e-38, %v4881_v32 }
 0x6f5   : > { %v4871_v58 = vmul.f32 %v7091_v25, %v11333_v36  ;;  %vm4876_vm8 = vweird.f32 %v7091_v25  ;;  %v5531_v8 = vpack.c.bf16 %v5407_v5, %v5407_v5  ;;  %v5420_v61 = vrot.slane %v5419_v4, 1 }
 0x6f6   : > { %v5458_v19 = vrot.slane %v5457_v13, 4  ;;  %v3874_v27 = vrot.slane %v3873_v38, 2  ;;  %v5455_v10 = vrot.slane %v5454_v7, 1  ;;  %vm4877_vm11 = vmor %vm4875_vm10, %vm4876_vm8  ;;  %v5658_v54 = vunpack.c.l.b16 %v5529_v63 }
 0x6f7   : > { %v4872_v23 = vsub.f32 1.0, %v4871_v58  ;;  %v5666_v11 = vunpack.c.l.b16 %v5537_v29 }
 0x6f8   : > { %v5459_v1 = vadd.f32 %v5458_v19, %v5457_v13  ;;  %v3875_v24 = vadd.f32 %v3874_v27, %v3873_v38  ;;  %v5456_v31 = vadd.f32 %v5455_v10, %v5454_v7  ;;  %v5532_v13 = vpack.c.bf16 %v5414_v14, %v5414_v14  ;;  %v1736_v5 = vpop.f32.mrf.mxu3 }
 0x6f9   : > { %v4873_v21 = vmul.f32 %v7091_v25, %v4872_v23  ;;  %v5659_v19 = vunpack.c.l.b16 %v5530_v33  ;;  %v5660_v7 = vunpack.c.l.b16 %v5531_v8  ;;  %v5722_v55 = vsel %vm5675_vm12, %v5658_v54, %v11050_v9 }
 0x6fa   : > { %v5460_v50 = vrot.slane %v5459_v1, 2  ;;  %v3876_v34 = vrot.slane %v3875_v24, 1  ;;  %v5538_v3 = vpack.c.bf16 %v5456_v31, %v5456_v31  ;;  %v5661_v58 = vunpack.c.l.b16 %v5532_v13 }
 0x6fb   : > { %v4874_v57 = vadd.f32 %v7091_v25, %v4873_v21  ;;  %v5723_v63 = vsel %vm5677_vm0, %v5659_v19, %v5722_v55 }
 0x6fc   : > { %v5461_v30 = vadd.f32 %v5460_v50, %v5459_v1  ;;  %v3877_v26 = vadd.f32 %v3876_v34, %v3875_v24  ;;  %v5667_v20 = vunpack.c.l.b16 %v5538_v3  ;;  %v5421_v1 = vadd.f32 %v5420_v61, %v5419_v4 }
 0x6fd   : > { %v4878_v56 = vsel %vm4877_vm11, %v7091_v25, %v4874_v57  ;;  %v5724_v50 = vsel %vm5679_vm1, %v5660_v7, %v5723_v63  ;;  %v12040_v57 = vld [vmem:[#allocation117_spill] sm:$0xff]  ;;  %v7122_v63 = vld [vmem:[%s11487_s7] sm:$0xff] }
 0x6fe   : > { %v5462_v17 = vrot.slane %v5461_v30, 1  ;;  %v4883_v12 = vsel %vm4880_vm9, %v4882_v39, %v4878_v56  ;;  %7092 = vrcp.f32 %v3877_v26  ;;  %v5533_v48 = vpack.c.bf16 %v5421_v1, %v5421_v1 }
 0x6ff   : > { %v4884_v37 = vmul.f32 %v11290_v43, %v4883_v12  ;;  %v4885_v36 = vmul.f32 %v11293_v47, %v4883_v12  ;;  %v5729_v43 = vsel %vm5675_vm12, %v5666_v11, %v11287_v35  ;;  %v5725_v0 = vsel %vm5681_vm2, %v5661_v58, %v5724_v50 }
 0x700   : > { %v5463_v51 = vadd.f32 %v5462_v17, %v5461_v30  ;;  %v5730_v27 = vsel %vm5677_vm0, %v5667_v20, %v5729_v43  ;;  %v5662_v10 = vunpack.c.l.b16 %v5533_v48  ;;  %v4897_v35 = vand.u32 2147483648, %v3877_v26 }
 0x701   : > { %v5026_v16 = vmul.f32 %v4884_v37, %v1043_v52  ;;  %v5027_v38 = vmul.f32 %v4885_v36, %v1735_v2  ;;  %v4895_v30 = vand.u32 2147483647, %v3877_v26  ;;  %vm4891_vm0 = vweird.f32 %v3877_v26 }
 0x702   : > { %v5539_v45 = vpack.c.bf16 %v5463_v51, %v5463_v51  ;;  %v5726_v9 = vsel %vm5683_vm3, %v5662_v10, %v5725_v0  ;;  %v4898_v14 = vor.u32 1.1754944e-38, %v4897_v35  ;;  %v1045_v29 = vadd.f32 %v12040_v57, %v11957_v22  ;;  %v7123_v10 = vld [vmem:[%s11487_s7 + $0x8] sm:$0xff] }
 0x703   : > { %v5464_v18 = vadd.f32 %v5027_v38, %v5026_v16  ;;  %vm4896_vm14 = vcmp.eq.f32.partialorder %v4895_v30, 8.507059e+37  ;;  %v1737_v2 = vadd.f32 %v1736_v5, %v8368_v28  ;;  %v11390_v50 = vperm.slane %v7123_v10, 3 }
 0x704   : > { %v5668_v25 = vunpack.c.l.b16 %v5539_v45  ;;  %v7093_v59 = vpop.eup %7092 }
 0x705   : > { %v5465_v47 = vrot.slane %v5464_v18, 4  ;;  %v4887_v52 = vmul.f32 %v7093_v59, %v3877_v26  ;;  %vm4892_vm12 = vweird.f32 %v7093_v59 }
 0x706   : > { %v5731_v62 = vsel %vm5679_vm1, %v5668_v25, %v5730_v27  ;;  %vm4893_vm13 = vmor %vm4891_vm0, %vm4892_vm12  ;;  %v11385_v27 = vperm.slane %v7122_v63, 3 }
 0x707   : > { %v5466_v23 = vadd.f32 %v5465_v47, %v5464_v18  ;;  %v4888_v32 = vsub.f32 1.0, %v4887_v52 }
 0x709   : > { %v5467_v24 = vrot.slane %v5466_v23, 2  ;;  %v4889_v31 = vmul.f32 %v7093_v59, %v4888_v32 }
 0x70b   : > { %v5468_v6 = vadd.f32 %v5467_v24, %v5466_v23  ;;  %v4890_v21 = vadd.f32 %v7093_v59, %v4889_v31  ;;  %v7124_v24 = vld [vmem:[%s7673_s21] sm:$0xff] }
 0x70d   : > { %v5469_v33 = vrot.slane %v5468_v6, 1  ;;  %v4894_v4 = vsel %vm4893_vm13, %v7093_v59, %v4890_v21 }
 0x70e   : > { %v4899_v17 = vsel %vm4896_vm14, %v4898_v14, %v4894_v4  ;;  %v7125_v4 = vld [vmem:[%s7673_s21 + $0x18] sm:$0xff] }
 0x70f   : > { %v5470_v34 = vadd.f32 %v5469_v33, %v5468_v6  ;;  %v4900_v39 = vmul.f32 %v11342_v42, %v4899_v17  ;;  %v4901_v3 = vmul.f32 %v11345_v53, %v4899_v17  ;;  %v5822_v17 = vpop.xlane.xlu0 %5821 }
 0x711   : > { %v5540_v51 = vpack.c.bf16 %v5470_v34, %v5470_v34  ;;  %v5028_v56 = vmul.f32 %v4900_v39, %v1045_v29  ;;  %v5029_v26 = vmul.f32 %v4901_v3, %v1737_v2  ;;  %v5843_v29 = vmul.f32 %v11200_v40, %v5822_v17  ;;  %v12041_v39 = vld [vmem:[#allocation125_spill] sm:$0xff] }
 0x713   : > { %v5669_v8 = vunpack.c.l.b16 %v5540_v51  ;;  %v5471_v13 = vadd.f32 %v5029_v26, %v5028_v56  ;;  %v5851_v3 = vsub.f32 %v12041_v39, %v5843_v29 }
 0x715   : > { %v5732_v61 = vsel %vm5681_vm2, %v5669_v8, %v5731_v62  ;;  %v5472_v12 = vrot.slane %v5471_v13, 4  ;;  %v5859_v8 = vmul.f32 %v5851_v3, %v5851_v3 }
 0x717   : > { %v5473_v45 = vadd.f32 %v5472_v12, %v5471_v13  ;;  %v12042_v13 = vld [vmem:[#allocation18_spill] sm:$0xff] }
 0x719   : > { %v5474_v37 = vrot.slane %v5473_v45, 2 }
 0x71b   : > { %v5475_v36 = vadd.f32 %v5474_v37, %v5473_v45 }
 0x71d   : > { %v5476_v54 = vrot.slane %v5475_v36, 1 }
 0x71f   : > { %v5477_v22 = vadd.f32 %v5476_v54, %v5475_v36 }
 0x721   : > { %v5541_v19 = vpack.c.bf16 %v5477_v22, %v5477_v22 }
 0x723   : > { %v5670_v28 = vunpack.c.l.b16 %v5541_v19 }
 0x725   : > { %v5733_v42 = vsel %vm5683_vm3, %v5670_v28, %v5732_v61 }
 0x726   : > { %v5737_v20 = vpack.c.b16 %v5733_v42, %v5726_v9 }
 0x728   : > { %5813 = vmatmul.bf16.gmra.mxu2 %v5737_v20 }
 0x72b   : > { %v5828_v11 = vpop.xlane.xlu2 %5827 }
 0x72c   : > { %v5846_v56 = vmul.f32 %v11200_v40, %v5828_v11 }
 0x72e   : > { %v11420_v12 = vsub.f32 %v11182_v15, %v5846_v56 }
 0x733   : > { %v5830_v53 = vpop.xlane.xlu2 %5829 }
 0x734   : > { %v5847_v45 = vmul.f32 %v11200_v40, %v5830_v53 }
 0x73b   : > { %v5867_v16 = vpop.xlane.xlu2 %5866 }
 0x73c   : > { %v5882_v38 = vmul.f32 %v5867_v16, %v11200_v40 }
 0x73e   : > { %v5890_v7 = vadd.f32 1e-06, %v5882_v38 }
 0x740   : > { %7094 = vrsqrt.f32 %v5890_v7  ;;  %vm5904_vm2 = vweird.f32 %v5890_v7 }
 0x743   : > { %v5873_v48 = vpop.xlane.xlu2 %5872 }
 0x744   : > { %v5885_v55 = vmul.f32 %v5873_v48, %v11200_v40 }
 0x746   : > { %v7095_v1 = vpop.eup %7094  ;;  %v5893_v59 = vadd.f32 1e-06, %v5885_v55 }
 0x747   : > { %v5899_v58 = vmul.f32 %v7095_v1, %v5890_v7  ;;  %vm5905_vm1 = vweird.f32 %v7095_v1 }
 0x748   : > { %vm5906_vm3 = vmor %vm5904_vm2, %vm5905_vm1  ;;  %7096 = vrsqrt.f32 %v5893_v59  ;;  %vm5934_vm5 = vweird.f32 %v5893_v59 }
 0x749   : > { %v5900_v25 = vmul.f32 %v7095_v1, %v5899_v58 }
 0x74b   : > { %v5901_v18 = vmul.f32 0.5, %v5900_v25 }
 0x74d   : > { %v5902_v43 = vsub.f32 1.5, %v5901_v18 }
 0x74e   : > { %v7097_v62 = vpop.eup %7096 }
 0x74f   : > { %v5903_v47 = vmul.f32 %v7095_v1, %v5902_v43  ;;  %v5929_v9 = vmul.f32 %v7097_v62, %v5893_v59  ;;  %vm5935_vm4 = vweird.f32 %v7097_v62 }
 0x750   : > { %vm5936_vm6 = vmor %vm5934_vm5, %vm5935_vm4 }
 0x751   : > { %v5907_v52 = vsel %vm5906_vm3, %v7095_v1, %v5903_v47  ;;  %v5930_v31 = vmul.f32 %v7097_v62, %v5929_v9 }
 0x752   : > { %v5978_v23 = vmul.f32 %v5907_v52, %v11219_v49 }
 0x753   : > { %v5931_v49 = vmul.f32 0.5, %v5930_v31 }
 0x754   : > { %v5987_v0 = vmul.f32 %v11385_v27, %v5978_v23 }
 0x755   : > { %v5932_v30 = vsub.f32 1.5, %v5931_v49 }
 0x756   : > { %v5996_v32 = vadd.f32 %v11390_v50, %v5987_v0 }
 0x757   : > { %v5933_v6 = vmul.f32 %v7097_v62, %v5932_v30 }
 0x758   : > { %v6004_v35 = vadd.f32 %v7124_v24, %v5996_v32 }
 0x759   : > { %v5937_v21 = vsel %vm5936_vm6, %v7097_v62, %v5933_v6 }
 0x75a   : > { %6012 = vst [vmem:[%s11400_s10] sm:$0xff] %v6004_v35  ;;  %v5981_v33 = vmul.f32 %v5937_v21, %v11247_v44  ;;  %v5844_v44 = vmul.f32 %v11200_v40, %v11212_v41  ;;  %v5862_v41 = vmul.f32 %v11420_v12, %v11420_v12 }
 0x75c   : > { %v5990_v5 = vmul.f32 %v11385_v27, %v5981_v33  ;;  %v11417_v61 = vsub.f32 %v12042_v13, %v5844_v44 }
 0x75e   : > { %v5999_v14 = vadd.f32 %v11390_v50, %v5990_v5  ;;  %v5860_v37 = vmul.f32 %v11417_v61, %v11417_v61 }
 0x760   : > { %v6007_v34 = vadd.f32 %v7125_v4, %v5999_v14 }
 0x762   : > { %6015 = vst [vmem:[%s11400_s10 + $0x18] sm:$0xff] %v6007_v34 }
 0x7ab   : > { %v5814_v57 = vpop.f32.mrf.mxu2 }
 0x7ac   : > { %v5815_v2 = vadd.f32 %v5814_v57, %v10490_v46  ;;  %v7126_v57 = vld [vmem:[%s7673_s21 + $0x8] sm:$0xff] }
 0x7ae   : > { %5831 = vadd.xlane.f32.xlu0 %v5815_v2 }
 0x7b3   : > { %v5816_v51 = vpop.f32.mrf.mxu2 }
 0x7b4   : > { %v5817_v26 = vadd.f32 %v5816_v51, %v10490_v46  ;;  %v11428_v46 = vsub.f32 %v11205_v60, %v5847_v45 }
 0x7b6   : > { %5833 = vadd.xlane.f32.xlu1 %v5817_v26  ;;  %5868 = vadd.xlane.f32.xlu0 %v5859_v8  ;;  %v5863_v36 = vmul.f32 %v11428_v46, %v11428_v46 }
 0x7be   : > { %5870 = vadd.xlane.f32.xlu1 %v5860_v37  ;;  %5874 = vadd.xlane.f32.xlu0 %v5862_v41 }
 0x7c6   : > { %5876 = vadd.xlane.f32.xlu1 %v5863_v36 }
 0x821   : > { %v5832_v54 = vpop.xlane.xlu0 %5831 }
 0x822   : > { %v5848_v15 = vmul.f32 %v11200_v40, %v5832_v54 }
 0x824   : > { %v11433_v11 = vsub.f32 %v5815_v2, %v5848_v15 }
 0x826   : > { %v5864_v22 = vmul.f32 %v11433_v11, %v11433_v11 }
 0x828   : > { %5878 = vadd.xlane.f32.xlu2 %v5864_v22 }
 0x829   : > { %v5834_v19 = vpop.xlane.xlu1 %5833  ;;  %v5869_v28 = vpop.xlane.xlu0 %5868 }
 0x82a   : > { %v5849_v42 = vmul.f32 %v11200_v40, %v5834_v19  ;;  %v5883_v60 = vmul.f32 %v5869_v28, %v11200_v40 }
 0x82c   : > { %v11439_v20 = vsub.f32 %v5817_v26, %v5849_v42  ;;  %v5891_v53 = vadd.f32 1e-06, %v5883_v60  ;;  %v7129_v60 = vld [vmem:[%s7673_s21 + $0x28] sm:$0xff] }
 0x82e   : > { %7098 = vrsqrt.f32 %v5891_v53  ;;  %v5865_v16 = vmul.f32 %v11439_v20, %v11439_v20  ;;  %vm5914_vm15 = vweird.f32 %v5891_v53 }
 0x830   : > { %5880 = vadd.xlane.f32.xlu0 %v5865_v16 }
 0x831   : > { %v5871_v38 = vpop.xlane.xlu1 %5870  ;;  %v5875_v7 = vpop.xlane.xlu0 %5874 }
 0x832   : > { %v5884_v1 = vmul.f32 %v5871_v38, %v11200_v40  ;;  %v5886_v58 = vmul.f32 %v5875_v7, %v11200_v40 }
 0x834   : > { %v7099_v25 = vpop.eup %7098  ;;  %v5892_v18 = vadd.f32 1e-06, %v5884_v1  ;;  %v5894_v48 = vadd.f32 1e-06, %v5886_v58 }
 0x835   : > { %v5909_v55 = vmul.f32 %v7099_v25, %v5891_v53  ;;  %vm5915_vm7 = vweird.f32 %v7099_v25 }
 0x836   : > { %7100 = vrsqrt.f32 %v5892_v18  ;;  %vm5916_vm8 = vmor %vm5914_vm15, %vm5915_vm7  ;;  %vm5924_vm9 = vweird.f32 %v5892_v18  ;;  %vm5944_vm0 = vweird.f32 %v5894_v48 }
 0x837   : > { %v5910_v43 = vmul.f32 %v7099_v25, %v5909_v55  ;;  %7102 = vrsqrt.f32 %v5894_v48 }
 0x839   : > { %v5911_v59 = vmul.f32 0.5, %v5910_v43  ;;  %v5877_v47 = vpop.xlane.xlu1 %5876 }
 0x83a   : > { %v5887_v63 = vmul.f32 %v5877_v47, %v11200_v40 }
 0x83b   : > { %v5912_v52 = vsub.f32 1.5, %v5911_v59 }
 0x83c   : > { %v7101_v10 = vpop.eup %7100  ;;  %v5895_v23 = vadd.f32 1e-06, %v5887_v63 }
 0x83d   : > { %v7103_v0 = vpop.eup %7102  ;;  %v5913_v62 = vmul.f32 %v7099_v25, %v5912_v52  ;;  %v5919_v32 = vmul.f32 %v7101_v10, %v5892_v18  ;;  %vm5925_vm10 = vweird.f32 %v7101_v10 }
 0x83e   : > { %v5939_v9 = vmul.f32 %v7103_v0, %v5894_v48  ;;  %7104 = vrsqrt.f32 %v5895_v23  ;;  %vm5945_vm11 = vweird.f32 %v7103_v0  ;;  %vm5926_vm12 = vmor %vm5924_vm9, %vm5925_vm10  ;;  %vm5954_vm1 = vweird.f32 %v5895_v23 }
 0x83f   : > { %v5917_v24 = vsel %vm5916_vm8, %v7099_v25, %v5913_v62  ;;  %v5920_v35 = vmul.f32 %v7101_v10, %v5919_v32  ;;  %vm5946_vm13 = vmor %vm5944_vm0, %vm5945_vm11 }
 0x840   : > { %v5979_v31 = vmul.f32 %v5917_v24, %v5851_v3  ;;  %v5940_v49 = vmul.f32 %v7103_v0, %v5939_v9  ;;  %v7130_v24 = vld [vmem:[%s7673_s21 + $0x30] sm:$0xff] }
 0x841   : > { %v5921_v30 = vmul.f32 0.5, %v5920_v35 }
 0x842   : > { %v5988_v6 = vmul.f32 %v11385_v27, %v5979_v31  ;;  %v5941_v21 = vmul.f32 0.5, %v5940_v49 }
 0x843   : > { %v5922_v33 = vsub.f32 1.5, %v5921_v30 }
 0x844   : > { %v7105_v5 = vpop.eup %7104  ;;  %v5997_v14 = vadd.f32 %v11390_v50, %v5988_v6  ;;  %v5942_v4 = vsub.f32 1.5, %v5941_v21  ;;  %v7131_v6 = vld [vmem:[%s7673_s21 + $0x38] sm:$0xff] }
 0x845   : > { %v5923_v34 = vmul.f32 %v7101_v10, %v5922_v33  ;;  %v5949_v17 = vmul.f32 %v7105_v5, %v5895_v23  ;;  %vm5955_vm14 = vweird.f32 %v7105_v5 }
 0x846   : > { %v6005_v29 = vadd.f32 %v7126_v57, %v5997_v14  ;;  %v5943_v2 = vmul.f32 %v7103_v0, %v5942_v4  ;;  %vm5956_vm2 = vmor %vm5954_vm1, %vm5955_vm14 }
 0x847   : > { %v5927_v39 = vsel %vm5926_vm12, %v7101_v10, %v5923_v34  ;;  %v5950_v3 = vmul.f32 %v7105_v5, %v5949_v17 }
 0x848   : > { %6013 = vst [vmem:[%s11400_s10 + $0x8] sm:$0xff] %v6005_v29  ;;  %v5980_v51 = vmul.f32 %v5927_v39, %v11417_v61  ;;  %v5947_v44 = vsel %vm5946_vm13, %v7103_v0, %v5943_v2  ;;  %v7127_v61 = vld [vmem:[%s7673_s21 + $0x10] sm:$0xff] }
 0x849   : > { %v5982_v56 = vmul.f32 %v5947_v44, %v11420_v12  ;;  %v5951_v26 = vmul.f32 0.5, %v5950_v3  ;;  %v7128_v12 = vld [vmem:[%s7673_s21 + $0x20] sm:$0xff] }
 0x84a   : > { %v5989_v8 = vmul.f32 %v11385_v27, %v5980_v51 }
 0x84b   : > { %v5991_v13 = vmul.f32 %v11385_v27, %v5982_v56  ;;  %v5952_v45 = vsub.f32 1.5, %v5951_v26 }
 0x84c   : > { %v5998_v37 = vadd.f32 %v11390_v50, %v5989_v8 }
 0x84d   : > { %v6000_v41 = vadd.f32 %v11390_v50, %v5991_v13  ;;  %v5953_v36 = vmul.f32 %v7105_v5, %v5952_v45 }
 0x84e   : > { %v6006_v54 = vadd.f32 %v7127_v61, %v5998_v37 }
 0x84f   : > { %v6008_v15 = vadd.f32 %v7128_v12, %v6000_v41  ;;  %v5957_v22 = vsel %vm5956_vm2, %v7105_v5, %v5953_v36 }
 0x850   : > { %6014 = vst [vmem:[%s11400_s10 + $0x10] sm:$0xff] %v6006_v54  ;;  %v5983_v19 = vmul.f32 %v5957_v22, %v11428_v46 }
 0x851   : > { %6016 = vst [vmem:[%s11400_s10 + $0x20] sm:$0xff] %v6008_v15 }
 0x852   : > { %v5992_v28 = vmul.f32 %v11385_v27, %v5983_v19 }
 0x854   : > { %v6001_v42 = vadd.f32 %v11390_v50, %v5992_v28 }
 0x856   : > { %v6009_v53 = vadd.f32 %v7129_v60, %v6001_v42 }
 0x858   : > { %6017 = vst [vmem:[%s11400_s10 + $0x28] sm:$0xff] %v6009_v53 }
 0x89b   : > { %v5879_v16 = vpop.xlane.xlu2 %5878 }
 0x89c   : > { %v5888_v38 = vmul.f32 %v5879_v16, %v11200_v40 }
 0x89e   : > { %v5896_v7 = vadd.f32 1e-06, %v5888_v38 }
 0x8a0   : > { %7106 = vrsqrt.f32 %v5896_v7  ;;  %vm5964_vm4 = vweird.f32 %v5896_v7 }
 0x8a3   : > { %v5881_v1 = vpop.xlane.xlu0 %5880 }
 0x8a4   : > { %v5889_v58 = vmul.f32 %v5881_v1, %v11200_v40 }
 0x8a6   : > { %v7107_v25 = vpop.eup %7106  ;;  %v5897_v18 = vadd.f32 1e-06, %v5889_v58 }
 0x8a7   : > { %v5959_v48 = vmul.f32 %v7107_v25, %v5896_v7  ;;  %vm5965_vm3 = vweird.f32 %v7107_v25 }
 0x8a8   : > { %7108 = vrsqrt.f32 %v5897_v18  ;;  %vm5966_vm5 = vmor %vm5964_vm4, %vm5965_vm3  ;;  %vm5974_vm7 = vweird.f32 %v5897_v18 }
 0x8a9   : > { %v5960_v46 = vmul.f32 %v7107_v25, %v5959_v48 }
 0x8ab   : > { %v5961_v55 = vmul.f32 0.5, %v5960_v46 }
 0x8ad   : > { %v5962_v43 = vsub.f32 1.5, %v5961_v55 }
 0x8ae   : > { %v7109_v59 = vpop.eup %7108 }
 0x8af   : > { %v5963_v47 = vmul.f32 %v7107_v25, %v5962_v43  ;;  %v5969_v63 = vmul.f32 %v7109_v59, %v5897_v18  ;;  %vm5975_vm6 = vweird.f32 %v7109_v59 }
 0x8b0   : > { %vm5976_vm15 = vmor %vm5974_vm7, %vm5975_vm6 }
 0x8b1   : > { %v5967_v52 = vsel %vm5966_vm5, %v7107_v25, %v5963_v47  ;;  %v5970_v10 = vmul.f32 %v7109_v59, %v5969_v63 }
 0x8b2   : > { %v5984_v23 = vmul.f32 %v5967_v52, %v11433_v11 }
 0x8b3   : > { %v5971_v40 = vmul.f32 0.5, %v5970_v10 }
 0x8b4   : > { %v5993_v0 = vmul.f32 %v11385_v27, %v5984_v23 }
 0x8b5   : > { %v5972_v62 = vsub.f32 1.5, %v5971_v40 }
 0x8b6   : > { %v6002_v32 = vadd.f32 %v11390_v50, %v5993_v0 }
 0x8b7   : > { %v5973_v9 = vmul.f32 %v7109_v59, %v5972_v62 }
 0x8b8   : > { %v6010_v35 = vadd.f32 %v7130_v24, %v6002_v32 }
 0x8b9   : > { %v5977_v31 = vsel %vm5976_vm15, %v7109_v59, %v5973_v9 }
 0x8ba   : > { %6018 = vst [vmem:[%s11400_s10 + $0x30] sm:$0xff] %v6010_v35  ;;  %v5985_v49 = vmul.f32 %v5977_v31, %v11439_v20 }
 0x8bc   : > { %v5994_v11 = vmul.f32 %v11385_v27, %v5985_v49 }
 0x8be   : > { %v6003_v30 = vadd.f32 %v11390_v50, %v5994_v11 }
 0x8c0   : > { %v6011_v21 = vadd.f32 %v7131_v6, %v6003_v30 }
 0x8c2   : > { %6019 = vst [vmem:[%s11400_s10 + $0x38] sm:$0xff] %v6011_v21 }
 0x8c3 PF: > { %s18_s27 = sadd.s32 1, %s7138_s27  }
 0x8c4   : > { %p15_p5 = scmp.ge.s32.totalorder %s18_s27, 6  }
 0x8c6   :  { %17 = sbr.rel (!%p15_p5) target bundleno = 1 (0x1), region = 88 }

</bundles_post_ra>
